<compile_context>
chip_gen: v7x
topology: tpu7x:2x2x1
jax: 0.10.0
libtpu: 0.0.40
codegen_flags: <defaults>
</compile_context>

<pallas_src>
import functools

import jax
import jax.numpy as jnp
from jax.experimental import pallas as pl
from jax.experimental.pallas import tpu as pltpu


# ----------------------------------------------------------------------------- kernel
def _gaussian_attr_kernel(x_ref, w0_ref, b1_ref, wmod_ref, alpha_ref, beta_ref,
                          whead_ref, bhead_ref, nl_ref, out_ref, *,
                          layers_per_key, n_shared_mod, branch_depth, slope):
    # x_ref:     (T, in_dim+n_classes)  f32      w0_ref: (in_dim+n_classes, h) bf16
    # b1_ref:    (1, h) f32                      wmod_ref: (L_mod, h, h) bf16
    # alpha_ref: (L_mod, h, 1) f32               beta_ref: (L_mod, h) f32
    # whead_ref: (n_heads*h, 3*n_heads) bf16 (block-diagonal)
    # bhead_ref: (1, 3*n_heads) f32              nl_ref: (3, 3*n_heads) f32 [fac, off, is_scale]
    # out_ref:   (T, 3*n_heads) f32
    h = wmod_ref.shape[-1]
    n_heads = whead_ref.shape[-1] // 3

    def leaky(v):
        return jnp.where(v > 0, v, slope * v)

    def fold(li):
        # y = (x*alpha) @ W^T  ==  x @ (alpha[:,None] * W^T): fold alpha into the weight.
        return (alpha_ref[li] * wmod_ref[li].astype(jnp.float32)).astype(jnp.bfloat16)

    def beta_row(li):
        return beta_ref[li:li + 1, :]

    # merged fc_1 + fc_m_a
    f = jnp.dot(x_ref[...].astype(jnp.bfloat16), w0_ref[...],
                preferred_element_type=jnp.float32) + b1_ref[...]
    f = leaky(f)

    li = 0
    # shared ModLinear layers
    for _ in range(n_shared_mod):
        f = jnp.dot(f.astype(jnp.bfloat16), fold(li),
                    preferred_element_type=jnp.float32) + beta_row(li)
        f = leaky(f)
        li += 1

    if branch_depth > 0:
        # all factor branches have the same depth -> fuse them into wide matmuls
        w_cat = jnp.concatenate([fold(li + hi * branch_depth) for hi in range(n_heads)],
                                axis=1)                                   # (h, n_heads*h) bf16
        beta_cat = jnp.concatenate([beta_row(li + hi * branch_depth) for hi in range(n_heads)],
                                   axis=1)                                # (1, n_heads*h)
        g = leaky(jnp.dot(f.astype(jnp.bfloat16), w_cat,
                          preferred_element_type=jnp.float32) + beta_cat)  # (T, n_heads*h)
        for d in range(1, branch_depth):
            parts = []
            for hi in range(n_heads):
                lj = li + hi * branch_depth + d
                p = jnp.dot(g[:, hi * h:(hi + 1) * h].astype(jnp.bfloat16), fold(lj),
                            preferred_element_type=jnp.float32) + beta_row(lj)
                parts.append(leaky(p))
            g = jnp.concatenate(parts, axis=1)
        # single block-diagonal head matmul -> (T, 3*n_heads)
        o = jnp.dot(g.astype(jnp.bfloat16), whead_ref[...],
                    preferred_element_type=jnp.float32) + bhead_ref[...]
    else:
        # non-uniform per-factor depths: per-branch fallback (not exercised in the demo)
        outs = []
        for hi in range(n_heads):
            g = f
            for _ in range(layers_per_key[hi]):
                g = jnp.dot(g.astype(jnp.bfloat16), fold(li),
                            preferred_element_type=jnp.float32) + beta_row(li)
                g = leaky(g)
                li += 1
            wh = whead_ref[hi * h:(hi + 1) * h, hi * 3:(hi + 1) * 3]
            outs.append(jnp.dot(g.astype(jnp.bfloat16), wh,
                                preferred_element_type=jnp.float32))
        o = jnp.concatenate(outs, axis=1) + bhead_ref[...]

    # vectorized per-factor nonlinearities + single lane-dense store
    fac_c = nl_ref[0:1, :]
    off_c = nl_ref[1:2, :]
    is_scale = nl_ref[2:3, :] > 0.5
    o_sig = jax.nn.sigmoid(o) * fac_c + off_c      # xyz/rgb: (sig-0.5)*f ; opacity: sig*f+(1-f)
    o_clp = jnp.clip(o, -1.0, 1.0) * fac_c + off_c  # scale: 1 + clip*f
    out_ref[...] = jnp.where(is_scale, o_clp, o_sig)


# ----------------------------------------------------------------------------- wrapper
def gaussian_attr_mlp_pallas(params, pt_feat, onehots, z, factors, n_layers,
                             n_shared_layers, tile_rows=512):
    """Fused GaussianAttrMLP forward (z-modulated path), one z per batch instance."""
    B, N, in_dim = pt_feat.shape
    n_classes = onehots.shape[-1]
    h = params['w1'].shape[0]
    keys = tuple(factors.keys())
    n_heads = len(keys)
    layers_per_key = tuple(int(n_layers[k]) for k in keys)
    L_shared = n_shared_layers - 1
    L_mod = L_shared + sum(layers_per_key)
    assert len(params['mod']) == L_mod

    # tiny per-instance modulation vectors (computed once in the wrapper)
    alphas = [jnp.matmul(z, mp['wa'].T) + mp['ba'] for mp in params['mod']]   # each (B, h)
    betas = [jnp.matmul(z, mp['wb'].T) + mp['bb'] for mp in params['mod']]
    mod_alpha = jnp.stack(alphas, axis=1)[..., None].astype(jnp.float32)      # (B, L_mod, h, 1)
    mod_beta = jnp.stack(betas, axis=1).astype(jnp.float32)                   # (B, L_mod, h)

    # merged first-layer weight over concatenated [pt_feat | onehots]; bf16 weights
    w0t = jnp.concatenate([params['w1'].T, params['wma'].T], axis=0).astype(jnp.bfloat16)
    b1 = params['b1'][None, :].astype(jnp.float32)
    wmod_t = jnp.stack([mp['w'].T for mp in params['mod']], axis=0).astype(jnp.bfloat16)

    # block-diagonal output head (each head padded to width 3) + concatenated bias
    whead_bd = jnp.zeros((n_heads * h, 3 * n_heads), jnp.float32)
    bhead = jnp.zeros((1, 3 * n_heads), jnp.float32)
    for hi, k in enumerate(keys):
        wk = params['head'][k]['w']                       # (width, h)
        bk = params['head'][k]['b']                       # (width,)
        whead_bd = whead_bd.at[hi * h:(hi + 1) * h, hi * 3:hi * 3 + wk.shape[0]].set(wk.T)
        bhead = bhead.at[0, hi * 3:hi * 3 + bk.shape[0]].set(bk)
    whead_bd = whead_bd.astype(jnp.bfloat16)

    # per-column nonlinearity table: row0 = factor, row1 = offset, row2 = is_scale mask
    fac_row, off_row, msk_row = [], [], []
    for k in keys:
        fac = float(factors[k])
        if k == 'scale':
            fac_row += [fac] * 3; off_row += [1.0] * 3; msk_row += [1.0] * 3
        elif k == 'opacity':
            fac_row += [fac] * 3; off_row += [1.0 - fac] * 3; msk_row += [0.0] * 3
        else:  # xyz / rgb
            fac_row += [fac] * 3; off_row += [-0.5 * fac] * 3; msk_row += [0.0] * 3
    nlparams = jnp.asarray([fac_row, off_row, msk_row], dtype=jnp.float32)   # (3, 3*n_heads)

    # concatenated input, padded up to a multiple of tile_rows
    x_cat = jnp.concatenate([pt_feat, onehots], axis=-1).astype(jnp.float32)
    K_in = in_dim + n_classes
    n_pad = pl.cdiv(N, tile_rows) * tile_rows
    if n_pad != N:
        x_cat = jnp.pad(x_cat, ((0, 0), (0, n_pad - N), (0, 0)))

    out_w = 3 * n_heads
    num_tiles = n_pad // tile_rows
    grid = (num_tiles, B)   # row tiles leading -> the large axis gets megacore-sharded on v7x

    # branch fusion only if every factor branch has the same (>=1) depth
    uniform = (len(set(layers_per_key)) == 1 and layers_per_key[0] >= 1)
    branch_depth = layers_per_key[0] if uniform else 0

    kernel = functools.partial(
        _gaussian_attr_kernel,
        layers_per_key=layers_per_key,
        n_shared_mod=L_shared,
        branch_depth=branch_depth,
        slope=0.2,
    )

    flops = 2 * B * n_pad * (K_in * h + L_mod * h * h + n_heads * h * 3)
    transcendentals = B * n_pad * out_w
    bytes_accessed = (4 * (x_cat.size + B * n_pad * out_w + b1.size + bhead.size
                           + nlparams.size + mod_alpha.size + mod_beta.size)
                      + 2 * (w0t.size + wmod_t.size + whead_bd.size))

    out = pl.pallas_call(
        kernel,
        out_shape=jax.ShapeDtypeStruct((B, n_pad, out_w), jnp.float32),
        grid_spec=pltpu.PrefetchScalarGridSpec(
            num_scalar_prefetch=0,
            grid=grid,
            in_specs=[
                pl.BlockSpec((None, tile_rows, K_in), lambda r, b: (b, r, 0)),
                pl.BlockSpec((K_in, h), lambda r, b: (0, 0)),
                pl.BlockSpec((1, h), lambda r, b: (0, 0)),
                pl.BlockSpec((L_mod, h, h), lambda r, b: (0, 0, 0)),
                pl.BlockSpec((None, L_mod, h, 1), lambda r, b: (b, 0, 0, 0)),
                pl.BlockSpec((None, L_mod, h), lambda r, b: (b, 0, 0)),
                pl.BlockSpec((n_heads * h, 3 * n_heads), lambda r, b: (0, 0)),
                pl.BlockSpec((1, 3 * n_heads), lambda r, b: (0, 0)),
                pl.BlockSpec((3, 3 * n_heads), lambda r, b: (0, 0)),
            ],
            out_specs=pl.BlockSpec((None, tile_rows, out_w), lambda r, b: (b, r, 0)),
        ),
        compiler_params=pltpu.CompilerParams(
            dimension_semantics=("parallel", "parallel"),
            vmem_limit_bytes=32 * 1024 * 1024,
        ),
        cost_estimate=pl.CostEstimate(
            flops=int(flops),
            transcendentals=int(transcendentals),
            bytes_accessed=int(bytes_accessed),
        ),
    )(x_cat, w0t, b1, wmod_t, mod_alpha, mod_beta, whead_bd, bhead, nlparams)

    out = out[:, :N]
    result = {}
    for hi, k in enumerate(keys):
        width = 1 if k == 'opacity' else 3
        result[k] = out[:, :, hi * 3:hi * 3 + width]
    return result


# ----------------------------------------------------------------------------- reference
def _leaky(x, slope=0.2):
    return jnp.where(x > 0, x, slope * x)


def _modlinear_ref(x, zb, p):
    # Faithful to ModLinear(bias=False, mod_bias=True, output_mode=True):
    #   w = weight[None] * (z @ Wa^T + ba);  y = x @ w^T + (z @ Wb^T + bb)
    alpha = jnp.matmul(zb, p['wa'].T) + p['ba']          # (1, 1, in)
    beta = jnp.matmul(zb, p['wb'].T) + p['bb']           # (1, 1, out)
    w = p['w'][None, :, :] * alpha                       # (1, out, in)
    return jnp.einsum('bmi,boi->bmo', x, w) + beta


def gaussian_attr_mlp_ref(params, pt_feat, onehots, z, factors, n_layers, n_shared_layers):
    """Pure-JAX f32 reference mirroring the PyTorch GaussianAttrMLP forward per instance."""
    f = jnp.matmul(pt_feat, params['w1'].T) + params['b1']
    f = f + jnp.matmul(onehots, params['wma'].T)
    f = _leaky(f)
    B = pt_feat.shape[0]
    keys = list(factors.keys())
    L_shared = n_shared_layers - 1
    out = {k: [] for k in keys}
    for b in range(B):
        fb = f[b:b + 1]
        zb = z[b:b + 1][:, None, :]                      # (1, 1, z_dim)
        for li in range(L_shared):
            fb = _leaky(_modlinear_ref(fb, zb, params['mod'][li]))
        li = L_shared
        for k in keys:
            g = fb
            for _ in range(int(n_layers[k])):
                g = _leaky(_modlinear_ref(g, zb, params['mod'][li]))
                li += 1
            hp = params['head'][k]
            o = jnp.matmul(g, hp['w'].T) + hp['b']
            fac = float(factors[k])
            if k in ('xyz', 'rgb'):
                o = (jax.nn.sigmoid(o) - 0.5) * fac
            elif k == 'scale':
                o = 1.0 + jnp.clip(o, -1.0, 1.0) * fac
            else:
                o = jax.nn.sigmoid(o) * fac + (1.0 - fac)
            out[k].append(o)
    return {k: jnp.concatenate(v, axis=0) for k, v in out.items()}


# ----------------------------------------------------------------------------- params
def init_params(key, n_classes, in_dim, z_dim, h, n_shared_layers, factors, n_layers):
    ks = iter(jax.random.split(key, 64))
    nk = lambda: next(ks)
    params = {
        'w1': jax.random.normal(nk(), (h, in_dim), jnp.float32) / jnp.sqrt(in_dim),
        'b1': 0.01 * jax.random.normal(nk(), (h,), jnp.float32),
        'wma': jax.random.normal(nk(), (h, n_classes), jnp.float32) / jnp.sqrt(n_classes),
    }
    total_mod = (n_shared_layers - 1) + sum(int(n_layers[k]) for k in factors)
    mods = []
    for _ in range(total_mod):
        mods.append({
            'w': jax.random.normal(nk(), (h, h), jnp.float32) / jnp.sqrt(h),
            'wa': jax.random.normal(nk(), (h, z_dim), jnp.float32) / jnp.sqrt(z_dim),
            'ba': jnp.ones((h,), jnp.float32),
            'wb': jax.random.normal(nk(), (h, z_dim), jnp.float32) / jnp.sqrt(z_dim),
            'bb': jnp.zeros((h,), jnp.float32),
        })
    params['mod'] = mods
    heads = {}
    for k in factors:
        width = 1 if k == 'opacity' else 3
        heads[k] = {
            'w': jax.random.normal(nk(), (width, h), jnp.float32) / jnp.sqrt(h),
            'b': jnp.zeros((width,), jnp.float32),
        }
    params['head'] = heads
    return params


# ----------------------------------------------------------------------------- main
if __name__ == "__main__":
    key = jax.random.PRNGKey(0)
    n_classes, in_dim, z_dim, hidden_dim = 4, 8, 16, 128
    n_shared_layers = 2
    factors = {'xyz': 1.0, 'rgb': 1.0, 'scale': 0.1, 'opacity': 0.9}
    n_layers = {'xyz': 1, 'rgb': 1, 'scale': 1, 'opacity': 1}
    B, N = 2, 500   # N not a multiple of tile_rows -> exercises the padding path

    k_param, k_pt, k_oh, k_z = jax.random.split(key, 4)
    params = init_params(k_param, n_classes, in_dim, z_dim, hidden_dim,
                         n_shared_layers, factors, n_layers)
    pt_feat = jax.random.normal(k_pt, (B, N, in_dim), dtype=jnp.float32)
    class_ids = jax.random.randint(k_oh, (B, N), 0, n_classes)
    onehots = jax.nn.one_hot(class_ids, n_classes, dtype=jnp.float32)
    z = jax.random.normal(k_z, (B, z_dim), dtype=jnp.float32)   # one z per instance

    out = gaussian_attr_mlp_pallas(params, pt_feat, onehots, z, factors,
                                   n_layers, n_shared_layers, tile_rows=512)
    for v in out.values():
        jax.block_until_ready(v)

    # Kernel uses bf16 MXU operands with f32 accumulation; the reference is pure f32, so
    # allow a bf16-level tolerance (outputs are sigmoid/clip-bounded, errors are O(1e-2)).
    ref = gaussian_attr_mlp_ref(params, pt_feat, onehots, z, factors,
                                n_layers, n_shared_layers)
    for k in factors:
        assert out[k].shape == ref[k].shape, (k, out[k].shape, ref[k].shape)
        err = float(jnp.max(jnp.abs(out[k] - ref[k])))
        assert jnp.allclose(out[k], ref[k], atol=5e-2, rtol=5e-2), (k, err)

    print("KERNEL_OK")
</pallas_src>

<mosaic_0001>
module attributes {stable_mosaic.version = 11 : i64} {
  func.func @_gaussian_attr_kernel(%arg0: i32, %arg1: i32, %arg2: memref<1x512x12xf32, #tpu.memory_space<vmem>>, %arg3: memref<12x128xbf16, #tpu.memory_space<vmem>>, %arg4: memref<1x128xf32, #tpu.memory_space<vmem>>, %arg5: memref<5x128x128xbf16, #tpu.memory_space<vmem>>, %arg6: memref<1x5x128x1xf32, #tpu.memory_space<vmem>>, %arg7: memref<1x5x128xf32, #tpu.memory_space<vmem>>, %arg8: memref<512x12xbf16, #tpu.memory_space<vmem>>, %arg9: memref<1x12xf32, #tpu.memory_space<vmem>>, %arg10: memref<3x12xf32, #tpu.memory_space<vmem>>, %arg11: memref<1x512x12xf32, #tpu.memory_space<vmem>>) attributes {dimension_semantics = [#tpu.dimension_semantics<parallel>, #tpu.dimension_semantics<parallel>], iteration_bounds = array<i64: 1, 2>, scalar_prefetch = 0 : i64, scratch_operands = 0 : i64, tpu.core_type = #tpu.core_type<tc>, window_params = [{transform_indices = @transform_0, window_bounds = array<i64: 1, 512, 12>}, {pipeline_mode = #tpu.pipeline_mode<synchronous>, transform_indices = @transform_1, window_bounds = array<i64: 12, 128>}, {pipeline_mode = #tpu.pipeline_mode<synchronous>, transform_indices = @transform_2, window_bounds = array<i64: 1, 128>}, {pipeline_mode = #tpu.pipeline_mode<synchronous>, transform_indices = @transform_3, window_bounds = array<i64: 5, 128, 128>}, {transform_indices = @transform_4, window_bounds = array<i64: 1, 5, 128, 1>}, {transform_indices = @transform_5, window_bounds = array<i64: 1, 5, 128>}, {pipeline_mode = #tpu.pipeline_mode<synchronous>, transform_indices = @transform_6, window_bounds = array<i64: 512, 12>}, {pipeline_mode = #tpu.pipeline_mode<synchronous>, transform_indices = @transform_7, window_bounds = array<i64: 1, 12>}, {pipeline_mode = #tpu.pipeline_mode<synchronous>, transform_indices = @transform_8, window_bounds = array<i64: 3, 12>}, {transform_indices = @transform_9, window_bounds = array<i64: 1, 512, 12>}]} {
    %c0 = arith.constant 0 : index
    %c0_0 = arith.constant 0 : index
    %c0_1 = arith.constant 0 : index
    %0 = vector.load %arg2[%c0, %c0_0, %c0_1] : memref<1x512x12xf32, #tpu.memory_space<vmem>>, vector<1x512x12xf32>
    %1 = vector.shape_cast %0 : vector<1x512x12xf32> to vector<512x12xf32>
    %2 = arith.truncf %1 : vector<512x12xf32> to vector<512x12xbf16>
    %c0_2 = arith.constant 0 : index
    %c0_3 = arith.constant 0 : index
    %3 = vector.load %arg3[%c0_2, %c0_3] : memref<12x128xbf16, #tpu.memory_space<vmem>>, vector<12x128xbf16>
    %cst = arith.constant dense<0.000000e+00> : vector<512x128xf32>
    %4 = tpu.matmul %2, %3, %cst {dimension_numbers = #tpu.dot_dimension_numbers<[1], [0], [0], [1], [0, 0, 1, 1], [], []>} : vector<512x12xbf16>, vector<12x128xbf16>, vector<512x128xf32> -> vector<512x128xf32>
    %c0_4 = arith.constant 0 : index
    %c0_5 = arith.constant 0 : index
    %5 = vector.load %arg4[%c0_4, %c0_5] : memref<1x128xf32, #tpu.memory_space<vmem>>, vector<1x128xf32>
    %6 = vector.broadcast %5 : vector<1x128xf32> to vector<512x128xf32>
    %7 = arith.addf %4, %6 : vector<512x128xf32>
    %cst_6 = arith.constant 0.000000e+00 : f32
    %8 = vector.broadcast %cst_6 : f32 to vector<512x128xf32>
    %9 = arith.cmpf ogt, %7, %8 : vector<512x128xf32>
    %cst_7 = arith.constant 2.000000e-01 : f32
    %10 = vector.broadcast %cst_7 : f32 to vector<512x128xf32>
    %11 = arith.mulf %10, %7 : vector<512x128xf32>
    %12 = arith.select %9, %7, %11 : vector<512x128xi1>, vector<512x128xf32>
    %13 = arith.truncf %12 : vector<512x128xf32> to vector<512x128xbf16>
    %c0_8 = arith.constant 0 : index
    %c0_9 = arith.constant 0 : index
    %c0_10 = arith.constant 0 : index
    %c0_11 = arith.constant 0 : index
    %14 = vector.load %arg6[%c0_8, %c0_9, %c0_10, %c0_11] : memref<1x5x128x1xf32, #tpu.memory_space<vmem>>, vector<1x1x128x1xf32>
    %15 = vector.shape_cast %14 : vector<1x1x128x1xf32> to vector<128x1xf32>
    %c0_12 = arith.constant 0 : index
    %c0_13 = arith.constant 0 : index
    %c0_14 = arith.constant 0 : index
    %16 = vector.load %arg5[%c0_12, %c0_13, %c0_14] : memref<5x128x128xbf16, #tpu.memory_space<vmem>>, vector<1x128x128xbf16>
    %17 = vector.shape_cast %16 : vector<1x128x128xbf16> to vector<128x128xbf16>
    %18 = arith.extf %17 : vector<128x128xbf16> to vector<128x128xf32>
    %19 = vector.broadcast %15 : vector<128x1xf32> to vector<128x128xf32>
    %20 = arith.mulf %19, %18 : vector<128x128xf32>
    %21 = arith.truncf %20 : vector<128x128xf32> to vector<128x128xbf16>
    %cst_15 = arith.constant dense<0.000000e+00> : vector<512x128xf32>
    %22 = tpu.matmul %13, %21, %cst_15 {dimension_numbers = #tpu.dot_dimension_numbers<[1], [0], [0], [1], [0, 0, 1, 1], [], []>} : vector<512x128xbf16>, vector<128x128xbf16>, vector<512x128xf32> -> vector<512x128xf32>
    %c0_16 = arith.constant 0 : index
    %c0_17 = arith.constant 0 : index
    %c0_18 = arith.constant 0 : index
    %23 = vector.load %arg7[%c0_16, %c0_17, %c0_18] : memref<1x5x128xf32, #tpu.memory_space<vmem>>, vector<1x1x128xf32>
    %24 = vector.shape_cast %23 : vector<1x1x128xf32> to vector<1x128xf32>
    %25 = vector.broadcast %24 : vector<1x128xf32> to vector<512x128xf32>
    %26 = arith.addf %22, %25 : vector<512x128xf32>
    %cst_19 = arith.constant 0.000000e+00 : f32
    %27 = vector.broadcast %cst_19 : f32 to vector<512x128xf32>
    %28 = arith.cmpf ogt, %26, %27 : vector<512x128xf32>
    %cst_20 = arith.constant 2.000000e-01 : f32
    %29 = vector.broadcast %cst_20 : f32 to vector<512x128xf32>
    %30 = arith.mulf %29, %26 : vector<512x128xf32>
    %31 = arith.select %28, %26, %30 : vector<512x128xi1>, vector<512x128xf32>
    %c0_21 = arith.constant 0 : index
    %c1 = arith.constant 1 : index
    %c0_22 = arith.constant 0 : index
    %c0_23 = arith.constant 0 : index
    %32 = vector.load %arg6[%c0_21, %c1, %c0_22, %c0_23] : memref<1x5x128x1xf32, #tpu.memory_space<vmem>>, vector<1x1x128x1xf32>
    %33 = vector.shape_cast %32 : vector<1x1x128x1xf32> to vector<128x1xf32>
    %c1_24 = arith.constant 1 : index
    %c0_25 = arith.constant 0 : index
    %c0_26 = arith.constant 0 : index
    %34 = vector.load %arg5[%c1_24, %c0_25, %c0_26] : memref<5x128x128xbf16, #tpu.memory_space<vmem>>, vector<1x128x128xbf16>
    %35 = vector.shape_cast %34 : vector<1x128x128xbf16> to vector<128x128xbf16>
    %36 = arith.extf %35 : vector<128x128xbf16> to vector<128x128xf32>
    %37 = vector.broadcast %33 : vector<128x1xf32> to vector<128x128xf32>
    %38 = arith.mulf %37, %36 : vector<128x128xf32>
    %39 = arith.truncf %38 : vector<128x128xf32> to vector<128x128xbf16>
    %c0_27 = arith.constant 0 : index
    %c2 = arith.constant 2 : index
    %c0_28 = arith.constant 0 : index
    %c0_29 = arith.constant 0 : index
    %40 = vector.load %arg6[%c0_27, %c2, %c0_28, %c0_29] : memref<1x5x128x1xf32, #tpu.memory_space<vmem>>, vector<1x1x128x1xf32>
    %41 = vector.shape_cast %40 : vector<1x1x128x1xf32> to vector<128x1xf32>
    %c2_30 = arith.constant 2 : index
    %c0_31 = arith.constant 0 : index
    %c0_32 = arith.constant 0 : index
    %42 = vector.load %arg5[%c2_30, %c0_31, %c0_32] : memref<5x128x128xbf16, #tpu.memory_space<vmem>>, vector<1x128x128xbf16>
    %43 = vector.shape_cast %42 : vector<1x128x128xbf16> to vector<128x128xbf16>
    %44 = arith.extf %43 : vector<128x128xbf16> to vector<128x128xf32>
    %45 = vector.broadcast %41 : vector<128x1xf32> to vector<128x128xf32>
    %46 = arith.mulf %45, %44 : vector<128x128xf32>
    %47 = arith.truncf %46 : vector<128x128xf32> to vector<128x128xbf16>
    %c0_33 = arith.constant 0 : index
    %c3 = arith.constant 3 : index
    %c0_34 = arith.constant 0 : index
    %c0_35 = arith.constant 0 : index
    %48 = vector.load %arg6[%c0_33, %c3, %c0_34, %c0_35] : memref<1x5x128x1xf32, #tpu.memory_space<vmem>>, vector<1x1x128x1xf32>
    %49 = vector.shape_cast %48 : vector<1x1x128x1xf32> to vector<128x1xf32>
    %c3_36 = arith.constant 3 : index
    %c0_37 = arith.constant 0 : index
    %c0_38 = arith.constant 0 : index
    %50 = vector.load %arg5[%c3_36, %c0_37, %c0_38] : memref<5x128x128xbf16, #tpu.memory_space<vmem>>, vector<1x128x128xbf16>
    %51 = vector.shape_cast %50 : vector<1x128x128xbf16> to vector<128x128xbf16>
    %52 = arith.extf %51 : vector<128x128xbf16> to vector<128x128xf32>
    %53 = vector.broadcast %49 : vector<128x1xf32> to vector<128x128xf32>
    %54 = arith.mulf %53, %52 : vector<128x128xf32>
    %55 = arith.truncf %54 : vector<128x128xf32> to vector<128x128xbf16>
    %c0_39 = arith.constant 0 : index
    %c4 = arith.constant 4 : index
    %c0_40 = arith.constant 0 : index
    %c0_41 = arith.constant 0 : index
    %56 = vector.load %arg6[%c0_39, %c4, %c0_40, %c0_41] : memref<1x5x128x1xf32, #tpu.memory_space<vmem>>, vector<1x1x128x1xf32>
    %57 = vector.shape_cast %56 : vector<1x1x128x1xf32> to vector<128x1xf32>
    %c4_42 = arith.constant 4 : index
    %c0_43 = arith.constant 0 : index
    %c0_44 = arith.constant 0 : index
    %58 = vector.load %arg5[%c4_42, %c0_43, %c0_44] : memref<5x128x128xbf16, #tpu.memory_space<vmem>>, vector<1x128x128xbf16>
    %59 = vector.shape_cast %58 : vector<1x128x128xbf16> to vector<128x128xbf16>
    %60 = arith.extf %59 : vector<128x128xbf16> to vector<128x128xf32>
    %61 = vector.broadcast %57 : vector<128x1xf32> to vector<128x128xf32>
    %62 = arith.mulf %61, %60 : vector<128x128xf32>
    %63 = arith.truncf %62 : vector<128x128xf32> to vector<128x128xbf16>
    %64 = tpu.concatenate %39, %47, %55, %63 in 1 : vector<128x128xbf16>, vector<128x128xbf16>, vector<128x128xbf16>, vector<128x128xbf16> -> vector<128x512xbf16>
    %c0_45 = arith.constant 0 : index
    %c1_46 = arith.constant 1 : index
    %c0_47 = arith.constant 0 : index
    %65 = vector.load %arg7[%c0_45, %c1_46, %c0_47] : memref<1x5x128xf32, #tpu.memory_space<vmem>>, vector<1x1x128xf32>
    %66 = vector.shape_cast %65 : vector<1x1x128xf32> to vector<1x128xf32>
    %c0_48 = arith.constant 0 : index
    %c2_49 = arith.constant 2 : index
    %c0_50 = arith.constant 0 : index
    %67 = vector.load %arg7[%c0_48, %c2_49, %c0_50] : memref<1x5x128xf32, #tpu.memory_space<vmem>>, vector<1x1x128xf32>
    %68 = vector.shape_cast %67 : vector<1x1x128xf32> to vector<1x128xf32>
    %c0_51 = arith.constant 0 : index
    %c3_52 = arith.constant 3 : index
    %c0_53 = arith.constant 0 : index
    %69 = vector.load %arg7[%c0_51, %c3_52, %c0_53] : memref<1x5x128xf32, #tpu.memory_space<vmem>>, vector<1x1x128xf32>
    %70 = vector.shape_cast %69 : vector<1x1x128xf32> to vector<1x128xf32>
    %c0_54 = arith.constant 0 : index
    %c4_55 = arith.constant 4 : index
    %c0_56 = arith.constant 0 : index
    %71 = vector.load %arg7[%c0_54, %c4_55, %c0_56] : memref<1x5x128xf32, #tpu.memory_space<vmem>>, vector<1x1x128xf32>
    %72 = vector.shape_cast %71 : vector<1x1x128xf32> to vector<1x128xf32>
    %73 = tpu.concatenate %66, %68, %70, %72 in 1 : vector<1x128xf32>, vector<1x128xf32>, vector<1x128xf32>, vector<1x128xf32> -> vector<1x512xf32>
    %74 = arith.truncf %31 : vector<512x128xf32> to vector<512x128xbf16>
    %cst_57 = arith.constant dense<0.000000e+00> : vector<512x512xf32>
    %75 = tpu.matmul %74, %64, %cst_57 {dimension_numbers = #tpu.dot_dimension_numbers<[1], [0], [0], [1], [0, 0, 1, 1], [], []>} : vector<512x128xbf16>, vector<128x512xbf16>, vector<512x512xf32> -> vector<512x512xf32>
    %76 = vector.broadcast %73 : vector<1x512xf32> to vector<512x512xf32>
    %77 = arith.addf %75, %76 : vector<512x512xf32>
    %cst_58 = arith.constant 0.000000e+00 : f32
    %78 = vector.broadcast %cst_58 : f32 to vector<512x512xf32>
    %79 = arith.cmpf ogt, %77, %78 : vector<512x512xf32>
    %cst_59 = arith.constant 2.000000e-01 : f32
    %80 = vector.broadcast %cst_59 : f32 to vector<512x512xf32>
    %81 = arith.mulf %80, %77 : vector<512x512xf32>
    %82 = arith.select %79, %77, %81 : vector<512x512xi1>, vector<512x512xf32>
    %83 = arith.truncf %82 : vector<512x512xf32> to vector<512x512xbf16>
    %c0_60 = arith.constant 0 : index
    %c0_61 = arith.constant 0 : index
    %84 = vector.load %arg8[%c0_60, %c0_61] : memref<512x12xbf16, #tpu.memory_space<vmem>>, vector<512x12xbf16>
    %cst_62 = arith.constant dense<0.000000e+00> : vector<512x12xf32>
    %85 = tpu.matmul %83, %84, %cst_62 {dimension_numbers = #tpu.dot_dimension_numbers<[1], [0], [0], [1], [0, 0, 1, 1], [], []>} : vector<512x512xbf16>, vector<512x12xbf16>, vector<512x12xf32> -> vector<512x12xf32>
    %c0_63 = arith.constant 0 : index
    %c0_64 = arith.constant 0 : index
    %86 = vector.load %arg9[%c0_63, %c0_64] : memref<1x12xf32, #tpu.memory_space<vmem>>, vector<1x12xf32>
    %87 = vector.broadcast %86 : vector<1x12xf32> to vector<512x12xf32>
    %88 = arith.addf %85, %87 : vector<512x12xf32>
    %c0_65 = arith.constant 0 : index
    %c0_66 = arith.constant 0 : index
    %89 = vector.load %arg10[%c0_65, %c0_66] : memref<3x12xf32, #tpu.memory_space<vmem>>, vector<1x12xf32>
    %c1_67 = arith.constant 1 : index
    %c0_68 = arith.constant 0 : index
    %90 = vector.load %arg10[%c1_67, %c0_68] : memref<3x12xf32, #tpu.memory_space<vmem>>, vector<1x12xf32>
    %c2_69 = arith.constant 2 : index
    %c0_70 = arith.constant 0 : index
    %91 = vector.load %arg10[%c2_69, %c0_70] : memref<3x12xf32, #tpu.memory_space<vmem>>, vector<1x12xf32>
    %cst_71 = arith.constant 5.000000e-01 : f32
    %92 = vector.broadcast %cst_71 : f32 to vector<1x12xf32>
    %93 = arith.cmpf ogt, %91, %92 : vector<1x12xf32>
    %94 = arith.negf %88 : vector<512x12xf32>
    %95 = math.exp %94 : vector<512x12xf32>
    %cst_72 = arith.constant 1.000000e+00 : f32
    %96 = vector.broadcast %cst_72 : f32 to vector<512x12xf32>
    %97 = arith.addf %96, %95 : vector<512x12xf32>
    %98 = arith.divf %96, %97 : vector<512x12xf32>
    %99 = vector.broadcast %89 : vector<1x12xf32> to vector<512x12xf32>
    %100 = arith.mulf %98, %99 : vector<512x12xf32>
    %101 = vector.broadcast %90 : vector<1x12xf32> to vector<512x12xf32>
    %102 = arith.addf %100, %101 : vector<512x12xf32>
    %cst_73 = arith.constant -1.000000e+00 : f32
    %cst_74 = arith.constant 1.000000e+00 : f32
    %103 = vector.broadcast %cst_73 : f32 to vector<512x12xf32>
    %104 = arith.maximumf %103, %88 : vector<512x12xf32>
    %105 = vector.broadcast %cst_74 : f32 to vector<512x12xf32>
    %106 = arith.minimumf %105, %104 : vector<512x12xf32>
    %107 = vector.broadcast %89 : vector<1x12xf32> to vector<512x12xf32>
    %108 = arith.mulf %106, %107 : vector<512x12xf32>
    %109 = vector.broadcast %90 : vector<1x12xf32> to vector<512x12xf32>
    %110 = arith.addf %108, %109 : vector<512x12xf32>
    %111 = vector.shape_cast %93 : vector<1x12xi1> to vector<1x12xi1>
    %112 = vector.broadcast %111 : vector<1x12xi1> to vector<512x12xi1>
    %113 = arith.select %112, %110, %102 : vector<512x12xi1>, vector<512x12xf32>
    %c0_75 = arith.constant 0 : index
    %c0_76 = arith.constant 0 : index
    %c0_77 = arith.constant 0 : index
    %114 = vector.load %arg11[%c0_75, %c0_76, %c0_77] : memref<1x512x12xf32, #tpu.memory_space<vmem>>, vector<1x512x12xf32>
    %115 = vector.shape_cast %114 : vector<1x512x12xf32> to vector<512x12xf32>
    %116 = vector.shape_cast %113 : vector<512x12xf32> to vector<1x512x12xf32>
    tpu.vector_store %arg11[%c0_75, %c0_76, %c0_77], %116 {strides = array<i32>} : memref<1x512x12xf32, #tpu.memory_space<vmem>>, vector<1x512x12xf32>,
    return
  }
  func.func @transform_0(%arg0: i32, %arg1: i32) -> (i32, i32, i32) {
    %c0_i32 = arith.constant 0 : i32
    %c0_i32_0 = arith.constant 0 : i32
    return %arg1, %arg0, %c0_i32 : i32, i32, i32
  }
  func.func @transform_1(%arg0: i32, %arg1: i32) -> (i32, i32) {
    %c0_i32 = arith.constant 0 : i32
    %c0_i32_0 = arith.constant 0 : i32
    %c0_i32_1 = arith.constant 0 : i32
    return %c0_i32, %c0_i32_0 : i32, i32
  }
  func.func @transform_2(%arg0: i32, %arg1: i32) -> (i32, i32) {
    %c0_i32 = arith.constant 0 : i32
    %c0_i32_0 = arith.constant 0 : i32
    %c0_i32_1 = arith.constant 0 : i32
    return %c0_i32, %c0_i32_0 : i32, i32
  }
  func.func @transform_3(%arg0: i32, %arg1: i32) -> (i32, i32, i32) {
    %c0_i32 = arith.constant 0 : i32
    %c0_i32_0 = arith.constant 0 : i32
    %c0_i32_1 = arith.constant 0 : i32
    %c0_i32_2 = arith.constant 0 : i32
    return %c0_i32, %c0_i32_0, %c0_i32_1 : i32, i32, i32
  }
  func.func @transform_4(%arg0: i32, %arg1: i32) -> (i32, i32, i32, i32) {
    %c0_i32 = arith.constant 0 : i32
    %c0_i32_0 = arith.constant 0 : i32
    %c0_i32_1 = arith.constant 0 : i32
    %c0_i32_2 = arith.constant 0 : i32
    return %arg1, %c0_i32, %c0_i32_0, %c0_i32_1 : i32, i32, i32, i32
  }
  func.func @transform_5(%arg0: i32, %arg1: i32) -> (i32, i32, i32) {
    %c0_i32 = arith.constant 0 : i32
    %c0_i32_0 = arith.constant 0 : i32
    %c0_i32_1 = arith.constant 0 : i32
    return %arg1, %c0_i32, %c0_i32_0 : i32, i32, i32
  }
  func.func @transform_6(%arg0: i32, %arg1: i32) -> (i32, i32) {
    %c0_i32 = arith.constant 0 : i32
    %c0_i32_0 = arith.constant 0 : i32
    %c0_i32_1 = arith.constant 0 : i32
    return %c0_i32, %c0_i32_0 : i32, i32
  }
  func.func @transform_7(%arg0: i32, %arg1: i32) -> (i32, i32) {
    %c0_i32 = arith.constant 0 : i32
    %c0_i32_0 = arith.constant 0 : i32
    %c0_i32_1 = arith.constant 0 : i32
    return %c0_i32, %c0_i32_0 : i32, i32
  }
  func.func @transform_8(%arg0: i32, %arg1: i32) -> (i32, i32) {
    %c0_i32 = arith.constant 0 : i32
    %c0_i32_0 = arith.constant 0 : i32
    %c0_i32_1 = arith.constant 0 : i32
    return %c0_i32, %c0_i32_0 : i32, i32
  }
  func.func @transform_9(%arg0: i32, %arg1: i32) -> (i32, i32, i32) {
    %c0_i32 = arith.constant 0 : i32
    %c0_i32_0 = arith.constant 0 : i32
    return %arg1, %arg0, %c0_i32 : i32, i32, i32
  }
}

</mosaic_0001>

<bundles_post_ra>
// kernel: tpu_custom_call.1
= control target key start
LH: loop header
LB: loop body
LE: loop exit
PB: predicated region body
PF: predicated region fallthrough
CT: control target
= control target key end

     0   :  { %s7260_s30 = smov 0   ;;  %s7262_s10 = smov 0   ;;  %s11605_s0 = inlined_call_operand.vmem [shape: f32[2,512,12], index: 0, kind: input, shape index: {}]   ;;  %s11606_s1 = inlined_call_operand.vmem [shape: bf16[12,128], index: 1, kind: input, shape index: {}]   ;;  %s11607_s2 = inlined_call_operand.vmem [shape: f32[1,128], index: 2, kind: input, shape index: {}]   ;;  %s11608_s3 = inlined_call_operand.vmem [shape: bf16[5,128,128], index: 3, kind: input, shape index: {}]   ;;  %s11609_s4 = inlined_call_operand.vmem [shape: f32[2,5,128,1], index: 4, kind: input, shape index: {}]   ;;  %s11610_s5 = inlined_call_operand.vmem [shape: f32[2,5,128], index: 5, kind: input, shape index: {}]   ;;  %s11611_s6 = inlined_call_operand.vmem [shape: bf16[512,12], index: 6, kind: input, shape index: {}]   ;;  %s11612_s7 = inlined_call_operand.vmem [shape: f32[1,12], index: 7, kind: input, shape index: {}]   ;;  %s11613_s8 = inlined_call_operand.vmem [shape: f32[3,12], index: 8, kind: input, shape index: {}]   ;;  %s11614_s9 = inlined_call_operand.vmem [shape: f32[2,512,12], index: 9, kind: output, shape index: {}]  }
   0x1   :  { %s7264_s11 = smov 0  }
   0x2 LB: > { %s28_s12 = sadd.s32 1, %s7203_s10  ;;  %p5912_p0 = scmp.ge.s32.totalorder %s7207_s11, 1  ;;  %s7207_s11 = sphi %s7264_s11, %s19_s11   ;;  %s7203_s10 = sphi %s7262_s10, %s11877_s10   ;;  %s7199_s30 = sphi %s7260_s30, %s11876_s30  }
   0x3   : > { %p29_p1 = scmp.ge.s32.totalorder %s28_s12, 2  ;;  %p327_p2 = scmp.lt.s32.totalorder %s7207_s11, 3 }
   0x5   : > { %s11879_s12 = smov (%p29_p1, %s28_s12), 0  ;;  %p328_p3 = pnand %p5912_p0, %p327_p2 }
   0x7   : > { %331 = sbr.rel (%p328_p3) target bundleno = 1271 (0x4f7), region = 56 }
   0xe   : > { %v6864_v0 = vld [vmem:[%s11606_s1] sm:$0x3f]   ;;  %vm617_vm0 = vcmask 1045504   ;;  %p381_p4 = scmp.lt.s32.totalorder %s7199_s30, 1  ;;  %v11615_v1 = vmov 0   ;;  %vm11644_vm1 = vcmask 97280  }
   0xf   : > { %6835 = vmatprep.subr.msk.bf16.mxu0 %vm617_vm0, %v6864_v0  ;;  %6863 = vset.pattern.permute.xlu1 %v11615_v1  ;;  %v619_v2 = vsel %vm617_vm0, %v6864_v0, 0 }
  0x10   : > { %6862 = vset.pattern.permute.xlu0 %v11615_v1  ;;  %6526 = vmatpush3.bf16.msra.mxu0 %v619_v2  ;;  %s11881_s30 = smov (!%p381_p4, %s7199_s30), 1 }
  0x11   : > { %s6836_s15 = smul.u32 640, %s11881_s30  ;;  %s6251_s16 = sshll.u32 %s11881_s30, 9 }
  0x12   : > { %s7292_s19 = scalar_lea.vmem %s11605_s0, %s6251_s16  ;;  %s10651_s14 = scalar_lea.vmem %s11614_s9, %s6251_s16 }
  0x13   : > { %s7297_s22 = scalar_lea.vmem %s11609_s4, %s6836_s15  ;;  %v410_v3 = vld [vmem:[%s7292_s19] sm:$0xff]  ;;  %v411_v4 = vld [vmem:[%s7292_s19 + $0x8] sm:$0xff]  ;;  %v412_v5 = vld [vmem:[%s7292_s19 + $0x10] sm:$0xff] }
  0x14   : > { %v1136_v6 = vld [vmem:[%s7297_s22 + $0x10] sm:$0xff]  ;;  %v1134_v7 = vld [vmem:[%s7297_s22] sm:$0xff]  ;;  %v474_v8 = vpack.c.bf16 %v411_v4, %v410_v3  ;;  %v413_v9 = vld [vmem:[%s7292_s19 + $0x18] sm:$0xff] }
  0x15   : > { %1194 = vperm.xlu1 %6863, %v1136_v6   ;;  %1184 = vperm.xlu0 %6862, %v1134_v7   ;;  %v475_v10 = vpack.c.bf16 %v413_v9, %v412_v5  ;;  %v1137_v11 = vld [vmem:[%s7297_s22 + $0x18] sm:$0xff]  ;;  %v1135_v12 = vld [vmem:[%s7297_s22 + $0x8] sm:$0xff]  ;;  %v414_v13 = vld [vmem:[%s7292_s19 + $0x20] sm:$0xff] }
  0x16   : > { %6527 = vmatprep.mubr.msk.bf16.mxu0 %vm11644_vm1, %v474_v8  ;;  %v415_v14 = vld [vmem:[%s7292_s19 + $0x28] sm:$0xff]  ;;  %v416_v16 = vld [vmem:[%s7292_s19 + $0x30] sm:$0xff]  ;;  %v417_v17 = vld [vmem:[%s7292_s19 + $0x38] sm:$0xff] }
  0x17   : > { %6528 = vmatmul.mubr.msk.bf16.vlgmr.msra.gmra.mrb[0].mxu0 %vm11644_vm1, %v475_v10  ;;  %v476_v15 = vpack.c.bf16 %v415_v14, %v414_v13  ;;  %v418_v18 = vld [vmem:[%s7292_s19 + $0x40] sm:$0xff]  ;;  %v1139_v19 = vld [vmem:[%s7297_s22 + $0x28] sm:$0xff]  ;;  %v477_v22 = vpack.c.bf16 %v417_v17, %v416_v16  ;;  %v1141_v24 = vld [vmem:[%s7297_s22 + $0x38] sm:$0xff] }
  0x18   : > { %v1138_v20 = vld [vmem:[%s7297_s22 + $0x20] sm:$0xff]  ;;  %v419_v21 = vld [vmem:[%s7292_s19 + $0x48] sm:$0xff]  ;;  %v1140_v25 = vld [vmem:[%s7297_s22 + $0x30] sm:$0xff] }
  0x19   : > { %1199 = vperm.xlu1 %6863, %v1137_v11   ;;  %1189 = vperm.xlu0 %6862, %v1135_v12   ;;  %v478_v23 = vpack.c.bf16 %v419_v21, %v418_v18  ;;  %v420_v26 = vld [vmem:[%s7292_s19 + $0x50] sm:$0xff]  ;;  %v421_v27 = vld [vmem:[%s7292_s19 + $0x58] sm:$0xff]  ;;  %v422_v28 = vld [vmem:[%s7292_s19 + $0x60] sm:$0xff] }
  0x1a   : > { %6531 = vmatprep.mubr.msk.bf16.mxu0 %vm11644_vm1, %v476_v15  ;;  %v423_v29 = vld [vmem:[%s7292_s19 + $0x68] sm:$0xff]  ;;  %v1142_v31 = vld [vmem:[%s7297_s22 + $0x40] sm:$0xff]  ;;  %v479_v32 = vpack.c.bf16 %v421_v27, %v420_v26  ;;  %v1145_v34 = vld [vmem:[%s7297_s22 + $0x58] sm:$0xff] }
  0x1b   : > { %v1143_v30 = vld [vmem:[%s7297_s22 + $0x48] sm:$0xff]  ;;  %v480_v33 = vpack.c.bf16 %v423_v29, %v422_v28  ;;  %v1144_v35 = vld [vmem:[%s7297_s22 + $0x50] sm:$0xff]  ;;  %v425_v37 = vld [vmem:[%s7292_s19 + $0x78] sm:$0xff] }
  0x1c   : > { %v424_v36 = vld [vmem:[%s7292_s19 + $0x70] sm:$0xff]  ;;  %v426_v38 = vld [vmem:[%s7292_s19 + $0x80] sm:$0xff]  ;;  %v427_v39 = vld [vmem:[%s7292_s19 + $0x88] sm:$0xff] }
  0x1d   : > { %1209 = vperm.xlu1 %6863, %v1139_v19   ;;  %1204 = vperm.xlu0 %6862, %v1138_v20   ;;  %v1147_v40 = vld [vmem:[%s7297_s22 + $0x68] sm:$0xff]  ;;  %v1146_v41 = vld [vmem:[%s7297_s22 + $0x60] sm:$0xff]  ;;  %v481_v42 = vpack.c.bf16 %v425_v37, %v424_v36  ;;  %v482_v43 = vpack.c.bf16 %v427_v39, %v426_v38  ;;  %v1149_v44 = vld [vmem:[%s7297_s22 + $0x78] sm:$0xff] }
  0x1e   : > { %v1148_v45 = vld [vmem:[%s7297_s22 + $0x70] sm:$0xff]  ;;  %v429_v47 = vld [vmem:[%s7292_s19 + $0x98] sm:$0xff]  ;;  %v430_v48 = vld [vmem:[%s7292_s19 + $0xa0] sm:$0xff] }
  0x1f   : > { %6532 = vmatmul.mubr.msk.bf16.gmra.mrb[4].mxu0 %vm11644_vm1, %v477_v22  ;;  %v428_v46 = vld [vmem:[%s7292_s19 + $0x90] sm:$0xff]  ;;  %v431_v49 = vld [vmem:[%s7292_s19 + $0xa8] sm:$0xff]  ;;  %v5986_v51 = vld [vmem:[%s7297_s22 + $0x100] sm:$0xff] }
  0x20   : > { %6535 = vmatprep.mubr.msk.bf16.mxu0 %vm11644_vm1, %v478_v23  ;;  %v5987_v50 = vld [vmem:[%s7297_s22 + $0x108] sm:$0xff]  ;;  %v483_v52 = vpack.c.bf16 %v429_v47, %v428_v46  ;;  %v484_v53 = vpack.c.bf16 %v431_v49, %v430_v48  ;;  %v5954_v55 = vld [vmem:[%s7297_s22 + $0x80] sm:$0xff]  ;;  %v432_v56 = vld [vmem:[%s7292_s19 + $0xb0] sm:$0xff] }
  0x21   : > { %1219 = vperm.xlu1 %6863, %v1141_v24   ;;  %1214 = vperm.xlu0 %6862, %v1140_v25   ;;  %v5955_v54 = vld [vmem:[%s7297_s22 + $0x88] sm:$0xff]  ;;  %v433_v57 = vld [vmem:[%s7292_s19 + $0xb8] sm:$0xff]  ;;  %v434_v58 = vld [vmem:[%s7292_s19 + $0xc0] sm:$0xff] }
  0x22   : > { %v435_v59 = vld [vmem:[%s7292_s19 + $0xc8] sm:$0xff]  ;;  %v5989_v60 = vld [vmem:[%s7297_s22 + $0x118] sm:$0xff]  ;;  %v5988_v61 = vld [vmem:[%s7297_s22 + $0x110] sm:$0xff]  ;;  %v485_v62 = vpack.c.bf16 %v433_v57, %v432_v56 }
  0x23   : > { %v486_v63 = vpack.c.bf16 %v435_v59, %v434_v58  ;;  %v5957_v0 = vld [vmem:[%s7297_s22 + $0x98] sm:$0xff]  ;;  %v5956_v2 = vld [vmem:[%s7297_s22 + $0x90] sm:$0xff]  ;;  %v5991_v3 = vld [vmem:[%s7297_s22 + $0x128] sm:$0xff] }
  0x24   : > { %v5990_v4 = vld [vmem:[%s7297_s22 + $0x120] sm:$0xff]  ;;  %v436_v5 = vld [vmem:[%s7292_s19 + $0xd0] sm:$0xff]  ;;  %v437_v6 = vld [vmem:[%s7292_s19 + $0xd8] sm:$0xff] }
  0x25   : > { %1229 = vperm.xlu1 %6863, %v1143_v30   ;;  %1224 = vperm.xlu0 %6862, %v1142_v31   ;;  %v438_v7 = vld [vmem:[%s7292_s19 + $0xe0] sm:$0xff]  ;;  %v439_v8 = vld [vmem:[%s7292_s19 + $0xe8] sm:$0xff]  ;;  %v487_v9 = vpack.c.bf16 %v437_v6, %v436_v5  ;;  %v5993_v13 = vld [vmem:[%s7297_s22 + $0x138] sm:$0xff] }
  0x26   : > { %v5959_v10 = vld [vmem:[%s7297_s22 + $0xa8] sm:$0xff]  ;;  %v5958_v11 = vld [vmem:[%s7297_s22 + $0xa0] sm:$0xff]  ;;  %v488_v12 = vpack.c.bf16 %v439_v8, %v438_v7  ;;  %v5992_v14 = vld [vmem:[%s7297_s22 + $0x130] sm:$0xff] }
  0x27   : > { %6536 = vmatmul.mubr.msk.bf16.gmra.mrb[8].mxu0 %vm11644_vm1, %v479_v32  ;;  %v440_v15 = vld [vmem:[%s7292_s19 + $0xf0] sm:$0xff]  ;;  %v441_v16 = vld [vmem:[%s7292_s19 + $0xf8] sm:$0xff]  ;;  %v442_v17 = vld [vmem:[%s7292_s19 + $0x100] sm:$0xff] }
  0x28   : > { %6539 = vmatprep.mubr.msk.bf16.mxu0 %vm11644_vm1, %v480_v33  ;;  %v443_v18 = vld [vmem:[%s7292_s19 + $0x108] sm:$0xff]  ;;  %v489_v19 = vpack.c.bf16 %v441_v16, %v440_v15  ;;  %v5961_v20 = vld [vmem:[%s7297_s22 + $0xb8] sm:$0xff]  ;;  %v5960_v21 = vld [vmem:[%s7297_s22 + $0xb0] sm:$0xff] }
  0x29   : > { %1239 = vperm.xlu1 %6863, %v1145_v34   ;;  %1234 = vperm.xlu0 %6862, %v1144_v35   ;;  %v490_v22 = vpack.c.bf16 %v443_v18, %v442_v17  ;;  %v444_v23 = vld [vmem:[%s7292_s19 + $0x110] sm:$0xff]  ;;  %v445_v24 = vld [vmem:[%s7292_s19 + $0x118] sm:$0xff]  ;;  %v446_v25 = vld [vmem:[%s7292_s19 + $0x120] sm:$0xff] }
  0x2a   : > { %v447_v26 = vld [vmem:[%s7292_s19 + $0x128] sm:$0xff]  ;;  %v5994_v28 = vld [vmem:[%s7297_s22 + $0x140] sm:$0xff]  ;;  %v491_v29 = vpack.c.bf16 %v445_v24, %v444_v23  ;;  %v448_v33 = vld [vmem:[%s7292_s19 + $0x130] sm:$0xff] }
  0x2b   : > { %v5995_v27 = vld [vmem:[%s7297_s22 + $0x148] sm:$0xff]  ;;  %v492_v30 = vpack.c.bf16 %v447_v26, %v446_v25  ;;  %v5962_v32 = vld [vmem:[%s7297_s22 + $0xc0] sm:$0xff]  ;;  %v449_v34 = vld [vmem:[%s7292_s19 + $0x138] sm:$0xff] }
  0x2c   : > { %v5963_v31 = vld [vmem:[%s7297_s22 + $0xc8] sm:$0xff]  ;;  %v450_v35 = vld [vmem:[%s7292_s19 + $0x140] sm:$0xff]  ;;  %v5997_v37 = vld [vmem:[%s7297_s22 + $0x158] sm:$0xff]  ;;  %v493_v39 = vpack.c.bf16 %v449_v34, %v448_v33 }
  0x2d   : > { %1249 = vperm.xlu1 %6863, %v1147_v40   ;;  %1244 = vperm.xlu0 %6862, %v1146_v41   ;;  %v451_v36 = vld [vmem:[%s7292_s19 + $0x148] sm:$0xff]  ;;  %v5996_v38 = vld [vmem:[%s7297_s22 + $0x150] sm:$0xff]  ;;  %v5965_v41 = vld [vmem:[%s7297_s22 + $0xd8] sm:$0xff] }
  0x2e   : > { %v494_v40 = vpack.c.bf16 %v451_v36, %v450_v35  ;;  %v455_v46 = vld [vmem:[%s7292_s19 + $0x168] sm:$0xff]  ;;  %v5998_v48 = vld [vmem:[%s7297_s22 + $0x160] sm:$0xff]  ;;  %v6001_v57 = vld [vmem:[%s7297_s22 + $0x178] sm:$0xff] }
  0x2f   : > { %6540 = vmatmul.mubr.msk.bf16.gmra.mrb[12].mxu0 %vm11644_vm1, %v481_v42  ;;  %v5964_v42 = vld [vmem:[%s7297_s22 + $0xd0] sm:$0xff]  ;;  %v5999_v47 = vld [vmem:[%s7297_s22 + $0x168] sm:$0xff]  ;;  %v6050_v5 = vld [vmem:[%s7297_s22 + $0x200] sm:$0xff] }
  0x30   : > { %6543 = vmatprep.mubr.msk.bf16.mxu0 %vm11644_vm1, %v482_v43  ;;  %v452_v43 = vld [vmem:[%s7292_s19 + $0x150] sm:$0xff]  ;;  %v459_v56 = vld [vmem:[%s7292_s19 + $0x188] sm:$0xff]  ;;  %v6021_v18 = vld [vmem:[%s7297_s22 + $0x198] sm:$0xff] }
  0x31   : > { %1259 = vperm.xlu1 %6863, %v1149_v44   ;;  %1254 = vperm.xlu0 %6862, %v1148_v45   ;;  %v453_v44 = vld [vmem:[%s7292_s19 + $0x158] sm:$0xff]  ;;  %v454_v45 = vld [vmem:[%s7292_s19 + $0x160] sm:$0xff]  ;;  %v6000_v58 = vld [vmem:[%s7297_s22 + $0x170] sm:$0xff] }
  0x32   : > { %v495_v49 = vpack.c.bf16 %v453_v44, %v452_v43  ;;  %v6019_v8 = vld [vmem:[%s7297_s22 + $0x188] sm:$0xff]  ;;  %v6052_v15 = vld [vmem:[%s7297_s22 + $0x210] sm:$0xff]  ;;  %v6054_v25 = vld [vmem:[%s7297_s22 + $0x220] sm:$0xff] }
  0x33   : > { %v471_v23 = vld [vmem:[%s7292_s19 + $0x1e8] sm:$0xff]  ;;  %v6056_v33 = vld [vmem:[%s7297_s22 + $0x230] sm:$0xff]  ;;  %v6025_v35 = vld [vmem:[%s7297_s22 + $0x1b8] sm:$0xff] }
  0x34   : > { %v6055_v24 = vld [vmem:[%s7297_s22 + $0x228] sm:$0xff]  ;;  %v6024_v36 = vld [vmem:[%s7297_s22 + $0x1b0] sm:$0xff] }
  0x35   : > { %1983 = vperm.xlu1 %6863, %v5987_v50   ;;  %1978 = vperm.xlu0 %6862, %v5986_v51   ;;  %v496_v50 = vpack.c.bf16 %v455_v46, %v454_v45  ;;  %v5967_v51 = vld [vmem:[%s7297_s22 + $0xe8] sm:$0xff] }
  0x37   : > { %6544 = vmatmul.mubr.msk.bf16.gmra.mrb[16].mxu0 %vm11644_vm1, %v483_v52  ;;  %v5966_v52 = vld [vmem:[%s7297_s22 + $0xe0] sm:$0xff] }
  0x38   : > { %6547 = vmatprep.mubr.msk.bf16.mxu0 %vm11644_vm1, %v484_v53  ;;  %v456_v53 = vld [vmem:[%s7292_s19 + $0x170] sm:$0xff] }
  0x39   : > { %1829 = vperm.xlu1 %6863, %v5955_v54   ;;  %1824 = vperm.xlu0 %6862, %v5954_v55   ;;  %v457_v54 = vld [vmem:[%s7292_s19 + $0x178] sm:$0xff]  ;;  %v458_v55 = vld [vmem:[%s7292_s19 + $0x180] sm:$0xff] }
  0x3a   : > { %v497_v59 = vpack.c.bf16 %v457_v54, %v456_v53 }
  0x3d   : > { %1993 = vperm.xlu1 %6863, %v5989_v60   ;;  %1988 = vperm.xlu0 %6862, %v5988_v61   ;;  %v498_v60 = vpack.c.bf16 %v459_v56, %v458_v55  ;;  %v5969_v61 = vld [vmem:[%s7297_s22 + $0xf8] sm:$0xff] }
  0x3f   : > { %6548 = vmatmul.mubr.msk.bf16.gmra.mrb[20].mxu0 %vm11644_vm1, %v485_v62  ;;  %v5968_v62 = vld [vmem:[%s7297_s22 + $0xf0] sm:$0xff] }
  0x40   : > { %6551 = vmatprep.mubr.msk.bf16.mxu0 %vm11644_vm1, %v486_v63  ;;  %v460_v63 = vld [vmem:[%s7292_s19 + $0x190] sm:$0xff] }
  0x41   : > { %1839 = vperm.xlu1 %6863, %v5957_v0   ;;  %1834 = vperm.xlu0 %6862, %v5956_v2   ;;  %v461_v0 = vld [vmem:[%s7292_s19 + $0x198] sm:$0xff]  ;;  %v462_v2 = vld [vmem:[%s7292_s19 + $0x1a0] sm:$0xff] }
  0x42   : > { %v499_v6 = vpack.c.bf16 %v461_v0, %v460_v63 }
  0x45   : > { %2003 = vperm.xlu1 %6863, %v5991_v3   ;;  %1998 = vperm.xlu0 %6862, %v5990_v4   ;;  %v463_v3 = vld [vmem:[%s7292_s19 + $0x1a8] sm:$0xff] }
  0x46   : > { %v6051_v4 = vld [vmem:[%s7297_s22 + $0x208] sm:$0xff]  ;;  %v500_v7 = vpack.c.bf16 %v463_v3, %v462_v2 }
  0x47   : > { %6552 = vmatmul.mubr.msk.bf16.gmra.mrb[24].mxu0 %vm11644_vm1, %v487_v9  ;;  %v6018_v9 = vld [vmem:[%s7297_s22 + $0x180] sm:$0xff] }
  0x48   : > { %6555 = vmatprep.mubr.msk.bf16.mxu0 %vm11644_vm1, %v488_v12  ;;  %v466_v12 = vld [vmem:[%s7292_s19 + $0x1c0] sm:$0xff] }
  0x49   : > { %1849 = vperm.xlu1 %6863, %v5959_v10   ;;  %1844 = vperm.xlu0 %6862, %v5958_v11   ;;  %v464_v10 = vld [vmem:[%s7292_s19 + $0x1b0] sm:$0xff]  ;;  %v465_v11 = vld [vmem:[%s7292_s19 + $0x1b8] sm:$0xff] }
  0x4a   : > { %v501_v16 = vpack.c.bf16 %v465_v11, %v464_v10 }
  0x4d   : > { %2013 = vperm.xlu1 %6863, %v5993_v13   ;;  %2008 = vperm.xlu0 %6862, %v5992_v14   ;;  %v467_v13 = vld [vmem:[%s7292_s19 + $0x1c8] sm:$0xff]  ;;  %v6053_v14 = vld [vmem:[%s7297_s22 + $0x218] sm:$0xff] }
  0x4e   : > { %v502_v17 = vpack.c.bf16 %v467_v13, %v466_v12 }
  0x4f   : > { %6556 = vmatmul.mubr.msk.bf16.gmra.mrb[28].mxu0 %vm11644_vm1, %v489_v19  ;;  %v6020_v19 = vld [vmem:[%s7297_s22 + $0x190] sm:$0xff] }
  0x50   : > { %6559 = vmatprep.mubr.msk.bf16.mxu0 %vm11644_vm1, %v490_v22  ;;  %v470_v22 = vld [vmem:[%s7292_s19 + $0x1e0] sm:$0xff] }
  0x51   : > { %1859 = vperm.xlu1 %6863, %v5961_v20   ;;  %1854 = vperm.xlu0 %6862, %v5960_v21   ;;  %v468_v20 = vld [vmem:[%s7292_s19 + $0x1d0] sm:$0xff]  ;;  %v469_v21 = vld [vmem:[%s7292_s19 + $0x1d8] sm:$0xff] }
  0x52   : > { %v503_v26 = vpack.c.bf16 %v469_v21, %v468_v20 }
  0x55   : > { %2023 = vperm.xlu1 %6863, %v5995_v27   ;;  %2018 = vperm.xlu0 %6862, %v5994_v28   ;;  %v504_v27 = vpack.c.bf16 %v471_v23, %v470_v22  ;;  %v6023_v28 = vld [vmem:[%s7297_s22 + $0x1a8] sm:$0xff] }
  0x57   : > { %6560 = vmatmul.mubr.msk.bf16.gmra.mrb[32].mxu0 %vm11644_vm1, %v491_v29  ;;  %v6022_v29 = vld [vmem:[%s7297_s22 + $0x1a0] sm:$0xff] }
  0x58   : > { %6563 = vmatprep.mubr.msk.bf16.mxu0 %vm11644_vm1, %v492_v30  ;;  %v472_v30 = vld [vmem:[%s7292_s19 + $0x1f0] sm:$0xff] }
  0x59   : > { %1869 = vperm.xlu1 %6863, %v5963_v31   ;;  %1864 = vperm.xlu0 %6862, %v5962_v32   ;;  %v473_v31 = vld [vmem:[%s7292_s19 + $0x1f8] sm:$0xff] }
  0x5a   : > { %v6057_v32 = vld [vmem:[%s7297_s22 + $0x238] sm:$0xff]  ;;  %v505_v34 = vpack.c.bf16 %v473_v31, %v472_v30 }
  0x5d   : > { %2033 = vperm.xlu1 %6863, %v5997_v37   ;;  %2028 = vperm.xlu0 %6862, %v5996_v38   ;;  %v6254_v37 = vld [vmem:[%s11608_s3] sm:$0xff]   ;;  %v6413_v38 = vld [vmem:[%s11608_s3 + $0x8] sm:$0xff]  }
  0x5e   : > { %v6260_v45 = vunpack.c.h.bf16 %v6413_v38  ;;  %v6256_v46 = vunpack.c.h.bf16 %v6254_v37 }
  0x5f   : > { %6564 = vmatmul.mubr.msk.bf16.gmra.mrb[36].mxu0 %vm11644_vm1, %v493_v39  ;;  %v6059_v39 = vld [vmem:[%s7297_s22 + $0x248] sm:$0xff] }
  0x60   : > { %6567 = vmatprep.mubr.msk.bf16.mxu0 %vm11644_vm1, %v494_v40  ;;  %v6058_v40 = vld [vmem:[%s7297_s22 + $0x240] sm:$0xff] }
  0x61   : > { %1879 = vperm.xlu1 %6863, %v5965_v41   ;;  %1874 = vperm.xlu0 %6862, %v5964_v42   ;;  %v6255_v41 = vunpack.c.l.bf16 %v6254_v37  ;;  %v6259_v42 = vunpack.c.l.bf16 %v6413_v38  ;;  %v6064_v37 = vld [vmem:[%s7297_s22 + $0x270] sm:$0xff]  ;;  %v6419_v38 = vld [vmem:[%s11608_s3 + $0x38] sm:$0xff]  }
  0x65   : > { %2043 = vperm.xlu1 %6863, %v5999_v47   ;;  %2038 = vperm.xlu0 %6862, %v5998_v48   ;;  %v6027_v47 = vld [vmem:[%s7297_s22 + $0x1c8] sm:$0xff]  ;;  %v6026_v48 = vld [vmem:[%s7297_s22 + $0x1c0] sm:$0xff] }
  0x67   : > { %6568 = vmatmul.mubr.msk.bf16.gmra.mrb[40].mxu0 %vm11644_vm1, %v495_v49  ;;  %v6414_v49 = vld [vmem:[%s11608_s3 + $0x10] sm:$0xff]  }
  0x68   : > { %6571 = vmatprep.mubr.msk.bf16.mxu0 %vm11644_vm1, %v496_v50  ;;  %v6264_v56 = vunpack.c.h.bf16 %v6414_v49 }
  0x69   : > { %1889 = vperm.xlu1 %6863, %v5967_v51   ;;  %1884 = vperm.xlu0 %6862, %v5966_v52  }
  0x6d   : > { %2053 = vperm.xlu1 %6863, %v6001_v57   ;;  %2048 = vperm.xlu0 %6862, %v6000_v58   ;;  %v6263_v57 = vunpack.c.l.bf16 %v6414_v49  ;;  %v6061_v58 = vld [vmem:[%s7297_s22 + $0x258] sm:$0xff] }
  0x6f   : > { %6572 = vmatmul.mubr.msk.bf16.gmra.mrb[44].mxu0 %vm11644_vm1, %v497_v59  ;;  %v6060_v59 = vld [vmem:[%s7297_s22 + $0x250] sm:$0xff] }
  0x70   : > { %6575 = vmatprep.mubr.msk.bf16.mxu0 %vm11644_vm1, %v498_v60  ;;  %v6415_v60 = vld [vmem:[%s11608_s3 + $0x18] sm:$0xff]  }
  0x71   : > { %1899 = vperm.xlu1 %6863, %v5969_v61   ;;  %1894 = vperm.xlu0 %6862, %v5968_v62  }
  0x75   : > { %2291 = vperm.xlu1 %6863, %v6051_v4   ;;  %2286 = vperm.xlu0 %6862, %v6050_v5   ;;  %v6268_v4 = vunpack.c.h.bf16 %v6415_v60  ;;  %v6267_v5 = vunpack.c.l.bf16 %v6415_v60 }
  0x77   : > { %6576 = vmatmul.mubr.msk.bf16.gmra.mrb[48].mxu0 %vm11644_vm1, %v499_v6  ;;  %v6029_v6 = vld [vmem:[%s7297_s22 + $0x1d8] sm:$0xff] }
  0x78   : > { %6579 = vmatprep.mubr.msk.bf16.mxu0 %vm11644_vm1, %v500_v7  ;;  %v6028_v7 = vld [vmem:[%s7297_s22 + $0x1d0] sm:$0xff] }
  0x79   : > { %2137 = vperm.xlu1 %6863, %v6019_v8   ;;  %2132 = vperm.xlu0 %6862, %v6018_v9   ;;  %v6416_v8 = vld [vmem:[%s11608_s3 + $0x20] sm:$0xff]  }
  0x7d   : > { %2301 = vperm.xlu1 %6863, %v6053_v14   ;;  %2296 = vperm.xlu0 %6862, %v6052_v15   ;;  %v6272_v14 = vunpack.c.h.bf16 %v6416_v8  ;;  %v6271_v15 = vunpack.c.l.bf16 %v6416_v8 }
  0x7f   : > { %6580 = vmatmul.mubr.msk.bf16.gmra.mrb[52].mxu0 %vm11644_vm1, %v501_v16  ;;  %v6063_v16 = vld [vmem:[%s7297_s22 + $0x268] sm:$0xff] }
  0x80   : > { %6583 = vmatprep.mubr.msk.bf16.mxu0 %vm11644_vm1, %v502_v17  ;;  %v6062_v17 = vld [vmem:[%s7297_s22 + $0x260] sm:$0xff] }
  0x81   : > { %2147 = vperm.xlu1 %6863, %v6021_v18   ;;  %2142 = vperm.xlu0 %6862, %v6020_v19   ;;  %v6417_v18 = vld [vmem:[%s11608_s3 + $0x28] sm:$0xff]  }
  0x85   : > { %2311 = vperm.xlu1 %6863, %v6055_v24   ;;  %2306 = vperm.xlu0 %6862, %v6054_v25   ;;  %v6276_v24 = vunpack.c.h.bf16 %v6417_v18  ;;  %v6275_v25 = vunpack.c.l.bf16 %v6417_v18 }
  0x87   : > { %6584 = vmatmul.mubr.msk.bf16.gmra.mrb[56].mxu0 %vm11644_vm1, %v503_v26  ;;  %v6031_v26 = vld [vmem:[%s7297_s22 + $0x1e8] sm:$0xff] }
  0x88   : > { %6587 = vmatprep.mubr.msk.bf16.mxu0 %vm11644_vm1, %v504_v27  ;;  %v6030_v27 = vld [vmem:[%s7297_s22 + $0x1e0] sm:$0xff] }
  0x89   : > { %2157 = vperm.xlu1 %6863, %v6023_v28   ;;  %2152 = vperm.xlu0 %6862, %v6022_v29   ;;  %v6418_v28 = vld [vmem:[%s11608_s3 + $0x30] sm:$0xff]  }
  0x8d   : > { %2321 = vperm.xlu1 %6863, %v6057_v32   ;;  %2316 = vperm.xlu0 %6862, %v6056_v33  }
  0x8f   : > { %6588 = vmatmul.mubr.msk.bf16.gmra.mrb[60].mxu0 %vm11644_vm1, %v505_v34  ;;  %v6280_v34 = vunpack.c.h.bf16 %v6418_v28 }
  0x90   : > { %2472 = vmatprep.mubr.bf16.mxu0 %v11615_v1 }
  0x91   : > { %2167 = vperm.xlu1 %6863, %v6025_v35   ;;  %2162 = vperm.xlu0 %6862, %v6024_v36   ;;  %v6279_v35 = vunpack.c.l.bf16 %v6418_v28  ;;  %v6065_v36 = vld [vmem:[%s7297_s22 + $0x278] sm:$0xff] }
  0x94   : > { %v1195_v43 = vpop.permute.xlu1 %1194  ;;  %v1185_v44 = vpop.permute.xlu0 %1184 }
  0x95   : > { %2331 = vperm.xlu1 %6863, %v6059_v39   ;;  %2326 = vperm.xlu0 %6862, %v6058_v40   ;;  %v1262_v50 = vmul.f32 %v6255_v41, %v1185_v44  ;;  %v1264_v51 = vmul.f32 %v6259_v42, %v1195_v43  ;;  %v6284_v44 = vunpack.c.h.bf16 %v6419_v38 }
  0x98   : > { %v1200_v52 = vpop.permute.xlu1 %1199  ;;  %v1190_v53 = vpop.permute.xlu0 %1189 }
  0x99   : > { %v1265_v54 = vmul.f32 %v6260_v45, %v1200_v52  ;;  %v1263_v55 = vmul.f32 %v6256_v46, %v1190_v53  ;;  %2177 = vperm.xlu1 %6863, %v6027_v47   ;;  %2172 = vperm.xlu0 %6862, %v6026_v48   ;;  %v6283_v45 = vunpack.c.l.bf16 %v6419_v38  ;;  %v6033_v46 = vld [vmem:[%s7297_s22 + $0x1f8] sm:$0xff]  ;;  %v6032_v47 = vld [vmem:[%s7297_s22 + $0x1f0] sm:$0xff]  ;;  %v6428_v48 = vld [vmem:[%s11608_s3 + $0x80] sm:$0xff]   ;;  %s5916_s22 = sshll.u32 %s11881_s30, 3 }
  0x9a   : > { %s7677_s13 = scalar_lea.vmem %s11610_s5, %s5916_s22 }
  0x9b   : > { %v1278_v61 = vpack.c.bf16 %v1263_v55, %v1262_v50  ;;  %v1279_v62 = vpack.c.bf16 %v1265_v54, %v1264_v51  ;;  %v6320_v54 = vunpack.c.h.bf16 %v6428_v48  ;;  %v6319_v55 = vunpack.c.l.bf16 %v6428_v48 }
  0x9c   : > { %v1210_v63 = vpop.permute.xlu1 %1209  ;;  %v1205_v0 = vpop.permute.xlu0 %1204 }
  0x9d   : > { %v1267_v2 = vmul.f32 %v6264_v56, %v1210_v63  ;;  %v1266_v3 = vmul.f32 %v6263_v57, %v1205_v0  ;;  %2341 = vperm.xlu1 %6863, %v6061_v58   ;;  %2336 = vperm.xlu0 %6862, %v6060_v59   ;;  %v6420_v56 = vld [vmem:[%s11608_s3 + $0x40] sm:$0xff]   ;;  %v6429_v0 = vld [vmem:[%s11608_s3 + $0x88] sm:$0xff]  }
  0x9e   : > { %6591 = vmatprep.subr.bf16.mxu1 %v1278_v61  ;;  %v6287_v63 = vunpack.c.l.bf16 %v6420_v56  ;;  %v6323_v8 = vunpack.c.l.bf16 %v6429_v0 }
  0x9f   : > { %6592 = vmatpush3.bf16.msra.mxu1 %v1278_v61  ;;  %v1280_v9 = vpack.c.bf16 %v1267_v2, %v1266_v3 }
  0xa0   : > { %v1220_v10 = vpop.permute.xlu1 %1219  ;;  %v1215_v11 = vpop.permute.xlu0 %1214  ;;  %6593 = vmatprep.subr.bf16.mxu1 %v1279_v62 }
  0xa1   : > { %v1269_v12 = vmul.f32 %v6268_v4, %v1220_v10  ;;  %v1268_v13 = vmul.f32 %v6267_v5, %v1215_v11  ;;  %2187 = vperm.xlu1 %6863, %v6029_v6   ;;  %2182 = vperm.xlu0 %6862, %v6028_v7   ;;  %v6324_v7 = vunpack.c.h.bf16 %v6429_v0 }
  0xa3   : > { %6594 = vmatpush3.bf16.msra.mxu1 %v1279_v62  ;;  %v1281_v19 = vpack.c.bf16 %v1269_v12, %v1268_v13  ;;  %v6288_v62 = vunpack.c.h.bf16 %v6420_v56 }
  0xa4   : > { %v1230_v20 = vpop.permute.xlu1 %1229  ;;  %v1225_v21 = vpop.permute.xlu0 %1224  ;;  %6595 = vmatprep.subr.bf16.mxu1 %v1280_v9 }
  0xa5   : > { %v1271_v22 = vmul.f32 %v6272_v14, %v1230_v20  ;;  %v1270_v23 = vmul.f32 %v6271_v15, %v1225_v21  ;;  %2351 = vperm.xlu1 %6863, %v6063_v16   ;;  %2346 = vperm.xlu0 %6862, %v6062_v17   ;;  %v6430_v17 = vld [vmem:[%s11608_s3 + $0x90] sm:$0xff]  }
  0xa7   : > { %6596 = vmatpush3.bf16.msra.mxu1 %v1280_v9  ;;  %v1282_v29 = vpack.c.bf16 %v1271_v22, %v1270_v23  ;;  %v6421_v9 = vld [vmem:[%s11608_s3 + $0x48] sm:$0xff]   ;;  %v6328_v23 = vunpack.c.h.bf16 %v6430_v17 }
  0xa8   : > { %v1240_v30 = vpop.permute.xlu1 %1239  ;;  %v1235_v31 = vpop.permute.xlu0 %1234  ;;  %6597 = vmatprep.subr.bf16.mxu1 %v1281_v19  ;;  %v6292_v15 = vunpack.c.h.bf16 %v6421_v9  ;;  %v6291_v16 = vunpack.c.l.bf16 %v6421_v9 }
  0xa9   : > { %v1273_v32 = vmul.f32 %v6276_v24, %v1240_v30  ;;  %v1272_v33 = vmul.f32 %v6275_v25, %v1235_v31  ;;  %2197 = vperm.xlu1 %6863, %v6031_v26   ;;  %2192 = vperm.xlu0 %6862, %v6030_v27   ;;  %v6327_v24 = vunpack.c.l.bf16 %v6430_v17  ;;  %v6422_v25 = vld [vmem:[%s11608_s3 + $0x50] sm:$0xff]  }
  0xaa   : > { %v6296_v31 = vunpack.c.h.bf16 %v6422_v25 }
  0xab   : > { %6598 = vmatpush3.bf16.msra.mxu1 %v1281_v19  ;;  %v1283_v39 = vpack.c.bf16 %v1273_v32, %v1272_v33  ;;  %v6295_v32 = vunpack.c.l.bf16 %v6422_v25  ;;  %v6431_v33 = vld [vmem:[%s11608_s3 + $0x98] sm:$0xff]  }
  0xac   : > { %v1250_v40 = vpop.permute.xlu1 %1249  ;;  %v1245_v41 = vpop.permute.xlu0 %1244  ;;  %6599 = vmatprep.subr.bf16.mxu1 %v1282_v29 }
  0xad   : > { %v1275_v42 = vmul.f32 %v6280_v34, %v1250_v40  ;;  %v1274_v43 = vmul.f32 %v6279_v35, %v1245_v41  ;;  %2361 = vperm.xlu1 %6863, %v6065_v36   ;;  %2356 = vperm.xlu0 %6862, %v6064_v37   ;;  %v6331_v40 = vunpack.c.l.bf16 %v6431_v33  ;;  %v6423_v41 = vld [vmem:[%s11608_s3 + $0x58] sm:$0xff]  }
  0xae   : > { %v6299_v48 = vunpack.c.l.bf16 %v6423_v41 }
  0xaf   : > { %6600 = vmatpush3.bf16.msra.mxu1 %v1282_v29  ;;  %v1284_v49 = vpack.c.bf16 %v1275_v42, %v1274_v43 }
  0xb0   : > { %v1260_v50 = vpop.permute.xlu1 %1259  ;;  %v1255_v51 = vpop.permute.xlu0 %1254  ;;  %6601 = vmatprep.subr.bf16.mxu1 %v1283_v39 }
  0xb1   : > { %v1277_v52 = vmul.f32 %v6284_v44, %v1260_v50  ;;  %v1276_v53 = vmul.f32 %v6283_v45, %v1255_v51  ;;  %2207 = vperm.xlu1 %6863, %v6033_v46   ;;  %2202 = vperm.xlu0 %6862, %v6032_v47   ;;  %v6300_v47 = vunpack.c.h.bf16 %v6423_v41 }
  0xb3   : > { %6602 = vmatpush3.bf16.msra.mxu1 %v1283_v39  ;;  %v1285_v57 = vpack.c.bf16 %v1277_v52, %v1276_v53  ;;  %v6332_v39 = vunpack.c.h.bf16 %v6431_v33 }
  0xb4   : > { %v1984_v58 = vpop.permute.xlu1 %1983  ;;  %v1979_v59 = vpop.permute.xlu0 %1978  ;;  %6603 = vmatprep.subr.bf16.mxu1 %v1284_v49 }
  0xb5   : > { %v2057_v60 = vmul.f32 %v6320_v54, %v1984_v58  ;;  %v2056_v61 = vmul.f32 %v6319_v55, %v1979_v59 }
  0xb7   : > { %v2072_v2 = vpack.c.bf16 %v2057_v60, %v2056_v61  ;;  %6604 = vmatpush3.bf16.msra.mxu1 %v1284_v49  ;;  %v6432_v49 = vld [vmem:[%s11608_s3 + $0xa0] sm:$0xff]  }
  0xb8   : > { %v1830_v3 = vpop.permute.xlu1 %1829  ;;  %v1825_v4 = vpop.permute.xlu0 %1824  ;;  %6605 = vmatprep.subr.bf16.mxu1 %v1285_v57  ;;  %v6336_v55 = vunpack.c.h.bf16 %v6432_v49  ;;  %v6335_v56 = vunpack.c.l.bf16 %v6432_v49 }
  0xb9   : > { %v1903_v5 = vmul.f32 %v6288_v62, %v1830_v3  ;;  %v1902_v6 = vmul.f32 %v6287_v63, %v1825_v4  ;;  %2440 = vmatprep.subr.bf16.mxu0 %v2072_v2  ;;  %v6433_v2 = vld [vmem:[%s11608_s3 + $0xa8] sm:$0xff]  }
  0xba   : > { %v6339_v9 = vunpack.c.l.bf16 %v6433_v2 }
  0xbb   : > { %v1918_v10 = vpack.c.bf16 %v1903_v5, %v1902_v6  ;;  %6606 = vmatpush3.bf16.msra.mxu1 %v1285_v57  ;;  %v6424_v57 = vld [vmem:[%s11608_s3 + $0x60] sm:$0xff]  }
  0xbc   : > { %v1994_v11 = vpop.permute.xlu1 %1993  ;;  %v1989_v12 = vpop.permute.xlu0 %1988  ;;  %v6304_v63 = vunpack.c.h.bf16 %v6424_v57  ;;  %v6303_v0 = vunpack.c.l.bf16 %v6424_v57 }
  0xbd   : > { %v2059_v13 = vmul.f32 %v6324_v7, %v1994_v11  ;;  %v2058_v14 = vmul.f32 %v6323_v8, %v1989_v12  ;;  %2441 = vmatpush1.bf16.msra.mxu0 %v1918_v10  ;;  %v6340_v8 = vunpack.c.h.bf16 %v6433_v2  ;;  %v6425_v10 = vld [vmem:[%s11608_s3 + $0x68] sm:$0xff]  }
  0xbe   : > { %v6307_v17 = vunpack.c.l.bf16 %v6425_v10 }
  0xbf   : > { %v2073_v18 = vpack.c.bf16 %v2059_v13, %v2058_v14 }
  0xc0   : > { %v1840_v19 = vpop.permute.xlu1 %1839  ;;  %v1835_v20 = vpop.permute.xlu0 %1834 }
  0xc1   : > { %v1905_v21 = vmul.f32 %v6292_v15, %v1840_v19  ;;  %v1904_v22 = vmul.f32 %v6291_v16, %v1835_v20  ;;  %2442 = vmatprep.subr.bf16.mxu0 %v2073_v18  ;;  %v6308_v16 = vunpack.c.h.bf16 %v6425_v10  ;;  %v6434_v18 = vld [vmem:[%s11608_s3 + $0xb0] sm:$0xff]  }
  0xc2   : > { %v6343_v25 = vunpack.c.l.bf16 %v6434_v18 }
  0xc3   : > { %v1919_v26 = vpack.c.bf16 %v1905_v21, %v1904_v22 }
  0xc4   : > { %v2004_v27 = vpop.permute.xlu1 %2003  ;;  %v1999_v28 = vpop.permute.xlu0 %1998 }
  0xc5   : > { %v2061_v29 = vmul.f32 %v6328_v23, %v2004_v27  ;;  %v2060_v30 = vmul.f32 %v6327_v24, %v1999_v28  ;;  %2443 = vmatpush1.bf16.msra.mxu0 %v1919_v26  ;;  %v6344_v24 = vunpack.c.h.bf16 %v6434_v18  ;;  %v6426_v26 = vld [vmem:[%s11608_s3 + $0x70] sm:$0xff]  }
  0xc6   : > { %v6311_v33 = vunpack.c.l.bf16 %v6426_v26 }
  0xc7   : > { %v2074_v34 = vpack.c.bf16 %v2061_v29, %v2060_v30 }
  0xc8   : > { %v1850_v35 = vpop.permute.xlu1 %1849  ;;  %v1845_v36 = vpop.permute.xlu0 %1844 }
  0xc9   : > { %v1907_v37 = vmul.f32 %v6296_v31, %v1850_v35  ;;  %v1906_v38 = vmul.f32 %v6295_v32, %v1845_v36  ;;  %2444 = vmatprep.subr.bf16.mxu0 %v2074_v34  ;;  %v6312_v32 = vunpack.c.h.bf16 %v6426_v26  ;;  %v6435_v34 = vld [vmem:[%s11608_s3 + $0xb8] sm:$0xff]  }
  0xca   : > { %v6348_v41 = vunpack.c.h.bf16 %v6435_v34 }
  0xcb   : > { %v1920_v42 = vpack.c.bf16 %v1907_v37, %v1906_v38  ;;  %v7548_v38 = vld [vmem:[%s11607_s2] ss:$0 sm:$0xff] }
  0xcc   : > { %v2014_v43 = vpop.permute.xlu1 %2013  ;;  %v2009_v44 = vpop.permute.xlu0 %2008 }
  0xcd   : > { %v2063_v45 = vmul.f32 %v6332_v39, %v2014_v43  ;;  %v2062_v46 = vmul.f32 %v6331_v40, %v2009_v44  ;;  %2445 = vmatpush1.bf16.msra.mxu0 %v1920_v42  ;;  %v6347_v42 = vunpack.c.l.bf16 %v6435_v34  ;;  %v6427_v44 = vld [vmem:[%s11608_s3 + $0x78] sm:$0xff]  }
  0xcf   : > { %v2075_v50 = vpack.c.bf16 %v2063_v45, %v2062_v46 }
  0xd0   : > { %v1860_v51 = vpop.permute.xlu1 %1859  ;;  %v1855_v52 = vpop.permute.xlu0 %1854 }
  0xd1   : > { %v1909_v53 = vmul.f32 %v6300_v47, %v1860_v51  ;;  %v1908_v54 = vmul.f32 %v6299_v48, %v1855_v52  ;;  %2446 = vmatprep.subr.bf16.mxu0 %v2075_v50 }
  0xd3   : > { %v1921_v58 = vpack.c.bf16 %v1909_v53, %v1908_v54  ;;  %v6316_v54 = vunpack.c.h.bf16 %v6427_v44 }
  0xd4   : > { %v2024_v59 = vpop.permute.xlu1 %2023  ;;  %v2019_v60 = vpop.permute.xlu0 %2018 }
  0xd5   : > { %v2065_v61 = vmul.f32 %v6336_v55, %v2024_v59  ;;  %v2064_v62 = vmul.f32 %v6335_v56, %v2019_v60  ;;  %2447 = vmatpush1.bf16.msra.mxu0 %v1921_v58  ;;  %v6315_v55 = vunpack.c.l.bf16 %v6427_v44  ;;  %v6444_v56 = vld [vmem:[%s11608_s3 + $0x100] sm:$0xff]  }
  0xd7   : > { %v2076_v3 = vpack.c.bf16 %v2065_v61, %v2064_v62 }
  0xd8   : > { %v1870_v4 = vpop.permute.xlu1 %1869  ;;  %v1865_v5 = vpop.permute.xlu0 %1864 }
  0xd9   : > { %v1911_v6 = vmul.f32 %v6304_v63, %v1870_v4  ;;  %v1910_v7 = vmul.f32 %v6303_v0, %v1865_v5  ;;  %2448 = vmatprep.subr.bf16.mxu0 %v2076_v3  ;;  %v6384_v3 = vunpack.c.h.bf16 %v6444_v56  ;;  %v6383_v4 = vunpack.c.l.bf16 %v6444_v56 }
  0xdb   : > { %v1922_v11 = vpack.c.bf16 %v1911_v6, %v1910_v7 }
  0xdc   : > { %v2034_v12 = vpop.permute.xlu1 %2033  ;;  %v2029_v13 = vpop.permute.xlu0 %2028 }
  0xdd   : > { %v2067_v14 = vmul.f32 %v6340_v8, %v2034_v12  ;;  %v2066_v15 = vmul.f32 %v6339_v9, %v2029_v13  ;;  %2449 = vmatpush1.bf16.msra.mxu0 %v1922_v11  ;;  %v6436_v8 = vld [vmem:[%s11608_s3 + $0xc0] sm:$0xff]  }
  0xdf   : > { %v2077_v19 = vpack.c.bf16 %v2067_v14, %v2066_v15 }
  0xe0   : > { %v1880_v20 = vpop.permute.xlu1 %1879  ;;  %v1875_v21 = vpop.permute.xlu0 %1874 }
  0xe1   : > { %v1913_v22 = vmul.f32 %v6308_v16, %v1880_v20  ;;  %v1912_v23 = vmul.f32 %v6307_v17, %v1875_v21  ;;  %2450 = vmatprep.subr.bf16.mxu0 %v2077_v19 }
  0xe3   : > { %v1923_v27 = vpack.c.bf16 %v1913_v22, %v1912_v23  ;;  %v6352_v22 = vunpack.c.h.bf16 %v6436_v8  ;;  %v6351_v23 = vunpack.c.l.bf16 %v6436_v8 }
  0xe4   : > { %v2044_v28 = vpop.permute.xlu1 %2043  ;;  %v2039_v29 = vpop.permute.xlu0 %2038 }
  0xe5   : > { %v2069_v30 = vmul.f32 %v6344_v24, %v2044_v28  ;;  %v2068_v31 = vmul.f32 %v6343_v25, %v2039_v29  ;;  %2451 = vmatpush1.bf16.msra.mxu0 %v1923_v27  ;;  %v6445_v24 = vld [vmem:[%s11608_s3 + $0x108] sm:$0xff]  }
  0xe6   : > { %v6388_v34 = vunpack.c.h.bf16 %v6445_v24 }
  0xe7   : > { %v2078_v35 = vpack.c.bf16 %v2069_v30, %v2068_v31 }
  0xe8   : > { %v1890_v36 = vpop.permute.xlu1 %1889  ;;  %v1885_v37 = vpop.permute.xlu0 %1884 }
  0xe9   : > { %v1915_v39 = vmul.f32 %v6312_v32, %v1890_v36  ;;  %v1914_v40 = vmul.f32 %v6311_v33, %v1885_v37  ;;  %2452 = vmatprep.subr.bf16.mxu0 %v2078_v35  ;;  %v6387_v35 = vunpack.c.l.bf16 %v6445_v24 }
  0xea   : > { %v6529_v43 = vpop.f32.mrb[0].mxu0 }
  0xeb   : > { %v1924_v45 = vpack.c.bf16 %v1915_v39, %v1914_v40  ;;  %v664_v46 = vadd.f32 %v6529_v43, %v7548_v38  ;;  %v655_v47 = vpop.f32.mrb[1].mxu0 }
  0xec   : > { %v656_v48 = vadd.f32 %v7548_v38, %v655_v47  ;;  %v2054_v49 = vpop.permute.xlu1 %2053  ;;  %v2049_v50 = vpop.permute.xlu0 %2048 }
  0xed   : > { %v2071_v51 = vmul.f32 %v6348_v41, %v2054_v49  ;;  %v2070_v52 = vmul.f32 %v6347_v42, %v2049_v50  ;;  %v6530_v53 = vpop.f32.mrb[2].mxu0  ;;  %2453 = vmatpush1.bf16.msra.mxu0 %v1924_v45  ;;  %v976_v57 = vmul.f32 0.2, %v664_v46  ;;  %vm912_vm3 = vcmp.gt.f32.partialorder %v664_v46, 0.0  ;;  %v6437_v45 = vld [vmem:[%s11608_s3 + $0xc8] sm:$0xff]  }
  0xee   : > { %v667_v58 = vadd.f32 %v6530_v53, %v7548_v38  ;;  %v658_v59 = vpop.f32.mrb[3].mxu0  ;;  %v974_v60 = vmul.f32 0.2, %v656_v48  ;;  %vm910_vm2 = vcmp.gt.f32.partialorder %v656_v48, 0.0  ;;  %v6356_v56 = vunpack.c.h.bf16 %v6437_v45 }
  0xef   : > { %v2079_v61 = vpack.c.bf16 %v2071_v51, %v2070_v52  ;;  %v659_v62 = vadd.f32 %v7548_v38, %v658_v59  ;;  %v1040_v11 = vsel %vm912_vm3, %v664_v46, %v976_v57  ;;  %v6355_v57 = vunpack.c.l.bf16 %v6437_v45  ;;  %v6446_v59 = vld [vmem:[%s11608_s3 + $0x110] sm:$0xff]  }
  0xf0   : > { %v977_v63 = vmul.f32 0.2, %v667_v58  ;;  %v1900_v0 = vpop.permute.xlu1 %1899  ;;  %v1895_v2 = vpop.permute.xlu0 %1894  ;;  %vm913_vm4 = vcmp.gt.f32.partialorder %v667_v58, 0.0  ;;  %v1038_v10 = vsel %vm910_vm2, %v656_v48, %v974_v60 }
  0xf1   : > { %v1917_v5 = vmul.f32 %v6316_v54, %v1900_v0  ;;  %v1916_v6 = vmul.f32 %v6315_v55, %v1895_v2  ;;  %2454 = vmatprep.subr.bf16.mxu0 %v2079_v61  ;;  %vm911_vm5 = vcmp.gt.f32.partialorder %v659_v62, 0.0  ;;  %v975_v7 = vmul.f32 0.2, %v659_v62 }
  0xf2   : > { %v6533_v9 = vpop.f32.mrb[4].mxu0  ;;  %v1041_v12 = vsel %vm913_vm4, %v667_v58, %v977_v63 }
  0xf3   : > { %v1925_v13 = vpack.c.bf16 %v1917_v5, %v1916_v6  ;;  %v680_v14 = vadd.f32 %v6533_v9, %v7548_v38  ;;  %v671_v15 = vpop.f32.mrb[5].mxu0  ;;  %v1039_v16 = vsel %vm911_vm5, %v659_v62, %v975_v7  ;;  %v1103_v17 = vpack.c.bf16 %v1041_v12, %v1040_v11 }
  0xf4   : > { %v672_v18 = vadd.f32 %v7548_v38, %v671_v15  ;;  %v2292_v19 = vpop.permute.xlu1 %2291  ;;  %v2287_v20 = vpop.permute.xlu0 %2286  ;;  %v1102_v21 = vpack.c.bf16 %v1039_v16, %v1038_v10  ;;  %v6392_v6 = vunpack.c.h.bf16 %v6446_v59  ;;  %v6391_v7 = vunpack.c.l.bf16 %v6446_v59  ;;  %v6438_v16 = vld [vmem:[%s11608_s3 + $0xd0] sm:$0xff]  }
  0xf5   : > { %v980_v25 = vmul.f32 0.2, %v680_v14  ;;  %v2365_v26 = vmul.f32 %v6384_v3, %v2292_v19  ;;  %v2364_v27 = vmul.f32 %v6383_v4, %v2287_v20  ;;  %v6534_v28 = vpop.f32.mrb[6].mxu0  ;;  %2455 = vmatpush1.bf16.msra.mxu0 %v1925_v13  ;;  %vm916_vm6 = vcmp.gt.f32.partialorder %v680_v14, 0.0 }
  0xf6   : > { %v978_v29 = vmul.f32 0.2, %v672_v18  ;;  %v683_v30 = vadd.f32 %v6534_v28, %v7548_v38  ;;  %v674_v31 = vpop.f32.mrb[7].mxu0  ;;  %6607 = vmatprep.mubr.bf16.mxu1 %v1102_v21  ;;  %vm914_vm7 = vcmp.gt.f32.partialorder %v672_v18, 0.0  ;;  %4305 = vmatprep.subr.bf16.mxu0 %v11615_v1 }
  0xf7   : > { %v2380_v32 = vpack.c.bf16 %v2365_v26, %v2364_v27  ;;  %v675_v33 = vadd.f32 %v7548_v38, %v674_v31  ;;  %6608 = vmatmul.mubr.bf16.vlgmr.msra.gmra.mrb[0].mxu1 %v1103_v17  ;;  %v1044_v41 = vsel %vm916_vm6, %v680_v14, %v980_v25  ;;  %v6360_v26 = vunpack.c.h.bf16 %v6438_v16 }
  0xf8   : > { %v981_v36 = vmul.f32 0.2, %v683_v30  ;;  %v2138_v37 = vpop.permute.xlu1 %2137  ;;  %v2133_v39 = vpop.permute.xlu0 %2132  ;;  %v1042_v40 = vsel %vm914_vm7, %v672_v18, %v978_v29  ;;  %vm917_vm8 = vcmp.gt.f32.partialorder %v683_v30, 0.0  ;;  %v6359_v27 = vunpack.c.l.bf16 %v6438_v16  ;;  %v6447_v29 = vld [vmem:[%s11608_s3 + $0x118] sm:$0xff]  }
  0xf9   : > { %v979_v42 = vmul.f32 0.2, %v675_v33  ;;  %v2211_v43 = vmul.f32 %v6352_v22, %v2138_v37  ;;  %v2210_v44 = vmul.f32 %v6351_v23, %v2133_v39  ;;  %2793 = vmatprep.subr.bf16.mxu1 %v2380_v32  ;;  %vm915_vm9 = vcmp.gt.f32.partialorder %v675_v33, 0.0 }
  0xfa   : > { %v1045_v46 = vsel %vm917_vm8, %v683_v30, %v981_v36  ;;  %v6537_v47 = vpop.f32.mrb[8].mxu0 }
  0xfb   : > { %v2226_v48 = vpack.c.bf16 %v2211_v43, %v2210_v44  ;;  %v1043_v49 = vsel %vm915_vm9, %v675_v33, %v979_v42  ;;  %v1105_v50 = vpack.c.bf16 %v1045_v46, %v1044_v41  ;;  %v696_v51 = vadd.f32 %v6537_v47, %v7548_v38  ;;  %v687_v52 = vpop.f32.mrb[9].mxu0 }
  0xfc   : > { %v2302_v53 = vpop.permute.xlu1 %2301  ;;  %v2297_v54 = vpop.permute.xlu0 %2296  ;;  %v1104_v55 = vpack.c.bf16 %v1043_v49, %v1042_v40  ;;  %v688_v58 = vadd.f32 %v7548_v38, %v687_v52  ;;  %v6396_v40 = vunpack.c.h.bf16 %v6447_v29  ;;  %v6395_v41 = vunpack.c.l.bf16 %v6447_v29 }
  0xfd   : > { %v2367_v60 = vmul.f32 %v6388_v34, %v2302_v53  ;;  %v2366_v61 = vmul.f32 %v6387_v35, %v2297_v54  ;;  %2794 = vmatpush1.bf16.msra.mxu1 %v2226_v48  ;;  %v984_v62 = vmul.f32 0.2, %v696_v51  ;;  %v6538_v63 = vpop.f32.mrb[10].mxu0  ;;  %vm920_vm10 = vcmp.gt.f32.partialorder %v696_v51, 0.0 }
  0xfe   : > { %6611 = vmatprep.mubr.bf16.mxu1 %v1104_v55  ;;  %v982_v0 = vmul.f32 0.2, %v688_v58  ;;  %v699_v2 = vadd.f32 %v6538_v63, %v7548_v38  ;;  %v690_v3 = vpop.f32.mrb[11].mxu0  ;;  %vm918_vm11 = vcmp.gt.f32.partialorder %v688_v58, 0.0  ;;  %v6448_v63 = vld [vmem:[%s11608_s3 + $0x120] sm:$0xff]  }
  0xff   : > { %v2381_v4 = vpack.c.bf16 %v2367_v60, %v2366_v61  ;;  %6612 = vmatmul.mubr.bf16.gmra.mrb[4].mxu1 %v1105_v50  ;;  %v691_v5 = vadd.f32 %v7548_v38, %v690_v3  ;;  %v1048_v12 = vsel %vm920_vm10, %v696_v51, %v984_v62  ;;  %v6439_v50 = vld [vmem:[%s11608_s3 + $0xd8] sm:$0xff]  }
 0x100   : > { %v2148_v8 = vpop.permute.xlu1 %2147  ;;  %v2143_v9 = vpop.permute.xlu0 %2142  ;;  %v985_v10 = vmul.f32 0.2, %v699_v2  ;;  %v1046_v11 = vsel %vm918_vm11, %v688_v58, %v982_v0  ;;  %vm921_vm12 = vcmp.gt.f32.partialorder %v699_v2, 0.0  ;;  %v6364_v61 = vunpack.c.h.bf16 %v6439_v50 }
 0x101   : > { %v2213_v13 = vmul.f32 %v6356_v56, %v2148_v8  ;;  %v2212_v14 = vmul.f32 %v6355_v57, %v2143_v9  ;;  %2795 = vmatprep.subr.bf16.mxu1 %v2381_v4  ;;  %v983_v15 = vmul.f32 0.2, %v691_v5  ;;  %vm919_vm13 = vcmp.gt.f32.partialorder %v691_v5, 0.0 }
 0x102   : > { %v1049_v17 = vsel %vm921_vm12, %v699_v2, %v985_v10  ;;  %v6541_v18 = vpop.f32.mrb[12].mxu0  ;;  %v6363_v62 = vunpack.c.l.bf16 %v6439_v50 }
 0x103   : > { %v2227_v19 = vpack.c.bf16 %v2213_v13, %v2212_v14  ;;  %v1047_v20 = vsel %vm919_vm13, %v691_v5, %v983_v15  ;;  %v1107_v21 = vpack.c.bf16 %v1049_v17, %v1048_v12  ;;  %v712_v22 = vadd.f32 %v6541_v18, %v7548_v38  ;;  %v703_v23 = vpop.f32.mrb[13].mxu0 }
 0x104   : > { %v2312_v24 = vpop.permute.xlu1 %2311  ;;  %v2307_v25 = vpop.permute.xlu0 %2306  ;;  %v1106_v28 = vpack.c.bf16 %v1047_v20, %v1046_v11  ;;  %v704_v30 = vadd.f32 %v7548_v38, %v703_v23  ;;  %v6400_v11 = vunpack.c.h.bf16 %v6448_v63  ;;  %v6399_v12 = vunpack.c.l.bf16 %v6448_v63 }
 0x105   : > { %v2369_v31 = vmul.f32 %v6392_v6, %v2312_v24  ;;  %v2368_v32 = vmul.f32 %v6391_v7, %v2307_v25  ;;  %2796 = vmatpush1.bf16.msra.mxu1 %v2227_v19  ;;  %v988_v33 = vmul.f32 0.2, %v712_v22  ;;  %v6542_v34 = vpop.f32.mrb[14].mxu0  ;;  %vm924_vm14 = vcmp.gt.f32.partialorder %v712_v22, 0.0 }
 0x106   : > { %6615 = vmatprep.mubr.bf16.mxu1 %v1106_v28  ;;  %v986_v35 = vmul.f32 0.2, %v704_v30  ;;  %v715_v36 = vadd.f32 %v6542_v34, %v7548_v38  ;;  %v706_v37 = vpop.f32.mrb[15].mxu0  ;;  %vm922_vm15 = vcmp.gt.f32.partialorder %v704_v30, 0.0  ;;  %v6449_v34 = vld [vmem:[%s11608_s3 + $0x128] sm:$0xff]  }
 0x107   : > { %v2382_v39 = vpack.c.bf16 %v2369_v31, %v2368_v32  ;;  %6616 = vmatmul.mubr.bf16.gmra.mrb[8].mxu1 %v1107_v21  ;;  %v707_v42 = vadd.f32 %v7548_v38, %v706_v37  ;;  %v1052_v47 = vsel %vm924_vm14, %v712_v22, %v988_v33  ;;  %v6440_v21 = vld [vmem:[%s11608_s3 + $0xe0] sm:$0xff]  }
 0x108   : > { %v2158_v43 = vpop.permute.xlu1 %2157  ;;  %v2153_v44 = vpop.permute.xlu0 %2152  ;;  %v989_v45 = vmul.f32 0.2, %v715_v36  ;;  %v1050_v46 = vsel %vm922_vm15, %v704_v30, %v986_v35  ;;  %vm925_vm0 = vcmp.gt.f32.partialorder %v715_v36, 0.0  ;;  %v6368_v32 = vunpack.c.h.bf16 %v6440_v21 }
 0x109   : > { %v2215_v48 = vmul.f32 %v6360_v26, %v2158_v43  ;;  %v2214_v49 = vmul.f32 %v6359_v27, %v2153_v44  ;;  %2797 = vmatprep.subr.bf16.mxu1 %v2382_v39  ;;  %v987_v51 = vmul.f32 0.2, %v707_v42  ;;  %vm923_vm2 = vcmp.gt.f32.partialorder %v707_v42, 0.0 }
 0x10a   : > { %v1053_v52 = vsel %vm925_vm0, %v715_v36, %v989_v45  ;;  %v6545_v53 = vpop.f32.mrb[16].mxu0  ;;  %v6367_v33 = vunpack.c.l.bf16 %v6440_v21 }
 0x10b   : > { %v2228_v54 = vpack.c.bf16 %v2215_v48, %v2214_v49  ;;  %v1051_v55 = vsel %vm923_vm2, %v707_v42, %v987_v51  ;;  %v1109_v56 = vpack.c.bf16 %v1053_v52, %v1052_v47  ;;  %v728_v57 = vadd.f32 %v6545_v53, %v7548_v38  ;;  %v719_v58 = vpop.f32.mrb[17].mxu0 }
 0x10c   : > { %v2322_v59 = vpop.permute.xlu1 %2321  ;;  %v2317_v60 = vpop.permute.xlu0 %2316  ;;  %v1108_v0 = vpack.c.bf16 %v1051_v55, %v1050_v46  ;;  %v720_v2 = vadd.f32 %v7548_v38, %v719_v58  ;;  %v6404_v46 = vunpack.c.h.bf16 %v6449_v34  ;;  %v6403_v47 = vunpack.c.l.bf16 %v6449_v34 }
 0x10d   : > { %v2371_v3 = vmul.f32 %v6396_v40, %v2322_v59  ;;  %v2370_v4 = vmul.f32 %v6395_v41, %v2317_v60  ;;  %2798 = vmatpush1.bf16.msra.mxu1 %v2228_v54  ;;  %v992_v5 = vmul.f32 0.2, %v728_v57  ;;  %v6546_v6 = vpop.f32.mrb[18].mxu0  ;;  %vm928_vm3 = vcmp.gt.f32.partialorder %v728_v57, 0.0 }
 0x10e   : > { %6619 = vmatprep.mubr.bf16.mxu1 %v1108_v0  ;;  %v990_v7 = vmul.f32 0.2, %v720_v2  ;;  %v731_v8 = vadd.f32 %v6546_v6, %v7548_v38  ;;  %v722_v9 = vpop.f32.mrb[19].mxu0  ;;  %vm926_vm4 = vcmp.gt.f32.partialorder %v720_v2, 0.0  ;;  %v6450_v6 = vld [vmem:[%s11608_s3 + $0x130] sm:$0xff]  }
 0x10f   : > { %v2383_v10 = vpack.c.bf16 %v2371_v3, %v2370_v4  ;;  %6620 = vmatmul.mubr.bf16.gmra.mrb[12].mxu1 %v1109_v56  ;;  %v723_v13 = vadd.f32 %v7548_v38, %v722_v9  ;;  %v1056_v18 = vsel %vm928_vm3, %v728_v57, %v992_v5  ;;  %v6441_v56 = vld [vmem:[%s11608_s3 + $0xe8] sm:$0xff]  }
 0x110   : > { %v2168_v14 = vpop.permute.xlu1 %2167  ;;  %v2163_v15 = vpop.permute.xlu0 %2162  ;;  %v993_v16 = vmul.f32 0.2, %v731_v8  ;;  %v1054_v17 = vsel %vm926_vm4, %v720_v2, %v990_v7  ;;  %vm929_vm5 = vcmp.gt.f32.partialorder %v731_v8, 0.0  ;;  %v6372_v4 = vunpack.c.h.bf16 %v6441_v56 }
 0x111   : > { %v2217_v19 = vmul.f32 %v6364_v61, %v2168_v14  ;;  %v2216_v20 = vmul.f32 %v6363_v62, %v2163_v15  ;;  %2799 = vmatprep.subr.bf16.mxu1 %v2383_v10  ;;  %v991_v22 = vmul.f32 0.2, %v723_v13  ;;  %vm927_vm6 = vcmp.gt.f32.partialorder %v723_v13, 0.0 }
 0x112   : > { %v1057_v23 = vsel %vm929_vm5, %v731_v8, %v993_v16  ;;  %v6549_v24 = vpop.f32.mrb[20].mxu0  ;;  %v6371_v5 = vunpack.c.l.bf16 %v6441_v56 }
 0x113   : > { %v2229_v25 = vpack.c.bf16 %v2217_v19, %v2216_v20  ;;  %v1055_v26 = vsel %vm927_vm6, %v723_v13, %v991_v22  ;;  %v1111_v27 = vpack.c.bf16 %v1057_v23, %v1056_v18  ;;  %v744_v28 = vadd.f32 %v6549_v24, %v7548_v38  ;;  %v735_v29 = vpop.f32.mrb[21].mxu0 }
 0x114   : > { %v2332_v30 = vpop.permute.xlu1 %2331  ;;  %v2327_v31 = vpop.permute.xlu0 %2326  ;;  %v1110_v35 = vpack.c.bf16 %v1055_v26, %v1054_v17  ;;  %v736_v36 = vadd.f32 %v7548_v38, %v735_v29  ;;  %v6408_v17 = vunpack.c.h.bf16 %v6450_v6  ;;  %v6407_v18 = vunpack.c.l.bf16 %v6450_v6 }
 0x115   : > { %v2373_v37 = vmul.f32 %v6400_v11, %v2332_v30  ;;  %v2372_v39 = vmul.f32 %v6399_v12, %v2327_v31  ;;  %2800 = vmatpush1.bf16.msra.mxu1 %v2229_v25  ;;  %v996_v40 = vmul.f32 0.2, %v744_v28  ;;  %v6550_v41 = vpop.f32.mrb[22].mxu0  ;;  %vm932_vm7 = vcmp.gt.f32.partialorder %v744_v28, 0.0 }
 0x116   : > { %6623 = vmatprep.mubr.bf16.mxu1 %v1110_v35  ;;  %v994_v42 = vmul.f32 0.2, %v736_v36  ;;  %v747_v43 = vadd.f32 %v6550_v41, %v7548_v38  ;;  %v738_v44 = vpop.f32.mrb[23].mxu0  ;;  %vm930_vm8 = vcmp.gt.f32.partialorder %v736_v36, 0.0  ;;  %v6451_v41 = vld [vmem:[%s11608_s3 + $0x138] sm:$0xff]  }
 0x117   : > { %v2384_v45 = vpack.c.bf16 %v2373_v37, %v2372_v39  ;;  %6624 = vmatmul.mubr.bf16.gmra.mrb[16].mxu1 %v1111_v27  ;;  %v739_v48 = vadd.f32 %v7548_v38, %v738_v44  ;;  %v1060_v53 = vsel %vm932_vm7, %v744_v28, %v996_v40  ;;  %v6442_v27 = vld [vmem:[%s11608_s3 + $0xf0] sm:$0xff]  }
 0x118   : > { %v2178_v49 = vpop.permute.xlu1 %2177  ;;  %v2173_v50 = vpop.permute.xlu0 %2172  ;;  %v997_v51 = vmul.f32 0.2, %v747_v43  ;;  %v1058_v52 = vsel %vm930_vm8, %v736_v36, %v994_v42  ;;  %vm933_vm9 = vcmp.gt.f32.partialorder %v747_v43, 0.0  ;;  %v6376_v39 = vunpack.c.h.bf16 %v6442_v27 }
 0x119   : > { %v2219_v54 = vmul.f32 %v6368_v32, %v2178_v49  ;;  %v2218_v55 = vmul.f32 %v6367_v33, %v2173_v50  ;;  %2801 = vmatprep.subr.bf16.mxu1 %v2384_v45  ;;  %v995_v57 = vmul.f32 0.2, %v739_v48  ;;  %vm931_vm10 = vcmp.gt.f32.partialorder %v739_v48, 0.0 }
 0x11a   : > { %v1061_v58 = vsel %vm933_vm9, %v747_v43, %v997_v51  ;;  %v6553_v59 = vpop.f32.mrb[24].mxu0  ;;  %v6375_v40 = vunpack.c.l.bf16 %v6442_v27 }
 0x11b   : > { %v2230_v60 = vpack.c.bf16 %v2219_v54, %v2218_v55  ;;  %v1059_v61 = vsel %vm931_vm10, %v739_v48, %v995_v57  ;;  %v1113_v62 = vpack.c.bf16 %v1061_v58, %v1060_v53  ;;  %v760_v63 = vadd.f32 %v6553_v59, %v7548_v38  ;;  %v751_v0 = vpop.f32.mrb[25].mxu0 }
 0x11c   : > { %v2342_v2 = vpop.permute.xlu1 %2341  ;;  %v2337_v3 = vpop.permute.xlu0 %2336  ;;  %v1112_v7 = vpack.c.bf16 %v1059_v61, %v1058_v52  ;;  %v752_v8 = vadd.f32 %v7548_v38, %v751_v0  ;;  %v6412_v52 = vunpack.c.h.bf16 %v6451_v41  ;;  %v6411_v53 = vunpack.c.l.bf16 %v6451_v41 }
 0x11d   : > { %v2375_v9 = vmul.f32 %v6404_v46, %v2342_v2  ;;  %v2374_v10 = vmul.f32 %v6403_v47, %v2337_v3  ;;  %2802 = vmatpush1.bf16.msra.mxu1 %v2230_v60  ;;  %v1000_v11 = vmul.f32 0.2, %v760_v63  ;;  %v6554_v12 = vpop.f32.mrb[26].mxu0  ;;  %vm936_vm11 = vcmp.gt.f32.partialorder %v760_v63, 0.0 }
 0x11e   : > { %6627 = vmatprep.mubr.bf16.mxu1 %v1112_v7  ;;  %v998_v13 = vmul.f32 0.2, %v752_v8  ;;  %v763_v14 = vadd.f32 %v6554_v12, %v7548_v38  ;;  %v754_v15 = vpop.f32.mrb[27].mxu0  ;;  %vm934_vm12 = vcmp.gt.f32.partialorder %v752_v8, 0.0 }
 0x11f   : > { %v2385_v16 = vpack.c.bf16 %v2375_v9, %v2374_v10  ;;  %6628 = vmatmul.mubr.bf16.gmra.mrb[20].mxu1 %v1113_v62  ;;  %v755_v19 = vadd.f32 %v7548_v38, %v754_v15  ;;  %v1064_v24 = vsel %vm936_vm11, %v760_v63, %v1000_v11  ;;  %v6443_v62 = vld [vmem:[%s11608_s3 + $0xf8] sm:$0xff]  }
 0x120   : > { %v2188_v20 = vpop.permute.xlu1 %2187  ;;  %v2183_v21 = vpop.permute.xlu0 %2182  ;;  %v1001_v22 = vmul.f32 0.2, %v763_v14  ;;  %v1062_v23 = vsel %vm934_vm12, %v752_v8, %v998_v13  ;;  %vm937_vm13 = vcmp.gt.f32.partialorder %v763_v14, 0.0  ;;  %v6380_v10 = vunpack.c.h.bf16 %v6443_v62 }
 0x121   : > { %v2221_v25 = vmul.f32 %v6372_v4, %v2188_v20  ;;  %v2220_v26 = vmul.f32 %v6371_v5, %v2183_v21  ;;  %2803 = vmatprep.subr.bf16.mxu1 %v2385_v16  ;;  %v999_v28 = vmul.f32 0.2, %v755_v19  ;;  %vm935_vm14 = vcmp.gt.f32.partialorder %v755_v19, 0.0 }
 0x122   : > { %v1065_v29 = vsel %vm937_vm13, %v763_v14, %v1001_v22  ;;  %v6557_v30 = vpop.f32.mrb[28].mxu0  ;;  %v6379_v11 = vunpack.c.l.bf16 %v6443_v62 }
 0x123   : > { %v2231_v31 = vpack.c.bf16 %v2221_v25, %v2220_v26  ;;  %v1063_v32 = vsel %vm935_vm14, %v755_v19, %v999_v28  ;;  %v1115_v33 = vpack.c.bf16 %v1065_v29, %v1064_v24  ;;  %v776_v34 = vadd.f32 %v6557_v30, %v7548_v38  ;;  %v767_v35 = vpop.f32.mrb[29].mxu0 }
 0x124   : > { %v2352_v36 = vpop.permute.xlu1 %2351  ;;  %v2347_v37 = vpop.permute.xlu0 %2346  ;;  %v1114_v42 = vpack.c.bf16 %v1063_v32, %v1062_v23  ;;  %v768_v43 = vadd.f32 %v7548_v38, %v767_v35 }
 0x125   : > { %v2377_v44 = vmul.f32 %v6408_v17, %v2352_v36  ;;  %v2376_v45 = vmul.f32 %v6407_v18, %v2347_v37  ;;  %2804 = vmatpush1.bf16.msra.mxu1 %v2231_v31  ;;  %v1004_v46 = vmul.f32 0.2, %v776_v34  ;;  %v6558_v47 = vpop.f32.mrb[30].mxu0  ;;  %vm940_vm15 = vcmp.gt.f32.partialorder %v776_v34, 0.0 }
 0x126   : > { %6631 = vmatprep.mubr.bf16.mxu1 %v1114_v42  ;;  %v1002_v48 = vmul.f32 0.2, %v768_v43  ;;  %v779_v49 = vadd.f32 %v6558_v47, %v7548_v38  ;;  %v770_v50 = vpop.f32.mrb[31].mxu0  ;;  %vm938_vm0 = vcmp.gt.f32.partialorder %v768_v43, 0.0 }
 0x127   : > { %v2386_v51 = vpack.c.bf16 %v2377_v44, %v2376_v45  ;;  %6632 = vmatmul.mubr.bf16.gmra.mrb[24].mxu1 %v1115_v33  ;;  %v771_v54 = vadd.f32 %v7548_v38, %v770_v50  ;;  %v1068_v59 = vsel %vm940_vm15, %v776_v34, %v1004_v46 }
 0x128   : > { %v2198_v55 = vpop.permute.xlu1 %2197  ;;  %v2193_v56 = vpop.permute.xlu0 %2192  ;;  %v1005_v57 = vmul.f32 0.2, %v779_v49  ;;  %v1066_v58 = vsel %vm938_vm0, %v768_v43, %v1002_v48  ;;  %vm941_vm2 = vcmp.gt.f32.partialorder %v779_v49, 0.0 }
 0x129   : > { %v2223_v60 = vmul.f32 %v6376_v39, %v2198_v55  ;;  %v2222_v61 = vmul.f32 %v6375_v40, %v2193_v56  ;;  %2805 = vmatprep.subr.bf16.mxu1 %v2386_v51  ;;  %v1003_v63 = vmul.f32 0.2, %v771_v54  ;;  %vm939_vm3 = vcmp.gt.f32.partialorder %v771_v54, 0.0 }
 0x12a   : > { %v1069_v0 = vsel %vm941_vm2, %v779_v49, %v1005_v57  ;;  %v6561_v2 = vpop.f32.mrb[32].mxu0 }
 0x12b   : > { %v2232_v3 = vpack.c.bf16 %v2223_v60, %v2222_v61  ;;  %v1067_v4 = vsel %vm939_vm3, %v771_v54, %v1003_v63  ;;  %v1117_v5 = vpack.c.bf16 %v1069_v0, %v1068_v59  ;;  %v792_v6 = vadd.f32 %v6561_v2, %v7548_v38  ;;  %v783_v7 = vpop.f32.mrb[33].mxu0 }
 0x12c   : > { %v2362_v8 = vpop.permute.xlu1 %2361  ;;  %v2357_v9 = vpop.permute.xlu0 %2356  ;;  %v1116_v12 = vpack.c.bf16 %v1067_v4, %v1066_v58  ;;  %v784_v13 = vadd.f32 %v7548_v38, %v783_v7 }
 0x12d   : > { %v2379_v14 = vmul.f32 %v6412_v52, %v2362_v8  ;;  %v2378_v15 = vmul.f32 %v6411_v53, %v2357_v9  ;;  %2806 = vmatpush1.bf16.msra.mxu1 %v2232_v3  ;;  %v1008_v16 = vmul.f32 0.2, %v792_v6  ;;  %v6562_v17 = vpop.f32.mrb[34].mxu0  ;;  %vm944_vm4 = vcmp.gt.f32.partialorder %v792_v6, 0.0 }
 0x12e   : > { %6635 = vmatprep.mubr.bf16.mxu1 %v1116_v12  ;;  %v1006_v18 = vmul.f32 0.2, %v784_v13  ;;  %v795_v19 = vadd.f32 %v6562_v17, %v7548_v38  ;;  %v786_v20 = vpop.f32.mrb[35].mxu0  ;;  %vm942_vm5 = vcmp.gt.f32.partialorder %v784_v13, 0.0 }
 0x12f   : > { %v2387_v21 = vpack.c.bf16 %v2379_v14, %v2378_v15  ;;  %6636 = vmatmul.mubr.bf16.gmra.mrb[28].mxu1 %v1117_v5  ;;  %v787_v22 = vadd.f32 %v7548_v38, %v786_v20  ;;  %v1072_v27 = vsel %vm944_vm4, %v792_v6, %v1008_v16 }
 0x130   : > { %v2208_v23 = vpop.permute.xlu1 %2207  ;;  %v2203_v24 = vpop.permute.xlu0 %2202  ;;  %v1009_v25 = vmul.f32 0.2, %v795_v19  ;;  %v1070_v26 = vsel %vm942_vm5, %v784_v13, %v1006_v18  ;;  %vm945_vm6 = vcmp.gt.f32.partialorder %v795_v19, 0.0 }
 0x131   : > { %v2225_v28 = vmul.f32 %v6380_v10, %v2208_v23  ;;  %v2224_v29 = vmul.f32 %v6379_v11, %v2203_v24  ;;  %2807 = vmatprep.subr.bf16.mxu1 %v2387_v21  ;;  %v1007_v30 = vmul.f32 0.2, %v787_v22  ;;  %vm943_vm7 = vcmp.gt.f32.partialorder %v787_v22, 0.0 }
 0x132   : > { %v1073_v31 = vsel %vm945_vm6, %v795_v19, %v1009_v25  ;;  %v6565_v32 = vpop.f32.mrb[36].mxu0 }
 0x133   : > { %v2233_v33 = vpack.c.bf16 %v2225_v28, %v2224_v29  ;;  %v1071_v34 = vsel %vm943_vm7, %v787_v22, %v1007_v30  ;;  %v1119_v35 = vpack.c.bf16 %v1073_v31, %v1072_v27  ;;  %v808_v36 = vadd.f32 %v6565_v32, %v7548_v38  ;;  %v799_v37 = vpop.f32.mrb[37].mxu0 }
 0x134   : > { %v1118_v39 = vpack.c.bf16 %v1071_v34, %v1070_v26  ;;  %v800_v40 = vadd.f32 %v7548_v38, %v799_v37  ;;  %v6566_v41 = vpop.f32.mrb[38].mxu0 }
 0x135   : > { %2808 = vmatpush1.bf16.msra.mxu1 %v2233_v33  ;;  %v1012_v42 = vmul.f32 0.2, %v808_v36  ;;  %v811_v43 = vadd.f32 %v6566_v41, %v7548_v38  ;;  %v802_v44 = vpop.f32.mrb[39].mxu0  ;;  %vm948_vm8 = vcmp.gt.f32.partialorder %v808_v36, 0.0 }
 0x136   : > { %6639 = vmatprep.mubr.bf16.mxu1 %v1118_v39  ;;  %v1010_v45 = vmul.f32 0.2, %v800_v40  ;;  %v803_v46 = vadd.f32 %v7548_v38, %v802_v44  ;;  %vm946_vm9 = vcmp.gt.f32.partialorder %v800_v40, 0.0  ;;  %6671 = vmatprep.subr.bf16.mxu1 %v11615_v1 }
 0x137   : > { %6640 = vmatmul.mubr.bf16.gmra.mrb[32].mxu1 %v1119_v35  ;;  %v1013_v47 = vmul.f32 0.2, %v811_v43  ;;  %vm949_vm10 = vcmp.gt.f32.partialorder %v811_v43, 0.0  ;;  %v1076_v48 = vsel %vm948_vm8, %v808_v36, %v1012_v42 }
 0x138   : > { %v1011_v49 = vmul.f32 0.2, %v803_v46  ;;  %vm947_vm11 = vcmp.gt.f32.partialorder %v803_v46, 0.0  ;;  %v1074_v50 = vsel %vm946_vm9, %v800_v40, %v1010_v45 }
 0x139   : > { %v1077_v51 = vsel %vm949_vm10, %v811_v43, %v1013_v47 }
 0x13a   : > { %v1075_v52 = vsel %vm947_vm11, %v803_v46, %v1011_v49  ;;  %v1121_v53 = vpack.c.bf16 %v1077_v51, %v1076_v48  ;;  %v6569_v54 = vpop.f32.mrb[40].mxu0 }
 0x13b   : > { %v1120_v55 = vpack.c.bf16 %v1075_v52, %v1074_v50  ;;  %v824_v56 = vadd.f32 %v6569_v54, %v7548_v38  ;;  %v815_v57 = vpop.f32.mrb[41].mxu0 }
 0x13c   : > { %v816_v58 = vadd.f32 %v7548_v38, %v815_v57  ;;  %v6570_v59 = vpop.f32.mrb[42].mxu0 }
 0x13d   : > { %6643 = vmatprep.mubr.bf16.mxu1 %v1120_v55  ;;  %v1016_v60 = vmul.f32 0.2, %v824_v56  ;;  %v827_v61 = vadd.f32 %v6570_v59, %v7548_v38  ;;  %v818_v62 = vpop.f32.mrb[43].mxu0  ;;  %vm952_vm12 = vcmp.gt.f32.partialorder %v824_v56, 0.0 }
 0x13e   : > { %v1014_v63 = vmul.f32 0.2, %v816_v58  ;;  %v819_v0 = vadd.f32 %v7548_v38, %v818_v62  ;;  %vm950_vm13 = vcmp.gt.f32.partialorder %v816_v58, 0.0 }
 0x13f   : > { %6644 = vmatmul.mubr.bf16.gmra.mrb[36].mxu1 %v1121_v53  ;;  %v1017_v2 = vmul.f32 0.2, %v827_v61  ;;  %vm953_vm14 = vcmp.gt.f32.partialorder %v827_v61, 0.0  ;;  %v1080_v3 = vsel %vm952_vm12, %v824_v56, %v1016_v60 }
 0x140   : > { %v1015_v4 = vmul.f32 0.2, %v819_v0  ;;  %vm951_vm15 = vcmp.gt.f32.partialorder %v819_v0, 0.0  ;;  %v1078_v5 = vsel %vm950_vm13, %v816_v58, %v1014_v63 }
 0x141   : > { %v1081_v6 = vsel %vm953_vm14, %v827_v61, %v1017_v2 }
 0x142   : > { %v1079_v7 = vsel %vm951_vm15, %v819_v0, %v1015_v4  ;;  %v1123_v8 = vpack.c.bf16 %v1081_v6, %v1080_v3  ;;  %v6573_v9 = vpop.f32.mrb[44].mxu0 }
 0x143   : > { %v1122_v10 = vpack.c.bf16 %v1079_v7, %v1078_v5  ;;  %v840_v11 = vadd.f32 %v6573_v9, %v7548_v38  ;;  %v831_v12 = vpop.f32.mrb[45].mxu0 }
 0x144   : > { %v832_v13 = vadd.f32 %v7548_v38, %v831_v12  ;;  %v6574_v14 = vpop.f32.mrb[46].mxu0 }
 0x145   : > { %6647 = vmatprep.mubr.bf16.mxu1 %v1122_v10  ;;  %v1020_v15 = vmul.f32 0.2, %v840_v11  ;;  %v843_v16 = vadd.f32 %v6574_v14, %v7548_v38  ;;  %v834_v17 = vpop.f32.mrb[47].mxu0  ;;  %vm956_vm0 = vcmp.gt.f32.partialorder %v840_v11, 0.0 }
 0x146   : > { %v1018_v18 = vmul.f32 0.2, %v832_v13  ;;  %v835_v19 = vadd.f32 %v7548_v38, %v834_v17  ;;  %vm954_vm2 = vcmp.gt.f32.partialorder %v832_v13, 0.0 }
 0x147   : > { %6648 = vmatmul.mubr.bf16.gmra.mrb[40].mxu1 %v1123_v8  ;;  %v1021_v20 = vmul.f32 0.2, %v843_v16  ;;  %vm957_vm3 = vcmp.gt.f32.partialorder %v843_v16, 0.0  ;;  %v1084_v21 = vsel %vm956_vm0, %v840_v11, %v1020_v15  ;;  %v7153_v11 = vld [vmem:[%s11607_s2] ss:$0 sm:$0xff] }
 0x148   : > { %v1019_v22 = vmul.f32 0.2, %v835_v19  ;;  %vm955_vm4 = vcmp.gt.f32.partialorder %v835_v19, 0.0  ;;  %v1082_v23 = vsel %vm954_vm2, %v832_v13, %v1018_v18 }
 0x149   : > { %v1085_v24 = vsel %vm957_vm3, %v843_v16, %v1021_v20 }
 0x14a   : > { %v1083_v25 = vsel %vm955_vm4, %v835_v19, %v1019_v22  ;;  %v1125_v26 = vpack.c.bf16 %v1085_v24, %v1084_v21  ;;  %v6577_v27 = vpop.f32.mrb[48].mxu0 }
 0x14b   : > { %v1124_v28 = vpack.c.bf16 %v1083_v25, %v1082_v23  ;;  %v856_v29 = vadd.f32 %v6577_v27, %v7548_v38  ;;  %v847_v30 = vpop.f32.mrb[49].mxu0 }
 0x14c   : > { %v848_v31 = vadd.f32 %v7548_v38, %v847_v30  ;;  %v6578_v32 = vpop.f32.mrb[50].mxu0 }
 0x14d   : > { %6651 = vmatprep.mubr.bf16.mxu1 %v1124_v28  ;;  %v1024_v33 = vmul.f32 0.2, %v856_v29  ;;  %v859_v34 = vadd.f32 %v6578_v32, %v7548_v38  ;;  %v850_v35 = vpop.f32.mrb[51].mxu0  ;;  %vm960_vm5 = vcmp.gt.f32.partialorder %v856_v29, 0.0 }
 0x14e   : > { %v1022_v36 = vmul.f32 0.2, %v848_v31  ;;  %v851_v37 = vadd.f32 %v7548_v38, %v850_v35  ;;  %vm958_vm6 = vcmp.gt.f32.partialorder %v848_v31, 0.0 }
 0x14f   : > { %6652 = vmatmul.mubr.bf16.gmra.mrb[44].mxu1 %v1125_v26  ;;  %v1025_v39 = vmul.f32 0.2, %v859_v34  ;;  %vm961_vm7 = vcmp.gt.f32.partialorder %v859_v34, 0.0  ;;  %v1088_v40 = vsel %vm960_vm5, %v856_v29, %v1024_v33 }
 0x150   : > { %v1023_v41 = vmul.f32 0.2, %v851_v37  ;;  %vm959_vm8 = vcmp.gt.f32.partialorder %v851_v37, 0.0  ;;  %v1086_v42 = vsel %vm958_vm6, %v848_v31, %v1022_v36 }
 0x151   : > { %v1089_v43 = vsel %vm961_vm7, %v859_v34, %v1025_v39  ;;  %v7680_v39 = vld [vmem:[%s7677_s13] ss:$0 sm:$0xff] }
 0x152   : > { %v1087_v44 = vsel %vm959_vm8, %v851_v37, %v1023_v41  ;;  %v1127_v45 = vpack.c.bf16 %v1089_v43, %v1088_v40  ;;  %v6581_v46 = vpop.f32.mrb[52].mxu0 }
 0x153   : > { %v1126_v47 = vpack.c.bf16 %v1087_v44, %v1086_v42  ;;  %v872_v48 = vadd.f32 %v6581_v46, %v7548_v38  ;;  %v863_v49 = vpop.f32.mrb[53].mxu0 }
 0x154   : > { %v864_v50 = vadd.f32 %v7548_v38, %v863_v49  ;;  %v6582_v51 = vpop.f32.mrb[54].mxu0 }
 0x155   : > { %6655 = vmatprep.mubr.bf16.mxu1 %v1126_v47  ;;  %v1028_v52 = vmul.f32 0.2, %v872_v48  ;;  %v875_v53 = vadd.f32 %v6582_v51, %v7548_v38  ;;  %v866_v54 = vpop.f32.mrb[55].mxu0  ;;  %vm964_vm9 = vcmp.gt.f32.partialorder %v872_v48, 0.0 }
 0x156   : > { %v1026_v55 = vmul.f32 0.2, %v864_v50  ;;  %v867_v56 = vadd.f32 %v7548_v38, %v866_v54  ;;  %vm962_vm10 = vcmp.gt.f32.partialorder %v864_v50, 0.0 }
 0x157   : > { %6656 = vmatmul.mubr.bf16.gmra.mrb[48].mxu1 %v1127_v45  ;;  %v1029_v57 = vmul.f32 0.2, %v875_v53  ;;  %vm965_vm11 = vcmp.gt.f32.partialorder %v875_v53, 0.0  ;;  %v1092_v58 = vsel %vm964_vm9, %v872_v48, %v1028_v52 }
 0x158   : > { %v1027_v59 = vmul.f32 0.2, %v867_v56  ;;  %vm963_vm12 = vcmp.gt.f32.partialorder %v867_v56, 0.0  ;;  %v1090_v60 = vsel %vm962_vm10, %v864_v50, %v1026_v55 }
 0x159   : > { %v1093_v61 = vsel %vm965_vm11, %v875_v53, %v1029_v57  ;;  %v6865_v57 = vld [vmem:[%s11611_s6] sm:$0xff]  }
 0x15a   : > { %v6585_v62 = vpop.f32.mrb[56].mxu0  ;;  %v1091_v63 = vsel %vm963_vm12, %v867_v56, %v1027_v59  ;;  %v1129_v0 = vpack.c.bf16 %v1093_v61, %v1092_v58 }
 0x15b   : > { %v888_v2 = vadd.f32 %v6585_v62, %v7548_v38  ;;  %v879_v3 = vpop.f32.mrb[57].mxu0  ;;  %v1128_v4 = vpack.c.bf16 %v1091_v63, %v1090_v60 }
 0x15c   : > { %v880_v5 = vadd.f32 %v7548_v38, %v879_v3  ;;  %v6586_v6 = vpop.f32.mrb[58].mxu0 }
 0x15d   : > { %v1032_v7 = vmul.f32 0.2, %v888_v2  ;;  %v891_v8 = vadd.f32 %v6586_v6, %v7548_v38  ;;  %6659 = vmatprep.mubr.bf16.mxu1 %v1128_v4  ;;  %v882_v9 = vpop.f32.mrb[59].mxu0  ;;  %vm968_vm13 = vcmp.gt.f32.partialorder %v888_v2, 0.0 }
 0x15e   : > { %v1030_v10 = vmul.f32 0.2, %v880_v5  ;;  %v883_v12 = vadd.f32 %v7153_v11, %v882_v9  ;;  %vm966_vm14 = vcmp.gt.f32.partialorder %v880_v5, 0.0 }
 0x15f   : > { %v1033_v13 = vmul.f32 0.2, %v891_v8  ;;  %6660 = vmatmul.mubr.bf16.gmra.mrb[52].mxu1 %v1129_v0  ;;  %vm969_vm15 = vcmp.gt.f32.partialorder %v891_v8, 0.0  ;;  %v1096_v14 = vsel %vm968_vm13, %v888_v2, %v1032_v7  ;;  %v6868_v0 = vld [vmem:[%s11611_s6 + $0x80] sm:$0xff]   ;;  %v6866_v7 = vld [vmem:[%s11611_s6 + $0x8] sm:$0xff]  }
 0x160   : > { %v1031_v15 = vmul.f32 0.2, %v883_v12  ;;  %vm967_vm0 = vcmp.gt.f32.partialorder %v883_v12, 0.0  ;;  %v1094_v16 = vsel %vm966_vm14, %v880_v5, %v1030_v10  ;;  %v6870_v10 = vld [vmem:[%s11611_s6 + $0x88] sm:$0xff]  }
 0x161   : > { %v1097_v17 = vsel %vm969_vm15, %v891_v8, %v1033_v13 }
 0x162   : > { %v6589_v18 = vpop.f32.mrb[60].mxu0  ;;  %v1095_v38 = vsel %vm967_vm0, %v883_v12, %v1031_v15  ;;  %v1131_v19 = vpack.c.bf16 %v1097_v17, %v1096_v14 }
 0x163   : > { %v904_v20 = vadd.f32 %v7153_v11, %v6589_v18  ;;  %v895_v21 = vpop.f32.mrb[61].mxu0  ;;  %v1130_v22 = vpack.c.bf16 %v1095_v38, %v1094_v16 }
 0x164   : > { %v896_v23 = vadd.f32 %v7153_v11, %v895_v21  ;;  %v6590_v24 = vpop.f32.mrb[62].mxu0 }
 0x165   : > { %v1036_v25 = vmul.f32 0.2, %v904_v20  ;;  %v907_v26 = vadd.f32 %v7153_v11, %v6590_v24  ;;  %v898_v27 = vpop.f32.mrb[63].mxu0  ;;  %6663 = vmatprep.mubr.bf16.mxu1 %v1130_v22  ;;  %vm972_vm2 = vcmp.gt.f32.partialorder %v904_v20, 0.0  ;;  %v6872_v22 = vld [vmem:[%s11611_s6 + $0x90] sm:$0xff]  }
 0x166   : > { %v1034_v28 = vmul.f32 0.2, %v896_v23  ;;  %v899_v29 = vadd.f32 %v7153_v11, %v898_v27  ;;  %vm970_vm3 = vcmp.gt.f32.partialorder %v896_v23, 0.0 }
 0x167   : > { %v1037_v30 = vmul.f32 0.2, %v907_v26  ;;  %6664 = vmatmul.mubr.bf16.gmra.mrb[56].mxu1 %v1131_v19  ;;  %vm973_vm4 = vcmp.gt.f32.partialorder %v907_v26, 0.0  ;;  %v1100_v31 = vsel %vm972_vm2, %v904_v20, %v1036_v25  ;;  %v6867_v19 = vld [vmem:[%s11611_s6 + $0x10] sm:$0xff]  }
 0x168   : > { %v1035_v32 = vmul.f32 0.2, %v899_v29  ;;  %vm971_vm5 = vcmp.gt.f32.partialorder %v899_v29, 0.0  ;;  %v1098_v33 = vsel %vm970_vm3, %v896_v23, %v1034_v28 }
 0x169   : > { %v1101_v34 = vsel %vm973_vm4, %v907_v26, %v1037_v30  ;;  %v6869_v30 = vld [vmem:[%s11611_s6 + $0x18] sm:$0xff]  }
 0x16a   : > { %v1099_v35 = vsel %vm971_vm5, %v899_v29, %v1035_v32  ;;  %v1133_v36 = vpack.c.bf16 %v1101_v34, %v1100_v31 }
 0x16b   : > { %v1132_v37 = vpack.c.bf16 %v1099_v35, %v1098_v33  ;;  %v6874_v33 = vld [vmem:[%s11611_s6 + $0x98] sm:$0xff]  }
 0x16d   : > { %6667 = vmatprep.mubr.bf16.mxu1 %v1132_v37 }
 0x16f   : > { %6668 = vmatmul.mubr.bf16.gmra.mrb[60].mxu1 %v1133_v36 }
 0x170   : > { %2825 = vmatprep.mubr.bf16.mxu1 %v11615_v1 }
 0x1ca   : > { %v6609_v40 = vpop.f32.mrb[0].mxu1 }
 0x1cb   : > { %v1334_v41 = vadd.f32 %v6609_v40, %v7680_v39  ;;  %v1325_v42 = vpop.f32.mrb[1].mxu1 }
 0x1cc   : > { %v1326_v43 = vadd.f32 %v7680_v39, %v1325_v42  ;;  %v6610_v44 = vpop.f32.mrb[2].mxu1 }
 0x1cd   : > { %v1646_v45 = vmul.f32 0.2, %v1334_v41  ;;  %v1337_v46 = vadd.f32 %v6610_v44, %v7680_v39  ;;  %v1328_v47 = vpop.f32.mrb[3].mxu1  ;;  %vm1582_vm6 = vcmp.gt.f32.partialorder %v1334_v41, 0.0 }
 0x1ce   : > { %v1644_v48 = vmul.f32 0.2, %v1326_v43  ;;  %v1329_v49 = vadd.f32 %v7680_v39, %v1328_v47  ;;  %vm1580_vm7 = vcmp.gt.f32.partialorder %v1326_v43, 0.0 }
 0x1cf   : > { %v1647_v50 = vmul.f32 0.2, %v1337_v46  ;;  %vm1583_vm8 = vcmp.gt.f32.partialorder %v1337_v46, 0.0  ;;  %v1710_v52 = vsel %vm1582_vm6, %v1334_v41, %v1646_v45 }
 0x1d0   : > { %vm1581_vm9 = vcmp.gt.f32.partialorder %v1329_v49, 0.0  ;;  %v1645_v51 = vmul.f32 0.2, %v1329_v49  ;;  %v1708_v54 = vsel %vm1580_vm7, %v1326_v43, %v1644_v48  ;;  %v6871_v43 = vld [vmem:[%s11611_s6 + $0x20] sm:$0xff]  }
 0x1d1   : > { %v1711_v53 = vsel %vm1583_vm8, %v1337_v46, %v1647_v50  ;;  %v6876_v46 = vld [vmem:[%s11611_s6 + $0xa0] sm:$0xff]  }
 0x1d2   : > { %v1709_v55 = vsel %vm1581_vm9, %v1329_v49, %v1645_v51  ;;  %v6613_v56 = vpop.f32.mrb[4].mxu1  ;;  %v2393_v58 = vpack.c.bf16 %v1711_v53, %v1710_v52 }
 0x1d3   : > { %v2392_v59 = vpack.c.bf16 %v1709_v55, %v1708_v54  ;;  %v1350_v60 = vadd.f32 %v6613_v56, %v7680_v39  ;;  %v1341_v61 = vpop.f32.mrb[5].mxu1  ;;  %v6873_v54 = vld [vmem:[%s11611_s6 + $0x28] sm:$0xff]  }
 0x1d4   : > { %v1342_v62 = vadd.f32 %v7680_v39, %v1341_v61  ;;  %v6614_v63 = vpop.f32.mrb[6].mxu1 }
 0x1d5   : > { %v1650_v2 = vmul.f32 0.2, %v1350_v60  ;;  %v1353_v3 = vadd.f32 %v6614_v63, %v7680_v39  ;;  %v1344_v4 = vpop.f32.mrb[7].mxu1  ;;  %2473 = vmatmul.mubr.bf16.vlgmr.msra.gmra.mrb[64].mxu0 %v2392_v59  ;;  %2826 = vmatmul.mubr.bf16.vlgmr.msra.gmra.mrb[64].mxu1 %v2392_v59  ;;  %vm1586_vm10 = vcmp.gt.f32.partialorder %v1350_v60, 0.0 }
 0x1d6   : > { %v1648_v5 = vmul.f32 0.2, %v1342_v62  ;;  %v1345_v6 = vadd.f32 %v7680_v39, %v1344_v4  ;;  %4306 = vmatpush1.bf16.msra.mxu0 %v6865_v57  ;;  %2482 = vmatprep.mubr.bf16.mxu0 %v11615_v1  ;;  %vm1584_vm11 = vcmp.gt.f32.partialorder %v1342_v62, 0.0  ;;  %v6878_v57 = vld [vmem:[%s11611_s6 + $0xa8] sm:$0xff]  }
 0x1d7   : > { %v1651_v8 = vmul.f32 0.2, %v1353_v3  ;;  %2835 = vmatprep.mubr.bf16.mxu1 %v11615_v1  ;;  %4307 = vmatprep.subr.bf16.mxu0 %v11615_v1  ;;  %vm1587_vm12 = vcmp.gt.f32.partialorder %v1353_v3, 0.0  ;;  %v1714_v11 = vsel %vm1586_vm10, %v1350_v60, %v1650_v2  ;;  %v6875_v2 = vld [vmem:[%s11611_s6 + $0x30] sm:$0xff]  }
 0x1d8   : > { %v1649_v9 = vmul.f32 0.2, %v1345_v6  ;;  %vm1585_vm13 = vcmp.gt.f32.partialorder %v1345_v6, 0.0  ;;  %6687 = vmatpush1.bf16.msra.mxu1 %v6868_v0  ;;  %v1712_v14 = vsel %vm1584_vm11, %v1342_v62, %v1648_v5  ;;  %v6880_v5 = vld [vmem:[%s11611_s6 + $0xb0] sm:$0xff]  }
 0x1d9   : > { %v1715_v12 = vsel %vm1587_vm12, %v1353_v3, %v1651_v8  ;;  %6672 = vmatprep.subr.bf16.mxu1 %v11615_v1 }
 0x1da   : > { %v6617_v13 = vpop.f32.mrb[8].mxu1  ;;  %v1713_v15 = vsel %vm1585_vm13, %v1345_v6, %v1649_v9  ;;  %4308 = vmatpush1.bf16.msra.mxu0 %v6866_v7  ;;  %v7706_v16 = vpack.c.bf16 %v1715_v12, %v1714_v11 }
 0x1db   : > { %v1366_v17 = vadd.f32 %v6617_v13, %v7680_v39  ;;  %v1357_v18 = vpop.f32.mrb[9].mxu1  ;;  %v2394_v38 = vpack.c.bf16 %v1713_v15, %v1712_v14  ;;  %4309 = vmatprep.subr.bf16.mxu0 %v11615_v1  ;;  %v6877_v13 = vld [vmem:[%s11611_s6 + $0x38] sm:$0xff]  }
 0x1dc   : > { %v1358_v20 = vadd.f32 %v7680_v39, %v1357_v18  ;;  %v6618_v21 = vpop.f32.mrb[10].mxu1  ;;  %6688 = vmatpush1.bf16.msra.mxu1 %v6870_v10 }
 0x1dd   : > { %2483 = vmatmul.mubr.bf16.gmra.mrb[68].mxu0 %v2393_v58  ;;  %2836 = vmatmul.mubr.bf16.gmra.mrb[68].mxu1 %v2393_v58  ;;  %v1654_v23 = vmul.f32 0.2, %v1366_v17  ;;  %v1369_v24 = vadd.f32 %v6618_v21, %v7680_v39  ;;  %v1360_v25 = vpop.f32.mrb[11].mxu1  ;;  %vm1590_vm14 = vcmp.gt.f32.partialorder %v1366_v17, 0.0 }
 0x1de   : > { %v1652_v26 = vmul.f32 0.2, %v1358_v20  ;;  %v1361_v27 = vadd.f32 %v7680_v39, %v1360_v25  ;;  %2492 = vmatprep.mubr.bf16.mxu0 %v11615_v1  ;;  %2845 = vmatprep.mubr.bf16.mxu1 %v11615_v1  ;;  %vm1588_vm15 = vcmp.gt.f32.partialorder %v1358_v20, 0.0 }
 0x1df   : > { %v1655_v28 = vmul.f32 0.2, %v1369_v24  ;;  %4310 = vmatpush1.bf16.msra.mxu0 %v6867_v19  ;;  %vm1591_vm0 = vcmp.gt.f32.partialorder %v1369_v24, 0.0  ;;  %v1718_v29 = vsel %vm1590_vm14, %v1366_v17, %v1654_v23  ;;  %6673 = vmatprep.subr.bf16.mxu1 %v11615_v1  ;;  %v6879_v23 = vld [vmem:[%s11611_s6 + $0x40] sm:$0xff]  }
 0x1e0   : > { %v1653_v31 = vmul.f32 0.2, %v1361_v27  ;;  %vm1589_vm2 = vcmp.gt.f32.partialorder %v1361_v27, 0.0  ;;  %v1716_v32 = vsel %vm1588_vm15, %v1358_v20, %v1652_v26  ;;  %4311 = vmatprep.subr.bf16.mxu0 %v11615_v1  ;;  %6689 = vmatpush1.bf16.msra.mxu1 %v6872_v22 }
 0x1e1   : > { %v1719_v34 = vsel %vm1591_vm0, %v1369_v24, %v1655_v28  ;;  %6674 = vmatprep.subr.bf16.mxu1 %v11615_v1 }
 0x1e2   : > { %v6621_v35 = vpop.f32.mrb[12].mxu1  ;;  %v1717_v36 = vsel %vm1589_vm2, %v1361_v27, %v1653_v31  ;;  %v7730_v37 = vpack.c.bf16 %v1719_v34, %v1718_v29  ;;  %v6884_v29 = vld [vmem:[%s11611_s6 + $0xc0] sm:$0xff]   ;;  %v6881_v34 = vld [vmem:[%s11611_s6 + $0x48] sm:$0xff]  }
 0x1e3   : > { %v1382_v40 = vadd.f32 %v6621_v35, %v7680_v39  ;;  %v1373_v41 = vpop.f32.mrb[13].mxu1  ;;  %v7733_v42 = vpack.c.bf16 %v1717_v36, %v1716_v32  ;;  %4312 = vmatpush1.bf16.msra.mxu0 %v6869_v30 }
 0x1e4   : > { %v1374_v44 = vadd.f32 %v7680_v39, %v1373_v41  ;;  %v6622_v45 = vpop.f32.mrb[14].mxu1  ;;  %4313 = vmatprep.subr.bf16.mxu0 %v11615_v1  ;;  %6690 = vmatpush1.bf16.msra.mxu1 %v6874_v33 }
 0x1e5   : > { %2493 = vmatmul.mubr.bf16.gmra.mrb[72].mxu0 %v2394_v38  ;;  %2846 = vmatmul.mubr.bf16.gmra.mrb[72].mxu1 %v2394_v38  ;;  %v1658_v47 = vmul.f32 0.2, %v1382_v40  ;;  %v1385_v48 = vadd.f32 %v6622_v45, %v7680_v39  ;;  %v1376_v49 = vpop.f32.mrb[15].mxu1  ;;  %vm1594_vm3 = vcmp.gt.f32.partialorder %v1382_v40, 0.0 }
 0x1e6   : > { %2502 = vmatprep.mubr.bf16.mxu0 %v11615_v1  ;;  %2855 = vmatprep.mubr.bf16.mxu1 %v11615_v1  ;;  %v1656_v50 = vmul.f32 0.2, %v1374_v44  ;;  %v1377_v51 = vadd.f32 %v7680_v39, %v1376_v49  ;;  %vm1592_vm4 = vcmp.gt.f32.partialorder %v1374_v44, 0.0 }
 0x1e7   : > { %v1659_v52 = vmul.f32 0.2, %v1385_v48  ;;  %vm1595_vm5 = vcmp.gt.f32.partialorder %v1385_v48, 0.0  ;;  %v1722_v53 = vsel %vm1594_vm3, %v1382_v40, %v1658_v47  ;;  %4314 = vmatpush1.bf16.msra.mxu0 %v6871_v43  ;;  %6675 = vmatprep.subr.bf16.mxu1 %v11615_v1  ;;  %v6883_v47 = vld [vmem:[%s11611_s6 + $0x50] sm:$0xff]  }
 0x1e8   : > { %v1657_v55 = vmul.f32 0.2, %v1377_v51  ;;  %vm1593_vm6 = vcmp.gt.f32.partialorder %v1377_v51, 0.0  ;;  %v1720_v56 = vsel %vm1592_vm4, %v1374_v44, %v1656_v50  ;;  %4315 = vmatprep.subr.bf16.mxu0 %v11615_v1  ;;  %6691 = vmatpush1.bf16.msra.mxu1 %v6876_v46 }
 0x1e9   : > { %v1723_v58 = vsel %vm1595_vm5, %v1385_v48, %v1659_v52  ;;  %6676 = vmatprep.subr.bf16.mxu1 %v11615_v1 }
 0x1ea   : > { %v6625_v59 = vpop.f32.mrb[16].mxu1  ;;  %v1721_v60 = vsel %vm1593_vm6, %v1377_v51, %v1657_v55  ;;  %v7756_v61 = vpack.c.bf16 %v1723_v58, %v1722_v53 }
 0x1eb   : > { %v1398_v62 = vadd.f32 %v6625_v59, %v7680_v39  ;;  %v1389_v63 = vpop.f32.mrb[17].mxu1  ;;  %v7759_v0 = vpack.c.bf16 %v1721_v60, %v1720_v56  ;;  %4316 = vmatpush1.bf16.msra.mxu0 %v6873_v54 }
 0x1ec   : > { %v1390_v3 = vadd.f32 %v7680_v39, %v1389_v63  ;;  %v6626_v4 = vpop.f32.mrb[18].mxu1  ;;  %4317 = vmatprep.subr.bf16.mxu0 %v11615_v1  ;;  %6692 = vmatpush1.bf16.msra.mxu1 %v6878_v57 }
 0x1ed   : > { %2503 = vmatmul.mubr.bf16.gmra.mrb[76].mxu0 %v7706_v16  ;;  %2856 = vmatmul.mubr.bf16.gmra.mrb[76].mxu1 %v7706_v16  ;;  %v1662_v6 = vmul.f32 0.2, %v1398_v62  ;;  %v1401_v7 = vadd.f32 %v6626_v4, %v7680_v39  ;;  %v1392_v8 = vpop.f32.mrb[19].mxu1  ;;  %vm1598_vm7 = vcmp.gt.f32.partialorder %v1398_v62, 0.0  ;;  %v6882_v16 = vld [vmem:[%s11611_s6 + $0xb8] sm:$0xff]  }
 0x1ee   : > { %2512 = vmatprep.mubr.bf16.mxu0 %v11615_v1  ;;  %2865 = vmatprep.mubr.bf16.mxu1 %v11615_v1  ;;  %v1660_v9 = vmul.f32 0.2, %v1390_v3  ;;  %v1393_v10 = vadd.f32 %v7680_v39, %v1392_v8  ;;  %vm1596_vm8 = vcmp.gt.f32.partialorder %v1390_v3, 0.0 }
 0x1ef   : > { %v1663_v11 = vmul.f32 0.2, %v1401_v7  ;;  %vm1599_vm9 = vcmp.gt.f32.partialorder %v1401_v7, 0.0  ;;  %v1726_v12 = vsel %vm1598_vm7, %v1398_v62, %v1662_v6  ;;  %4318 = vmatpush1.bf16.msra.mxu0 %v6875_v2  ;;  %6677 = vmatprep.subr.bf16.mxu1 %v11615_v1 }
 0x1f0   : > { %v1661_v14 = vmul.f32 0.2, %v1393_v10  ;;  %vm1597_vm10 = vcmp.gt.f32.partialorder %v1393_v10, 0.0  ;;  %v1724_v15 = vsel %vm1596_vm8, %v1390_v3, %v1660_v9  ;;  %4319 = vmatprep.subr.bf16.mxu0 %v11615_v1  ;;  %6693 = vmatpush1.bf16.msra.mxu1 %v6880_v5  ;;  %v6885_v9 = vld [vmem:[%s11611_s6 + $0x58] sm:$0xff]  }
 0x1f1   : > { %v1727_v17 = vsel %vm1599_vm9, %v1401_v7, %v1663_v11  ;;  %6678 = vmatprep.subr.bf16.mxu1 %v11615_v1 }
 0x1f2   : > { %v6629_v18 = vpop.f32.mrb[20].mxu1  ;;  %v1725_v38 = vsel %vm1597_vm10, %v1393_v10, %v1661_v14  ;;  %v7784_v19 = vpack.c.bf16 %v1727_v17, %v1726_v12  ;;  %v6886_v10 = vld [vmem:[%s11611_s6 + $0xc8] sm:$0xff]  }
 0x1f3   : > { %v1414_v20 = vadd.f32 %v6629_v18, %v7680_v39  ;;  %v1405_v21 = vpop.f32.mrb[21].mxu1  ;;  %v7787_v22 = vpack.c.bf16 %v1725_v38, %v1724_v15  ;;  %4320 = vmatpush1.bf16.msra.mxu0 %v6877_v13 }
 0x1f4   : > { %v1406_v24 = vadd.f32 %v7680_v39, %v1405_v21  ;;  %v6630_v25 = vpop.f32.mrb[22].mxu1  ;;  %4321 = vmatprep.subr.bf16.mxu0 %v11615_v1  ;;  %6694 = vmatpush1.bf16.msra.mxu1 %v6882_v16 }
 0x1f5   : > { %2513 = vmatmul.mubr.bf16.gmra.mrb[80].mxu0 %v7733_v42  ;;  %2866 = vmatmul.mubr.bf16.gmra.mrb[80].mxu1 %v7733_v42  ;;  %v1666_v26 = vmul.f32 0.2, %v1414_v20  ;;  %v1417_v27 = vadd.f32 %v6630_v25, %v7680_v39  ;;  %v1408_v28 = vpop.f32.mrb[23].mxu1  ;;  %vm1602_vm11 = vcmp.gt.f32.partialorder %v1414_v20, 0.0 }
 0x1f6   : > { %2522 = vmatprep.mubr.bf16.mxu0 %v11615_v1  ;;  %2875 = vmatprep.mubr.bf16.mxu1 %v11615_v1  ;;  %v1664_v30 = vmul.f32 0.2, %v1406_v24  ;;  %v1409_v31 = vadd.f32 %v7680_v39, %v1408_v28  ;;  %vm1600_vm12 = vcmp.gt.f32.partialorder %v1406_v24, 0.0 }
 0x1f7   : > { %v1667_v32 = vmul.f32 0.2, %v1417_v27  ;;  %vm1603_vm13 = vcmp.gt.f32.partialorder %v1417_v27, 0.0  ;;  %v1730_v33 = vsel %vm1602_vm11, %v1414_v20, %v1666_v26  ;;  %4322 = vmatpush1.bf16.msra.mxu0 %v6879_v23  ;;  %6679 = vmatprep.subr.bf16.mxu1 %v11615_v1 }
 0x1f8   : > { %v1665_v35 = vmul.f32 0.2, %v1409_v31  ;;  %vm1601_vm14 = vcmp.gt.f32.partialorder %v1409_v31, 0.0  ;;  %v1728_v36 = vsel %vm1600_vm12, %v1406_v24, %v1664_v30  ;;  %4323 = vmatprep.subr.bf16.mxu0 %v11615_v1  ;;  %6695 = vmatpush1.bf16.msra.mxu1 %v6884_v29 }
 0x1f9   : > { %v1731_v40 = vsel %vm1603_vm13, %v1417_v27, %v1667_v32  ;;  %6680 = vmatprep.subr.bf16.mxu1 %v11615_v1 }
 0x1fa   : > { %v6633_v41 = vpop.f32.mrb[24].mxu1  ;;  %v1729_v42 = vsel %vm1601_vm14, %v1409_v31, %v1665_v35  ;;  %v7809_v43 = vpack.c.bf16 %v1731_v40, %v1730_v33 }
 0x1fb   : > { %v1430_v44 = vadd.f32 %v6633_v41, %v7680_v39  ;;  %v1421_v45 = vpop.f32.mrb[25].mxu1  ;;  %v7812_v46 = vpack.c.bf16 %v1729_v42, %v1728_v36  ;;  %4324 = vmatpush1.bf16.msra.mxu0 %v6881_v34 }
 0x1fc   : > { %v1422_v48 = vadd.f32 %v7680_v39, %v1421_v45  ;;  %v6634_v49 = vpop.f32.mrb[26].mxu1  ;;  %4325 = vmatprep.subr.bf16.mxu0 %v11615_v1  ;;  %6696 = vmatpush1.bf16.msra.mxu1 %v6886_v10 }
 0x1fd   : > { %2523 = vmatmul.mubr.bf16.gmra.mrb[84].mxu0 %v7730_v37  ;;  %2876 = vmatmul.mubr.bf16.gmra.mrb[84].mxu1 %v7730_v37  ;;  %v1670_v50 = vmul.f32 0.2, %v1430_v44  ;;  %v1433_v51 = vadd.f32 %v6634_v49, %v7680_v39  ;;  %v1424_v52 = vpop.f32.mrb[27].mxu1  ;;  %vm1606_vm15 = vcmp.gt.f32.partialorder %v1430_v44, 0.0 }
 0x1fe   : > { %2532 = vmatprep.mubr.bf16.mxu0 %v11615_v1  ;;  %2885 = vmatprep.mubr.bf16.mxu1 %v11615_v1  ;;  %v1668_v53 = vmul.f32 0.2, %v1422_v48  ;;  %v1425_v54 = vadd.f32 %v7680_v39, %v1424_v52  ;;  %vm1604_vm0 = vcmp.gt.f32.partialorder %v1422_v48, 0.0  ;;  %v6888_v52 = vld [vmem:[%s11611_s6 + $0xd0] sm:$0xff]  }
 0x1ff   : > { %v1671_v55 = vmul.f32 0.2, %v1433_v51  ;;  %vm1607_vm2 = vcmp.gt.f32.partialorder %v1433_v51, 0.0  ;;  %v1734_v56 = vsel %vm1606_vm15, %v1430_v44, %v1670_v50  ;;  %4326 = vmatpush1.bf16.msra.mxu0 %v6883_v47  ;;  %6681 = vmatprep.subr.bf16.mxu1 %v11615_v1 }
 0x200   : > { %v1669_v57 = vmul.f32 0.2, %v1425_v54  ;;  %vm1605_vm3 = vcmp.gt.f32.partialorder %v1425_v54, 0.0  ;;  %v1732_v37 = vsel %vm1604_vm0, %v1422_v48, %v1668_v53  ;;  %4327 = vmatprep.subr.bf16.mxu0 %v11615_v1  ;;  %6697 = vmatpush1.bf16.msra.mxu1 %v6888_v52 }
 0x201   : > { %v1735_v58 = vsel %vm1607_vm2, %v1433_v51, %v1671_v55  ;;  %v6887_v51 = vld [vmem:[%s11611_s6 + $0x60] sm:$0xff]   ;;  %6682 = vmatprep.subr.bf16.mxu1 %v11615_v1 }
 0x202   : > { %v6637_v59 = vpop.f32.mrb[28].mxu1  ;;  %v1733_v60 = vsel %vm1605_vm3, %v1425_v54, %v1669_v57  ;;  %v7826_v62 = vpack.c.bf16 %v1735_v58, %v1734_v56 }
 0x203   : > { %v1446_v63 = vadd.f32 %v6637_v59, %v7680_v39  ;;  %v1437_v2 = vpop.f32.mrb[29].mxu1  ;;  %v7829_v3 = vpack.c.bf16 %v1733_v60, %v1732_v37  ;;  %4328 = vmatpush1.bf16.msra.mxu0 %v6885_v9 }
 0x204   : > { %v1438_v4 = vadd.f32 %v7680_v39, %v1437_v2  ;;  %v6638_v5 = vpop.f32.mrb[30].mxu1  ;;  %4329 = vmatprep.subr.bf16.mxu0 %v11615_v1 }
 0x205   : > { %2533 = vmatmul.mubr.bf16.gmra.mrb[88].mxu0 %v7759_v0  ;;  %2886 = vmatmul.mubr.bf16.gmra.mrb[88].mxu1 %v7759_v0  ;;  %v1674_v6 = vmul.f32 0.2, %v1446_v63  ;;  %v1449_v7 = vadd.f32 %v6638_v5, %v7680_v39  ;;  %v1440_v8 = vpop.f32.mrb[31].mxu1  ;;  %vm1610_vm4 = vcmp.gt.f32.partialorder %v1446_v63, 0.0 }
 0x206   : > { %2542 = vmatprep.mubr.bf16.mxu0 %v11615_v1  ;;  %2895 = vmatprep.mubr.bf16.mxu1 %v11615_v1  ;;  %v1672_v11 = vmul.f32 0.2, %v1438_v4  ;;  %v1441_v0 = vadd.f32 %v7680_v39, %v1440_v8  ;;  %vm1608_vm5 = vcmp.gt.f32.partialorder %v1438_v4, 0.0 }
 0x207   : > { %v1675_v12 = vmul.f32 0.2, %v1449_v7  ;;  %vm1611_vm6 = vcmp.gt.f32.partialorder %v1449_v7, 0.0  ;;  %v1738_v13 = vsel %vm1610_vm4, %v1446_v63, %v1674_v6  ;;  %4330 = vmatpush1.bf16.msra.mxu0 %v6887_v51 }
 0x208   : > { %v1673_v14 = vmul.f32 0.2, %v1441_v0  ;;  %vm1609_vm7 = vcmp.gt.f32.partialorder %v1441_v0, 0.0  ;;  %v1736_v15 = vsel %vm1608_vm5, %v1438_v4, %v1672_v11  ;;  %4331 = vmatprep.subr.bf16.mxu0 %v11615_v1 }
 0x209   : > { %v1739_v16 = vsel %vm1611_vm6, %v1449_v7, %v1675_v12 }
 0x20a   : > { %v6641_v17 = vpop.f32.mrb[32].mxu1  ;;  %v1737_v18 = vsel %vm1609_vm7, %v1441_v0, %v1673_v14  ;;  %v7846_v38 = vpack.c.bf16 %v1739_v16, %v1738_v13 }
 0x20b   : > { %v1462_v20 = vadd.f32 %v6641_v17, %v7680_v39  ;;  %v1453_v21 = vpop.f32.mrb[33].mxu1  ;;  %v7849_v23 = vpack.c.bf16 %v1737_v18, %v1736_v15 }
 0x20c   : > { %v1454_v24 = vadd.f32 %v7680_v39, %v1453_v21  ;;  %v6642_v25 = vpop.f32.mrb[34].mxu1 }
 0x20d   : > { %2543 = vmatmul.mubr.bf16.gmra.mrb[92].mxu0 %v7756_v61  ;;  %2896 = vmatmul.mubr.bf16.gmra.mrb[92].mxu1 %v7756_v61  ;;  %v1678_v26 = vmul.f32 0.2, %v1462_v20  ;;  %v1465_v27 = vadd.f32 %v6642_v25, %v7680_v39  ;;  %v1456_v28 = vpop.f32.mrb[35].mxu1  ;;  %vm1614_vm8 = vcmp.gt.f32.partialorder %v1462_v20, 0.0 }
 0x20e   : > { %2552 = vmatprep.mubr.bf16.mxu0 %v11615_v1  ;;  %2905 = vmatprep.mubr.bf16.mxu1 %v11615_v1  ;;  %v1676_v29 = vmul.f32 0.2, %v1454_v24  ;;  %v1457_v30 = vadd.f32 %v7680_v39, %v1456_v28  ;;  %vm1612_vm9 = vcmp.gt.f32.partialorder %v1454_v24, 0.0 }
 0x20f   : > { %v1679_v31 = vmul.f32 0.2, %v1465_v27  ;;  %vm1615_vm10 = vcmp.gt.f32.partialorder %v1465_v27, 0.0  ;;  %v1742_v32 = vsel %vm1614_vm8, %v1462_v20, %v1678_v26 }
 0x210   : > { %v1677_v33 = vmul.f32 0.2, %v1457_v30  ;;  %vm1613_vm11 = vcmp.gt.f32.partialorder %v1457_v30, 0.0  ;;  %v1740_v34 = vsel %vm1612_vm9, %v1454_v24, %v1676_v29  ;;  %v6889_v29 = vld [vmem:[%s11611_s6 + $0x68] sm:$0xff]  }
 0x211   : > { %v1743_v61 = vsel %vm1615_vm10, %v1465_v27, %v1679_v31  ;;  %4332 = vmatpush1.bf16.msra.mxu0 %v6889_v29 }
 0x212   : > { %v6645_v35 = vpop.f32.mrb[36].mxu1  ;;  %v1741_v36 = vsel %vm1613_vm11, %v1457_v30, %v1677_v33  ;;  %v7858_v40 = vpack.c.bf16 %v1743_v61, %v1742_v32  ;;  %v6890_v30 = vld [vmem:[%s11611_s6 + $0xd8] sm:$0xff]   ;;  %4333 = vmatprep.subr.bf16.mxu0 %v11615_v1 }
 0x213   : > { %v1478_v41 = vadd.f32 %v6645_v35, %v7680_v39  ;;  %v1469_v42 = vpop.f32.mrb[37].mxu1  ;;  %v7861_v44 = vpack.c.bf16 %v1741_v36, %v1740_v34  ;;  %6698 = vmatpush1.bf16.msra.mxu1 %v6890_v30 }
 0x214   : > { %v1470_v45 = vadd.f32 %v7680_v39, %v1469_v42  ;;  %v6646_v47 = vpop.f32.mrb[38].mxu1  ;;  %6683 = vmatprep.subr.bf16.mxu1 %v11615_v1 }
 0x215   : > { %2553 = vmatmul.mubr.bf16.gmra.mrb[96].mxu0 %v7787_v22  ;;  %2906 = vmatmul.mubr.bf16.gmra.mrb[96].mxu1 %v7787_v22  ;;  %v1682_v48 = vmul.f32 0.2, %v1478_v41  ;;  %v1481_v49 = vadd.f32 %v6646_v47, %v7680_v39  ;;  %v1472_v50 = vpop.f32.mrb[39].mxu1  ;;  %vm1618_vm12 = vcmp.gt.f32.partialorder %v1478_v41, 0.0 }
 0x216   : > { %2562 = vmatprep.mubr.bf16.mxu0 %v11615_v1  ;;  %2915 = vmatprep.mubr.bf16.mxu1 %v11615_v1  ;;  %v1680_v53 = vmul.f32 0.2, %v1470_v45  ;;  %v1473_v22 = vadd.f32 %v7680_v39, %v1472_v50  ;;  %vm1616_vm13 = vcmp.gt.f32.partialorder %v1470_v45, 0.0 }
 0x217   : > { %v1683_v54 = vmul.f32 0.2, %v1481_v49  ;;  %vm1619_vm14 = vcmp.gt.f32.partialorder %v1481_v49, 0.0  ;;  %v1746_v55 = vsel %vm1618_vm12, %v1478_v41, %v1682_v48 }
 0x218   : > { %v1681_v56 = vmul.f32 0.2, %v1473_v22  ;;  %vm1617_vm15 = vcmp.gt.f32.partialorder %v1473_v22, 0.0  ;;  %v1744_v57 = vsel %vm1616_vm13, %v1470_v45, %v1680_v53 }
 0x219   : > { %v1747_v37 = vsel %vm1619_vm14, %v1481_v49, %v1683_v54 }
 0x21a   : > { %v6649_v58 = vpop.f32.mrb[40].mxu1  ;;  %v1745_v59 = vsel %vm1617_vm15, %v1473_v22, %v1681_v56  ;;  %v7878_v60 = vpack.c.bf16 %v1747_v37, %v1746_v55 }
 0x21b   : > { %v1494_v63 = vadd.f32 %v6649_v58, %v7680_v39  ;;  %v1485_v2 = vpop.f32.mrb[41].mxu1  ;;  %v7881_v4 = vpack.c.bf16 %v1745_v59, %v1744_v57 }
 0x21c   : > { %v1486_v5 = vadd.f32 %v7680_v39, %v1485_v2  ;;  %v6650_v6 = vpop.f32.mrb[42].mxu1 }
 0x21d   : > { %2563 = vmatmul.mubr.bf16.gmra.mrb[100].mxu0 %v7784_v19  ;;  %2916 = vmatmul.mubr.bf16.gmra.mrb[100].mxu1 %v7784_v19  ;;  %v1686_v7 = vmul.f32 0.2, %v1494_v63  ;;  %v1497_v8 = vadd.f32 %v6650_v6, %v7680_v39  ;;  %v1488_v9 = vpop.f32.mrb[43].mxu1  ;;  %vm1622_vm0 = vcmp.gt.f32.partialorder %v1494_v63, 0.0 }
 0x21e   : > { %2572 = vmatprep.mubr.bf16.mxu0 %v11615_v1  ;;  %2925 = vmatprep.mubr.bf16.mxu1 %v11615_v1  ;;  %v1684_v10 = vmul.f32 0.2, %v1486_v5  ;;  %v1489_v11 = vadd.f32 %v7680_v39, %v1488_v9  ;;  %vm1620_vm2 = vcmp.gt.f32.partialorder %v1486_v5, 0.0 }
 0x21f   : > { %v1687_v0 = vmul.f32 0.2, %v1497_v8  ;;  %vm1623_vm3 = vcmp.gt.f32.partialorder %v1497_v8, 0.0  ;;  %v1750_v12 = vsel %vm1622_vm0, %v1494_v63, %v1686_v7 }
 0x220   : > { %v1685_v13 = vmul.f32 0.2, %v1489_v11  ;;  %vm1621_vm4 = vcmp.gt.f32.partialorder %v1489_v11, 0.0  ;;  %v1748_v14 = vsel %vm1620_vm2, %v1486_v5, %v1684_v10 }
 0x221   : > { %v1751_v19 = vsel %vm1623_vm3, %v1497_v8, %v1687_v0 }
 0x222   : > { %v6653_v15 = vpop.f32.mrb[44].mxu1  ;;  %v1749_v16 = vsel %vm1621_vm4, %v1489_v11, %v1685_v13  ;;  %v7890_v17 = vpack.c.bf16 %v1751_v19, %v1750_v12 }
 0x223   : > { %v1510_v18 = vadd.f32 %v6653_v15, %v7680_v39  ;;  %v1501_v20 = vpop.f32.mrb[45].mxu1  ;;  %v7893_v21 = vpack.c.bf16 %v1749_v16, %v1748_v14  ;;  %v6891_v16 = vld [vmem:[%s11611_s6 + $0x70] sm:$0xff]  }
 0x224   : > { %v1502_v24 = vadd.f32 %v7680_v39, %v1501_v20  ;;  %v6654_v25 = vpop.f32.mrb[46].mxu1  ;;  %4334 = vmatpush1.bf16.msra.mxu0 %v6891_v16 }
 0x225   : > { %2573 = vmatmul.mubr.bf16.gmra.mrb[104].mxu0 %v7812_v46  ;;  %2926 = vmatmul.mubr.bf16.gmra.mrb[104].mxu1 %v7812_v46  ;;  %v1690_v26 = vmul.f32 0.2, %v1510_v18  ;;  %v1513_v27 = vadd.f32 %v6654_v25, %v7680_v39  ;;  %v1504_v28 = vpop.f32.mrb[47].mxu1  ;;  %vm1626_vm5 = vcmp.gt.f32.partialorder %v1510_v18, 0.0 }
 0x226   : > { %2582 = vmatprep.mubr.bf16.mxu0 %v11615_v1  ;;  %2935 = vmatprep.mubr.bf16.mxu1 %v11615_v1  ;;  %v1688_v31 = vmul.f32 0.2, %v1502_v24  ;;  %v1505_v46 = vadd.f32 %v7680_v39, %v1504_v28  ;;  %vm1624_vm6 = vcmp.gt.f32.partialorder %v1502_v24, 0.0 }
 0x227   : > { %v1691_v32 = vmul.f32 0.2, %v1513_v27  ;;  %vm1627_vm7 = vcmp.gt.f32.partialorder %v1513_v27, 0.0  ;;  %v1754_v33 = vsel %vm1626_vm5, %v1510_v18, %v1690_v26  ;;  %v6892_v18 = vld [vmem:[%s11611_s6 + $0xe0] sm:$0xff]   ;;  %4335 = vmatprep.subr.bf16.mxu0 %v11615_v1 }
 0x228   : > { %v1689_v34 = vmul.f32 0.2, %v1505_v46  ;;  %vm1625_vm8 = vcmp.gt.f32.partialorder %v1505_v46, 0.0  ;;  %v1752_v61 = vsel %vm1624_vm6, %v1502_v24, %v1688_v31  ;;  %6699 = vmatpush1.bf16.msra.mxu1 %v6892_v18 }
 0x229   : > { %v1755_v35 = vsel %vm1627_vm7, %v1513_v27, %v1691_v32  ;;  %6684 = vmatprep.subr.bf16.mxu1 %v11615_v1 }
 0x22a   : > { %v6657_v36 = vpop.f32.mrb[48].mxu1  ;;  %v1753_v41 = vsel %vm1625_vm8, %v1505_v46, %v1689_v34  ;;  %v7910_v42 = vpack.c.bf16 %v1755_v35, %v1754_v33 }
 0x22b   : > { %v1526_v45 = vadd.f32 %v6657_v36, %v7680_v39  ;;  %v1517_v47 = vpop.f32.mrb[49].mxu1  ;;  %v7913_v48 = vpack.c.bf16 %v1753_v41, %v1752_v61 }
 0x22c   : > { %v1518_v49 = vadd.f32 %v7680_v39, %v1517_v47  ;;  %v6658_v50 = vpop.f32.mrb[50].mxu1 }
 0x22d   : > { %2583 = vmatmul.mubr.bf16.gmra.mrb[108].mxu0 %v7809_v43  ;;  %2936 = vmatmul.mubr.bf16.gmra.mrb[108].mxu1 %v7809_v43  ;;  %v1694_v51 = vmul.f32 0.2, %v1526_v45  ;;  %v1529_v52 = vadd.f32 %v6658_v50, %v7680_v39  ;;  %v1520_v53 = vpop.f32.mrb[51].mxu1  ;;  %vm1630_vm9 = vcmp.gt.f32.partialorder %v1526_v45, 0.0 }
 0x22e   : > { %2592 = vmatprep.mubr.bf16.mxu0 %v11615_v1  ;;  %2945 = vmatprep.mubr.bf16.mxu1 %v11615_v1  ;;  %v1692_v22 = vmul.f32 0.2, %v1518_v49  ;;  %v1521_v54 = vadd.f32 %v7680_v39, %v1520_v53  ;;  %vm1628_vm10 = vcmp.gt.f32.partialorder %v1518_v49, 0.0 }
 0x22f   : > { %v1695_v55 = vmul.f32 0.2, %v1529_v52  ;;  %vm1631_vm11 = vcmp.gt.f32.partialorder %v1529_v52, 0.0  ;;  %v1758_v56 = vsel %vm1630_vm9, %v1526_v45, %v1694_v51 }
 0x230   : > { %v1693_v57 = vmul.f32 0.2, %v1521_v54  ;;  %vm1629_vm12 = vcmp.gt.f32.partialorder %v1521_v54, 0.0  ;;  %v1756_v37 = vsel %vm1628_vm10, %v1518_v49, %v1692_v22 }
 0x231   : > { %v1759_v43 = vsel %vm1631_vm11, %v1529_v52, %v1695_v55 }
 0x232   : > { %v6661_v58 = vpop.f32.mrb[52].mxu1  ;;  %v1757_v59 = vsel %vm1629_vm12, %v1521_v54, %v1693_v57  ;;  %v7922_v63 = vpack.c.bf16 %v1759_v43, %v1758_v56 }
 0x233   : > { %v1542_v2 = vadd.f32 %v6661_v58, %v7680_v39  ;;  %v1533_v5 = vpop.f32.mrb[53].mxu1  ;;  %v7925_v6 = vpack.c.bf16 %v1757_v59, %v1756_v37 }
 0x234   : > { %v1534_v7 = vadd.f32 %v7680_v39, %v1533_v5  ;;  %v6662_v8 = vpop.f32.mrb[54].mxu1 }
 0x235   : > { %2593 = vmatmul.mubr.bf16.gmra.mrb[112].mxu0 %v7829_v3  ;;  %2946 = vmatmul.mubr.bf16.gmra.mrb[112].mxu1 %v7829_v3  ;;  %v1698_v9 = vmul.f32 0.2, %v1542_v2  ;;  %v1545_v10 = vadd.f32 %v6662_v8, %v7680_v39  ;;  %v1536_v11 = vpop.f32.mrb[55].mxu1  ;;  %vm1634_vm13 = vcmp.gt.f32.partialorder %v1542_v2, 0.0  ;;  %v6894_v8 = vld [vmem:[%s11611_s6 + $0xe8] sm:$0xff]  }
 0x236   : > { %2602 = vmatprep.mubr.bf16.mxu0 %v11615_v1  ;;  %2955 = vmatprep.mubr.bf16.mxu1 %v11615_v1  ;;  %v1696_v0 = vmul.f32 0.2, %v1534_v7  ;;  %v1537_v12 = vadd.f32 %v7680_v39, %v1536_v11  ;;  %vm1632_vm14 = vcmp.gt.f32.partialorder %v1534_v7, 0.0 }
 0x237   : > { %v1699_v13 = vmul.f32 0.2, %v1545_v10  ;;  %vm1635_vm15 = vcmp.gt.f32.partialorder %v1545_v10, 0.0  ;;  %v1762_v14 = vsel %vm1634_vm13, %v1542_v2, %v1698_v9  ;;  %6700 = vmatpush1.bf16.msra.mxu1 %v6894_v8 }
 0x238   : > { %v1697_v19 = vmul.f32 0.2, %v1537_v12  ;;  %vm1633_vm0 = vcmp.gt.f32.partialorder %v1537_v12, 0.0  ;;  %v1760_v15 = vsel %vm1632_vm14, %v1534_v7, %v1696_v0  ;;  %v6893_v7 = vld [vmem:[%s11611_s6 + $0x78] sm:$0xff]   ;;  %6685 = vmatprep.subr.bf16.mxu1 %v11615_v1 }
 0x239   : > { %v1763_v3 = vsel %vm1635_vm15, %v1545_v10, %v1699_v13  ;;  %4336 = vmatpush1.bf16.msra.mxu0 %v6893_v7 }
 0x23a   : > { %v6665_v20 = vpop.f32.mrb[56].mxu1  ;;  %v1761_v24 = vsel %vm1633_vm0, %v1537_v12, %v1697_v19  ;;  %v7940_v25 = vpack.c.bf16 %v1763_v3, %v1762_v14  ;;  %4594 = vmatprep.subr.bf16.mxu0 %v11615_v1  ;;  %v8046_v12 = vld [vmem:[%s7677_s13 + $0x4] ss:$0 sm:$0xff] }
 0x23b   : > { %v1558_v26 = vadd.f32 %v6665_v20, %v7680_v39  ;;  %v1549_v27 = vpop.f32.mrb[57].mxu1  ;;  %v7943_v28 = vpack.c.bf16 %v1761_v24, %v1760_v15 }
 0x23c   : > { %v1550_v29 = vadd.f32 %v7680_v39, %v1549_v27  ;;  %v6666_v30 = vpop.f32.mrb[58].mxu1 }
 0x23d   : > { %2603 = vmatmul.mubr.bf16.gmra.mrb[116].mxu0 %v7826_v62  ;;  %2956 = vmatmul.mubr.bf16.gmra.mrb[116].mxu1 %v7826_v62  ;;  %vm1638_vm2 = vcmp.gt.f32.partialorder %v1558_v26, 0.0  ;;  %v1702_v31 = vmul.f32 0.2, %v1558_v26  ;;  %v1561_v46 = vadd.f32 %v6666_v30, %v7680_v39  ;;  %v1552_v32 = vpop.f32.mrb[59].mxu1 }
 0x23e   : > { %2612 = vmatprep.mubr.bf16.mxu0 %v11615_v1  ;;  %2965 = vmatprep.mubr.bf16.mxu1 %v11615_v1  ;;  %vm1636_vm3 = vcmp.gt.f32.partialorder %v1550_v29, 0.0  ;;  %v1700_v33 = vmul.f32 0.2, %v1550_v29  ;;  %v1553_v34 = vadd.f32 %v7680_v39, %v1552_v32 }
 0x23f   : > { %vm1639_vm4 = vcmp.gt.f32.partialorder %v1561_v46, 0.0  ;;  %v1703_v61 = vmul.f32 0.2, %v1561_v46  ;;  %v1766_v35 = vsel %vm1638_vm2, %v1558_v26, %v1702_v31 }
 0x240   : > { %vm1637_vm5 = vcmp.gt.f32.partialorder %v1553_v34, 0.0  ;;  %v1701_v36 = vmul.f32 0.2, %v1553_v34  ;;  %v1764_v41 = vsel %vm1636_vm3, %v1550_v29, %v1700_v33 }
 0x241   : > { %v1767_v62 = vsel %vm1639_vm4, %v1561_v46, %v1703_v61 }
 0x242   : > { %v6669_v45 = vpop.f32.mrb[60].mxu1  ;;  %v1765_v47 = vsel %vm1637_vm5, %v1553_v34, %v1701_v36  ;;  %v7954_v49 = vpack.c.bf16 %v1767_v62, %v1766_v35 }
 0x243   : > { %v1574_v50 = vadd.f32 %v6669_v45, %v7680_v39  ;;  %v1565_v51 = vpop.f32.mrb[61].mxu1  ;;  %v7957_v52 = vpack.c.bf16 %v1765_v47, %v1764_v41 }
 0x244   : > { %v1566_v53 = vadd.f32 %v7680_v39, %v1565_v51  ;;  %v6670_v22 = vpop.f32.mrb[62].mxu1 }
 0x245   : > { %2613 = vmatmul.mubr.bf16.gmra.mrb[120].mxu0 %v7849_v23  ;;  %2966 = vmatmul.mubr.bf16.gmra.mrb[120].mxu1 %v7849_v23  ;;  %vm1642_vm6 = vcmp.gt.f32.partialorder %v1574_v50, 0.0  ;;  %v1706_v54 = vmul.f32 0.2, %v1574_v50  ;;  %v1577_v55 = vadd.f32 %v6670_v22, %v7680_v39  ;;  %v1568_v56 = vpop.f32.mrb[63].mxu1 }
 0x246   : > { %2622 = vmatprep.mubr.bf16.mxu0 %v11615_v1  ;;  %2975 = vmatprep.mubr.bf16.mxu1 %v11615_v1  ;;  %vm1640_vm7 = vcmp.gt.f32.partialorder %v1566_v53, 0.0  ;;  %v1704_v57 = vmul.f32 0.2, %v1566_v53  ;;  %v1569_v37 = vadd.f32 %v7680_v39, %v1568_v56  ;;  %v6895_v39 = vld [vmem:[%s11611_s6 + $0xf0] sm:$0xff]  }
 0x247   : > { %vm1643_vm8 = vcmp.gt.f32.partialorder %v1577_v55, 0.0  ;;  %v1707_v43 = vmul.f32 0.2, %v1577_v55  ;;  %v1770_v58 = vsel %vm1642_vm6, %v1574_v50, %v1706_v54  ;;  %6701 = vmatpush1.bf16.msra.mxu1 %v6895_v39 }
 0x248   : > { %vm1641_vm9 = vcmp.gt.f32.partialorder %v1569_v37, 0.0  ;;  %v1705_v59 = vmul.f32 0.2, %v1569_v37  ;;  %v1768_v2 = vsel %vm1640_vm7, %v1566_v53, %v1704_v57  ;;  %6686 = vmatprep.subr.bf16.mxu1 %v11615_v1 }
 0x249   : > { %v1771_v23 = vsel %vm1643_vm8, %v1577_v55, %v1707_v43 }
 0x24a   : > { %v1769_v5 = vsel %vm1641_vm9, %v1569_v37, %v1705_v59  ;;  %v7972_v9 = vpack.c.bf16 %v1771_v23, %v1770_v58 }
 0x24b   : > { %v7974_v10 = vpack.c.bf16 %v1769_v5, %v1768_v2 }
 0x24d   : > { %2623 = vmatmul.mubr.bf16.gmra.mrb[124].mxu0 %v7846_v38  ;;  %2976 = vmatmul.mubr.bf16.gmra.mrb[124].mxu1 %v7846_v38  ;;  %v6896_v38 = vld [vmem:[%s11611_s6 + $0xf8] sm:$0xff]  }
 0x24e   : > { %2632 = vmatprep.mubr.bf16.mxu0 %v11615_v1  ;;  %2985 = vmatprep.mubr.bf16.mxu1 %v11615_v1 }
 0x24f   : > { %6702 = vmatpush1.bf16.msra.mxu1 %v6896_v38 }
 0x255   : > { %2633 = vmatmul.mubr.bf16.gmra.mrb[128].mxu0 %v7861_v44  ;;  %2986 = vmatmul.mubr.bf16.gmra.mrb[128].mxu1 %v7861_v44  ;;  %v8035_v44 = vld [vmem:[%s7677_s13 + $0x3] ss:$0 sm:$0xff] }
 0x256   : > { %2642 = vmatprep.mubr.bf16.mxu0 %v11615_v1  ;;  %2995 = vmatprep.mubr.bf16.mxu1 %v11615_v1 }
 0x25d   : > { %2643 = vmatmul.mubr.bf16.gmra.mrb[132].mxu0 %v7858_v40  ;;  %2996 = vmatmul.mubr.bf16.gmra.mrb[132].mxu1 %v7858_v40  ;;  %v8032_v40 = vld [vmem:[%s7677_s13 + $0x1] ss:$0 sm:$0xff] }
 0x25e   : > { %2652 = vmatprep.mubr.bf16.mxu0 %v11615_v1  ;;  %3005 = vmatprep.mubr.bf16.mxu1 %v11615_v1 }
 0x265   : > { %2653 = vmatmul.mubr.bf16.gmra.mrb[136].mxu0 %v7881_v4  ;;  %3006 = vmatmul.mubr.bf16.gmra.mrb[136].mxu1 %v7881_v4 }
 0x266   : > { %2662 = vmatprep.mubr.bf16.mxu0 %v11615_v1  ;;  %3015 = vmatprep.mubr.bf16.mxu1 %v11615_v1 }
 0x26d   : > { %2663 = vmatmul.mubr.bf16.gmra.mrb[140].mxu0 %v7878_v60  ;;  %3016 = vmatmul.mubr.bf16.gmra.mrb[140].mxu1 %v7878_v60 }
 0x26e   : > { %2672 = vmatprep.mubr.bf16.mxu0 %v11615_v1  ;;  %3025 = vmatprep.mubr.bf16.mxu1 %v11615_v1 }
 0x275   : > { %2673 = vmatmul.mubr.bf16.gmra.mrb[144].mxu0 %v7893_v21  ;;  %3026 = vmatmul.mubr.bf16.gmra.mrb[144].mxu1 %v7893_v21 }
 0x276   : > { %2682 = vmatprep.mubr.bf16.mxu0 %v11615_v1  ;;  %3035 = vmatprep.mubr.bf16.mxu1 %v11615_v1 }
 0x27d   : > { %2683 = vmatmul.mubr.bf16.gmra.mrb[148].mxu0 %v7890_v17  ;;  %3036 = vmatmul.mubr.bf16.gmra.mrb[148].mxu1 %v7890_v17 }
 0x27e   : > { %2692 = vmatprep.mubr.bf16.mxu0 %v11615_v1  ;;  %3045 = vmatprep.mubr.bf16.mxu1 %v11615_v1 }
 0x285   : > { %2693 = vmatmul.mubr.bf16.gmra.mrb[152].mxu0 %v7913_v48  ;;  %3046 = vmatmul.mubr.bf16.gmra.mrb[152].mxu1 %v7913_v48 }
 0x286   : > { %2702 = vmatprep.mubr.bf16.mxu0 %v11615_v1  ;;  %3055 = vmatprep.mubr.bf16.mxu1 %v11615_v1 }
 0x28d   : > { %2703 = vmatmul.mubr.bf16.gmra.mrb[156].mxu0 %v7910_v42  ;;  %3056 = vmatmul.mubr.bf16.gmra.mrb[156].mxu1 %v7910_v42  ;;  %v8042_v42 = vld [vmem:[%s7677_s13 + $0x2] ss:$0 sm:$0xff] }
 0x28e   : > { %2712 = vmatprep.mubr.bf16.mxu0 %v11615_v1  ;;  %3065 = vmatprep.mubr.bf16.mxu1 %v11615_v1 }
 0x295   : > { %2713 = vmatmul.mubr.bf16.gmra.mrb[160].mxu0 %v7925_v6  ;;  %3066 = vmatmul.mubr.bf16.gmra.mrb[160].mxu1 %v7925_v6 }
 0x296   : > { %2722 = vmatprep.mubr.bf16.mxu0 %v11615_v1  ;;  %3075 = vmatprep.mubr.bf16.mxu1 %v11615_v1 }
 0x29d   : > { %2723 = vmatmul.mubr.bf16.gmra.mrb[164].mxu0 %v7922_v63  ;;  %3076 = vmatmul.mubr.bf16.gmra.mrb[164].mxu1 %v7922_v63 }
 0x29e   : > { %2732 = vmatprep.mubr.bf16.mxu0 %v11615_v1  ;;  %3085 = vmatprep.mubr.bf16.mxu1 %v11615_v1 }
 0x2a5   : > { %2733 = vmatmul.mubr.bf16.gmra.mrb[168].mxu0 %v7943_v28  ;;  %3086 = vmatmul.mubr.bf16.gmra.mrb[168].mxu1 %v7943_v28 }
 0x2a6   : > { %2742 = vmatprep.mubr.bf16.mxu0 %v11615_v1  ;;  %3095 = vmatprep.mubr.bf16.mxu1 %v11615_v1 }
 0x2a8   : > { %v2474_v60 = vpop.f32.mrb[64].mxu0  ;;  %v2827_v4 = vpop.f32.mrb[64].mxu1 }
 0x2a9   : > { %v2475_v17 = vadd.f32 %v8032_v40, %v2474_v60  ;;  %v2828_v21 = vadd.f32 %v8035_v44, %v2827_v4  ;;  %v2476_v48 = vpop.f32.mrb[65].mxu0  ;;  %v2829_v63 = vpop.f32.mrb[65].mxu1 }
 0x2aa   : > { %v2478_v6 = vpop.f32.mrb[66].mxu0  ;;  %v2831_v11 = vpop.f32.mrb[66].mxu1  ;;  %v2477_v0 = vadd.f32 %v8042_v42, %v2476_v48  ;;  %v2830_v28 = vadd.f32 %v8046_v12, %v2829_v63 }
 0x2ab   : > { %v3402_v13 = vmul.f32 0.2, %v2475_v17  ;;  %v3404_v14 = vmul.f32 0.2, %v2828_v21  ;;  %v2479_v19 = vadd.f32 %v8032_v40, %v2478_v6  ;;  %v2832_v15 = vadd.f32 %v8035_v44, %v2831_v11  ;;  %v2480_v3 = vpop.f32.mrb[67].mxu0  ;;  %v2833_v16 = vpop.f32.mrb[67].mxu1 }
 0x2ac   : > { %vm3146_vm10 = vcmp.gt.f32.partialorder %v2475_v17, 0.0  ;;  %vm3148_vm11 = vcmp.gt.f32.partialorder %v2828_v21, 0.0  ;;  %v2481_v18 = vadd.f32 %v8042_v42, %v2480_v3  ;;  %v2834_v20 = vadd.f32 %v8046_v12, %v2833_v16 }
 0x2ad   : > { %2743 = vmatmul.mubr.bf16.gmra.mrb[172].mxu0 %v7940_v25  ;;  %3096 = vmatmul.mubr.bf16.gmra.mrb[172].mxu1 %v7940_v25  ;;  %vm3150_vm12 = vcmp.gt.f32.partialorder %v2479_v19, 0.0  ;;  %v3406_v24 = vmul.f32 0.2, %v2479_v19  ;;  %vm3152_vm13 = vcmp.gt.f32.partialorder %v2832_v15, 0.0  ;;  %v3408_v26 = vmul.f32 0.2, %v2832_v15 }
 0x2ae   : > { %2752 = vmatprep.mubr.bf16.mxu0 %v11615_v1  ;;  %3105 = vmatprep.mubr.bf16.mxu1 %v11615_v1  ;;  %v3403_v27 = vmul.f32 0.2, %v2477_v0  ;;  %vm3151_vm14 = vcmp.gt.f32.partialorder %v2481_v18, 0.0  ;;  %v3407_v29 = vmul.f32 0.2, %v2481_v18  ;;  %v8057_v30 = vsel %vm3146_vm10, %v2475_v17, %v3402_v13 }
 0x2af   : > { %v8059_v31 = vsel %vm3148_vm11, %v2828_v21, %v3404_v14  ;;  %v8061_v46 = vsel %vm3150_vm12, %v2479_v19, %v3406_v24  ;;  %v8063_v25 = vsel %vm3152_vm13, %v2832_v15, %v3408_v26  ;;  %vm3147_vm15 = vcmp.gt.f32.partialorder %v2477_v0, 0.0 }
 0x2b0   : > { %11648 = vst [vmem:[#allocation2_spill] sm:$0xff] %v8059_v31  ;;  %11649 = vst [vmem:[#allocation3_spill] sm:$0xff] %v8063_v25  ;;  %v2484_v32 = vpop.f32.mrb[68].mxu0  ;;  %v8065_v33 = vpop.f32.mrb[68].mxu1  ;;  %v3914_v34 = vpack.c.bf16 %v8061_v46, %v8057_v30  ;;  %v3409_v62 = vmul.f32 0.2, %v2834_v20  ;;  %v8078_v51 = vsel %vm3151_vm14, %v2481_v18, %v3407_v29  ;;  %v8081_v22 = vsel %vm3147_vm15, %v2477_v0, %v3403_v27 }
 0x2b1   : > { %11650 = vst [vmem:[#allocation4_spill] sm:$0xff] %v8065_v33  ;;  %v2485_v35 = vadd.f32 %v8032_v40, %v2484_v32  ;;  %v2486_v36 = vpop.f32.mrb[69].mxu0  ;;  %v8072_v41 = vpop.f32.mrb[69].mxu1  ;;  %vm3153_vm0 = vcmp.gt.f32.partialorder %v2834_v20, 0.0  ;;  %v3405_v53 = vmul.f32 0.2, %v2830_v28  ;;  %v3915_v37 = vpack.c.bf16 %v8078_v51, %v8081_v22 }
 0x2b2   : > { %11651 = vst [vmem:[#allocation5_spill] sm:$0xff] %v8072_v41  ;;  %v2487_v45 = vadd.f32 %v8042_v42, %v2486_v36  ;;  %v2488_v47 = vpop.f32.mrb[70].mxu0  ;;  %v8075_v50 = vpop.f32.mrb[70].mxu1  ;;  %vm3149_vm2 = vcmp.gt.f32.partialorder %v2830_v28, 0.0  ;;  %v8093_v59 = vsel %vm3153_vm0, %v2834_v20, %v3409_v62 }
 0x2b3   : > { %11652 = vst [vmem:[#allocation6_spill] sm:$0xff] %v8075_v50  ;;  %v3410_v54 = vmul.f32 0.2, %v2485_v35  ;;  %v2489_v55 = vadd.f32 %v8032_v40, %v2488_v47  ;;  %v2490_v56 = vpop.f32.mrb[71].mxu0  ;;  %v8084_v57 = vpop.f32.mrb[71].mxu1  ;;  %vm3154_vm3 = vcmp.gt.f32.partialorder %v2485_v35, 0.0 }
 0x2b4   : > { %11653 = vst [vmem:[#allocation7_spill] sm:$0xff] %v8084_v57  ;;  %v3411_v43 = vmul.f32 0.2, %v2487_v45  ;;  %v2491_v58 = vadd.f32 %v8042_v42, %v2490_v56  ;;  %11654 = vst [vmem:[#allocation8_spill] sm:$0xff] %v8093_v59  ;;  %vm3155_vm4 = vcmp.gt.f32.partialorder %v2487_v45, 0.0 }
 0x2b5   : > { %2753 = vmatmul.mubr.bf16.gmra.mrb[176].mxu0 %v7957_v52  ;;  %3106 = vmatmul.mubr.bf16.gmra.mrb[176].mxu1 %v7957_v52  ;;  %vm3158_vm5 = vcmp.gt.f32.partialorder %v2489_v55, 0.0  ;;  %v3414_v2 = vmul.f32 0.2, %v2489_v55  ;;  %v8096_v52 = vsel %vm3149_vm2, %v2830_v28, %v3405_v53  ;;  %v8098_v8 = vsel %vm3154_vm3, %v2485_v35, %v3410_v54 }
 0x2b6   : > { %2762 = vmatprep.mubr.bf16.mxu0 %v11615_v1  ;;  %3115 = vmatprep.mubr.bf16.mxu1 %v11615_v1  ;;  %vm3159_vm6 = vcmp.gt.f32.partialorder %v2491_v58, 0.0  ;;  %v3415_v23 = vmul.f32 0.2, %v2491_v58  ;;  %11655 = vst [vmem:[#allocation9_spill] sm:$0xff] %v8096_v52  ;;  %v8105_v21 = vsel %vm3155_vm4, %v2487_v45, %v3411_v43 }
 0x2b7   : > { %v8100_v39 = vsel %vm3158_vm5, %v2489_v55, %v3414_v2 }
 0x2b8   : > { %v2494_v5 = vpop.f32.mrb[72].mxu0  ;;  %v2847_v7 = vpop.f32.mrb[72].mxu1  ;;  %v8107_v48 = vsel %vm3159_vm6, %v2491_v58, %v3415_v23  ;;  %v3918_v63 = vpack.c.bf16 %v8100_v39, %v8098_v8 }
 0x2b9   : > { %v2848_v60 = vadd.f32 %v8035_v44, %v2847_v7  ;;  %v2496_v4 = vpop.f32.mrb[73].mxu0  ;;  %v2849_v17 = vpop.f32.mrb[73].mxu1  ;;  %v3919_v0 = vpack.c.bf16 %v8107_v48, %v8105_v21  ;;  %v8125_v27 = vadd.f32 %v8032_v40, %v2494_v5 }
 0x2ba   : > { %v2498_v6 = vpop.f32.mrb[74].mxu0  ;;  %v2851_v11 = vpop.f32.mrb[74].mxu1  ;;  %v2850_v13 = vadd.f32 %v8046_v12, %v2849_v17  ;;  %v2497_v26 = vadd.f32 %v8042_v42, %v2496_v4 }
 0x2bb   : > { %v3420_v14 = vmul.f32 0.2, %v2848_v60  ;;  %v2852_v19 = vadd.f32 %v8035_v44, %v2851_v11  ;;  %v2500_v15 = vpop.f32.mrb[75].mxu0  ;;  %v2853_v3 = vpop.f32.mrb[75].mxu1  ;;  %vm3164_vm7 = vcmp.gt.f32.partialorder %v2848_v60, 0.0  ;;  %v2499_v47 = vadd.f32 %v8032_v40, %v2498_v6 }
 0x2bc   : > { %v2501_v16 = vadd.f32 %v8042_v42, %v2500_v15  ;;  %v2854_v18 = vadd.f32 %v8046_v12, %v2853_v3  ;;  %v3421_v28 = vmul.f32 0.2, %v2850_v13  ;;  %vm3165_vm10 = vcmp.gt.f32.partialorder %v2850_v13, 0.0 }
 0x2bd   : > { %2763 = vmatmul.mubr.bf16.gmra.mrb[180].mxu0 %v7954_v49  ;;  %3116 = vmatmul.mubr.bf16.gmra.mrb[180].mxu1 %v7954_v49  ;;  %vm3168_vm8 = vcmp.gt.f32.partialorder %v2852_v19, 0.0  ;;  %v3424_v49 = vmul.f32 0.2, %v2852_v19  ;;  %v8127_v32 = vsel %vm3164_vm7, %v2848_v60, %v3420_v14  ;;  %v3419_v58 = vmul.f32 0.2, %v2497_v26 }
 0x2be   : > { %2772 = vmatprep.mubr.bf16.mxu0 %v11615_v1  ;;  %3125 = vmatprep.mubr.bf16.mxu1 %v11615_v1  ;;  %vm3169_vm9 = vcmp.gt.f32.partialorder %v2854_v18, 0.0  ;;  %v3425_v29 = vmul.f32 0.2, %v2854_v18  ;;  %v3423_v54 = vmul.f32 0.2, %v2501_v16  ;;  %vm3167_vm11 = vcmp.gt.f32.partialorder %v2501_v16, 0.0 }
 0x2bf   : > { %v8129_v35 = vsel %vm3168_vm8, %v2852_v19, %v3424_v49  ;;  %vm3162_vm12 = vcmp.gt.f32.partialorder %v8125_v27, 0.0  ;;  %vm3163_vm13 = vcmp.gt.f32.partialorder %v2497_v26, 0.0  ;;  %v3677_v23 = vsel %vm3165_vm10, %v2850_v13, %v3421_v28 }
 0x2c0   : > { %v8121_v20 = vpop.f32.mrb[76].mxu0  ;;  %v2857_v24 = vpop.f32.mrb[76].mxu1  ;;  %v3924_v53 = vpack.c.bf16 %v8129_v35, %v8127_v32  ;;  %v3681_v43 = vsel %vm3169_vm9, %v2854_v18, %v3425_v29  ;;  %v3418_v5 = vmul.f32 0.2, %v8125_v27  ;;  %v3422_v11 = vmul.f32 0.2, %v2499_v47 }
 0x2c1   : > { %v2858_v36 = vadd.f32 %v8035_v44, %v2857_v24  ;;  %v8132_v62 = vpop.f32.mrb[77].mxu0  ;;  %v2859_v45 = vpop.f32.mrb[77].mxu1  ;;  %v3925_v6 = vpack.c.bf16 %v3681_v43, %v3677_v23  ;;  %v8152_v15 = vsel %vm3167_vm11, %v2501_v16, %v3423_v54  ;;  %vm3166_vm15 = vcmp.gt.f32.partialorder %v2499_v47, 0.0 }
 0x2c2   : > { %v8137_v55 = vpop.f32.mrb[78].mxu0  ;;  %v2861_v56 = vpop.f32.mrb[78].mxu1  ;;  %v2860_v2 = vadd.f32 %v8046_v12, %v2859_v45  ;;  %v8155_v3 = vsel %vm3163_vm13, %v2497_v26, %v3419_v58  ;;  %v8172_v23 = vsel %vm3166_vm15, %v2499_v47, %v3422_v11  ;;  %v2505_v38 = vadd.f32 %v8032_v40, %v8121_v20 }
 0x2c3   : > { %v3428_v7 = vmul.f32 0.2, %v2858_v36  ;;  %v2862_v60 = vadd.f32 %v8035_v44, %v2861_v56  ;;  %v2510_v4 = vpop.f32.mrb[79].mxu0  ;;  %v2863_v17 = vpop.f32.mrb[79].mxu1  ;;  %vm3172_vm14 = vcmp.gt.f32.partialorder %v2858_v36, 0.0  ;;  %v3923_v54 = vpack.c.bf16 %v8152_v15, %v8155_v3 }
 0x2c4   : > { %v2864_v14 = vadd.f32 %v8046_v12, %v2863_v17  ;;  %vm3173_vm2 = vcmp.gt.f32.partialorder %v2860_v2, 0.0  ;;  %v3429_v18 = vmul.f32 0.2, %v2860_v2  ;;  %v2511_v51 = vadd.f32 %v8042_v42, %v2510_v4 }
 0x2c5   : > { %2773 = vmatmul.mubr.bf16.gmra.mrb[184].mxu0 %v7974_v10  ;;  %3126 = vmatmul.mubr.bf16.gmra.mrb[184].mxu1 %v7974_v10  ;;  %vm3176_vm0 = vcmp.gt.f32.partialorder %v2862_v60, 0.0  ;;  %v3432_v13 = vmul.f32 0.2, %v2862_v60  ;;  %v8161_v45 = vsel %vm3172_vm14, %v2858_v36, %v3428_v7 }
 0x2c6   : > { %2782 = vmatprep.mubr.bf16.mxu0 %v11615_v1  ;;  %3135 = vmatprep.mubr.bf16.mxu1 %v11615_v1  ;;  %vm3177_vm3 = vcmp.gt.f32.partialorder %v2864_v14, 0.0  ;;  %v3433_v24 = vmul.f32 0.2, %v2864_v14  ;;  %v3685_v7 = vsel %vm3173_vm2, %v2860_v2, %v3429_v18  ;;  %vm3175_vm8 = vcmp.gt.f32.partialorder %v2511_v51, 0.0 }
 0x2c7   : > { %v8163_v16 = vsel %vm3176_vm0, %v2862_v60, %v3432_v13  ;;  %v8184_v60 = vsel %vm3162_vm12, %v8125_v27, %v3418_v5  ;;  %v2507_v5 = vadd.f32 %v8042_v42, %v8132_v62  ;;  %vm3170_vm12 = vcmp.gt.f32.partialorder %v2505_v38, 0.0 }
 0x2c8   : > { %v8149_v19 = vpop.f32.mrb[80].mxu0  ;;  %v2867_v10 = vpop.f32.mrb[80].mxu1  ;;  %v3689_v43 = vsel %vm3177_vm3, %v2864_v14, %v3433_v24  ;;  %v3928_v58 = vpack.c.bf16 %v8163_v16, %v8161_v45 }
 0x2c9   : > { %v2868_v49 = vadd.f32 %v8035_v44, %v2867_v10  ;;  %v8158_v28 = vpop.f32.mrb[81].mxu0  ;;  %v2869_v29 = vpop.f32.mrb[81].mxu1  ;;  %v3929_v10 = vpack.c.bf16 %v3689_v43, %v3685_v7  ;;  %v3431_v43 = vmul.f32 0.2, %v2511_v51  ;;  %vm3171_vm9 = vcmp.gt.f32.partialorder %v2507_v5, 0.0 }
 0x2ca   : > { %v8167_v56 = vpop.f32.mrb[82].mxu0  ;;  %v2871_v26 = vpop.f32.mrb[82].mxu1  ;;  %v2870_v36 = vadd.f32 %v8046_v12, %v2869_v29 }
 0x2cb   : > { %v3436_v17 = vmul.f32 0.2, %v2868_v49  ;;  %v2872_v47 = vadd.f32 %v8035_v44, %v2871_v26  ;;  %v8187_v11 = vpop.f32.mrb[83].mxu0  ;;  %v2873_v14 = vpop.f32.mrb[83].mxu1  ;;  %vm3180_vm4 = vcmp.gt.f32.partialorder %v2868_v49, 0.0  ;;  %v2509_v26 = vadd.f32 %v8032_v40, %v8137_v55  ;;  %v7154_v55 = vld [vmem:[%s11611_s6 + $0x80] sm:$0xff]  }
 0x2cc   : > { %v2874_v22 = vadd.f32 %v8046_v12, %v2873_v14  ;;  %v3437_v13 = vmul.f32 0.2, %v2870_v36  ;;  %vm3181_vm7 = vcmp.gt.f32.partialorder %v2870_v36, 0.0  ;;  %v8235_v35 = vsel %vm3175_vm8, %v2511_v51, %v3431_v43 }
 0x2cd   : > { %2783 = vmatmul.mubr.bf16.gmra.mrb[188].mxu0 %v7972_v9  ;;  %3136 = vmatmul.mubr.bf16.gmra.mrb[188].mxu1 %v7972_v9  ;;  %v3922_v9 = vpack.c.bf16 %v8172_v23, %v8184_v60  ;;  %vm3184_vm5 = vcmp.gt.f32.partialorder %v2872_v47, 0.0  ;;  %v3440_v2 = vmul.f32 0.2, %v2872_v47  ;;  %v8199_v29 = vsel %vm3180_vm4, %v2868_v49, %v3436_v17 }
 0x2ce   : > { %4337 = vmatprep.mubr.bf16.mxu0 %v3915_v37  ;;  %4642 = vmatprep.mubr.bf16.mxu1 %v3925_v6  ;;  %vm3185_vm6 = vcmp.gt.f32.partialorder %v2874_v22, 0.0  ;;  %v3441_v6 = vmul.f32 0.2, %v2874_v22  ;;  %v3427_v49 = vmul.f32 0.2, %v2507_v5  ;;  %vm3174_vm10 = vcmp.gt.f32.partialorder %v2509_v26, 0.0 }
 0x2cf   : > { %v8201_v4 = vsel %vm3184_vm5, %v2872_v47, %v3440_v2  ;;  %v3693_v47 = vsel %vm3181_vm7, %v2870_v36, %v3437_v13  ;;  %v3430_v46 = vmul.f32 0.2, %v2509_v26 }
 0x2d0   : > { %v8193_v37 = vpop.f32.mrb[84].mxu0  ;;  %v2877_v27 = vpop.f32.mrb[84].mxu1  ;;  %v3697_v61 = vsel %vm3185_vm6, %v2874_v22, %v3441_v6  ;;  %v3932_v62 = vpack.c.bf16 %v8201_v4, %v8199_v29  ;;  %v3683_v36 = vsel %vm3171_vm9, %v2507_v5, %v3427_v49  ;;  %v2517_v5 = vadd.f32 %v8042_v42, %v8158_v28 }
 0x2d1   : > { %v8197_v18 = vpop.f32.mrb[85].mxu0  ;;  %v2879_v24 = vpop.f32.mrb[85].mxu1  ;;  %v3933_v30 = vpack.c.bf16 %v3697_v61, %v3693_v47  ;;  %v2878_v21 = vadd.f32 %v8035_v44, %v2877_v27  ;;  %v3927_v13 = vpack.c.bf16 %v8235_v35, %v3683_v36  ;;  %v2521_v27 = vadd.f32 %v8042_v42, %v8187_v11 }
 0x2d2   : > { %v8205_v7 = vpop.f32.mrb[86].mxu0  ;;  %v2881_v14 = vpop.f32.mrb[86].mxu1  ;;  %v2880_v17 = vadd.f32 %v8046_v12, %v2879_v24  ;;  %v8251_v47 = vsel %vm3174_vm10, %v2509_v26, %v3430_v46  ;;  %vm3179_vm2 = vcmp.gt.f32.partialorder %v2517_v5, 0.0  ;;  %v2519_v46 = vadd.f32 %v8032_v40, %v8167_v56  ;;  %v7157_v56 = vld [vmem:[%s11611_s6 + $0x98] sm:$0xff]  }
 0x2d3   : > { %v8222_v20 = vpop.f32.mrb[87].mxu0  ;;  %v2883_v22 = vpop.f32.mrb[87].mxu1  ;;  %v3444_v49 = vmul.f32 0.2, %v2878_v21  ;;  %vm3188_vm15 = vcmp.gt.f32.partialorder %v2878_v21, 0.0  ;;  %vm3183_vm0 = vcmp.gt.f32.partialorder %v2521_v27, 0.0 }
 0x2d4   : > { %v2884_v2 = vadd.f32 %v8046_v12, %v2883_v22  ;;  %v3445_v48 = vmul.f32 0.2, %v2880_v17  ;;  %vm3189_vm13 = vcmp.gt.f32.partialorder %v2880_v17, 0.0  ;;  %v3439_v16 = vmul.f32 0.2, %v2521_v27 }
 0x2d5   : > { %4338 = vmatmul.mubr.bf16.vlgmr.msra.gmra.mrb[192].mxu0 %v3914_v34  ;;  %4643 = vmatmul.mubr.bf16.vlgmr.msra.gmra.mrb[192].mxu1 %v3924_v53  ;;  %v2882_v34 = vadd.f32 %v8035_v44, %v2881_v14  ;;  %v3426_v53 = vmul.f32 0.2, %v2505_v38  ;;  %v3435_v22 = vmul.f32 0.2, %v2517_v5  ;;  %vm3182_vm6 = vcmp.gt.f32.partialorder %v2519_v46, 0.0 }
 0x2d6   : > { %4595 = vmatpush1.bf16.msra.mxu0 %v7154_v55  ;;  %4345 = vmatprep.mubr.bf16.mxu0 %v3919_v0  ;;  %vm3193_vm11 = vcmp.gt.f32.partialorder %v2884_v2, 0.0  ;;  %v3449_v61 = vmul.f32 0.2, %v2884_v2  ;;  %v7155_v0 = vld [vmem:[%s11611_s6 + $0x88] sm:$0xff]   ;;  %v3701_v11 = vsel %vm3189_vm13, %v2880_v17, %v3445_v48  ;;  %v2515_v17 = vadd.f32 %v8032_v40, %v8149_v19 }
 0x2d7   : > { %4650 = vmatprep.mubr.bf16.mxu1 %v3929_v10  ;;  %4596 = vmatprep.subr.bf16.mxu0 %v11615_v1  ;;  %v3448_v24 = vmul.f32 0.2, %v2882_v34  ;;  %vm3192_vm14 = vcmp.gt.f32.partialorder %v2882_v34, 0.0  ;;  %v8266_v26 = vsel %vm3170_vm12, %v2505_v38, %v3426_v53  ;;  %v3695_v36 = vsel %vm3183_vm0, %v2521_v27, %v3439_v16 }
 0x2d8   : > { %v8229_v6 = vpop.f32.mrb[88].mxu0  ;;  %v8231_v32 = vpop.f32.mrb[88].mxu1  ;;  %v3705_v55 = vsel %vm3193_vm11, %v2884_v2, %v3449_v61  ;;  %v3926_v45 = vpack.c.bf16 %v8251_v47, %v8266_v26  ;;  %vm3178_vm5 = vcmp.gt.f32.partialorder %v2515_v17, 0.0  ;;  %v3691_v27 = vsel %vm3179_vm2, %v2517_v5, %v3435_v22 }
 0x2d9   : > { %v8242_v10 = vpop.f32.mrb[89].mxu0  ;;  %v2889_v51 = vpop.f32.mrb[89].mxu1  ;;  %v3937_v28 = vpack.c.bf16 %v3705_v55, %v3701_v11  ;;  %v8279_v38 = vsel %vm3192_vm14, %v2882_v34, %v3448_v24  ;;  %v3438_v24 = vmul.f32 0.2, %v2519_v46  ;;  %v3931_v23 = vpack.c.bf16 %v3695_v36, %v3691_v27 }
 0x2da   : > { %4597 = vmatpush1.bf16.msra.mxu0 %v7155_v0  ;;  %v8248_v43 = vpop.f32.mrb[90].mxu0  ;;  %v2891_v14 = vpop.f32.mrb[90].mxu1  ;;  %v2890_v8 = vadd.f32 %v8046_v12, %v2889_v51  ;;  %v2888_v51 = vadd.f32 %v8035_v44, %v8231_v32  ;;  %v2531_v32 = vadd.f32 %v8042_v42, %v8222_v20  ;;  %v2527_v5 = vadd.f32 %v8042_v42, %v8197_v18 }
 0x2db   : > { %4598 = vmatprep.subr.bf16.mxu0 %v11615_v1  ;;  %v8269_v39 = vpop.f32.mrb[91].mxu0  ;;  %v2892_v61 = vadd.f32 %v8035_v44, %v2891_v14 }
 0x2dc   : > { %v3453_v34 = vmul.f32 0.2, %v2890_v8  ;;  %vm3197_vm3 = vcmp.gt.f32.partialorder %v2890_v8, 0.0  ;;  %vm3196_vm8 = vcmp.gt.f32.partialorder %v2888_v51, 0.0  ;;  %v3452_v11 = vmul.f32 0.2, %v2888_v51 }
 0x2dd   : > { %4346 = vmatmul.mubr.bf16.gmra.mrb[196].mxu0 %v3918_v63  ;;  %4651 = vmatmul.mubr.bf16.gmra.mrb[196].mxu1 %v3928_v58  ;;  %v2893_v63 = vpop.f32.mrb[91].mxu1  ;;  %v7156_v58 = vld [vmem:[%s11611_s6 + $0x90] sm:$0xff]   ;;  %vm3200_vm7 = vcmp.gt.f32.partialorder %v2892_v61, 0.0  ;;  %vm3191_vm9 = vcmp.gt.f32.partialorder %v2531_v32, 0.0  ;;  %vm3187_vm10 = vcmp.gt.f32.partialorder %v2527_v5, 0.0 }
 0x2de   : > { %4353 = vmatprep.mubr.bf16.mxu0 %v3923_v54  ;;  %4658 = vmatprep.mubr.bf16.mxu1 %v3933_v30  ;;  %v2894_v15 = vadd.f32 %v8046_v12, %v2893_v63  ;;  %v3700_v30 = vsel %vm3188_vm15, %v2878_v21, %v3444_v49  ;;  %v3434_v21 = vmul.f32 0.2, %v2515_v17  ;;  %v3709_v60 = vsel %vm3197_vm3, %v2890_v8, %v3453_v34  ;;  %v7159_v34 = vld [vmem:[%s11611_s6 + $0xa8] sm:$0xff]  }
 0x2df   : > { %4599 = vmatpush1.bf16.msra.mxu0 %v7156_v58  ;;  %v3936_v48 = vpack.c.bf16 %v8279_v38, %v3700_v30  ;;  %v3456_v49 = vmul.f32 0.2, %v2892_v61  ;;  %v3447_v38 = vmul.f32 0.2, %v2531_v32 }
 0x2e0   : > { %v8274_v3 = vpop.f32.mrb[92].mxu0  ;;  %v8276_v54 = vpop.f32.mrb[92].mxu1  ;;  %4600 = vmatprep.subr.bf16.mxu0 %v11615_v1  ;;  %v3457_v2 = vmul.f32 0.2, %v2894_v15  ;;  %vm3201_vm4 = vcmp.gt.f32.partialorder %v2894_v15, 0.0  ;;  %v3690_v16 = vsel %vm3178_vm5, %v2515_v17, %v3434_v21  ;;  %v2525_v17 = vadd.f32 %v8032_v40, %v8193_v37 }
 0x2e1   : > { %v8290_v35 = vpop.f32.mrb[93].mxu0  ;;  %v2899_v53 = vpop.f32.mrb[93].mxu1  ;;  %v3712_v18 = vsel %vm3200_vm7, %v2892_v61, %v3456_v49  ;;  %v3703_v21 = vsel %vm3191_vm9, %v2531_v32, %v3447_v38  ;;  %v2898_v27 = vadd.f32 %v8035_v44, %v8276_v54  ;;  %v2541_v49 = vadd.f32 %v8042_v42, %v8269_v39 }
 0x2e2   : > { %v8294_v0 = vpop.f32.mrb[94].mxu0  ;;  %v2901_v19 = vpop.f32.mrb[94].mxu1  ;;  %v2900_v20 = vadd.f32 %v8046_v12, %v2899_v53  ;;  %v2529_v53 = vadd.f32 %v8032_v40, %v8205_v7  ;;  %v7160_v7 = vld [vmem:[%s11611_s6 + $0xb0] sm:$0xff]   ;;  %vm3186_vm13 = vcmp.gt.f32.partialorder %v2525_v17, 0.0 }
 0x2e3   : > { %4601 = vmatpush1.bf16.msra.mxu0 %v7157_v56  ;;  %v8310_v14 = vpop.f32.mrb[95].mxu0  ;;  %v2903_v55 = vpop.f32.mrb[95].mxu1  ;;  %vm3204_vm0 = vcmp.gt.f32.partialorder %v2898_v27, 0.0  ;;  %v3460_v39 = vmul.f32 0.2, %v2898_v27  ;;  %vm3199_vm2 = vcmp.gt.f32.partialorder %v2541_v49, 0.0 }
 0x2e4   : > { %4602 = vmatprep.subr.bf16.mxu0 %v11615_v1  ;;  %v2904_v8 = vadd.f32 %v8046_v12, %v2903_v55  ;;  %v3461_v61 = vmul.f32 0.2, %v2900_v20  ;;  %vm3205_vm11 = vcmp.gt.f32.partialorder %v2900_v20, 0.0  ;;  %vm3190_vm14 = vcmp.gt.f32.partialorder %v2529_v53, 0.0 }
 0x2e5   : > { %4354 = vmatmul.mubr.bf16.gmra.mrb[200].mxu0 %v3922_v9  ;;  %4659 = vmatmul.mubr.bf16.gmra.mrb[200].mxu1 %v3932_v62  ;;  %v3713_v9 = vsel %vm3201_vm4, %v2894_v15, %v3457_v2  ;;  %v3694_v15 = vsel %vm3182_vm6, %v2519_v46, %v3438_v24  ;;  %v3443_v46 = vmul.f32 0.2, %v2527_v5  ;;  %v3708_v2 = vsel %vm3196_vm8, %v2888_v51, %v3452_v11  ;;  %v7161_v11 = vld [vmem:[%s11611_s6 + $0xb8] sm:$0xff]  }
 0x2e6   : > { %4361 = vmatprep.mubr.bf16.mxu0 %v3927_v13  ;;  %4666 = vmatprep.mubr.bf16.mxu1 %v3937_v28  ;;  %v3941_v62 = vpack.c.bf16 %v3713_v9, %v3709_v60  ;;  %v7158_v13 = vld [vmem:[%s11611_s6 + $0xa0] sm:$0xff]   ;;  %v3930_v30 = vpack.c.bf16 %v3694_v15, %v3690_v16  ;;  %v3465_v36 = vmul.f32 0.2, %v2904_v8  ;;  %v3940_v26 = vpack.c.bf16 %v3712_v18, %v3708_v2 }
 0x2e7   : > { %4603 = vmatpush1.bf16.msra.mxu0 %v7158_v13  ;;  %vm3209_vm12 = vcmp.gt.f32.partialorder %v2904_v8, 0.0  ;;  %v3442_v51 = vmul.f32 0.2, %v2525_v17  ;;  %v3446_v24 = vmul.f32 0.2, %v2529_v53  ;;  %v3717_v9 = vsel %vm3205_vm11, %v2900_v20, %v3461_v61 }
 0x2e8   : > { %v8316_v29 = vpop.f32.mrb[96].mxu0  ;;  %v8318_v4 = vpop.f32.mrb[96].mxu1  ;;  %4604 = vmatprep.subr.bf16.mxu0 %v11615_v1  ;;  %v3721_v32 = vsel %vm3209_vm12, %v2904_v8, %v3465_v36  ;;  %v2537_v20 = vadd.f32 %v8042_v42, %v8242_v10  ;;  %v3716_v36 = vsel %vm3204_vm0, %v2898_v27, %v3460_v39 }
 0x2e9   : > { %v8328_v63 = vpop.f32.mrb[97].mxu0  ;;  %v2909_v28 = vpop.f32.mrb[97].mxu1  ;;  %v3702_v18 = vsel %vm3190_vm14, %v2529_v53, %v3446_v24 }
 0x2ea   : > { %v8332_v58 = vpop.f32.mrb[98].mxu0  ;;  %v8334_v22 = vpop.f32.mrb[98].mxu1  ;;  %v2910_v8 = vadd.f32 %v8046_v12, %v2909_v28  ;;  %v7162_v28 = vld [vmem:[%s11611_s6 + $0xc0] sm:$0xff]   ;;  %vm3195_vm3 = vcmp.gt.f32.partialorder %v2537_v20, 0.0  ;;  %v3451_v53 = vmul.f32 0.2, %v2537_v20 }
 0x2eb   : > { %4605 = vmatpush1.bf16.msra.mxu0 %v7159_v34  ;;  %v8348_v56 = vpop.f32.mrb[99].mxu0  ;;  %v2913_v47 = vpop.f32.mrb[99].mxu1  ;;  %v3455_v34 = vmul.f32 0.2, %v2541_v49 }
 0x2ec   : > { %4606 = vmatprep.subr.bf16.mxu0 %v11615_v1  ;;  %v2914_v16 = vadd.f32 %v8046_v12, %v2913_v47  ;;  %v2539_v47 = vadd.f32 %v8032_v40, %v8248_v43  ;;  %vm3213_vm4 = vcmp.gt.f32.partialorder %v2910_v8, 0.0  ;;  %v7163_v43 = vld [vmem:[%s11611_s6 + $0xc8] sm:$0xff]  }
 0x2ed   : > { %4362 = vmatmul.mubr.bf16.gmra.mrb[204].mxu0 %v3926_v45  ;;  %4667 = vmatmul.mubr.bf16.gmra.mrb[204].mxu1 %v3936_v48  ;;  %v2902_v45 = vadd.f32 %v8035_v44, %v2901_v19  ;;  %v3699_v19 = vsel %vm3187_vm10, %v2527_v5, %v3443_v46  ;;  %v3945_v5 = vpack.c.bf16 %v3721_v32, %v3717_v9 }
 0x2ee   : > { %4369 = vmatprep.mubr.bf16.mxu0 %v3931_v23  ;;  %4674 = vmatprep.mubr.bf16.mxu1 %v3941_v62  ;;  %v3935_v60 = vpack.c.bf16 %v3703_v21, %v3699_v19  ;;  %v2912_v19 = vadd.f32 %v8035_v44, %v8334_v22  ;;  %vm3217_vm5 = vcmp.gt.f32.partialorder %v2914_v16, 0.0  ;;  %v3711_v27 = vsel %vm3199_vm2, %v2541_v49, %v3455_v34 }
 0x2ef   : > { %4607 = vmatpush1.bf16.msra.mxu0 %v7160_v7  ;;  %v3464_v62 = vmul.f32 0.2, %v2902_v45  ;;  %vm3208_vm15 = vcmp.gt.f32.partialorder %v2902_v45, 0.0  ;;  %v8423_v9 = vadd.f32 %v8042_v42, %v8290_v35  ;;  %v2908_v32 = vadd.f32 %v8035_v44, %v8318_v4 }
 0x2f0   : > { %v8351_v37 = vpop.f32.mrb[100].mxu0  ;;  %v8353_v48 = vpop.f32.mrb[100].mxu1  ;;  %4608 = vmatprep.subr.bf16.mxu0 %v11615_v1  ;;  %v3707_v49 = vsel %vm3195_vm3, %v2537_v20, %v3451_v53  ;;  %vm3198_vm7 = vcmp.gt.f32.partialorder %v2539_v47, 0.0  ;;  %v7164_v20 = vld [vmem:[%s11611_s6 + $0xd0] sm:$0xff]   ;;  %vm3216_vm9 = vcmp.gt.f32.partialorder %v2912_v19, 0.0 }
 0x2f1   : > { %v8363_v55 = vpop.f32.mrb[101].mxu0  ;;  %v8365_v23 = vpop.f32.mrb[101].mxu1  ;;  %v3720_v61 = vsel %vm3208_vm15, %v2902_v45, %v3464_v62  ;;  %v3473_v45 = vmul.f32 0.2, %v2914_v16  ;;  %v3454_v62 = vmul.f32 0.2, %v2539_v47 }
 0x2f2   : > { %v8371_v13 = vpop.f32.mrb[102].mxu0  ;;  %v8373_v54 = vpop.f32.mrb[102].mxu1  ;;  %vm3203_vm8 = vcmp.gt.f32.partialorder %v8423_v9, 0.0  ;;  %vm3212_vm10 = vcmp.gt.f32.partialorder %v2908_v32, 0.0  ;;  %v2920_v53 = vadd.f32 %v8046_v12, %v8365_v23 }
 0x2f3   : > { %4609 = vmatpush1.bf16.msra.mxu0 %v7161_v11  ;;  %v8383_v15 = vpop.f32.mrb[103].mxu0  ;;  %v8385_v38 = vpop.f32.mrb[103].mxu1  ;;  %v3939_v11 = vpack.c.bf16 %v3711_v27, %v3707_v49  ;;  %v3729_v39 = vsel %vm3217_vm5, %v2914_v16, %v3473_v45  ;;  %v3468_v16 = vmul.f32 0.2, %v2908_v32  ;;  %v3710_v45 = vsel %vm3198_vm7, %v2539_v47, %v3454_v62  ;;  %v7165_v49 = vld [vmem:[%s11611_s6 + $0xd8] sm:$0xff]  }
 0x2f4   : > { %4610 = vmatprep.subr.bf16.mxu0 %v11615_v1  ;;  %v8488_v47 = vadd.f32 %v8042_v42, %v8348_v56  ;;  %vm3221_vm15 = vcmp.gt.f32.partialorder %v2920_v53, 0.0 }
 0x2f5   : > { %4370 = vmatmul.mubr.bf16.gmra.mrb[208].mxu0 %v3930_v30  ;;  %4675 = vmatmul.mubr.bf16.gmra.mrb[208].mxu1 %v3940_v26  ;;  %v3698_v30 = vsel %vm3186_vm13, %v2525_v17, %v3442_v51  ;;  %v2535_v17 = vadd.f32 %v8032_v40, %v8229_v6  ;;  %v3469_v26 = vmul.f32 0.2, %v2910_v8  ;;  %v3944_v51 = vpack.c.bf16 %v3720_v61, %v3716_v36 }
 0x2f6   : > { %4377 = vmatprep.mubr.bf16.mxu0 %v3935_v60  ;;  %4682 = vmatprep.mubr.bf16.mxu1 %v3945_v5  ;;  %v3934_v2 = vpack.c.bf16 %v3702_v18, %v3698_v30  ;;  %v8419_v60 = vadd.f32 %v8032_v40, %v8274_v3  ;;  %v2551_v30 = vadd.f32 %v8042_v42, %v8310_v14  ;;  %v3472_v18 = vmul.f32 0.2, %v2912_v19 }
 0x2f7   : > { %4611 = vmatpush1.bf16.msra.mxu0 %v7162_v28  ;;  %vm3194_vm6 = vcmp.gt.f32.partialorder %v2535_v17, 0.0  ;;  %v3450_v22 = vmul.f32 0.2, %v2535_v17  ;;  %v3725_v35 = vsel %vm3213_vm4, %v2910_v8, %v3469_v26  ;;  %v8450_v8 = vadd.f32 %v8032_v40, %v8294_v0 }
 0x2f8   : > { %v8389_v46 = vpop.f32.mrb[104].mxu0  ;;  %v8391_v10 = vpop.f32.mrb[104].mxu1  ;;  %4612 = vmatprep.subr.bf16.mxu0 %v11615_v1  ;;  %v3949_v34 = vpack.c.bf16 %v3729_v39, %v3725_v35  ;;  %v8445_v61 = vmul.f32 0.2, %v8419_v60  ;;  %v8455_v14 = vadd.f32 %v8032_v40, %v8316_v29  ;;  %v8459_v28 = vadd.f32 %v8042_v42, %v8328_v63 }
 0x2f9   : > { %v8403_v21 = vpop.f32.mrb[105].mxu0  ;;  %v8405_v7 = vpop.f32.mrb[105].mxu1  ;;  %v2924_v0 = vadd.f32 %v8046_v12, %v8385_v38  ;;  %v3706_v29 = vsel %vm3194_vm6, %v2535_v17, %v3450_v22  ;;  %vm3202_vm11 = vcmp.gt.f32.partialorder %v8419_v60, 0.0  ;;  %v3459_v63 = vmul.f32 0.2, %v8423_v9 }
 0x2fa   : > { %v8409_v6 = vpop.f32.mrb[106].mxu0  ;;  %v8411_v24 = vpop.f32.mrb[106].mxu1  ;;  %v3938_v23 = vpack.c.bf16 %v3710_v45, %v3706_v29  ;;  %v3728_v38 = vsel %vm3216_vm9, %v2912_v19, %v3472_v18  ;;  %vm3206_vm12 = vcmp.gt.f32.partialorder %v8450_v8, 0.0  ;;  %vm3207_vm13 = vcmp.gt.f32.partialorder %v2551_v30, 0.0  ;;  %v7166_v29 = vld [vmem:[%s11611_s6 + $0xe0] sm:$0xff]  }
 0x2fb   : > { %4613 = vmatpush1.bf16.msra.mxu0 %v7163_v43  ;;  %v8429_v5 = vpop.f32.mrb[107].mxu0  ;;  %v8431_v3 = vpop.f32.mrb[107].mxu1  ;;  %v8484_v17 = vadd.f32 %v8032_v40, %v8332_v58  ;;  %v3462_v19 = vmul.f32 0.2, %v8450_v8  ;;  %v8493_v22 = vmul.f32 0.2, %v8455_v14  ;;  %v8501_v58 = vadd.f32 %v8032_v40, %v8351_v37 }
 0x2fc   : > { %4614 = vmatprep.subr.bf16.mxu0 %v11615_v1  ;;  %v8496_v62 = vmul.f32 0.2, %v8459_v28  ;;  %v3477_v35 = vmul.f32 0.2, %v2920_v53  ;;  %v3481_v56 = vmul.f32 0.2, %v2924_v0  ;;  %v2934_v31 = vadd.f32 %v8046_v12, %v8431_v3 }
 0x2fd   : > { %4378 = vmatmul.mubr.bf16.gmra.mrb[212].mxu0 %v3934_v2  ;;  %4683 = vmatmul.mubr.bf16.gmra.mrb[212].mxu1 %v3944_v51  ;;  %v3463_v51 = vmul.f32 0.2, %v2551_v30  ;;  %vm3211_vm14 = vcmp.gt.f32.partialorder %v8459_v28, 0.0  ;;  %vm3225_vm0 = vcmp.gt.f32.partialorder %v2924_v0, 0.0  ;;  %v8519_v45 = vmul.f32 0.2, %v8484_v17 }
 0x2fe   : > { %4385 = vmatprep.mubr.bf16.mxu0 %v3939_v11  ;;  %4690 = vmatprep.mubr.bf16.mxu1 %v3949_v34  ;;  %v3724_v11 = vsel %vm3212_vm10, %v2908_v32, %v3468_v16  ;;  %vm3215_vm2 = vcmp.gt.f32.partialorder %v8488_v47, 0.0  ;;  %vm3214_vm5 = vcmp.gt.f32.partialorder %v8484_v17, 0.0  ;;  %vm3210_vm6 = vcmp.gt.f32.partialorder %v8455_v14, 0.0 }
 0x2ff   : > { %4615 = vmatpush1.bf16.msra.mxu0 %v7164_v20  ;;  %v3948_v34 = vpack.c.bf16 %v3728_v38, %v3724_v11  ;;  %v2922_v20 = vadd.f32 %v8035_v44, %v8373_v54  ;;  %v3719_v32 = vsel %vm3207_vm13, %v2551_v30, %v3463_v51  ;;  %v2918_v54 = vadd.f32 %v8035_v44, %v8353_v48 }
 0x300   : > { %v8437_v4 = vpop.f32.mrb[108].mxu0  ;;  %v8439_v2 = vpop.f32.mrb[108].mxu1  ;;  %4616 = vmatprep.subr.bf16.mxu0 %v11615_v1  ;;  %v8530_v30 = vadd.f32 %v8042_v42, %v8363_v55  ;;  %v8534_v51 = vadd.f32 %v8032_v40, %v8371_v13  ;;  %v8538_v38 = vadd.f32 %v8042_v42, %v8383_v15  ;;  %v8544_v48 = vmul.f32 0.2, %v8501_v58 }
 0x301   : > { %v8465_v36 = vpop.f32.mrb[109].mxu0  ;;  %v8467_v26 = vpop.f32.mrb[109].mxu1  ;;  %v3737_v55 = vsel %vm3225_vm0, %v2924_v0, %v3481_v56  ;;  %v2930_v15 = vadd.f32 %v8046_v12, %v8405_v7  ;;  %vm3220_vm3 = vcmp.gt.f32.partialorder %v2918_v54, 0.0  ;;  %v3476_v0 = vmul.f32 0.2, %v2918_v54 }
 0x302   : > { %v8473_v27 = vpop.f32.mrb[110].mxu0  ;;  %v8475_v43 = vpop.f32.mrb[110].mxu1  ;;  %vm3224_vm4 = vcmp.gt.f32.partialorder %v2922_v20, 0.0  ;;  %v11656_v7 = vmov 0   ;;  %v8570_v12 = vmul.f32 0.2, %v8530_v30 }
 0x303   : > { %4617 = vmatpush1.bf16.msra.mxu0 %v7165_v49  ;;  %v8503_v39 = vpop.f32.mrb[111].mxu0  ;;  %v8505_v18 = vpop.f32.mrb[111].mxu1  ;;  %v3715_v49 = vsel %vm3203_vm8, %v8423_v9, %v3459_v63  ;;  %v8573_v3 = vmul.f32 0.2, %v8534_v51  ;;  %v8576_v56 = vmul.f32 0.2, %v8538_v38 }
 0x304   : > { %4618 = vmatprep.subr.bf16.mxu0 %v11615_v1  ;;  %v3943_v11 = vpack.c.bf16 %v3719_v32, %v3715_v49  ;;  %vm3219_vm7 = vcmp.gt.f32.partialorder %v8530_v30, 0.0  ;;  %vm3223_vm8 = vcmp.gt.f32.partialorder %v8538_v38, 0.0  ;;  %vm3229_vm9 = vcmp.gt.f32.partialorder %v2930_v15, 0.0 }
 0x305   : > { %4386 = vmatmul.mubr.bf16.gmra.mrb[216].mxu0 %v3938_v23  ;;  %v8523_v23 = vmul.f32 0.2, %v8488_v47  ;;  %4691 = vmatmul.mubr.bf16.gmra.mrb[216].mxu1 %v3948_v34  ;;  %v3733_v34 = vsel %vm3221_vm15, %v2920_v53, %v3477_v35  ;;  %v7167_v53 = vld [vmem:[%s11611_s6 + $0xe8] sm:$0xff]   ;;  %v8565_v35 = vadd.f32 %v8032_v40, %v8389_v46  ;;  %v8581_v40 = vadd.f32 %v8035_v44, %v8391_v10 }
 0x306   : > { %v3953_v9 = vpack.c.bf16 %v3737_v55, %v3733_v34  ;;  %4393 = vmatprep.mubr.bf16.mxu0 %v3943_v11  ;;  %v8585_v46 = vadd.f32 %v8042_v42, %v8403_v21  ;;  %v3714_v11 = vsel %vm3202_vm11, %v8419_v60, %v8445_v61  ;;  %v3718_v34 = vsel %vm3206_vm12, %v8450_v8, %v3462_v19  ;;  %v8612_v61 = vld [vmem:[%s7677_s13 + $0x1] ss:$0 sm:$0xff]  ;;  %v8620_v8 = vld [vmem:[%s7677_s13 + $0x3] ss:$0 sm:$0xff] }
 0x307   : > { %4619 = vmatpush1.bf16.msra.mxu0 %v7166_v29  ;;  %v3485_v44 = vmul.f32 0.2, %v2930_v15  ;;  %v3489_v10 = vmul.f32 0.2, %v2934_v31  ;;  %v3942_v55 = vpack.c.bf16 %v3718_v34, %v3714_v11  ;;  %v8609_v60 = vmul.f32 0.2, %v8565_v35 }
 0x308   : > { %v8511_v16 = vpop.f32.mrb[112].mxu0  ;;  %v8513_v37 = vpop.f32.mrb[112].mxu1  ;;  %4620 = vmatprep.subr.bf16.mxu0 %v11615_v1  ;;  %v3480_v1 = vmul.f32 0.2, %v2922_v20  ;;  %4698 = vmatprep.mubr.bf16.mxu1 %v3953_v9  ;;  %vm3233_vm10 = vcmp.gt.f32.partialorder %v2934_v31, 0.0  ;;  %v2932_v19 = vadd.f32 %v8620_v8, %v8411_v24  ;;  %v8633_v34 = vadd.f32 %v8612_v61, %v8437_v4 }
 0x309   : > { %v8548_v29 = vpop.f32.mrb[113].mxu0  ;;  %v8550_v13 = vpop.f32.mrb[113].mxu1  ;;  %11657 = vst [vmem:[#allocation10_spill] sm:$0xff] %v8609_v60  ;;  %v3723_v24 = vsel %vm3211_vm14, %v8459_v28, %v8496_v62  ;;  %v8668_v59 = vmul.f32 0.2, %v8585_v46  ;;  %vm3228_vm11 = vcmp.gt.f32.partialorder %v8581_v40, 0.0 }
 0x30a   : > { %v8556_v63 = vpop.f32.mrb[114].mxu0  ;;  %v8558_v25 = vpop.f32.mrb[114].mxu1  ;;  %v3736_v42 = vsel %vm3224_vm4, %v2922_v20, %v3480_v1  ;;  %v8616_v1 = vadd.f32 %v8612_v61, %v8409_v6  ;;  %v8625_v20 = vld [vmem:[%s7677_s13 + $0x2] ss:$0 sm:$0xff]  ;;  %v3732_v6 = vsel %vm3220_vm3, %v2918_v54, %v3476_v0  ;;  %v8653_v54 = vld [vmem:[%s7677_s13 + $0x4] ss:$0 sm:$0xff] }
 0x30b   : > { %4621 = vmatpush1.bf16.msra.mxu0 %v7167_v53  ;;  %v8587_v32 = vpop.f32.mrb[115].mxu0  ;;  %v8589_v49 = vpop.f32.mrb[115].mxu1  ;;  %v7168_v53 = vld [vmem:[%s11611_s6 + $0xf0] sm:$0xff]   ;;  %v8629_v11 = vadd.f32 %v8625_v20, %v8429_v5  ;;  %v3952_v52 = vpack.c.bf16 %v3736_v42, %v3732_v6  ;;  %v3727_v5 = vsel %vm3215_vm2, %v8488_v47, %v8523_v23  ;;  %v3741_v42 = vsel %vm3229_vm9, %v2930_v15, %v3485_v44  ;;  %v7173_v47 = vld [vmem:[%s11611_s6 + $0xf8] sm:$0xff]  }
 0x30c   : > { %4622 = vmatprep.subr.bf16.mxu0 %v11656_v7  ;;  %v3947_v0 = vpack.c.bf16 %v3727_v5, %v3723_v24  ;;  %v3745_v6 = vsel %vm3233_vm10, %v2934_v31, %v3489_v10  ;;  %v3484_v23 = vmul.f32 0.2, %v8581_v40  ;;  %v8678_v10 = vmul.f32 0.2, %v8616_v1 }
 0x30d   : > { %4394 = vmatmul.mubr.bf16.gmra.mrb[220].mxu0 %v3942_v55  ;;  %4699 = vmatmul.mubr.bf16.gmra.mrb[220].mxu1 %v3952_v52  ;;  %v3957_v15 = vpack.c.bf16 %v3745_v6, %v3741_v42  ;;  %vm3232_vm12 = vcmp.gt.f32.partialorder %v2932_v19, 0.0  ;;  %v3488_v24 = vmul.f32 0.2, %v2932_v19  ;;  %vm3222_vm13 = vcmp.gt.f32.partialorder %v8534_v51, 0.0 }
 0x30e   : > { %4401 = vmatprep.mubr.bf16.mxu0 %v3947_v0  ;;  %v8682_v5 = vmul.f32 0.2, %v8629_v11  ;;  %v8685_v52 = vmul.f32 0.2, %v8633_v34  ;;  %vm3218_vm14 = vcmp.gt.f32.partialorder %v8501_v58, 0.0  ;;  %v8693_v42 = vadd.f32 %v8625_v20, %v8465_v36 }
 0x30f   : > { %4623 = vmatpush1.bf16.msra.mxu0 %v7168_v53  ;;  %v8638_v53 = vadd.f32 %v8620_v8, %v8439_v2  ;;  %v2940_v2 = vadd.f32 %v8653_v54, %v8467_v26  ;;  %v2944_v26 = vadd.f32 %v8653_v54, %v8505_v18  ;;  %4706 = vmatprep.mubr.bf16.mxu1 %v3957_v15  ;;  %vm3227_vm2 = vcmp.gt.f32.partialorder %v8585_v46, 0.0 }
 0x310   : > { %v8599_v21 = vpop.f32.mrb[116].mxu0  ;;  %v8601_v9 = vpop.f32.mrb[116].mxu1  ;;  %4624 = vmatprep.subr.bf16.mxu0 %v11656_v7  ;;  %11658 = vst [vmem:[#allocation11_spill] sm:$0xff] %v8685_v52  ;;  %v8697_v6 = vadd.f32 %v8612_v61, %v8473_v27  ;;  %v8706_v15 = vadd.f32 %v8620_v8, %v8475_v43  ;;  %v8710_v36 = vadd.f32 %v8625_v20, %v8503_v39  ;;  %vm3231_vm3 = vcmp.gt.f32.partialorder %v8629_v11, 0.0 }
 0x311   : > { %v8648_v4 = vpop.f32.mrb[117].mxu0  ;;  %v8650_v55 = vpop.f32.mrb[117].mxu1  ;;  %v8688_v18 = vmul.f32 0.2, %v8638_v53  ;;  %vm3237_vm15 = vcmp.gt.f32.partialorder %v2940_v2, 0.0  ;;  %vm3236_vm0 = vcmp.gt.f32.partialorder %v8638_v53, 0.0  ;;  %v3726_v27 = vsel %vm3214_vm5, %v8484_v17, %v8519_v45 }
 0x312   : > { %v8659_v28 = vpop.f32.mrb[118].mxu0  ;;  %v8661_v62 = vpop.f32.mrb[118].mxu1  ;;  %v3493_v0 = vmul.f32 0.2, %v2940_v2  ;;  %v3497_v50 = vmul.f32 0.2, %v2944_v26  ;;  %v8724_v43 = vadd.f32 %v8612_v61, %v8511_v16  ;;  %v8728_v39 = vadd.f32 %v8620_v8, %v8513_v37 }
 0x313   : > { %4625 = vmatpush1.bf16.msra.mxu0 %v7173_v47  ;;  %v8672_v31 = vpop.f32.mrb[119].mxu0  ;;  %v8674_v44 = vpop.f32.mrb[119].mxu1  ;;  %vm3241_vm4 = vcmp.gt.f32.partialorder %v2944_v26, 0.0  ;;  %v3722_v17 = vsel %vm3210_vm6, %v8455_v14, %v8493_v22  ;;  %v8736_v45 = vadd.f32 %v8625_v20, %v8548_v29  ;;  %v3740_v52 = vsel %vm3228_vm11, %v8581_v40, %v3484_v23 }
 0x314   : > { %v3946_v33 = vpack.c.bf16 %v3726_v27, %v3722_v17  ;;  %v3744_v16 = vsel %vm3232_vm12, %v2932_v19, %v3488_v24  ;;  %v3731_v14 = vsel %vm3219_vm7, %v8530_v30, %v8570_v12  ;;  %v3735_v22 = vsel %vm3223_vm8, %v8538_v38, %v8576_v56 }
 0x315   : > { %v8762_v19 = vadd.f32 %v8612_v61, %v8556_v63  ;;  %v3749_v23 = vsel %vm3237_vm15, %v2940_v2, %v3493_v0  ;;  %v3753_v24 = vsel %vm3241_vm4, %v2944_v26, %v3497_v50  ;;  %v8767_v30 = vmul.f32 0.2, %v8693_v42 }
 0x316   : > { %4402 = vmatmul.mubr.bf16.gmra.mrb[224].mxu0 %v3946_v33  ;;  %v8770_v12 = vmul.f32 0.2, %v8697_v6  ;;  %v2954_v38 = vadd.f32 %v8653_v54, %v8589_v49  ;;  %v3961_v56 = vpack.c.bf16 %v3753_v24, %v3749_v23  ;;  %v3496_v63 = vmul.f32 0.2, %v8706_v15 }
 0x317   : > { %v8776_v33 = vmul.f32 0.2, %v8710_v36  ;;  %v8779_v2 = vmul.f32 0.2, %v8724_v43  ;;  %vm3230_vm5 = vcmp.gt.f32.partialorder %v8616_v1, 0.0  ;;  %vm3240_vm6 = vcmp.gt.f32.partialorder %v8706_v15, 0.0 }
 0x318   : > { %v8699_v47 = vpop.f32.mrb[120].mxu0  ;;  %v8701_v7 = vpop.f32.mrb[120].mxu1  ;;  %v8784_v50 = vmul.f32 0.2, %v8728_v39  ;;  %v8787_v49 = vmul.f32 0.2, %v8736_v45  ;;  %v8799_v0 = vadd.f32 %v8625_v20, %v8587_v32  ;;  %v8830_v23 = vadd.f32 %v8653_v54, %v8650_v55 }
 0x319   : > { %v8716_v41 = vpop.f32.mrb[121].mxu0  ;;  %v8718_v57 = vpop.f32.mrb[121].mxu1  ;;  %11661 = vst [vmem:[#allocation14_spill] sm:$0xff] %v8779_v2  ;;  %vm3226_vm8 = vcmp.gt.f32.partialorder %v8565_v35, 0.0  ;;  %v8791_v26 = vmul.f32 0.2, %v8762_v19 }
 0x31a   : > { %11659 = vst [vmem:[#allocation12_spill] sm:$0xff] %v8716_v41  ;;  %11660 = vst [vmem:[#allocation13_spill] sm:$0xff] %v8718_v57  ;;  %v8742_v60 = vpop.f32.mrb[122].mxu0  ;;  %v8744_v37 = vpop.f32.mrb[122].mxu1  ;;  %v2950_v57 = vadd.f32 %v8653_v54, %v8550_v13  ;;  %v3956_v41 = vpack.c.bf16 %v3744_v16, %v3740_v52  ;;  %v3951_v13 = vpack.c.bf16 %v3735_v22, %v3731_v14  ;;  %vm3244_vm9 = vcmp.gt.f32.partialorder %v8728_v39, 0.0 }
 0x31b   : > { %v8756_v29 = vpop.f32.mrb[123].mxu0  ;;  %v8758_v40 = vpop.f32.mrb[123].mxu1  ;;  %v8795_v52 = vadd.f32 %v8620_v8, %v8558_v25  ;;  %vm3249_vm10 = vcmp.gt.f32.partialorder %v2954_v38, 0.0  ;;  %v3505_v16 = vmul.f32 0.2, %v2954_v38  ;;  %v8808_v14 = vadd.f32 %v8612_v61, %v8599_v21 }
 0x31c   : > { %4707 = vmatmul.mubr.bf16.gmra.mrb[224].mxu1 %v3956_v41  ;;  %4409 = vmatprep.mubr.bf16.mxu0 %v3951_v13  ;;  %vm3245_vm7 = vcmp.gt.f32.partialorder %v2950_v57, 0.0  ;;  %v3501_v41 = vmul.f32 0.2, %v2950_v57  ;;  %v3734_v25 = vsel %vm3222_vm13, %v8534_v51, %v8573_v3  ;;  %vm3235_vm11 = vcmp.gt.f32.partialorder %v8693_v42, 0.0 }
 0x31d   : > { %4714 = vmatprep.mubr.bf16.mxu1 %v3961_v56  ;;  %vm3239_vm12 = vcmp.gt.f32.partialorder %v8710_v36, 0.0  ;;  %v8822_v13 = vadd.f32 %v8620_v8, %v8601_v9  ;;  %v8826_v21 = vadd.f32 %v8625_v20, %v8648_v4  ;;  %v3730_v51 = vsel %vm3218_vm14, %v8501_v58, %v8544_v48 }
 0x31e   : > { %v8838_v3 = vadd.f32 %v8612_v61, %v8659_v28  ;;  %v3950_v24 = vpack.c.bf16 %v3734_v25, %v3730_v51  ;;  %v3748_v9 = vsel %vm3236_vm0, %v8638_v53, %v8688_v18  ;;  %v3752_v4 = vsel %vm3240_vm6, %v8706_v15, %v3496_v63 }
 0x31f   : > { %v8853_v58 = vadd.f32 %v8620_v8, %v8661_v62  ;;  %v3960_v48 = vpack.c.bf16 %v3752_v4, %v3748_v9  ;;  %v3739_v28 = vsel %vm3227_vm2, %v8585_v46, %v8668_v59  ;;  %v3743_v53 = vsel %vm3231_vm3, %v8629_v11, %v8682_v5 }
 0x320   : > { %v8801_v27 = vpop.f32.mrb[124].mxu0  ;;  %v8803_v17 = vpop.f32.mrb[124].mxu1  ;;  %v8869_v63 = vadd.f32 %v8625_v20, %v8672_v31  ;;  %4410 = vmatmul.mubr.bf16.gmra.mrb[228].mxu0 %v3950_v24  ;;  %v3955_v62 = vpack.c.bf16 %v3743_v53, %v3739_v28  ;;  %v3757_v25 = vsel %vm3245_vm7, %v2950_v57, %v3501_v41  ;;  %v3761_v51 = vsel %vm3249_vm10, %v2954_v38, %v3505_v16 }
 0x321   : > { %v8814_v22 = vpop.f32.mrb[125].mxu0  ;;  %v8816_v32 = vpop.f32.mrb[125].mxu1  ;;  %vm3248_vm13 = vcmp.gt.f32.partialorder %v8795_v52, 0.0  ;;  %v3504_v59 = vmul.f32 0.2, %v8795_v52  ;;  %v2964_v46 = vadd.f32 %v8653_v54, %v8674_v44  ;;  %v3965_v11 = vpack.c.bf16 %v3761_v51, %v3757_v25  ;;  %v11666_v51 = vld [vmem:[#allocation12_spill] sm:$0xff] }
 0x322   : > { %v8847_v55 = vpop.f32.mrb[126].mxu0  ;;  %v8849_v56 = vpop.f32.mrb[126].mxu1  ;;  %v8878_v5 = vmul.f32 0.2, %v8799_v0  ;;  %v8881_v31 = vmul.f32 0.2, %v8808_v14  ;;  %4417 = vmatprep.mubr.bf16.mxu0 %v3955_v62  ;;  %v8903_v9 = vadd.f32 %v8612_v61, %v8699_v47  ;;  %v3742_v53 = vsel %vm3230_vm5, %v8616_v1, %v8678_v10 }
 0x323   : > { %v8863_v18 = vpop.f32.mrb[127].mxu0  ;;  %v8865_v15 = vpop.f32.mrb[127].mxu1  ;;  %v8884_v24 = vmul.f32 0.2, %v8822_v13  ;;  %vm3234_vm14 = vcmp.gt.f32.partialorder %v8633_v34, 0.0  ;;  %vm3238_vm15 = vcmp.gt.f32.partialorder %v8697_v6, 0.0  ;;  %v8920_v47 = vadd.f32 %v8620_v8, %v8701_v7 }
 0x324   : > { %4715 = vmatmul.mubr.bf16.gmra.mrb[228].mxu1 %v3960_v48  ;;  %11662 = vst [vmem:[#allocation15_spill] sm:$0xff] %v8881_v31  ;;  %v8889_v57 = vmul.f32 0.2, %v8826_v21  ;;  %v3509_v44 = vmul.f32 0.2, %v8830_v23  ;;  %vm3253_vm0 = vcmp.gt.f32.partialorder %v8830_v23, 0.0 }
 0x325   : > { %v8893_v38 = vmul.f32 0.2, %v8838_v3  ;;  %4722 = vmatprep.mubr.bf16.mxu1 %v3965_v11  ;;  %v8896_v41 = vmul.f32 0.2, %v8853_v58  ;;  %v8899_v16 = vmul.f32 0.2, %v8869_v63  ;;  %v8924_v11 = vadd.f32 %v8625_v20, %v11666_v51 }
 0x326   : > { %11663 = vst [vmem:[#allocation16_spill] sm:$0xff] %v8889_v57  ;;  %vm3257_vm2 = vcmp.gt.f32.partialorder %v2964_v46, 0.0  ;;  %v3513_v28 = vmul.f32 0.2, %v2964_v46  ;;  %vm3243_vm3 = vcmp.gt.f32.partialorder %v8736_v45, 0.0  ;;  %vm3252_vm4 = vcmp.gt.f32.partialorder %v8822_v13, 0.0 }
 0x327   : > { %11664 = vst [vmem:[#allocation17_spill] sm:$0xff] %v8893_v38  ;;  %11665 = vst [vmem:[#allocation18_spill] sm:$0xff] %v8899_v16  ;;  %v11667_v31 = vld [vmem:[#allocation13_spill] sm:$0xff]  ;;  %v11668_v1 = vld [vmem:[#allocation10_spill] sm:$0xff]  ;;  %vm3247_vm5 = vcmp.gt.f32.partialorder %v8799_v0, 0.0  ;;  %v8937_v16 = vadd.f32 %v8612_v61, %v8742_v60  ;;  %v3756_v51 = vsel %vm3244_vm9, %v8728_v39, %v8784_v50  ;;  %v3747_v60 = vsel %vm3235_vm11, %v8693_v42, %v8767_v30 }
 0x328   : > { %v2634_v4 = vpop.f32.mrb[128].mxu0  ;;  %v8905_v48 = vpop.f32.mrb[128].mxu1  ;;  %v8928_v38 = vadd.f32 %v8653_v54, %v11667_v31  ;;  %v3738_v10 = vsel %vm3226_vm8, %v8565_v35, %v11668_v1  ;;  %v3760_v31 = vsel %vm3248_vm13, %v8795_v52, %v3504_v59  ;;  %v8949_v35 = vmul.f32 0.2, %v8903_v9 }
 0x329   : > { %v8912_v62 = vpop.f32.mrb[129].mxu0  ;;  %v8914_v25 = vpop.f32.mrb[129].mxu1  ;;  %v3954_v7 = vpack.c.bf16 %v3742_v53, %v3738_v10  ;;  %v3964_v1 = vpack.c.bf16 %v3760_v31, %v3756_v51  ;;  %v3751_v39 = vsel %vm3239_vm12, %v8710_v36, %v8776_v33  ;;  %v3765_v53 = vsel %vm3253_vm0, %v8830_v23, %v3509_v44 }
 0x32a   : > { %v2638_v57 = vpop.f32.mrb[130].mxu0  ;;  %v8946_v2 = vpop.f32.mrb[130].mxu1  ;;  %11669 = vst [vmem:[#allocation12_spill] sm:$0xff] %v8949_v35  ;;  %v3959_v59 = vpack.c.bf16 %v3751_v39, %v3747_v60  ;;  %v3769_v10 = vsel %vm3257_vm2, %v2964_v46, %v3513_v28  ;;  %v2635_v51 = vadd.f32 %v8612_v61, %v2634_v4  ;;  %v8970_v42 = vadd.f32 %v8620_v8, %v8744_v37  ;;  %v11671_v39 = vld [vmem:[#allocation11_spill] sm:$0xff] }
 0x32b   : > { %v8959_v50 = vpop.f32.mrb[131].mxu0  ;;  %v8961_v52 = vpop.f32.mrb[131].mxu1  ;;  %4418 = vmatmul.mubr.bf16.gmra.mrb[232].mxu0 %v3954_v7  ;;  %v2974_v36 = vadd.f32 %v8653_v54, %v8758_v40  ;;  %v3969_v30 = vpack.c.bf16 %v3769_v10, %v3765_v53  ;;  %v2639_v33 = vadd.f32 %v8612_v61, %v2638_v57  ;;  %v8978_v23 = vmul.f32 0.2, %v8920_v47 }
 0x32c   : > { %4723 = vmatmul.mubr.bf16.gmra.mrb[232].mxu1 %v3964_v1  ;;  %v8981_v46 = vmul.f32 0.2, %v8924_v11  ;;  %4425 = vmatprep.mubr.bf16.mxu0 %v3959_v59  ;;  %v3530_v44 = vmul.f32 0.2, %v2635_v51  ;;  %vm3256_vm6 = vcmp.gt.f32.partialorder %v8853_v58, 0.0  ;;  %vm3274_vm7 = vcmp.gt.f32.partialorder %v2635_v51, 0.0 }
 0x32d   : > { %v3517_v37 = vmul.f32 0.2, %v8928_v38  ;;  %v8986_v40 = vmul.f32 0.2, %v8937_v16  ;;  %4730 = vmatprep.mubr.bf16.mxu1 %v3969_v30  ;;  %vm3261_vm8 = vcmp.gt.f32.partialorder %v8928_v38, 0.0  ;;  %v8991_v57 = vadd.f32 %v8625_v20, %v8756_v29 }
 0x32e   : > { %vm3278_vm9 = vcmp.gt.f32.partialorder %v2639_v33, 0.0  ;;  %v3534_v4 = vmul.f32 0.2, %v2639_v33  ;;  %vm3246_vm10 = vcmp.gt.f32.partialorder %v8762_v19, 0.0  ;;  %vm3264_vm11 = vcmp.gt.f32.partialorder %v8970_v42, 0.0 }
 0x32f   : > { %11670 = vst [vmem:[#allocation13_spill] sm:$0xff] %v8986_v40  ;;  %vm3265_vm12 = vcmp.gt.f32.partialorder %v2974_v36, 0.0  ;;  %v3521_v60 = vmul.f32 0.2, %v2974_v36  ;;  %v3746_v59 = vsel %vm3234_vm14, %v8633_v34, %v11671_v39  ;;  %v3750_v29 = vsel %vm3238_vm15, %v8697_v6, %v8770_v12 }
 0x330   : > { %v2644_v7 = vpop.f32.mrb[132].mxu0  ;;  %v8975_v31 = vpop.f32.mrb[132].mxu1  ;;  %vm3242_vm13 = vcmp.gt.f32.partialorder %v8724_v43, 0.0  ;;  %vm3260_vm0 = vcmp.gt.f32.partialorder %v8920_v47, 0.0  ;;  %v9013_v30 = vadd.f32 %v8612_v61, %v8801_v27  ;;  %v9016_v40 = vsel %vm3274_vm7, %v2635_v51, %v3530_v44 }
 0x331   : > { %v8993_v28 = vpop.f32.mrb[133].mxu0  ;;  %v8995_v1 = vpop.f32.mrb[133].mxu1  ;;  %11672 = vst [vmem:[#allocation10_spill] sm:$0xff] %v9016_v40  ;;  %v9019_v34 = vsel %vm3278_vm9, %v2639_v33, %v3534_v4  ;;  %v3958_v39 = vpack.c.bf16 %v3750_v29, %v3746_v59  ;;  %vm3251_vm14 = vcmp.gt.f32.partialorder %v8826_v21, 0.0  ;;  %v9028_v12 = vadd.f32 %v8620_v8, %v8803_v17 }
 0x332   : > { %v2648_v53 = vpop.f32.mrb[134].mxu0  ;;  %v9007_v10 = vpop.f32.mrb[134].mxu1  ;;  %11673 = vst [vmem:[#allocation11_spill] sm:$0xff] %v9019_v34  ;;  %v9032_v27 = vadd.f32 %v8625_v20, %v8814_v22  ;;  %v9036_v51 = vadd.f32 %v8653_v54, %v8816_v32  ;;  %vm3255_vm15 = vcmp.gt.f32.partialorder %v8869_v63, 0.0  ;;  %v9043_v44 = vadd.f32 %v8612_v61, %v8847_v55 }
 0x333   : > { %v9021_v35 = vpop.f32.mrb[135].mxu0  ;;  %v9023_v6 = vpop.f32.mrb[135].mxu1  ;;  %4426 = vmatmul.mubr.bf16.gmra.mrb[236].mxu0 %v3958_v39  ;;  %v3764_v17 = vsel %vm3252_vm4, %v8822_v13, %v8884_v24  ;;  %v3768_v22 = vsel %vm3256_vm6, %v8853_v58, %v8896_v41  ;;  %v3755_v32 = vsel %vm3243_vm3, %v8736_v45, %v8787_v49  ;;  %v3759_v55 = vsel %vm3247_vm5, %v8799_v0, %v8878_v5 }
 0x334   : > { %v3968_v4 = vpack.c.bf16 %v3768_v22, %v3764_v17  ;;  %v3773_v13 = vsel %vm3261_vm8, %v8928_v38, %v3517_v37  ;;  %v3777_v24 = vsel %vm3265_vm12, %v2974_v36, %v3521_v60  ;;  %v3520_v58 = vmul.f32 0.2, %v8970_v42 }
 0x335   : > { %v3963_v41 = vpack.c.bf16 %v3759_v55, %v3755_v32  ;;  %v3973_v39 = vpack.c.bf16 %v3777_v24, %v3773_v13  ;;  %v2645_v45 = vadd.f32 %v8612_v61, %v2644_v7  ;;  %v9074_v0 = vmul.f32 0.2, %v8991_v57 }
 0x336   : > { %v9077_v5 = vmul.f32 0.2, %v9013_v30  ;;  %v2984_v38 = vadd.f32 %v8653_v54, %v8865_v15  ;;  %4731 = vmatmul.mubr.bf16.gmra.mrb[236].mxu1 %v3968_v4  ;;  %v2649_v36 = vadd.f32 %v8612_v61, %v2648_v53  ;;  %v9087_v7 = vmul.f32 0.2, %v9028_v12 }
 0x337   : > { %v9090_v22 = vmul.f32 0.2, %v9032_v27  ;;  %4433 = vmatprep.mubr.bf16.mxu0 %v3963_v41  ;;  %4738 = vmatprep.mubr.bf16.mxu1 %v3973_v39  ;;  %v3538_v32 = vmul.f32 0.2, %v2645_v45  ;;  %vm3269_vm2 = vcmp.gt.f32.partialorder %v9036_v51, 0.0  ;;  %vm3282_vm3 = vcmp.gt.f32.partialorder %v2645_v45, 0.0 }
 0x338   : > { %v2654_v59 = vpop.f32.mrb[136].mxu0  ;;  %v9065_v29 = vpop.f32.mrb[136].mxu1  ;;  %11674 = vst [vmem:[#allocation19_spill] sm:$0xff] %v9077_v5  ;;  %v3525_v15 = vmul.f32 0.2, %v9036_v51  ;;  %v9099_v53 = vadd.f32 %v8620_v8, %v8849_v56  ;;  %v9103_v55 = vadd.f32 %v8625_v20, %v8863_v18  ;;  %vm3286_vm4 = vcmp.gt.f32.partialorder %v2649_v36, 0.0 }
 0x339   : > { %v9069_v49 = vpop.f32.mrb[137].mxu0  ;;  %v9071_v17 = vpop.f32.mrb[137].mxu1  ;;  %v9095_v4 = vmul.f32 0.2, %v9043_v44  ;;  %v3542_v13 = vmul.f32 0.2, %v2649_v36  ;;  %v9112_v33 = vadd.f32 %v8620_v8, %v8905_v48  ;;  %v9116_v56 = vadd.f32 %v8625_v20, %v8912_v62 }
 0x33a   : > { %v9082_v37 = vpop.f32.mrb[138].mxu0  ;;  %v9084_v60 = vpop.f32.mrb[138].mxu1  ;;  %vm3254_vm5 = vcmp.gt.f32.partialorder %v8838_v3, 0.0  ;;  %vm3273_vm6 = vcmp.gt.f32.partialorder %v2984_v38, 0.0  ;;  %v3529_v39 = vmul.f32 0.2, %v2984_v38  ;;  %v9119_v18 = vsel %vm3282_vm3, %v2645_v45, %v3538_v32 }
 0x33b   : > { %11675 = vst [vmem:[#allocation20_spill] sm:$0xff] %v9095_v4  ;;  %v9105_v24 = vpop.f32.mrb[139].mxu0  ;;  %v9107_v41 = vpop.f32.mrb[139].mxu1  ;;  %vm3250_vm7 = vcmp.gt.f32.partialorder %v8808_v14, 0.0  ;;  %11677 = vst [vmem:[#allocation22_spill] sm:$0xff] %v9119_v18  ;;  %v9121_v40 = vsel %vm3286_vm4, %v2649_v36, %v3542_v13  ;;  %v3758_v34 = vsel %vm3246_vm10, %v8762_v19, %v8791_v26  ;;  %v3776_v48 = vsel %vm3264_vm11, %v8970_v42, %v3520_v58  ;;  %v11679_v36 = vld [vmem:[#allocation14_spill] sm:$0xff] }
 0x33c   : > { %11676 = vst [vmem:[#allocation21_spill] sm:$0xff] %v9105_v24  ;;  %11678 = vst [vmem:[#allocation23_spill] sm:$0xff] %v9121_v40  ;;  %vm3268_vm8 = vcmp.gt.f32.partialorder %v9028_v12, 0.0  ;;  %v9133_v62 = vadd.f32 %v8653_v54, %v8914_v25  ;;  %v3754_v32 = vsel %vm3242_vm13, %v8724_v43, %v11679_v36  ;;  %v3772_v19 = vsel %vm3260_vm0, %v8920_v47, %v8978_v23  ;;  %v11680_v13 = vld [vmem:[#allocation16_spill] sm:$0xff]  ;;  %v11682_v45 = vld [vmem:[#allocation18_spill] sm:$0xff] }
 0x33d   : > { %vm3259_vm9 = vcmp.gt.f32.partialorder %v8924_v11, 0.0  ;;  %vm3263_vm10 = vcmp.gt.f32.partialorder %v8991_v57, 0.0  ;;  %vm3272_vm11 = vcmp.gt.f32.partialorder %v9099_v53, 0.0  ;;  %v9154_v25 = vadd.f32 %v8653_v54, %v8961_v52  ;;  %v11686_v24 = vld [vmem:[#allocation17_spill] sm:$0xff] }
 0x33e   : > { %v3962_v43 = vpack.c.bf16 %v3758_v34, %v3754_v32  ;;  %v3972_v58 = vpack.c.bf16 %v3776_v48, %v3772_v19  ;;  %v3763_v47 = vsel %vm3251_vm14, %v8826_v21, %v11680_v13  ;;  %v3767_v18 = vsel %vm3255_vm15, %v8869_v63, %v11682_v45 }
 0x33f   : > { %v3781_v52 = vsel %vm3269_vm2, %v9036_v51, %v3525_v15  ;;  %v3785_v34 = vsel %vm3273_vm6, %v2984_v38, %v3529_v39  ;;  %v2655_v48 = vadd.f32 %v8612_v61, %v2654_v59  ;;  %v3528_v19 = vmul.f32 0.2, %v9099_v53 }
 0x340   : > { %v9145_v26 = vpop.f32.mrb[140].mxu0  ;;  %v9147_v42 = vpop.f32.mrb[140].mxu1  ;;  %4434 = vmatmul.mubr.bf16.gmra.mrb[240].mxu0 %v3962_v43  ;;  %4739 = vmatmul.mubr.bf16.gmra.mrb[240].mxu1 %v3972_v58  ;;  %v3967_v13 = vpack.c.bf16 %v3767_v18, %v3763_v47  ;;  %v3977_v40 = vpack.c.bf16 %v3785_v34, %v3781_v52  ;;  %v3008_v63 = vadd.f32 %v8620_v8, %v9065_v29  ;;  %v9185_v38 = vmul.f32 0.2, %v9103_v55 }
 0x341   : > { %v9160_v23 = vpop.f32.mrb[141].mxu0  ;;  %v9162_v36 = vpop.f32.mrb[141].mxu1  ;;  %v9188_v59 = vmul.f32 0.2, %v9112_v33  ;;  %v9191_v15 = vmul.f32 0.2, %v9116_v56  ;;  %v2659_v29 = vadd.f32 %v8612_v61, %v9082_v37  ;;  %v3012_v18 = vadd.f32 %v8620_v8, %v9084_v60 }
 0x342   : > { %11681 = vst [vmem:[#allocation14_spill] sm:$0xff] %v9160_v23  ;;  %v9173_v32 = vpop.f32.mrb[142].mxu0  ;;  %v9175_v21 = vpop.f32.mrb[142].mxu1  ;;  %vm3277_vm12 = vcmp.gt.f32.partialorder %v9133_v62, 0.0  ;;  %4441 = vmatprep.mubr.bf16.mxu0 %v3967_v13  ;;  %4746 = vmatprep.mubr.bf16.mxu1 %v3977_v40  ;;  %v3546_v39 = vmul.f32 0.2, %v2655_v48  ;;  %v9201_v58 = vadd.f32 %v8620_v8, %v8946_v2  ;;  %v9208_v37 = vadd.f32 %v8625_v20, %v8959_v50 }
 0x343   : > { %v9180_v45 = vpop.f32.mrb[143].mxu0  ;;  %v9182_v51 = vpop.f32.mrb[143].mxu1  ;;  %11685 = vst [vmem:[#allocation24_spill] sm:$0xff] %v9191_v15  ;;  %v3533_v43 = vmul.f32 0.2, %v9133_v62  ;;  %vm3290_vm13 = vcmp.gt.f32.partialorder %v2655_v48, 0.0  ;;  %v9217_v13 = vadd.f32 %v8653_v54, %v8995_v1  ;;  %v3766_v50 = vsel %vm3254_vm5, %v8838_v3, %v11686_v24 }
 0x344   : > { %11683 = vst [vmem:[#allocation16_spill] sm:$0xff] %v9180_v45  ;;  %11684 = vst [vmem:[#allocation18_spill] sm:$0xff] %v9182_v51  ;;  %v3548_v47 = vmul.f32 0.2, %v3008_v63  ;;  %v3537_v52 = vmul.f32 0.2, %v9154_v25  ;;  %v9219_v45 = vsel %vm3290_vm13, %v2655_v48, %v3546_v39  ;;  %v9251_v24 = vadd.f32 %v8653_v54, %v9023_v6 }
 0x345   : > { %vm3292_vm0 = vcmp.gt.f32.partialorder %v3008_v63, 0.0  ;;  %vm3294_vm14 = vcmp.gt.f32.partialorder %v2659_v29, 0.0  ;;  %v3550_v40 = vmul.f32 0.2, %v2659_v29  ;;  %vm3258_vm15 = vcmp.gt.f32.partialorder %v8903_v9, 0.0  ;;  %v11687_v48 = vld [vmem:[#allocation15_spill] sm:$0xff] }
 0x346   : > { %vm3262_vm2 = vcmp.gt.f32.partialorder %v8937_v16, 0.0  ;;  %vm3281_vm3 = vcmp.gt.f32.partialorder %v9154_v25, 0.0  ;;  %vm3296_vm4 = vcmp.gt.f32.partialorder %v3012_v18, 0.0  ;;  %v3552_v2 = vmul.f32 0.2, %v3012_v18 }
 0x347   : > { %v9221_v23 = vsel %vm3294_vm14, %v2659_v29, %v3550_v40  ;;  %v9232_v5 = vsel %vm3292_vm0, %v3008_v63, %v3548_v47  ;;  %v3762_v39 = vsel %vm3250_vm7, %v8808_v14, %v11687_v48  ;;  %vm3267_vm5 = vcmp.gt.f32.partialorder %v9032_v27, 0.0 }
 0x348   : > { %v9211_v60 = vpop.f32.mrb[144].mxu0  ;;  %v9213_v34 = vpop.f32.mrb[144].mxu1  ;;  %v9236_v4 = vsel %vm3296_vm4, %v3012_v18, %v3552_v2  ;;  %vm3276_vm6 = vcmp.gt.f32.partialorder %v9112_v33, 0.0  ;;  %vm3280_vm13 = vcmp.gt.f32.partialorder %v9201_v58, 0.0  ;;  %v3966_v18 = vpack.c.bf16 %v3766_v50, %v3762_v39 }
 0x349   : > { %v9227_v15 = vpop.f32.mrb[145].mxu0  ;;  %v9229_v51 = vpop.f32.mrb[145].mxu1  ;;  %v3780_v14 = vsel %vm3268_vm8, %v9028_v12, %v9087_v7  ;;  %vm3271_vm7 = vcmp.gt.f32.partialorder %v9103_v55, 0.0  ;;  %v3784_v6 = vsel %vm3272_vm11, %v9099_v53, %v3528_v19  ;;  %v3771_v2 = vsel %vm3259_vm9, %v8924_v11, %v8981_v46 }
 0x34a   : > { %v9242_v29 = vpop.f32.mrb[146].mxu0  ;;  %v9244_v3 = vpop.f32.mrb[146].mxu1  ;;  %v3775_v12 = vsel %vm3263_vm10, %v8991_v57, %v9074_v0  ;;  %v3789_v7 = vsel %vm3277_vm12, %v9133_v62, %v3533_v43  ;;  %4442 = vmatmul.mubr.bf16.gmra.mrb[244].mxu0 %v3966_v18  ;;  %v3976_v50 = vpack.c.bf16 %v3784_v6, %v3780_v14  ;;  %v3793_v53 = vsel %vm3281_vm3, %v9154_v25, %v3537_v52 }
 0x34b   : > { %v9259_v47 = vpop.f32.mrb[147].mxu0  ;;  %v9261_v40 = vpop.f32.mrb[147].mxu1  ;;  %v3971_v48 = vpack.c.bf16 %v3775_v12, %v3771_v2  ;;  %v2665_v19 = vadd.f32 %v8612_v61, %v9145_v26  ;;  %v3536_v11 = vmul.f32 0.2, %v9201_v58  ;;  %v9285_v46 = vmul.f32 0.2, %v9208_v37 }
 0x34c   : > { %v3981_v57 = vpack.c.bf16 %v3793_v53, %v3789_v7  ;;  %v3018_v0 = vadd.f32 %v8620_v8, %v9147_v42  ;;  %v9291_v62 = vadd.f32 %v8620_v8, %v8975_v31  ;;  %4747 = vmatmul.mubr.bf16.gmra.mrb[244].mxu1 %v3976_v50  ;;  %v2669_v25 = vadd.f32 %v8612_v61, %v9173_v32  ;;  %v11689_v12 = vld [vmem:[#allocation12_spill] sm:$0xff]  ;;  %v11690_v50 = vld [vmem:[#allocation13_spill] sm:$0xff] }
 0x34d   : > { %4449 = vmatprep.mubr.bf16.mxu0 %v3971_v48  ;;  %v3554_v43 = vmul.f32 0.2, %v2665_v19  ;;  %v3022_v26 = vadd.f32 %v8620_v8, %v9175_v21  ;;  %v9299_v52 = vadd.f32 %v8625_v20, %v8993_v28  ;;  %v3541_v39 = vmul.f32 0.2, %v9217_v13 }
 0x34e   : > { %4754 = vmatprep.mubr.bf16.mxu1 %v3981_v57  ;;  %vm3298_vm8 = vcmp.gt.f32.partialorder %v2665_v19, 0.0  ;;  %v3556_v42 = vmul.f32 0.2, %v3018_v0  ;;  %vm3285_vm9 = vcmp.gt.f32.partialorder %v9217_v13, 0.0  ;;  %vm3289_vm10 = vcmp.gt.f32.partialorder %v9251_v24, 0.0 }
 0x34f   : > { %vm3300_vm11 = vcmp.gt.f32.partialorder %v3018_v0, 0.0  ;;  %vm3302_vm12 = vcmp.gt.f32.partialorder %v2669_v25, 0.0  ;;  %v9310_v21 = vadd.f32 %v8620_v8, %v9007_v10  ;;  %v3558_v28 = vmul.f32 0.2, %v2669_v25 }
 0x350   : > { %v9304_v31 = vpop.f32.mrb[148].mxu0  ;;  %v9306_v32 = vpop.f32.mrb[148].mxu1  ;;  %vm3304_vm0 = vcmp.gt.f32.partialorder %v3022_v26, 0.0  ;;  %v3560_v18 = vmul.f32 0.2, %v3022_v26  ;;  %vm3270_vm14 = vcmp.gt.f32.partialorder %v9043_v44, 0.0  ;;  %v9316_v2 = vsel %vm3298_vm8, %v2665_v19, %v3554_v43 }
 0x351   : > { %v9312_v14 = vpop.f32.mrb[149].mxu0  ;;  %v3545_v6 = vmul.f32 0.2, %v9251_v24  ;;  %11688 = vst [vmem:[#allocation17_spill] sm:$0xff] %v9316_v2  ;;  %v3770_v7 = vsel %vm3258_vm15, %v8903_v9, %v11689_v12  ;;  %v3774_v10 = vsel %vm3262_vm2, %v8937_v16, %v11690_v50  ;;  %v9326_v48 = vpop.f32.mrb[149].mxu1  ;;  %vm3266_vm3 = vcmp.gt.f32.partialorder %v9013_v30, 0.0 }
 0x352   : > { %v9328_v53 = vpop.f32.mrb[150].mxu0  ;;  %v9332_v57 = vsel %vm3300_vm11, %v3018_v0, %v3556_v42  ;;  %v9335_v19 = vsel %vm3302_vm12, %v2669_v25, %v3558_v28  ;;  %v9337_v43 = vsel %vm3304_vm0, %v3022_v26, %v3560_v18  ;;  %v3970_v9 = vpack.c.bf16 %v3774_v10, %v3770_v7  ;;  %v9339_v12 = vpop.f32.mrb[150].mxu1  ;;  %v11694_v25 = vld [vmem:[#allocation20_spill] sm:$0xff] }
 0x353   : > { %11691 = vst [vmem:[#allocation15_spill] sm:$0xff] %v9335_v19  ;;  %v9341_v1 = vpop.f32.mrb[151].mxu0  ;;  %vm3284_vm15 = vcmp.gt.f32.partialorder %v9291_v62, 0.0  ;;  %v9345_v16 = vmul.f32 0.2, %v9291_v62  ;;  %v9349_v50 = vadd.f32 %v8653_v54, %v9071_v17  ;;  %v9355_v26 = vpop.f32.mrb[151].mxu1  ;;  %v9361_v42 = vadd.f32 %v8653_v54, %v9107_v41 }
 0x354   : > { %vm3275_vm2 = vcmp.gt.f32.partialorder %v9116_v56, 0.0  ;;  %vm3279_vm4 = vcmp.gt.f32.partialorder %v9208_v37, 0.0  ;;  %4450 = vmatmul.mubr.bf16.gmra.mrb[248].mxu0 %v3970_v9  ;;  %v3788_v17 = vsel %vm3276_vm6, %v9112_v33, %v9188_v59  ;;  %v3792_v28 = vsel %vm3280_vm13, %v9201_v58, %v3536_v11 }
 0x355   : > { %v3779_v18 = vsel %vm3267_vm5, %v9032_v27, %v9090_v22  ;;  %v3980_v7 = vpack.c.bf16 %v3792_v28, %v3788_v17  ;;  %v3783_v41 = vsel %vm3271_vm7, %v9103_v55, %v9185_v38  ;;  %v3797_v10 = vsel %vm3285_vm9, %v9217_v13, %v3541_v39 }
 0x356   : > { %v3801_v33 = vsel %vm3289_vm10, %v9251_v24, %v3545_v6  ;;  %v3975_v59 = vpack.c.bf16 %v3783_v41, %v3779_v18  ;;  %v2675_v11 = vadd.f32 %v8612_v61, %v9211_v60  ;;  %v3028_v27 = vadd.f32 %v8620_v8, %v9213_v34 }
 0x357   : > { %v3985_v58 = vpack.c.bf16 %v3801_v33, %v3797_v10  ;;  %v9393_v55 = vmul.f32 0.2, %v9299_v52  ;;  %vm3288_vm5 = vcmp.gt.f32.partialorder %v9310_v21, 0.0  ;;  %4755 = vmatmul.mubr.bf16.gmra.mrb[248].mxu1 %v3980_v7  ;;  %v2679_v38 = vadd.f32 %v8612_v61, %v9242_v29 }
 0x358   : > { %v9388_v22 = vpop.f32.mrb[152].mxu0  ;;  %v9390_v9 = vpop.f32.mrb[152].mxu1  ;;  %v3032_v13 = vadd.f32 %v8620_v8, %v9244_v3  ;;  %v3544_v34 = vmul.f32 0.2, %v9310_v21  ;;  %v3549_v39 = vmul.f32 0.2, %v9349_v50  ;;  %4457 = vmatprep.mubr.bf16.mxu0 %v3975_v59  ;;  %v9410_v3 = vadd.f32 %v8625_v20, %v9021_v35 }
 0x359   : > { %v9400_v60 = vpop.f32.mrb[153].mxu0  ;;  %v9402_v24 = vpop.f32.mrb[153].mxu1  ;;  %4762 = vmatprep.mubr.bf16.mxu1 %v3985_v58  ;;  %v3562_v6 = vmul.f32 0.2, %v2675_v11  ;;  %vm3293_vm6 = vcmp.gt.f32.partialorder %v9349_v50, 0.0  ;;  %vm3306_vm13 = vcmp.gt.f32.partialorder %v2675_v11, 0.0  ;;  %v9419_v41 = vadd.f32 %v8625_v20, %v9069_v49 }
 0x35a   : > { %v3553_v17 = vmul.f32 0.2, %v9361_v42  ;;  %v3564_v29 = vmul.f32 0.2, %v3028_v27  ;;  %vm3308_vm7 = vcmp.gt.f32.partialorder %v3028_v27, 0.0  ;;  %vm3310_vm8 = vcmp.gt.f32.partialorder %v2679_v38, 0.0 }
 0x35b   : > { %v3566_v28 = vmul.f32 0.2, %v2679_v38  ;;  %v9412_v18 = vpop.f32.mrb[154].mxu0  ;;  %v9414_v7 = vpop.f32.mrb[154].mxu1  ;;  %vm3283_vm9 = vcmp.gt.f32.partialorder %v9299_v52, 0.0  ;;  %vm3297_vm10 = vcmp.gt.f32.partialorder %v9361_v42, 0.0  ;;  %v9428_v59 = vadd.f32 %v8653_v54, %v9162_v36 }
 0x35c   : > { %vm3312_vm11 = vcmp.gt.f32.partialorder %v3032_v13, 0.0  ;;  %v3568_v10 = vmul.f32 0.2, %v3032_v13  ;;  %v9422_v33 = vpop.f32.mrb[155].mxu0  ;;  %v9424_v35 = vpop.f32.mrb[155].mxu1  ;;  %v9431_v58 = vsel %vm3306_vm13, %v2675_v11, %v3562_v6  ;;  %v3782_v49 = vsel %vm3270_vm14, %v9043_v44, %v11694_v25  ;;  %v11695_v36 = vld [vmem:[#allocation19_spill] sm:$0xff] }
 0x35d   : > { %11692 = vst [vmem:[#allocation12_spill] sm:$0xff] %v9431_v58  ;;  %v9433_v0 = vsel %vm3310_vm8, %v2679_v38, %v3566_v28  ;;  %v9440_v63 = vsel %vm3308_vm7, %v3028_v27, %v3564_v29  ;;  %v3778_v11 = vsel %vm3266_vm3, %v9013_v30, %v11695_v36  ;;  %v11696_v38 = vld [vmem:[#allocation18_spill] sm:$0xff]  ;;  %v3796_v27 = vsel %vm3284_vm15, %v9291_v62, %v9345_v16  ;;  %v11697_v28 = vld [vmem:[#allocation24_spill] sm:$0xff] }
 0x35e   : > { %11693 = vst [vmem:[#allocation13_spill] sm:$0xff] %v9433_v0  ;;  %v9444_v19 = vsel %vm3312_vm11, %v3032_v13, %v3568_v10  ;;  %v9452_v6 = vadd.f32 %v8653_v54, %v11696_v38  ;;  %v3974_v25 = vpack.c.bf16 %v3782_v49, %v3778_v11  ;;  %v3800_v30 = vsel %vm3288_vm5, %v9310_v21, %v3544_v34 }
 0x35f   : > { %v3787_v10 = vsel %vm3275_vm2, %v9116_v56, %v11697_v28  ;;  %v3791_v49 = vsel %vm3279_vm4, %v9208_v37, %v9285_v46  ;;  %v3805_v62 = vsel %vm3293_vm6, %v9349_v50, %v3549_v39  ;;  %v3984_v21 = vpack.c.bf16 %v3800_v30, %v3796_v27  ;;  %v11698_v28 = vld [vmem:[#allocation21_spill] sm:$0xff] }
 0x360   : > { %v9460_v13 = vpop.f32.mrb[156].mxu0  ;;  %v9462_v29 = vpop.f32.mrb[156].mxu1  ;;  %4458 = vmatmul.mubr.bf16.gmra.mrb[252].mxu0 %v3974_v25  ;;  %v3979_v34 = vpack.c.bf16 %v3791_v49, %v3787_v10  ;;  %v3809_v56 = vsel %vm3297_vm10, %v9361_v42, %v3553_v17  ;;  %v2685_v11 = vadd.f32 %v8612_v61, %v9304_v31  ;;  %vm3287_vm12 = vcmp.gt.f32.partialorder %v9410_v3, 0.0 }
 0x361   : > { %v9478_v16 = vpop.f32.mrb[157].mxu0  ;;  %v9480_v36 = vpop.f32.mrb[157].mxu1  ;;  %v3543_v46 = vmul.f32 0.2, %v9410_v3  ;;  %v3989_v50 = vpack.c.bf16 %v3809_v56, %v3805_v62  ;;  %v3038_v39 = vadd.f32 %v8620_v8, %v9306_v32  ;;  %v9500_v42 = vmul.f32 0.2, %v9419_v41  ;;  %4763 = vmatmul.mubr.bf16.gmra.mrb[252].mxu1 %v3984_v21 }
 0x362   : > { %v9487_v38 = vpop.f32.mrb[158].mxu0  ;;  %v9489_v37 = vpop.f32.mrb[158].mxu1  ;;  %4465 = vmatprep.mubr.bf16.mxu0 %v3979_v34  ;;  %v3570_v31 = vmul.f32 0.2, %v2685_v11  ;;  %v2689_v17 = vadd.f32 %v8612_v61, %v9328_v53  ;;  %v3042_v30 = vadd.f32 %v8620_v8, %v9339_v12  ;;  %v9508_v10 = vadd.f32 %v8625_v20, %v11698_v28  ;;  %v11699_v32 = vld [vmem:[#allocation14_spill] sm:$0xff] }
 0x363   : > { %v9495_v25 = vpop.f32.mrb[159].mxu0  ;;  %v9497_v27 = vpop.f32.mrb[159].mxu1  ;;  %v9512_v49 = vadd.f32 %v8625_v20, %v11699_v32  ;;  %4770 = vmatprep.mubr.bf16.mxu1 %v3989_v50  ;;  %vm3314_vm0 = vcmp.gt.f32.partialorder %v2685_v11, 0.0  ;;  %v3572_v62 = vmul.f32 0.2, %v3038_v39  ;;  %vm3291_vm14 = vcmp.gt.f32.partialorder %v9419_v41, 0.0 }
 0x364   : > { %v3557_v21 = vmul.f32 0.2, %v9428_v59  ;;  %v3561_v61 = vmul.f32 0.2, %v9452_v6  ;;  %vm3316_vm3 = vcmp.gt.f32.partialorder %v3038_v39, 0.0  ;;  %vm3318_vm15 = vcmp.gt.f32.partialorder %v2689_v17, 0.0 }
 0x365   : > { %vm3301_vm2 = vcmp.gt.f32.partialorder %v9428_v59, 0.0  ;;  %v3574_v8 = vmul.f32 0.2, %v2689_v17  ;;  %vm3320_vm4 = vcmp.gt.f32.partialorder %v3042_v30, 0.0  ;;  %v3576_v53 = vmul.f32 0.2, %v3042_v30 }
 0x366   : > { %vm3305_vm5 = vcmp.gt.f32.partialorder %v9452_v6, 0.0  ;;  %v9519_v20 = vsel %vm3314_vm0, %v2685_v11, %v3570_v31  ;;  %v3795_v12 = vsel %vm3283_vm9, %v9299_v52, %v9393_v55  ;;  %v3799_v34 = vsel %vm3287_vm12, %v9410_v3, %v3543_v46  ;;  %v11704_v46 = vld [vmem:[#allocation11_spill] sm:$0xff] }
 0x367   : > { %11700 = vst [vmem:[#allocation20_spill] sm:$0xff] %v9519_v20  ;;  %v9532_v28 = vsel %vm3316_vm3, %v3038_v39, %v3572_v62  ;;  %v9534_v32 = vsel %vm3318_vm15, %v2689_v17, %v3574_v8  ;;  %v9536_v11 = vsel %vm3320_vm4, %v3042_v30, %v3576_v53  ;;  %v3983_v31 = vpack.c.bf16 %v3799_v34, %v3795_v12  ;;  %v11705_v39 = vld [vmem:[#allocation10_spill] sm:$0xff] }
 0x368   : > { %v9528_v56 = vpop.f32.mrb[160].mxu0  ;;  %v9530_v50 = vpop.f32.mrb[160].mxu1  ;;  %11701 = vst [vmem:[#allocation19_spill] sm:$0xff] %v9534_v32  ;;  %vm3295_vm6 = vcmp.gt.f32.partialorder %v9508_v10, 0.0  ;;  %v9545_v52 = vadd.f32 %v8653_v54, %v9229_v51  ;;  %v11706_v17 = vpack.c.bf16 %v11704_v46, %v11705_v39  ;;  %v3034_v51 = vadd.f32 %v8653_v54, %v9261_v40  ;;  %v9567_v12 = vld [vmem:[%s7677_s13 + $0x1] ss:$0 sm:$0xff] }
 0x369   : > { %v9538_v2 = vpop.f32.mrb[161].mxu0  ;;  %v9540_v44 = vpop.f32.mrb[161].mxu1  ;;  %v3813_v8 = vsel %vm3301_vm2, %v9428_v59, %v3557_v21  ;;  %v3817_v53 = vsel %vm3305_vm5, %v9452_v6, %v3561_v61  ;;  %v2695_v34 = vadd.f32 %v9567_v12, %v9388_v22  ;;  %v3551_v54 = vmul.f32 0.2, %v9508_v10  ;;  %v9583_v6 = vld [vmem:[%s7677_s13 + $0x3] ss:$0 sm:$0xff] }
 0x36a   : > { %11702 = vst [vmem:[#allocation18_spill] sm:$0xff] %v9538_v2  ;;  %11703 = vst [vmem:[#allocation24_spill] sm:$0xff] %v9540_v44  ;;  %4466 = vmatmul.mubr.bf16.gmra.mrb[0].mxu0 %v11706_v17  ;;  %v9554_v30 = vpop.f32.mrb[162].mxu0  ;;  %v9556_v62 = vpop.f32.mrb[162].mxu1  ;;  %v9577_v40 = vmul.f32 0.2, %v9512_v49  ;;  %v11709_v59 = vpack.c.bf16 %v9236_v4, %v9232_v5  ;;  %v3993_v21 = vpack.c.bf16 %v3817_v53, %v3813_v8 }
 0x36b   : > { %4473 = vmatprep.mubr.bf16.mxu0 %v3983_v31  ;;  %v9571_v46 = vpop.f32.mrb[163].mxu0  ;;  %v9573_v39 = vpop.f32.mrb[163].mxu1  ;;  %v3048_v61 = vadd.f32 %v9583_v6, %v9390_v9  ;;  %v9588_v22 = vld [vmem:[%s7677_s13 + $0x2] ss:$0 sm:$0xff]  ;;  %v11710_v31 = vld [vmem:[#allocation16_spill] sm:$0xff]  ;;  %v2699_v3 = vadd.f32 %v9567_v12, %v9412_v18  ;;  %v3052_v5 = vadd.f32 %v9583_v6, %v9414_v7  ;;  %vm3309_vm13 = vcmp.gt.f32.partialorder %v9545_v52, 0.0 }
 0x36c   : > { %11707 = vst [vmem:[#allocation21_spill] sm:$0xff] %v9571_v46  ;;  %11708 = vst [vmem:[#allocation14_spill] sm:$0xff] %v9573_v39  ;;  %4771 = vmatmul.mubr.bf16.gmra.mrb[0].mxu1 %v11709_v59  ;;  %v9592_v17 = vadd.f32 %v9588_v22, %v11710_v31  ;;  %v3578_v55 = vmul.f32 0.2, %v2695_v34  ;;  %v3565_v4 = vmul.f32 0.2, %v9545_v52  ;;  %v9603_v18 = vadd.f32 %v9588_v22, %v9227_v15 }
 0x36d   : > { %4778 = vmatprep.mubr.bf16.mxu1 %v3993_v21  ;;  %vm3322_vm7 = vcmp.gt.f32.partialorder %v2695_v34, 0.0  ;;  %v3580_v9 = vmul.f32 0.2, %v3048_v61  ;;  %vm3299_vm8 = vcmp.gt.f32.partialorder %v9512_v49, 0.0  ;;  %vm3313_vm9 = vcmp.gt.f32.partialorder %v3034_v51, 0.0 }
 0x36e   : > { %v3569_v8 = vmul.f32 0.2, %v3034_v51  ;;  %vm3324_vm10 = vcmp.gt.f32.partialorder %v3048_v61, 0.0  ;;  %vm3326_vm11 = vcmp.gt.f32.partialorder %v2699_v3, 0.0  ;;  %v3582_v53 = vmul.f32 0.2, %v2699_v3 }
 0x36f   : > { %vm3328_vm12 = vcmp.gt.f32.partialorder %v3052_v5, 0.0  ;;  %v3584_v7 = vmul.f32 0.2, %v3052_v5  ;;  %v9608_v31 = vld [vmem:[%s7677_s13 + $0x4] ss:$0 sm:$0xff]  ;;  %v9614_v20 = vsel %vm3322_vm7, %v2695_v34, %v3578_v55  ;;  %v3803_v32 = vsel %vm3291_vm14, %v9419_v41, %v9500_v42  ;;  %v11711_v55 = vld [vmem:[#allocation23_spill] sm:$0xff] }
 0x370   : > { %v9605_v59 = vpop.f32.mrb[164].mxu0  ;;  %v9612_v21 = vadd.f32 %v9608_v31, %v9326_v48  ;;  %v3807_v15 = vsel %vm3295_vm6, %v9508_v10, %v3551_v54  ;;  %v9623_v39 = vpop.f32.mrb[164].mxu1  ;;  %v9627_v44 = vsel %vm3324_vm10, %v3048_v61, %v3580_v9  ;;  %v9629_v2 = vsel %vm3326_vm11, %v2699_v3, %v3582_v53  ;;  %v11712_v34 = vld [vmem:[#allocation22_spill] sm:$0xff] }
 0x371   : > { %v9625_v46 = vpop.f32.mrb[165].mxu0  ;;  %v9631_v48 = vsel %vm3328_vm12, %v3052_v5, %v3584_v7  ;;  %v11713_v58 = vpack.c.bf16 %v11711_v55, %v11712_v34  ;;  %v3987_v0 = vpack.c.bf16 %v3807_v15, %v3803_v32  ;;  %v9636_v41 = vpop.f32.mrb[165].mxu1  ;;  %v9642_v10 = vadd.f32 %v9588_v22, %v9259_v47 }
 0x372   : > { %v9638_v42 = vpop.f32.mrb[166].mxu0  ;;  %v3044_v54 = vadd.f32 %v9608_v31, %v9355_v26  ;;  %v9650_v5 = vpop.f32.mrb[166].mxu1  ;;  %vm3303_vm0 = vcmp.gt.f32.partialorder %v9592_v17, 0.0  ;;  %v11714_v32 = vpack.c.bf16 %v9337_v43, %v9332_v57  ;;  %v3821_v47 = vsel %vm3309_vm13, %v9545_v52, %v3565_v4  ;;  %v11715_v4 = vld [vmem:[#allocation4_spill] sm:$0xff] }
 0x373   : > { %4474 = vmatmul.mubr.bf16.gmra.mrb[4].mxu0 %v11713_v58  ;;  %v9652_v58 = vpop.f32.mrb[167].mxu0  ;;  %v3825_v26 = vsel %vm3313_vm9, %v3034_v51, %v3569_v8  ;;  %v2705_v9 = vadd.f32 %v9567_v12, %v9460_v13  ;;  %v9664_v53 = vpop.f32.mrb[167].mxu1  ;;  %v3559_v7 = vmul.f32 0.2, %v9592_v17  ;;  %v9668_v15 = vmul.f32 0.2, %v9603_v18 }
 0x374   : > { %4779 = vmatmul.mubr.bf16.gmra.mrb[4].mxu1 %v11714_v32  ;;  %4481 = vmatprep.mubr.bf16.mxu0 %v3987_v0  ;;  %v3997_v55 = vpack.c.bf16 %v3825_v26, %v3821_v47  ;;  %v3058_v57 = vadd.f32 %v9583_v6, %v9462_v29  ;;  %vm3317_vm14 = vcmp.gt.f32.partialorder %v9612_v21, 0.0  ;;  %v2709_v0 = vadd.f32 %v9567_v12, %v9487_v38 }
 0x375   : > { %v3586_v43 = vmul.f32 0.2, %v2705_v9  ;;  %v3062_v13 = vadd.f32 %v9583_v6, %v9489_v37  ;;  %v3573_v52 = vmul.f32 0.2, %v9612_v21  ;;  %vm3321_vm3 = vcmp.gt.f32.partialorder %v3044_v54, 0.0 }
 0x376   : > { %4786 = vmatprep.mubr.bf16.mxu1 %v3997_v55  ;;  %vm3330_vm15 = vcmp.gt.f32.partialorder %v2705_v9, 0.0  ;;  %v3588_v51 = vmul.f32 0.2, %v3058_v57  ;;  %v9680_v8 = vadd.f32 %v9583_v6, %v11715_v4  ;;  %vm3307_vm2 = vcmp.gt.f32.partialorder %v9603_v18, 0.0 }
 0x377   : > { %vm3311_vm4 = vcmp.gt.f32.partialorder %v9642_v10, 0.0  ;;  %v3577_v29 = vmul.f32 0.2, %v3044_v54  ;;  %vm3332_vm5 = vcmp.gt.f32.partialorder %v3058_v57, 0.0  ;;  %vm3334_vm6 = vcmp.gt.f32.partialorder %v2709_v0, 0.0 }
 0x378   : > { %11716 = vst [vmem:[#allocation11_spill] sm:$0xff] %v9680_v8  ;;  %v9684_v38 = vpop.f32.mrb[168].mxu0  ;;  %v9686_v37 = vpop.f32.mrb[168].mxu1  ;;  %v9690_v34 = vadd.f32 %v9588_v22, %v9312_v14  ;;  %v3590_v32 = vmul.f32 0.2, %v2709_v0  ;;  %vm3336_vm13 = vcmp.gt.f32.partialorder %v3062_v13, 0.0  ;;  %v9696_v55 = vadd.f32 %v9608_v31, %v9402_v24 }
 0x379   : > { %v3592_v47 = vmul.f32 0.2, %v3062_v13  ;;  %v9692_v26 = vpop.f32.mrb[169].mxu0  ;;  %v9699_v4 = vsel %vm3330_vm15, %v2705_v9, %v3586_v43  ;;  %v11718_v3 = vpack.c.bf16 %v9221_v23, %v9219_v45  ;;  %v3811_v14 = vsel %vm3299_vm8, %v9512_v49, %v9577_v40  ;;  %v9711_v8 = vpop.f32.mrb[169].mxu1 }
 0x37a   : > { %11717 = vst [vmem:[#allocation10_spill] sm:$0xff] %v9699_v4  ;;  %v3815_v61 = vsel %vm3303_vm0, %v9592_v17, %v3559_v7  ;;  %v9713_v24 = vpop.f32.mrb[170].mxu0  ;;  %v9716_v9 = vsel %vm3332_vm5, %v3058_v57, %v3588_v51  ;;  %v9719_v43 = vsel %vm3334_vm6, %v2709_v0, %v3590_v32  ;;  %v3567_v40 = vmul.f32 0.2, %v9642_v10 }
 0x37b   : > { %4482 = vmatmul.mubr.bf16.gmra.mrb[8].mxu0 %v11718_v3  ;;  %11719 = vst [vmem:[#allocation16_spill] sm:$0xff] %v9719_v43  ;;  %v9721_v23 = vsel %vm3336_vm13, %v3062_v13, %v3592_v47  ;;  %v3991_v45 = vpack.c.bf16 %v3815_v61, %v3811_v14  ;;  %v9723_v3 = vpop.f32.mrb[170].mxu1  ;;  %v9725_v49 = vpop.f32.mrb[171].mxu0  ;;  %v3054_v17 = vadd.f32 %v9608_v31, %v9424_v35  ;;  %v9750_v47 = vmul.f32 0.2, %v9690_v34 }
 0x37c   : > { %v11720_v0 = vpack.c.bf16 %v9444_v19, %v9440_v63  ;;  %v9737_v61 = vpop.f32.mrb[171].mxu1  ;;  %v9741_v13 = vadd.f32 %v9588_v22, %v9341_v1  ;;  %v3829_v35 = vsel %vm3317_vm14, %v9612_v21, %v3573_v52  ;;  %v3833_v51 = vsel %vm3321_vm3, %v3044_v54, %v3577_v29 }
 0x37d   : > { %4489 = vmatprep.mubr.bf16.mxu0 %v3991_v45  ;;  %v2715_v32 = vadd.f32 %v9567_v12, %v9528_v56  ;;  %v9754_v63 = vadd.f32 %v9588_v22, %v9400_v60  ;;  %v4001_v19 = vpack.c.bf16 %v3833_v51, %v3829_v35  ;;  %v3068_v1 = vadd.f32 %v9583_v6, %v9530_v50  ;;  %v11721_v35 = vld [vmem:[#allocation15_spill] sm:$0xff]  ;;  %v11722_v51 = vld [vmem:[#allocation17_spill] sm:$0xff] }
 0x37e   : > { %4787 = vmatmul.mubr.bf16.gmra.mrb[8].mxu1 %v11720_v0  ;;  %vm3325_vm7 = vcmp.gt.f32.partialorder %v9696_v55, 0.0  ;;  %v2719_v21 = vadd.f32 %v9567_v12, %v9554_v30  ;;  %v3072_v56 = vadd.f32 %v9583_v6, %v9556_v62  ;;  %v3581_v54 = vmul.f32 0.2, %v9696_v55 }
 0x37f   : > { %v3594_v14 = vmul.f32 0.2, %v2715_v32  ;;  %vm3329_vm8 = vcmp.gt.f32.partialorder %v3054_v17, 0.0  ;;  %4794 = vmatprep.mubr.bf16.mxu1 %v4001_v19  ;;  %vm3338_vm9 = vcmp.gt.f32.partialorder %v2715_v32, 0.0  ;;  %v3596_v60 = vmul.f32 0.2, %v3068_v1 }
 0x380   : > { %vm3315_vm10 = vcmp.gt.f32.partialorder %v9690_v34, 0.0  ;;  %vm3319_vm11 = vcmp.gt.f32.partialorder %v9741_v13, 0.0  ;;  %v9768_v50 = vadd.f32 %v9588_v22, %v9422_v33  ;;  %v3585_v52 = vmul.f32 0.2, %v3054_v17  ;;  %v9770_v30 = vpop.f32.mrb[172].mxu0  ;;  %v9772_v62 = vpop.f32.mrb[172].mxu1 }
 0x381   : > { %vm3340_vm12 = vcmp.gt.f32.partialorder %v3068_v1, 0.0  ;;  %vm3342_vm0 = vcmp.gt.f32.partialorder %v2719_v21, 0.0  ;;  %v9776_v29 = vadd.f32 %v9588_v22, %v9478_v16  ;;  %v3598_v45 = vmul.f32 0.2, %v2719_v21  ;;  %v9781_v33 = vpop.f32.mrb[173].mxu0 }
 0x382   : > { %vm3344_vm14 = vcmp.gt.f32.partialorder %v3072_v56, 0.0  ;;  %v3600_v0 = vmul.f32 0.2, %v3072_v56  ;;  %v11723_v19 = vpack.c.bf16 %v11721_v35, %v11722_v51  ;;  %v9785_v7 = vadd.f32 %v9608_v31, %v9480_v36  ;;  %v9797_v35 = vpop.f32.mrb[173].mxu1  ;;  %v9799_v51 = vpop.f32.mrb[174].mxu0 }
 0x383   : > { %v9788_v57 = vsel %vm3338_vm9, %v2715_v32, %v3594_v14  ;;  %v3819_v16 = vsel %vm3307_vm2, %v9603_v18, %v9668_v15  ;;  %v3823_v4 = vsel %vm3311_vm4, %v9642_v10, %v3567_v40  ;;  %v9805_v36 = vsel %vm3342_vm0, %v2719_v21, %v3598_v45  ;;  %v9812_v15 = vpop.f32.mrb[174].mxu1  ;;  %v9814_v10 = vpop.f32.mrb[175].mxu0 }
 0x384   : > { %4490 = vmatmul.mubr.bf16.gmra.mrb[12].mxu0 %v11723_v19  ;;  %11724 = vst [vmem:[#allocation23_spill] sm:$0xff] %v9788_v57  ;;  %v9802_v19 = vsel %vm3340_vm12, %v3068_v1, %v3596_v60  ;;  %11725 = vst [vmem:[#allocation22_spill] sm:$0xff] %v9805_v36  ;;  %v9807_v32 = vsel %vm3344_vm14, %v3072_v56, %v3600_v0  ;;  %v11726_v14 = vpack.c.bf16 %v9536_v11, %v9532_v28  ;;  %v9823_v60 = vpop.f32.mrb[175].mxu1  ;;  %v11733_v56 = vld [vmem:[#allocation18_spill] sm:$0xff] }
 0x385   : > { %v3995_v18 = vpack.c.bf16 %v3823_v4, %v3819_v16  ;;  %11727 = vst [vmem:[#allocation4_spill] sm:$0xff] %v9814_v10  ;;  %v3575_v40 = vmul.f32 0.2, %v9741_v13  ;;  %v3064_v1 = vadd.f32 %v9608_v31, %v9497_v27  ;;  %11728 = vst [vmem:[#allocation15_spill] sm:$0xff] %v9823_v60  ;;  %v9826_v28 = vmul.f32 0.2, %v9754_v63 }
 0x386   : > { %4795 = vmatmul.mubr.bf16.gmra.mrb[12].mxu1 %v11726_v14  ;;  %v3837_v11 = vsel %vm3325_vm7, %v9696_v55, %v3581_v54  ;;  %v3841_v4 = vsel %vm3329_vm8, %v3054_v17, %v3585_v52  ;;  %v2725_v27 = vadd.f32 %v9567_v12, %v9605_v59  ;;  %v9835_v45 = vmul.f32 0.2, %v9768_v50  ;;  %v11735_v10 = vld [vmem:[#allocation24_spill] sm:$0xff] }
 0x387   : > { %4497 = vmatprep.mubr.bf16.mxu0 %v3995_v18  ;;  %v9838_v0 = vmul.f32 0.2, %v9776_v29  ;;  %v4005_v16 = vpack.c.bf16 %v3841_v4, %v3837_v11  ;;  %v3078_v14 = vadd.f32 %v9583_v6, %v9623_v39  ;;  %vm3333_vm3 = vcmp.gt.f32.partialorder %v9785_v7, 0.0  ;;  %v11730_v11 = vld [vmem:[#allocation12_spill] sm:$0xff] }
 0x388   : > { %v3602_v18 = vmul.f32 0.2, %v2725_v27  ;;  %v2729_v55 = vadd.f32 %v9567_v12, %v9638_v42  ;;  %v3082_v17 = vadd.f32 %v9583_v6, %v9650_v5  ;;  %v9847_v59 = vpop.f32.mrb[176].mxu0  ;;  %v3589_v54 = vmul.f32 0.2, %v9785_v7  ;;  %v11729_v5 = vld [vmem:[#allocation13_spill] sm:$0xff] }
 0x389   : > { %vm3337_vm15 = vcmp.gt.f32.partialorder %v3064_v1, 0.0  ;;  %4802 = vmatprep.mubr.bf16.mxu1 %v4005_v16  ;;  %vm3346_vm2 = vcmp.gt.f32.partialorder %v2725_v27, 0.0  ;;  %v3604_v52 = vmul.f32 0.2, %v3078_v14  ;;  %vm3323_vm4 = vcmp.gt.f32.partialorder %v9754_v63, 0.0  ;;  %v9859_v21 = vpop.f32.mrb[176].mxu1 }
 0x38a   : > { %vm3327_vm5 = vcmp.gt.f32.partialorder %v9768_v50, 0.0  ;;  %v9854_v39 = vadd.f32 %v9588_v22, %v9495_v25  ;;  %v3593_v42 = vmul.f32 0.2, %v3064_v1  ;;  %vm3348_vm6 = vcmp.gt.f32.partialorder %v3078_v14, 0.0  ;;  %v9861_v16 = vpop.f32.mrb[177].mxu0  ;;  %v9867_v25 = vpop.f32.mrb[177].mxu1 }
 0x38b   : > { %vm3350_vm13 = vcmp.gt.f32.partialorder %v2729_v55, 0.0  ;;  %v11731_v4 = vpack.c.bf16 %v11729_v5, %v11730_v11  ;;  %11732 = vst [vmem:[#allocation17_spill] sm:$0xff] %v9861_v16  ;;  %v9865_v57 = vadd.f32 %v9588_v22, %v11733_v56  ;;  %v3606_v36 = vmul.f32 0.2, %v2729_v55  ;;  %11734 = vst [vmem:[#allocation13_spill] sm:$0xff] %v9867_v25  ;;  %v9886_v25 = vpop.f32.mrb[178].mxu0 }
 0x38c   : > { %vm3352_vm7 = vcmp.gt.f32.partialorder %v3082_v17, 0.0  ;;  %v3608_v60 = vmul.f32 0.2, %v3082_v17  ;;  %v9871_v43 = vadd.f32 %v9608_v31, %v11735_v10  ;;  %v9874_v5 = vsel %vm3346_vm2, %v2725_v27, %v3602_v18  ;;  %v9888_v10 = vpop.f32.mrb[178].mxu1 }
 0x38d   : > { %4498 = vmatmul.mubr.bf16.gmra.mrb[16].mxu0 %v11731_v4  ;;  %11736 = vst [vmem:[#allocation12_spill] sm:$0xff] %v9874_v5  ;;  %v11737_v11 = vpack.c.bf16 %v9631_v48, %v9627_v44  ;;  %v3827_v56 = vsel %vm3315_vm10, %v9690_v34, %v9750_v47  ;;  %v3831_v4 = vsel %vm3319_vm11, %v9741_v13, %v3575_v40  ;;  %v9900_v34 = vpop.f32.mrb[179].mxu1  ;;  %v11740_v47 = vld [vmem:[#allocation21_spill] sm:$0xff]  ;;  %v11741_v40 = vld [vmem:[#allocation14_spill] sm:$0xff]  ;;  %vm3331_vm11 = vcmp.gt.f32.partialorder %v9776_v29, 0.0 }
 0x38e   : > { %v9891_v27 = vsel %vm3348_vm6, %v3078_v14, %v3604_v52  ;;  %v9894_v18 = vsel %vm3350_vm13, %v2729_v55, %v3606_v36  ;;  %v9896_v44 = vsel %vm3352_vm7, %v3082_v17, %v3608_v60  ;;  %v3999_v48 = vpack.c.bf16 %v3831_v4, %v3827_v56  ;;  %11739 = vst [vmem:[#allocation24_spill] sm:$0xff] %v9900_v34 }
 0x38f   : > { %4803 = vmatmul.mubr.bf16.gmra.mrb[16].mxu1 %v11737_v11  ;;  %11738 = vst [vmem:[#allocation18_spill] sm:$0xff] %v9894_v18  ;;  %v9898_v11 = vpop.f32.mrb[179].mxu0  ;;  %v9904_v13 = vadd.f32 %v9588_v22, %v11740_v47  ;;  %v3074_v16 = vadd.f32 %v9608_v31, %v11741_v40  ;;  %v9913_v60 = vmul.f32 0.2, %v9854_v39  ;;  %v3845_v55 = vsel %vm3333_vm3, %v9785_v7, %v3589_v54 }
 0x390   : > { %4505 = vmatprep.mubr.bf16.mxu0 %v3999_v48  ;;  %v3849_v17 = vsel %vm3337_vm15, %v3064_v1, %v3593_v42  ;;  %v2735_v52 = vadd.f32 %v9567_v12, %v9684_v38  ;;  %v9922_v56 = vmul.f32 0.2, %v9865_v57  ;;  %vm3341_vm8 = vcmp.gt.f32.partialorder %v9871_v43, 0.0  ;;  %v9927_v40 = vpop.f32.mrb[180].mxu0  ;;  %v9934_v1 = vpop.f32.mrb[180].mxu1 }
 0x391   : > { %v4009_v4 = vpack.c.bf16 %v3849_v17, %v3845_v55  ;;  %v3088_v47 = vadd.f32 %v9583_v6, %v9686_v37  ;;  %v3597_v48 = vmul.f32 0.2, %v9871_v43  ;;  %v2739_v7 = vadd.f32 %v9567_v12, %v9713_v24  ;;  %v9936_v54 = vpop.f32.mrb[181].mxu0  ;;  %v11743_v55 = vld [vmem:[#allocation19_spill] sm:$0xff]  ;;  %v11744_v17 = vld [vmem:[#allocation20_spill] sm:$0xff]  ;;  %v9950_v5 = vpop.f32.mrb[181].mxu1 }
 0x392   : > { %v3610_v14 = vmul.f32 0.2, %v2735_v52  ;;  %v3092_v38 = vadd.f32 %v9583_v6, %v9723_v3  ;;  %11742 = vst [vmem:[#allocation21_spill] sm:$0xff] %v9936_v54  ;;  %v9939_v42 = vmul.f32 0.2, %v9904_v13  ;;  %vm3345_vm9 = vcmp.gt.f32.partialorder %v3074_v16, 0.0 }
 0x393   : > { %4810 = vmatprep.mubr.bf16.mxu1 %v4009_v4  ;;  %vm3354_vm10 = vcmp.gt.f32.partialorder %v2735_v52, 0.0  ;;  %v3612_v37 = vmul.f32 0.2, %v3088_v47  ;;  %v11745_v36 = vpack.c.bf16 %v11743_v55, %v11744_v17  ;;  %vm3335_vm12 = vcmp.gt.f32.partialorder %v9854_v39, 0.0  ;;  %11746 = vst [vmem:[#allocation14_spill] sm:$0xff] %v9950_v5  ;;  %v9952_v4 = vpop.f32.mrb[182].mxu0 }
 0x394   : > { %v3601_v24 = vmul.f32 0.2, %v3074_v16  ;;  %v9948_v3 = vadd.f32 %v9588_v22, %v9625_v46  ;;  %vm3356_vm0 = vcmp.gt.f32.partialorder %v3088_v47, 0.0  ;;  %vm3358_vm14 = vcmp.gt.f32.partialorder %v2739_v7, 0.0  ;;  %v9961_v54 = vpop.f32.mrb[182].mxu1 }
 0x395   : > { %4506 = vmatmul.mubr.bf16.gmra.mrb[20].mxu0 %v11745_v36  ;;  %v9956_v18 = vadd.f32 %v9608_v31, %v9636_v41  ;;  %v3614_v36 = vmul.f32 0.2, %v2739_v7  ;;  %vm3360_vm3 = vcmp.gt.f32.partialorder %v3092_v38, 0.0  ;;  %v3616_v55 = vmul.f32 0.2, %v3092_v38 }
 0x396   : > { %v11747_v17 = vpack.c.bf16 %v9721_v23, %v9716_v9  ;;  %v9965_v46 = vadd.f32 %v9588_v22, %v9652_v58  ;;  %v9968_v5 = vsel %vm3354_vm10, %v2735_v52, %v3610_v14  ;;  %v3835_v41 = vsel %vm3323_vm4, %v9754_v63, %v9826_v28  ;;  %v9978_v23 = vpop.f32.mrb[183].mxu0 }
 0x397   : > { %11748 = vst [vmem:[#allocation19_spill] sm:$0xff] %v9968_v5  ;;  %v3839_v9 = vsel %vm3327_vm5, %v9768_v50, %v9835_v45  ;;  %v9983_v58 = vsel %vm3356_vm0, %v3088_v47, %v3612_v37  ;;  %v9986_v14 = vsel %vm3358_vm14, %v2739_v7, %v3614_v36  ;;  %v9988_v52 = vsel %vm3360_vm3, %v3092_v38, %v3616_v55 }
 0x398   : > { %4811 = vmatmul.mubr.bf16.gmra.mrb[20].mxu1 %v11747_v17  ;;  %v9980_v17 = vpop.f32.mrb[183].mxu1  ;;  %11749 = vst [vmem:[#allocation20_spill] sm:$0xff] %v9986_v14  ;;  %v4003_v34 = vpack.c.bf16 %v3839_v9, %v3835_v41  ;;  %v9991_v63 = vmul.f32 0.2, %v9948_v3  ;;  %v3084_v28 = vadd.f32 %v9608_v31, %v9664_v53  ;;  %v10001_v47 = vadd.f32 %v9588_v22, %v9692_v26  ;;  %v10009_v37 = vpop.f32.mrb[184].mxu0 }
 0x399   : > { %v3853_v7 = vsel %vm3341_vm8, %v9871_v43, %v3597_v48  ;;  %v3857_v38 = vsel %vm3345_vm9, %v3074_v16, %v3601_v24  ;;  %v2745_v53 = vadd.f32 %v9567_v12, %v9770_v30  ;;  %vm3349_vm15 = vcmp.gt.f32.partialorder %v9956_v18, 0.0  ;;  %v10017_v41 = vpop.f32.mrb[185].mxu0 }
 0x39a   : > { %4513 = vmatprep.mubr.bf16.mxu0 %v4003_v34  ;;  %v3605_v36 = vmul.f32 0.2, %v9956_v18  ;;  %v4013_v55 = vpack.c.bf16 %v3857_v38, %v3853_v7  ;;  %v3098_v26 = vadd.f32 %v9583_v6, %v9772_v62  ;;  %v10015_v34 = vpop.f32.mrb[184].mxu1  ;;  %v10020_v43 = vmul.f32 0.2, %v9965_v46  ;;  %v10031_v62 = vpop.f32.mrb[186].mxu0 }
 0x39b   : > { %v3618_v16 = vmul.f32 0.2, %v2745_v53  ;;  %v2749_v30 = vadd.f32 %v9567_v12, %v9799_v51  ;;  %v3102_v48 = vadd.f32 %v9583_v6, %v9812_v15  ;;  %v11750_v24 = vpack.c.bf16 %v9629_v2, %v9614_v20  ;;  %v10029_v9 = vpop.f32.mrb[185].mxu1 }
 0x39c   : > { %vm3353_vm2 = vcmp.gt.f32.partialorder %v3084_v28, 0.0  ;;  %v3609_v7 = vmul.f32 0.2, %v3084_v28  ;;  %4818 = vmatprep.mubr.bf16.mxu1 %v4013_v55  ;;  %vm3362_vm4 = vcmp.gt.f32.partialorder %v2745_v53, 0.0  ;;  %v3620_v38 = vmul.f32 0.2, %v3098_v26 }
 0x39d   : > { %4514 = vmatmul.mubr.bf16.gmra.mrb[24].mxu0 %v11750_v24  ;;  %vm3339_vm5 = vcmp.gt.f32.partialorder %v9865_v57, 0.0  ;;  %vm3343_vm6 = vcmp.gt.f32.partialorder %v9904_v13, 0.0  ;;  %v10036_v51 = vmul.f32 0.2, %v10001_v47  ;;  %v10040_v2 = vadd.f32 %v9608_v31, %v9711_v8  ;;  %v10045_v15 = vpop.f32.mrb[186].mxu1  ;;  %v10047_v55 = vpop.f32.mrb[187].mxu0 }
 0x39e   : > { %vm3364_vm13 = vcmp.gt.f32.partialorder %v3098_v26, 0.0  ;;  %vm3366_vm7 = vcmp.gt.f32.partialorder %v2749_v30, 0.0  ;;  %v11751_v20 = vpack.c.bf16 %v9807_v32, %v9802_v19  ;;  %v10051_v24 = vadd.f32 %v9588_v22, %v9725_v49  ;;  %v10053_v5 = vpop.f32.mrb[187].mxu1 }
 0x39f   : > { %v3622_v50 = vmul.f32 0.2, %v2749_v30  ;;  %vm3368_vm8 = vcmp.gt.f32.partialorder %v3102_v48, 0.0  ;;  %v3624_v45 = vmul.f32 0.2, %v3102_v48  ;;  %11752 = vst [vmem:[#allocation25_spill] sm:$0xff] %v10053_v5  ;;  %v10057_v8 = vadd.f32 %v9608_v31, %v9737_v61 }
 0x3a0   : > { %4819 = vmatmul.mubr.bf16.gmra.mrb[24].mxu1 %v11751_v20  ;;  %v10060_v19 = vsel %vm3362_vm4, %v2745_v53, %v3618_v16  ;;  %v3843_v32 = vsel %vm3331_vm11, %v9776_v29, %v9838_v0  ;;  %v3847_v49 = vsel %vm3335_vm12, %v9854_v39, %v9913_v60  ;;  %v10070_v20 = vsel %vm3364_vm13, %v3098_v26, %v3620_v38  ;;  %v10085_v39 = vpop.f32.mrb[188].mxu0  ;;  %v10097_v26 = vpop.f32.mrb[188].mxu1  ;;  %v11764_v0 = vld [vmem:[#allocation15_spill] sm:$0xff] }
 0x3a1   : > { %11753 = vst [vmem:[#allocation26_spill] sm:$0xff] %v10060_v19  ;;  %v10072_v14 = vsel %vm3366_vm7, %v2749_v30, %v3622_v50  ;;  %v10074_v5 = vsel %vm3368_vm8, %v3102_v48, %v3624_v45  ;;  %v4007_v61 = vpack.c.bf16 %v3847_v49, %v3843_v32  ;;  %vm3357_vm9 = vcmp.gt.f32.partialorder %v10040_v2, 0.0  ;;  %v10099_v16 = vpop.f32.mrb[189].mxu0  ;;  %v11756_v32 = vld [vmem:[#allocation16_spill] sm:$0xff] }
 0x3a2   : > { %11754 = vst [vmem:[#allocation27_spill] sm:$0xff] %v10072_v14  ;;  %v10079_v53 = vadd.f32 %v9588_v22, %v9781_v33  ;;  %v10089_v60 = vadd.f32 %v9608_v31, %v9797_v35  ;;  %v3861_v50 = vsel %vm3349_vm15, %v9956_v18, %v3605_v36  ;;  %v3865_v33 = vsel %vm3353_vm2, %v3084_v28, %v3609_v7  ;;  %v11757_v18 = vld [vmem:[#allocation10_spill] sm:$0xff]  ;;  %v10110_v28 = vpop.f32.mrb[189].mxu1 }
 0x3a3   : > { %4521 = vmatprep.mubr.bf16.mxu0 %v4007_v61  ;;  %v2755_v45 = vadd.f32 %v9567_v12, %v9847_v59  ;;  %11755 = vst [vmem:[#allocation28_spill] sm:$0xff] %v10099_v16  ;;  %v3613_v30 = vmul.f32 0.2, %v10040_v2  ;;  %v10103_v48 = vmul.f32 0.2, %v10051_v24  ;;  %v4017_v35 = vpack.c.bf16 %v3865_v33, %v3861_v50  ;;  %v10112_v59 = vpop.f32.mrb[190].mxu0 }
 0x3a4   : > { %v3108_v38 = vadd.f32 %v9583_v6, %v9859_v21  ;;  %v11758_v36 = vpack.c.bf16 %v11756_v32, %v11757_v18  ;;  %v3617_v7 = vmul.f32 0.2, %v10057_v8  ;;  %v2759_v61 = vadd.f32 %v9567_v12, %v9886_v25  ;;  %v10119_v33 = vpop.f32.mrb[190].mxu1  ;;  %v10121_v21 = vpop.f32.mrb[191].mxu0  ;;  %v11766_v16 = vld [vmem:[#allocation17_spill] sm:$0xff] }
 0x3a5   : > { %v3626_v49 = vmul.f32 0.2, %v2755_v45  ;;  %v3112_v50 = vadd.f32 %v9583_v6, %v9888_v10  ;;  %11759 = vst [vmem:[#allocation16_spill] sm:$0xff] %v10121_v21  ;;  %vm3361_vm10 = vcmp.gt.f32.partialorder %v10057_v8, 0.0  ;;  %v10125_v32 = vmul.f32 0.2, %v10079_v53  ;;  %4826 = vmatprep.mubr.bf16.mxu1 %v4017_v35 }
 0x3a6   : > { %4522 = vmatmul.mubr.bf16.gmra.mrb[28].mxu0 %v11758_v36  ;;  %vm3370_vm11 = vcmp.gt.f32.partialorder %v2755_v45, 0.0  ;;  %v3628_v18 = vmul.f32 0.2, %v3108_v38  ;;  %vm3347_vm12 = vcmp.gt.f32.partialorder %v9948_v3, 0.0  ;;  %vm3351_vm0 = vcmp.gt.f32.partialorder %v9965_v46, 0.0  ;;  %v11761_v10 = vld [vmem:[#allocation4_spill] sm:$0xff] }
 0x3a7   : > { %11760 = vst [vmem:[#allocation10_spill] sm:$0xff] %v10125_v32  ;;  %v10130_v25 = vmul.f32 0.2, %v10089_v60  ;;  %v10134_v36 = vadd.f32 %v9588_v22, %v11761_v10  ;;  %vm3372_vm14 = vcmp.gt.f32.partialorder %v3108_v38, 0.0  ;;  %vm3374_vm3 = vcmp.gt.f32.partialorder %v2759_v61, 0.0  ;;  %v10139_v35 = vpop.f32.mrb[191].mxu1 }
 0x3a8   : > { %v11762_v29 = vpack.c.bf16 %v9896_v44, %v9891_v27  ;;  %11763 = vst [vmem:[#allocation4_spill] sm:$0xff] %v10139_v35  ;;  %v10143_v19 = vadd.f32 %v9608_v31, %v11764_v0  ;;  %v3630_v14 = vmul.f32 0.2, %v2759_v61  ;;  %vm3376_vm15 = vcmp.gt.f32.partialorder %v3112_v50, 0.0  ;;  %v11767_v35 = vld [vmem:[#allocation13_spill] sm:$0xff] }
 0x3a9   : > { %v3632_v21 = vmul.f32 0.2, %v3112_v50  ;;  %v10145_v32 = vsel %vm3370_vm11, %v2755_v45, %v3626_v49  ;;  %v10149_v10 = vadd.f32 %v9588_v22, %v11766_v16  ;;  %v3851_v27 = vsel %vm3339_vm5, %v9865_v57, %v9922_v56 }
 0x3aa   : > { %4827 = vmatmul.mubr.bf16.gmra.mrb[28].mxu1 %v11762_v29  ;;  %11765 = vst [vmem:[#allocation15_spill] sm:$0xff] %v10145_v32  ;;  %v3855_v44 = vsel %vm3343_vm6, %v9904_v13, %v9939_v42  ;;  %vm3365_vm2 = vcmp.gt.f32.partialorder %v10089_v60, 0.0  ;;  %v10160_v29 = vsel %vm3372_vm14, %v3108_v38, %v3628_v18  ;;  %v10162_v0 = vsel %vm3374_vm3, %v2759_v61, %v3630_v14  ;;  %v10177_v42 = vpop.f32.mrb[192].mxu1 }
 0x3ab   : > { %v10164_v45 = vsel %vm3376_vm15, %v3112_v50, %v3632_v21  ;;  %v4011_v16 = vpack.c.bf16 %v3855_v44, %v3851_v27  ;;  %v10167_v49 = vmul.f32 0.2, %v10134_v36  ;;  %v10171_v57 = vadd.f32 %v9608_v31, %v11767_v35  ;;  %v4646_v21 = vpop.f32.mrb[193].mxu1  ;;  %v11768_v27 = vld [vmem:[#allocation22_spill] sm:$0xff]  ;;  %v11769_v44 = vld [vmem:[#allocation23_spill] sm:$0xff] }
 0x3ac   : > { %v10181_v14 = vadd.f32 %v9588_v22, %v9898_v11  ;;  %v3869_v38 = vsel %vm3357_vm9, %v10040_v2, %v3613_v30  ;;  %v3873_v61 = vsel %vm3361_vm10, %v10057_v8, %v3617_v7  ;;  %v2765_v50 = vadd.f32 %v9567_v12, %v9927_v40  ;;  %v10198_v2 = vpop.f32.mrb[194].mxu1 }
 0x3ad   : > { %4529 = vmatprep.mubr.bf16.mxu0 %v4011_v16  ;;  %vm3369_vm4 = vcmp.gt.f32.partialorder %v10143_v19, 0.0  ;;  %v3625_v18 = vmul.f32 0.2, %v10143_v19  ;;  %v4021_v35 = vpack.c.bf16 %v3873_v61, %v3869_v38  ;;  %v3118_v11 = vadd.f32 %v9583_v6, %v9934_v1  ;;  %v4649_v38 = vpop.f32.mrb[195].mxu1 }
 0x3ae   : > { %v11770_v16 = vpack.c.bf16 %v11768_v27, %v11769_v44  ;;  %v10201_v8 = vmul.f32 0.2, %v10149_v10  ;;  %v3634_v30 = vmul.f32 0.2, %v2765_v50  ;;  %v2769_v40 = vadd.f32 %v9567_v12, %v9952_v4  ;;  %v11771_v27 = vld [vmem:[#allocation24_spill] sm:$0xff] }
 0x3af   : > { %v3122_v7 = vadd.f32 %v9583_v6, %v9961_v54  ;;  %v10208_v61 = vmul.f32 0.2, %v10171_v57  ;;  %4834 = vmatprep.mubr.bf16.mxu1 %v4021_v35  ;;  %vm3378_vm5 = vcmp.gt.f32.partialorder %v2765_v50, 0.0  ;;  %vm3380_vm6 = vcmp.gt.f32.partialorder %v3118_v11, 0.0  ;;  %v11772_v54 = vld [vmem:[#allocation21_spill] sm:$0xff] }
 0x3b0   : > { %4530 = vmatmul.mubr.bf16.gmra.mrb[32].mxu0 %v11770_v16  ;;  %v3636_v1 = vmul.f32 0.2, %v3118_v11  ;;  %vm3355_vm13 = vcmp.gt.f32.partialorder %v10001_v47, 0.0  ;;  %vm3359_vm7 = vcmp.gt.f32.partialorder %v10051_v24, 0.0  ;;  %v10213_v21 = vmul.f32 0.2, %v10181_v14 }
 0x3b1   : > { %v10217_v4 = vadd.f32 %v9608_v31, %v11771_v27  ;;  %v10221_v44 = vadd.f32 %v9588_v22, %v11772_v54  ;;  %vm3382_vm8 = vcmp.gt.f32.partialorder %v2769_v40, 0.0  ;;  %v11773_v35 = vpack.c.bf16 %v9988_v52, %v9983_v58  ;;  %v11774_v16 = vld [vmem:[#allocation14_spill] sm:$0xff] }
 0x3b2   : > { %v10228_v38 = vadd.f32 %v9608_v31, %v11774_v16  ;;  %v3638_v56 = vmul.f32 0.2, %v2769_v40  ;;  %vm3384_vm9 = vcmp.gt.f32.partialorder %v3122_v7, 0.0  ;;  %v3640_v13 = vmul.f32 0.2, %v3122_v7 }
 0x3b3   : > { %4835 = vmatmul.mubr.bf16.gmra.mrb[32].mxu1 %v11773_v35  ;;  %v10230_v32 = vsel %vm3378_vm5, %v2765_v50, %v3634_v30  ;;  %v10232_v27 = vsel %vm3380_vm6, %v3118_v11, %v3636_v1  ;;  %v3859_v54 = vsel %vm3347_vm12, %v9948_v3, %v9991_v63  ;;  %v3863_v58 = vsel %vm3351_vm0, %v9965_v46, %v10020_v43  ;;  %v10251_v30 = vpop.f32.mrb[196].mxu1 }
 0x3b4   : > { %11775 = vst [vmem:[#allocation17_spill] sm:$0xff] %v10230_v32  ;;  %vm3373_vm10 = vcmp.gt.f32.partialorder %v10171_v57, 0.0  ;;  %v10243_v52 = vsel %vm3382_vm8, %v2769_v40, %v3638_v56  ;;  %v10245_v35 = vsel %vm3384_vm9, %v3122_v7, %v3640_v13  ;;  %v10249_v50 = vadd.f32 %v9588_v22, %v9978_v23  ;;  %v4654_v56 = vpop.f32.mrb[197].mxu1 }
 0x3b5   : > { %v4015_v11 = vpack.c.bf16 %v3863_v58, %v3859_v54  ;;  %v10254_v3 = vmul.f32 0.2, %v10217_v4  ;;  %v10262_v43 = vadd.f32 %v9608_v31, %v9980_v17  ;;  %v10265_v23 = vmul.f32 0.2, %v10221_v44  ;;  %v10276_v1 = vpop.f32.mrb[198].mxu1 }
 0x3b6   : > { %v3877_v13 = vsel %vm3365_vm2, %v10089_v60, %v10130_v25  ;;  %v3881_v40 = vsel %vm3369_vm4, %v10143_v19, %v3625_v18  ;;  %v2775_v7 = vadd.f32 %v9567_v12, %v10009_v37  ;;  %v10279_v17 = vmul.f32 0.2, %v10228_v38  ;;  %v11776_v60 = vld [vmem:[#allocation18_spill] sm:$0xff]  ;;  %v11777_v25 = vld [vmem:[#allocation12_spill] sm:$0xff]  ;;  %v4657_v19 = vpop.f32.mrb[199].mxu1 }
 0x3b7   : > { %4537 = vmatprep.mubr.bf16.mxu0 %v4015_v11  ;;  %v4025_v16 = vpack.c.bf16 %v3881_v40, %v3877_v13  ;;  %v3128_v54 = vadd.f32 %v9583_v6, %v10015_v34  ;;  %v10285_v58 = vadd.f32 %v9588_v22, %v10017_v41  ;;  %v11778_v11 = vpack.c.bf16 %v11776_v60, %v11777_v25 }
 0x3b8   : > { %v10291_v37 = vmul.f32 0.2, %v10249_v50  ;;  %v3642_v18 = vmul.f32 0.2, %v2775_v7  ;;  %v2779_v56 = vadd.f32 %v9567_v12, %v10031_v62  ;;  %v3132_v13 = vadd.f32 %v9583_v6, %v10045_v15  ;;  %v10317_v19 = vpop.f32.mrb[200].mxu0 }
 0x3b9   : > { %4538 = vmatmul.mubr.bf16.gmra.mrb[36].mxu0 %v11778_v11  ;;  %vm3377_vm11 = vcmp.gt.f32.partialorder %v10217_v4, 0.0  ;;  %v10299_v34 = vmul.f32 0.2, %v10262_v43  ;;  %4842 = vmatprep.mubr.bf16.mxu1 %v4025_v16  ;;  %vm3386_vm12 = vcmp.gt.f32.partialorder %v2775_v7, 0.0  ;;  %v3644_v41 = vmul.f32 0.2, %v3128_v54 }
 0x3ba   : > { %vm3363_vm0 = vcmp.gt.f32.partialorder %v10079_v53, 0.0  ;;  %vm3367_vm14 = vcmp.gt.f32.partialorder %v10134_v36, 0.0  ;;  %vm3388_vm3 = vcmp.gt.f32.partialorder %v3128_v54, 0.0  ;;  %v10304_v40 = vmul.f32 0.2, %v10285_v58  ;;  %v11780_v16 = vld [vmem:[#allocation7_spill] sm:$0xff] }
 0x3bb   : > { %v10308_v62 = vadd.f32 %v9608_v31, %v10029_v9  ;;  %vm3390_vm15 = vcmp.gt.f32.partialorder %v2779_v56, 0.0  ;;  %v11779_v15 = vpack.c.bf16 %v10074_v5, %v10070_v20  ;;  %v10315_v60 = vadd.f32 %v9608_v31, %v11780_v16  ;;  %v4357_v16 = vpop.f32.mrb[201].mxu0 }
 0x3bc   : > { %v3646_v25 = vmul.f32 0.2, %v2779_v56  ;;  %vm3392_vm2 = vcmp.gt.f32.partialorder %v3132_v13, 0.0  ;;  %v3648_v11 = vmul.f32 0.2, %v3132_v13  ;;  %vm3381_vm4 = vcmp.gt.f32.partialorder %v10228_v38, 0.0 }
 0x3bd   : > { %4843 = vmatmul.mubr.bf16.gmra.mrb[36].mxu1 %v11779_v15  ;;  %v10320_v63 = vsel %vm3386_vm12, %v2775_v7, %v3642_v18  ;;  %v10324_v9 = vadd.f32 %v9588_v22, %v10047_v55  ;;  %v3867_v5 = vsel %vm3355_vm13, %v10001_v47, %v10036_v51  ;;  %v3871_v20 = vsel %vm3359_vm7, %v10051_v24, %v10103_v48  ;;  %v10334_v15 = vpop.f32.mrb[200].mxu1  ;;  %v10346_v46 = vpop.f32.mrb[202].mxu0 }
 0x3be   : > { %11781 = vst [vmem:[#allocation13_spill] sm:$0xff] %v10320_v63  ;;  %vm3371_vm5 = vcmp.gt.f32.partialorder %v10149_v10, 0.0  ;;  %vm3385_vm6 = vcmp.gt.f32.partialorder %v10262_v43, 0.0  ;;  %v10339_v55 = vsel %vm3388_vm3, %v3128_v54, %v3644_v41  ;;  %v10342_v7 = vsel %vm3390_vm15, %v2779_v56, %v3646_v25  ;;  %v4662_v51 = vpop.f32.mrb[201].mxu1  ;;  %v11783_v54 = vld [vmem:[#allocation25_spill] sm:$0xff]  ;;  %v4360_v41 = vpop.f32.mrb[203].mxu0 }
 0x3bf   : > { %11782 = vst [vmem:[#allocation22_spill] sm:$0xff] %v10342_v7  ;;  %v10344_v18 = vsel %vm3392_vm2, %v3132_v13, %v3648_v11  ;;  %v4019_v47 = vpack.c.bf16 %v3871_v20, %v3867_v5  ;;  %vm3375_vm13 = vcmp.gt.f32.partialorder %v10181_v14, 0.0  ;;  %vm3389_vm7 = vcmp.gt.f32.partialorder %v10308_v62, 0.0  ;;  %v10358_v13 = vpop.f32.mrb[202].mxu1 }
 0x3c0   : > { %v10356_v56 = vadd.f32 %v9608_v31, %v11783_v54  ;;  %vm3379_vm8 = vcmp.gt.f32.partialorder %v10221_v44, 0.0  ;;  %vm3383_vm9 = vcmp.gt.f32.partialorder %v10249_v50, 0.0  ;;  %v3645_v25 = vmul.f32 0.2, %v10308_v62  ;;  %v4665_v16 = vpop.f32.mrb[203].mxu1 }
 0x3c1   : > { %4545 = vmatprep.mubr.bf16.mxu0 %v4019_v47  ;;  %v3885_v11 = vsel %vm3373_vm10, %v10171_v57, %v10208_v61  ;;  %v3889_v5 = vsel %vm3377_vm11, %v10217_v4, %v10254_v3  ;;  %v2785_v20 = vadd.f32 %v9567_v12, %v10085_v39  ;;  %v10374_v51 = vmul.f32 0.2, %v10324_v9  ;;  %v11784_v57 = vld [vmem:[#allocation20_spill] sm:$0xff]  ;;  %v11785_v61 = vld [vmem:[#allocation19_spill] sm:$0xff]  ;;  %v10403_v16 = vpop.f32.mrb[204].mxu1 }
 0x3c2   : > { %v4029_v54 = vpack.c.bf16 %v3889_v5, %v3885_v11  ;;  %v3138_v47 = vadd.f32 %v9583_v6, %v10097_v26  ;;  %v3140_v41 = vadd.f32 %v9608_v31, %v10110_v28  ;;  %v11786_v24 = vpack.c.bf16 %v11784_v57, %v11785_v61  ;;  %v11789_v57 = vld [vmem:[#allocation4_spill] sm:$0xff] }
 0x3c3   : > { %vm3394_vm10 = vcmp.gt.f32.partialorder %v2785_v20, 0.0  ;;  %v3650_v4 = vmul.f32 0.2, %v2785_v20  ;;  %v2789_v39 = vadd.f32 %v9567_v12, %v10112_v59  ;;  %v3142_v3 = vadd.f32 %v9583_v6, %v10119_v33  ;;  %v10398_v6 = vpop.f32.mrb[204].mxu0 }
 0x3c4   : > { %4546 = vmatmul.mubr.bf16.gmra.mrb[40].mxu0 %v11786_v24  ;;  %vm3387_vm11 = vcmp.gt.f32.partialorder %v10285_v58, 0.0  ;;  %vm3393_vm3 = vcmp.gt.f32.partialorder %v10356_v56, 0.0  ;;  %v3649_v26 = vmul.f32 0.2, %v10356_v56  ;;  %4850 = vmatprep.mubr.bf16.mxu1 %v4029_v54  ;;  %v3652_v28 = vmul.f32 0.2, %v3138_v47 }
 0x3c5   : > { %vm3396_vm15 = vcmp.gt.f32.partialorder %v3138_v47, 0.0  ;;  %v11787_v24 = vld [vmem:[#allocation28_spill] sm:$0xff]  ;;  %vm3397_vm2 = vcmp.gt.f32.partialorder %v3140_v41, 0.0  ;;  %vm3398_vm1 = vcmp.gt.f32.partialorder %v2789_v39, 0.0  ;;  %v11788_v12 = vpack.c.bf16 %v10164_v45, %v10160_v29 }
 0x3c6   : > { %v10393_v11 = vadd.f32 %v9588_v22, %v11787_v24  ;;  %v10401_v59 = vsel %vm3394_vm10, %v2785_v20, %v3650_v4  ;;  %v3654_v33 = vmul.f32 0.2, %v2789_v39  ;;  %vm3400_vm12 = vcmp.gt.f32.partialorder %v3142_v3, 0.0  ;;  %v11790_v24 = vld [vmem:[#allocation10_spill] sm:$0xff]  ;;  %v4365_v20 = vpop.f32.mrb[205].mxu0  ;;  %v4670_v4 = vpop.f32.mrb[205].mxu1 }
 0x3c7   : > { %4851 = vmatmul.mubr.bf16.gmra.mrb[40].mxu1 %v11788_v12  ;;  %v3656_v5 = vmul.f32 0.2, %v3142_v3  ;;  %v3653_v54 = vmul.f32 0.2, %v3140_v41  ;;  %v3144_v61 = vadd.f32 %v9608_v31, %v11789_v57  ;;  %v3875_v29 = vsel %vm3363_vm0, %v10079_v53, %v11790_v24  ;;  %v4366_v7 = vpop.f32.mrb[206].mxu0  ;;  %v10422_v32 = vpop.f32.mrb[206].mxu1 }
 0x3c8   : > { %v3879_v45 = vsel %vm3367_vm14, %v10134_v36, %v10167_v49  ;;  %v10416_v12 = vsel %vm3396_vm15, %v3138_v47, %v3652_v28  ;;  %v10418_v48 = vsel %vm3398_vm1, %v2789_v39, %v3654_v33  ;;  %v11791_v36 = vld [vmem:[#allocation16_spill] sm:$0xff]  ;;  %v3893_v47 = vsel %vm3381_vm4, %v10228_v38, %v10279_v17  ;;  %v4368_v39 = vpop.f32.mrb[207].mxu0  ;;  %v11792_v17 = vld [vmem:[#allocation27_spill] sm:$0xff] }
 0x3c9   : > { %v10420_v63 = vsel %vm3400_vm12, %v3142_v3, %v3656_v5  ;;  %v4023_v57 = vpack.c.bf16 %v3879_v45, %v3875_v29  ;;  %v4038_v53 = vpack.c.bf16 %v10418_v48, %v10401_v59  ;;  %v2791_v49 = vadd.f32 %v9588_v22, %v11791_v36  ;;  %v4673_v3 = vpop.f32.mrb[207].mxu1  ;;  %v10445_v5 = vld [vmem:[%s11612_s7] ss:$0 sm:$0xff] }
 0x3ca   : > { %v4040_v24 = vpack.c.bf16 %v10420_v63, %v10416_v12  ;;  %vm3401_vm1 = vcmp.gt.f32.partialorder %v3144_v61, 0.0  ;;  %v3657_v28 = vmul.f32 0.2, %v3144_v61  ;;  %v3897_v33 = vsel %vm3385_vm6, %v10262_v43, %v10299_v34  ;;  %v11793_v29 = vld [vmem:[#allocation26_spill] sm:$0xff] }
 0x3cb   : > { %4553 = vmatprep.mubr.bf16.mxu0 %v4023_v57  ;;  %v3883_v22 = vsel %vm3371_vm5, %v10149_v10, %v10201_v8  ;;  %v4033_v38 = vpack.c.bf16 %v3897_v33, %v3893_v47  ;;  %v11794_v45 = vpack.c.bf16 %v11792_v17, %v11793_v29  ;;  %v3887_v43 = vsel %vm3375_vm13, %v10181_v14, %v10213_v21  ;;  %v11795_v57 = vld [vmem:[#allocation5_spill] sm:$0xff]  ;;  %v7178_v3 = vld [vmem:[%s7677_s13 + $0x3] ss:$0 sm:$0xff]  ;;  %v11799_v29 = vld [vmem:[#allocation15_spill] sm:$0xff] }
 0x3cc   : > { %v3901_v34 = vsel %vm3389_vm7, %v10308_v62, %v3645_v25  ;;  %v3905_v10 = vsel %vm3393_vm3, %v10356_v56, %v3649_v26  ;;  %v4027_v8 = vpack.c.bf16 %v3887_v43, %v3883_v22  ;;  %v3891_v4 = vsel %vm3379_vm8, %v10221_v44, %v10265_v23  ;;  %v4371_v26 = vpop.f32.mrb[208].mxu0 }
 0x3cd   : > { %4554 = vmatmul.mubr.bf16.gmra.mrb[44].mxu0 %v11794_v45  ;;  %v4037_v20 = vpack.c.bf16 %v3905_v10, %v3901_v34  ;;  %v3895_v14 = vsel %vm3383_vm9, %v10249_v50, %v10291_v37  ;;  %4858 = vmatprep.mubr.bf16.mxu1 %v4033_v38  ;;  %v3909_v62 = vsel %vm3397_vm2, %v3140_v41, %v3653_v54  ;;  %v3417_v44 = vmul.f32 0.2, %v10315_v60  ;;  %v10480_v41 = vpop.f32.mrb[208].mxu1  ;;  %v4373_v54 = vpop.f32.mrb[209].mxu0  ;;  %v11801_v10 = vld [vmem:[#allocation11_spill] sm:$0xff] }
 0x3ce   : > { %v4031_v21 = vpack.c.bf16 %v3895_v14, %v3891_v4  ;;  %v3913_v25 = vsel %vm3401_vm1, %v3144_v61, %v3657_v28  ;;  %v4356_v56 = vadd.f32 %v10445_v5, %v10317_v19  ;;  %v2840_v36 = vadd.f32 %v9608_v31, %v11795_v57  ;;  %4561 = vmatprep.mubr.bf16.mxu0 %v4027_v8  ;;  %v11798_v28 = vld [vmem:[#allocation6_spill] sm:$0xff] }
 0x3cf   : > { %v11796_v23 = vpack.c.bf16 %v10245_v35, %v10232_v27  ;;  %v4041_v50 = vpack.c.bf16 %v3913_v25, %v3909_v62  ;;  %v4359_v37 = vadd.f32 %v10445_v5, %v10346_v46  ;;  %v3655_v19 = vmul.f32 0.2, %v2791_v49  ;;  %v4678_v35 = vpop.f32.mrb[209].mxu1  ;;  %v4374_v46 = vpop.f32.mrb[210].mxu0 }
 0x3d0   : > { %v10483_v61 = vadd.f32 %v10177_v42, %v4356_v56  ;;  %v10489_v31 = vsel %vm3387_vm11, %v10285_v58, %v10304_v40  ;;  %vm11797_vm0 = vcmp.gt.f32.partialorder %v10324_v9, 0.0  ;;  %vm3399_vm14 = vcmp.gt.f32.partialorder %v2791_v49, 0.0  ;;  %v10504_v58 = vpop.f32.mrb[210].mxu1  ;;  %v4376_v40 = vpop.f32.mrb[211].mxu0 }
 0x3d1   : > { %4859 = vmatmul.mubr.bf16.gmra.mrb[44].mxu1 %v11796_v23  ;;  %v10495_v27 = vsel %vm11797_vm0, %v10324_v9, %v10374_v51  ;;  %v10498_v47 = vadd.f32 %v10198_v2, %v4359_v37  ;;  %v4364_v39 = vadd.f32 %v10445_v5, %v10398_v6  ;;  %v2842_v33 = vadd.f32 %v7178_v3, %v11798_v28  ;;  %v4681_v2 = vpop.f32.mrb[211].mxu1 }
 0x3d2   : > { %4866 = vmatprep.mubr.bf16.mxu1 %v4037_v20  ;;  %v4035_v42 = vpack.c.bf16 %v10495_v27, %v10489_v31  ;;  %v3651_v9 = vmul.f32 0.2, %v10393_v11  ;;  %v6123_v51 = vmul.f32 -1.442695, %v10483_v61  ;;  %v4367_v22 = vadd.f32 %v10445_v5, %v4366_v7 }
 0x3d3   : > { %vm3161_vm4 = vcmp.gt.f32.partialorder %v10315_v60, 0.0  ;;  %vm3395_vm5 = vcmp.gt.f32.partialorder %v10393_v11, 0.0  ;;  %v6124_v38 = vmul.f32 -1.442695, %v10498_v47  ;;  %v10515_v6 = vadd.f32 %v10251_v30, %v4364_v39 }
 0x3d4   : > { %v3413_v17 = vmul.f32 0.2, %v2840_v36  ;;  %v11800_v45 = vpack.c.bf16 %v10162_v0, %v11799_v29  ;;  %6897 = vpow2.f32 %v6123_v51  ;;  %v10521_v43 = vadd.f32 %v10276_v1, %v4367_v22  ;;  %v4379_v0 = vpop.f32.mrb[212].mxu0 }
 0x3d5   : > { %v10524_v7 = vsel %vm3399_vm14, %v2791_v49, %v3655_v19  ;;  %vm3157_vm6 = vcmp.gt.f32.partialorder %v2840_v36, 0.0  ;;  %6899 = vpow2.f32 %v6124_v38  ;;  %v6125_v34 = vmul.f32 -1.442695, %v10515_v6 }
 0x3d6   : > { %4562 = vmatmul.mubr.bf16.gmra.mrb[48].mxu0 %v11800_v45  ;;  %v3412_v30 = vmul.f32 0.2, %v11801_v10  ;;  %v6126_v8 = vmul.f32 -1.442695, %v10521_v43  ;;  %v10530_v20 = vsel %vm3395_vm5, %v10393_v11, %v3651_v9  ;;  %v10535_v1 = vsel %vm3161_vm4, %v10315_v60, %v3417_v44  ;;  %v4381_v11 = vpop.f32.mrb[213].mxu0 }
 0x3d7   : > { %4569 = vmatprep.mubr.bf16.mxu0 %v4031_v21  ;;  %vm3156_vm13 = vcmp.gt.f32.partialorder %v11801_v10, 0.0  ;;  %v3416_v49 = vmul.f32 0.2, %v2842_v33  ;;  %v11802_v4 = vpack.c.bf16 %v10344_v18, %v10339_v55  ;;  %6901 = vpow2.f32 %v6125_v34  ;;  %v10543_v21 = vpop.f32.mrb[212].mxu1  ;;  %v4382_v25 = vpop.f32.mrb[214].mxu0 }
 0x3d8   : > { %v4039_v14 = vpack.c.bf16 %v10524_v7, %v10530_v20  ;;  %vm3160_vm7 = vcmp.gt.f32.partialorder %v2842_v33, 0.0  ;;  %6903 = vpow2.f32 %v6126_v8  ;;  %v4372_v60 = vadd.f32 %v10445_v5, %v4371_v26  ;;  %v4686_v62 = vpop.f32.mrb[213].mxu1  ;;  %v4384_v23 = vpop.f32.mrb[215].mxu0 }
 0x3d9   : > { %4867 = vmatmul.mubr.bf16.gmra.mrb[48].mxu1 %v11802_v4  ;;  %v10547_v56 = vsel %vm3157_vm6, %v2840_v36, %v3413_v17  ;;  %v4375_v55 = vadd.f32 %v10445_v5, %v4374_v46  ;;  %v4380_v18 = vadd.f32 %v10445_v5, %v4379_v0  ;;  %v4383_v57 = vadd.f32 %v10445_v5, %v4382_v25  ;;  %v10552_v44 = vpop.f32.mrb[214].mxu1  ;;  %v4387_v9 = vpop.f32.mrb[216].mxu0  ;;  %v11807_v62 = vld [vmem:[#allocation13_spill] sm:$0xff] }
 0x3da   : > { %4874 = vmatprep.mubr.bf16.mxu1 %v4041_v50  ;;  %v3921_v50 = vpack.c.bf16 %v10535_v1, %v10547_v56  ;;  %v5664_v37 = vlaneseq  ;;  %v10557_v26 = vadd.f32 %v10334_v15, %v4372_v60  ;;  %v4689_v54 = vpop.f32.mrb[215].mxu1  ;;  %v10562_v36 = vsel %vm3156_vm13, %v11801_v10, %v3412_v30  ;;  %v11803_v15 = vld [vmem:[#allocation17_spill] sm:$0xff]  ;;  %v4389_v22 = vpop.f32.mrb[217].mxu0  ;;  %v11806_v60 = vld [vmem:[#allocation22_spill] sm:$0xff] }
 0x3db   : > { %v10565_v19 = vadd.f32 %v10358_v13, %v4375_v55  ;;  %v10568_v31 = vadd.f32 %v10403_v16, %v4380_v18  ;;  %v10571_v27 = vadd.f32 %v10422_v32, %v4383_v57  ;;  %v10574_v35 = vsel %vm3160_vm7, %v2842_v33, %v3416_v49  ;;  %v4885_v32 = vld [vmem:[%s11613_s8 + $0x2] sm:$0x1]  ;;  %v4390_v17 = vpop.f32.mrb[218].mxu0  ;;  %v10593_v63 = vpop.f32.mrb[216].mxu1  ;;  %v10602_v49 = vld [vmem:[%s11613_s8] ss:$0 sm:$0xff] }
 0x3dc   : > { %v11804_v46 = vpack.c.bf16 %v10243_v52, %v11803_v15  ;;  %v6127_v39 = vmul.f32 -1.442695, %v10557_v26  ;;  %v3920_v40 = vpack.c.bf16 %v10574_v35, %v10562_v36  ;;  %v5665_v52 = vshrl.u32 %v5664_v37, 7  ;;  %v4694_v0 = vpop.f32.mrb[217].mxu1 }
 0x3dd   : > { %v6128_v13 = vmul.f32 -1.442695, %v10565_v19  ;;  %v6129_v16 = vmul.f32 -1.442695, %v10568_v31  ;;  %vm4886_vm8 = vcmp.gt.f32.partialorder %v4885_v32, 0.5  ;;  %v4388_v38 = vadd.f32 %v10445_v5, %v4387_v9 }
 0x3de   : > { %4570 = vmatmul.mubr.bf16.gmra.mrb[52].mxu0 %v11804_v46  ;;  %v6898_v3 = vpop.eup %6897  ;;  %6905 = vpow2.f32 %v6127_v39  ;;  %v6189_v45 = vclamps-f32 %v10483_v61, 1.0  ;;  %v4391_v12 = vadd.f32 %v10445_v5, %v4390_v17  ;;  %v5666_v10 = vsub.s32 0, %v5665_v52  ;;  %v11809_v17 = vld [vmem:[#allocation8_spill] sm:$0xff] }
 0x3df   : > { %4577 = vmatprep.mubr.bf16.mxu0 %v4035_v42  ;;  %v6900_v28 = vpop.eup %6899  ;;  %v5083_v33 = vadd.f32 1.0, %v6898_v3  ;;  %6907 = vpow2.f32 %v6128_v13  ;;  %v6130_v42 = vmul.f32 -1.442695, %v10571_v27  ;;  %v10597_v8 = vadd.f32 %v10480_v41, %v4388_v38  ;;  %v10613_v41 = vpop.f32.mrb[218].mxu1 }
 0x3e0   : > { %v5084_v51 = vadd.f32 1.0, %v6900_v28  ;;  %6909 = vpow2.f32 %v6129_v16  ;;  %v11805_v61 = vmov 0   ;;  %v6190_v11 = vclamps-f32 %v10498_v47, 1.0  ;;  %v4697_v47 = vpop.f32.mrb[219].mxu1 }
 0x3e1   : > { %4875 = vmatmul.mubr.bf16.gmra.mrb[52].mxu1 %v4040_v24  ;;  %v6902_v2 = vpop.eup %6901  ;;  %6911 = vrcp.f32 %v5083_v33  ;;  %v4392_v24 = vpop.f32.mrb[219].mxu0  ;;  %v5663_v4 = vsel %vm4886_vm8, 1, %v11805_v61  ;;  %v11808_v25 = vpack.c.bf16 %v11806_v60, %v11807_v62  ;;  %v10611_v55 = vadd.f32 %v10504_v58, %v4391_v12 }
 0x3e2   : > { %v6904_v29 = vpop.eup %6903  ;;  %6913 = vrcp.f32 %v5084_v51  ;;  %v5085_v34 = vadd.f32 1.0, %v6902_v2  ;;  %v6191_v18 = vclamps-f32 %v10515_v6, 1.0  ;;  %v6131_v57 = vmul.f32 -1.442695, %v10597_v8  ;;  %v10627_v6 = vld [vmem:[%s11613_s8 + $0x1] ss:$0 sm:$0xff] }
 0x3e3   : > { %v5086_v30 = vadd.f32 1.0, %v6904_v29  ;;  %6915 = vpow2.f32 %v6130_v42  ;;  %v6132_v23 = vmul.f32 -1.442695, %v10611_v55  ;;  %v5539_v37 = vmul.f32 %v6189_v45, %v10602_v49  ;;  %v4395_v28 = vpop.f32.mrb[220].mxu0  ;;  %v11810_v29 = vld [vmem:[#allocation9_spill] sm:$0xff]  ;;  %v10657_v24 = vpop.f32.mrb[220].mxu1 }
 0x3e4   : > { %6917 = vrcp.f32 %v5085_v34  ;;  %v10622_v54 = vrot.slane %v5663_v4, %v5666_v10  ;;  %v5540_v15 = vmul.f32 %v6190_v11, %v10602_v49  ;;  %v5541_v20 = vmul.f32 %v6191_v18, %v10602_v49  ;;  %v4397_v9 = vpop.f32.mrb[221].mxu0  ;;  %v4702_v62 = vpop.f32.mrb[221].mxu1 }
 0x3e5   : > { %6919 = vrcp.f32 %v5086_v30  ;;  %v5603_v3 = vadd.f32 %v10627_v6, %v5539_v37  ;;  %v11811_v45 = vpack.c.bf16 %v11809_v17, %v11810_v29  ;;  %v4398_v34 = vpop.f32.mrb[222].mxu0  ;;  %v6193_v11 = vclamps-f32 %v10557_v26, 1.0 }
 0x3e6   : > { %4578 = vmatmul.mubr.bf16.gmra.mrb[56].mxu0 %v11808_v25  ;;  %6921 = vpow2.f32 %v6131_v57  ;;  %vm5668_vm9 = vcmp.eq.s32.totalorder %v10622_v54, 1  ;;  %v5604_v42 = vadd.f32 %v10627_v6, %v5540_v15  ;;  %v5605_v2 = vadd.f32 %v10627_v6, %v5541_v20  ;;  %v4400_v30 = vpop.f32.mrb[223].mxu0  ;;  %v10668_v57 = vpop.f32.mrb[222].mxu1 }
 0x3e7   : > { %4585 = vmatprep.mubr.bf16.mxu0 %v4039_v14  ;;  %6923 = vpow2.f32 %v6132_v23  ;;  %v6192_v14 = vclamps-f32 %v10521_v43, 1.0  ;;  %v4396_v43 = vadd.f32 %v10445_v5, %v4395_v28  ;;  %v4399_v10 = vadd.f32 %v10445_v5, %v4398_v34  ;;  %v11816_v28 = vld [vmem:[#allocation2_spill] sm:$0xff] }
 0x3e8   : > { %v6906_v58 = vpop.eup %6905  ;;  %v6194_v60 = vclamps-f32 %v10565_v19, 1.0  ;;  %vm11812_vm10 = vcmask 97280   ;;  %v6195_v20 = vclamps-f32 %v10568_v31, 1.0  ;;  %v11815_v31 = vld [vmem:[#allocation3_spill] sm:$0xff] }
 0x3e9   : > { %v6908_v7 = vpop.eup %6907  ;;  %v5087_v46 = vadd.f32 1.0, %v6906_v58  ;;  %v5542_v38 = vmul.f32 %v6192_v14, %v10602_v49  ;;  %v10677_v37 = vadd.f32 %v10552_v44, %v4399_v10  ;;  %v4705_v58 = vpop.f32.mrb[223].mxu1  ;;  %vm11813_vm11 = vmmov %vm11812_vm10 }
 0x3ea   : > { %v6910_v39 = vpop.eup %6909  ;;  %v5088_v13 = vadd.f32 1.0, %v6908_v7  ;;  %vm11814_vm12 = vmmov %vm11812_vm10  ;;  %v5545_v9 = vmul.f32 %v6195_v20, %v10602_v49 }
 0x3eb   : > { %v6912_v16 = vpop.eup %6911  ;;  %6925 = vrcp.f32 %v5087_v46  ;;  %v5089_v32 = vadd.f32 1.0, %v6910_v39  ;;  %v5606_v23 = vadd.f32 %v10627_v6, %v5542_v38  ;;  %v5543_v39 = vmul.f32 %v6193_v11, %v10602_v49  ;;  %vm11818_vm3 = vmmov %vm11812_vm10 }
 0x3ec   : > { %v6914_v33 = vpop.eup %6913  ;;  %v5279_v52 = vmul.f32 %v6912_v16, %v10602_v49  ;;  %6927 = vrcp.f32 %v5088_v13  ;;  %v6134_v44 = vmul.f32 -1.442695, %v10677_v37  ;;  %v5609_v62 = vadd.f32 %v10627_v6, %v5545_v9  ;;  %vm11819_vm15 = vmmov %vm11818_vm3 }
 0x3ed   : > { %v6916_v51 = vpop.eup %6915  ;;  %v5280_v22 = vmul.f32 %v6914_v33, %v10602_v49  ;;  %6929 = vrcp.f32 %v5089_v32  ;;  %v6196_v32 = vclamps-f32 %v10571_v27, 1.0  ;;  %v11817_v33 = vpack.c.bf16 %v11815_v31, %v11816_v28  ;;  %v4403_v27 = vpop.f32.mrb[224].mxu0  ;;  %vm11820_vm2 = vmmov %vm11818_vm3 }
 0x3ee   : > { %4586 = vmatmul.mubr.bf16.gmra.mrb[60].mxu0 %v4038_v53  ;;  %v6918_v12 = vpop.eup %6917  ;;  %v5347_v48 = vadd.f32 %v10627_v6, %v5279_v52  ;;  %v5090_v59 = vadd.f32 1.0, %v6916_v51  ;;  %v10655_v53 = vadd.f32 %v10543_v21, %v4396_v43  ;;  %v4404_v38 = vadd.f32 %v10445_v5, %v4403_v27  ;;  %v4405_v29 = vpop.f32.mrb[225].mxu0  ;;  %vm11821_vm1 = vmmov %vm11820_vm2 }
 0x3ef   : > { %4626 = vmatprep.mubr.bf16.mxu0 %v11811_v45  ;;  %v6920_v0 = vpop.eup %6919  ;;  %v5348_v61 = vadd.f32 %v10627_v6, %v5280_v22  ;;  %v5281_v4 = vmul.f32 %v6918_v12, %v10602_v49  ;;  %v5607_v22 = vadd.f32 %v10627_v6, %v5543_v39  ;;  %v10706_v17 = vpop.f32.mrb[224].mxu1  ;;  %v5546_v45 = vmul.f32 %v6196_v32, %v10602_v49  ;;  %vm11822_vm0 = vmmov %vm11821_vm1 }
 0x3f0   : > { %v5673_v21 = vsel %vm5668_vm9, %v5603_v3, %v5347_v48  ;;  %v5282_v25 = vmul.f32 %v6920_v0, %v10602_v49  ;;  %6931 = vrcp.f32 %v5090_v59  ;;  %v6133_v18 = vmul.f32 -1.442695, %v10655_v53  ;;  %v6922_v47 = vpop.eup %6921  ;;  %v4710_v34 = vpop.f32.mrb[225].mxu1  ;;  %vm11823_vm14 = vmmov %vm11822_vm0 }
 0x3f1   : > { %5737 = vst.msk [vmem:[%s10651_s14 + $0x20] sm:$0xff] %vm11812_vm10, %v5673_v21  ;;  %v5674_v26 = vsel %vm5668_vm9, %v5604_v42, %v5348_v61  ;;  %v5349_v19 = vadd.f32 %v10627_v6, %v5281_v4  ;;  %v6924_v15 = vpop.eup %6923  ;;  %v5091_v14 = vadd.f32 1.0, %v6922_v47  ;;  %v5544_v3 = vmul.f32 %v6194_v60, %v10602_v49  ;;  %v4406_v12 = vpop.f32.mrb[226].mxu0  ;;  %vm11824_vm4 = vmmov %vm11822_vm0 }
 0x3f2   : > { %5738 = vst.msk [vmem:[%s10651_s14 + $0x28] sm:$0xff] %vm11813_vm11, %v5674_v26  ;;  %v5350_v7 = vadd.f32 %v10627_v6, %v5282_v25  ;;  %6933 = vpow2.f32 %v6133_v18  ;;  %v5092_v13 = vadd.f32 1.0, %v6924_v15  ;;  %v6197_v59 = vclamps-f32 %v10597_v8, 1.0  ;;  %v10718_v0 = vpop.f32.mrb[226].mxu1  ;;  %v4408_v61 = vpop.f32.mrb[227].mxu0  ;;  %vm11825_vm5 = vmmov %vm11822_vm0 }
 0x3f3   : > { %v5675_v46 = vsel %vm5668_vm9, %v5605_v2, %v5349_v19  ;;  %6935 = vrcp.f32 %v5091_v14  ;;  %v5608_v56 = vadd.f32 %v10627_v6, %v5544_v3  ;;  %v10715_v10 = vadd.f32 %v10593_v63, %v4404_v38  ;;  %v4713_v21 = vpop.f32.mrb[227].mxu1  ;;  %vm11826_vm6 = vmmov %vm11822_vm0 }
 0x3f4   : > { %5739 = vst.msk [vmem:[%s10651_s14 + $0x30] sm:$0xff] %vm11814_vm12, %v5675_v46  ;;  %v5676_v16 = vsel %vm5668_vm9, %v5606_v23, %v5350_v7  ;;  %6937 = vrcp.f32 %v5092_v13  ;;  %v4407_v30 = vadd.f32 %v10445_v5, %v4406_v12  ;;  %v6198_v8 = vclamps-f32 %v10611_v55, 1.0  ;;  %vm11827_vm13 = vmmov %vm11822_vm0 }
 0x3f5   : > { %v6926_v52 = vpop.eup %6925  ;;  %5740 = vst.msk [vmem:[%s10651_s14 + $0x38] sm:$0xff] %vm11818_vm3, %v5676_v16  ;;  %6939 = vpow2.f32 %v6134_v44  ;;  %v6135_v18 = vmul.f32 -1.442695, %v10715_v10  ;;  %v5610_v19 = vadd.f32 %v10627_v6, %v5546_v45  ;;  %v5547_v58 = vmul.f32 %v6197_v59, %v10602_v49  ;;  %vm11828_vm7 = vmmov %vm11822_vm0 }
 0x3f6   : > { %4627 = vmatmul.mubr.bf16.vlgmr.msra.gmra.mrb[192].mxu0 %v11817_v33  ;;  %v6928_v42 = vpop.eup %6927  ;;  %v5283_v43 = vmul.f32 %v6926_v52, %v10602_v49  ;;  %v10740_v55 = vadd.f32 %v10613_v41, %v4407_v30  ;;  %v5548_v20 = vmul.f32 %v6198_v8, %v10602_v49  ;;  %v6199_v29 = vclamps-f32 %v10655_v53, 1.0  ;;  %vm11829_vm8 = vmmov %vm11822_vm0 }
 0x3f7   : > { %4634 = vmatprep.mubr.bf16.mxu0 %v3921_v50  ;;  %v6930_v51 = vpop.eup %6929  ;;  %v5284_v2 = vmul.f32 %v6928_v42, %v10602_v49  ;;  %6941 = vpow2.f32 %v6135_v18  ;;  %v10755_v44 = vpop.f32.mrb[228].mxu1  ;;  %v5611_v32 = vadd.f32 %v10627_v6, %v5547_v58  ;;  %v6200_v34 = vclamps-f32 %v10677_v37, 1.0  ;;  %vm11830_vm10 = vmmov %vm11822_vm0 }
 0x3f8   : > { %v5351_v1 = vadd.f32 %v10627_v6, %v5283_v43  ;;  %v5285_v50 = vmul.f32 %v6930_v51, %v10602_v49  ;;  %v6136_v14 = vmul.f32 -1.442695, %v10740_v55  ;;  %v4718_v28 = vpop.f32.mrb[229].mxu1  ;;  %v5612_v42 = vadd.f32 %v10627_v6, %v5548_v20  ;;  %vm11831_vm11 = vmmov %vm11822_vm0 }
 0x3f9   : > { %v5352_v48 = vadd.f32 %v10627_v6, %v5284_v2  ;;  %v10765_v27 = vpop.f32.mrb[230].mxu1  ;;  %v5549_v45 = vmul.f32 %v6199_v29, %v10602_v49  ;;  %vm11832_vm12 = vmmov %vm11822_vm0 }
 0x3fa   : > { %v6932_v4 = vpop.eup %6931  ;;  %v5677_v11 = vsel %vm5668_vm9, %v5607_v22, %v5351_v1  ;;  %v5353_v60 = vadd.f32 %v10627_v6, %v5285_v50  ;;  %v4721_v2 = vpop.f32.mrb[231].mxu1  ;;  %vm11833_vm3 = vmmov %vm11822_vm0 }
 0x3fb   : > { %5741 = vst.msk [vmem:[%s10651_s14 + $0x40] sm:$0xff] %vm11819_vm15, %v5677_v11  ;;  %v5678_v63 = vsel %vm5668_vm9, %v5608_v56, %v5352_v48  ;;  %v5286_v25 = vmul.f32 %v6932_v4, %v10602_v49  ;;  %v5613_v18 = vadd.f32 %v10627_v6, %v5549_v45  ;;  %vm11834_vm15 = vmmov %vm11822_vm0 }
 0x3fc   : > { %v6934_v47 = vpop.eup %6933  ;;  %5742 = vst.msk [vmem:[%s10651_s14 + $0x48] sm:$0xff] %vm11820_vm2, %v5678_v63  ;;  %v5679_v26 = vsel %vm5668_vm9, %v5609_v62, %v5353_v60  ;;  %vm11835_vm2 = vmmov %vm11822_vm0 }
 0x3fd   : > { %5743 = vst.msk [vmem:[%s10651_s14 + $0x50] sm:$0xff] %vm11821_vm1, %v5679_v26  ;;  %v5354_v23 = vadd.f32 %v10627_v6, %v5286_v25  ;;  %v5093_v15 = vadd.f32 1.0, %v6934_v47  ;;  %v6936_v7 = vpop.eup %6935  ;;  %v5550_v47 = vmul.f32 %v6200_v34, %v10602_v49  ;;  %vm11836_vm1 = vmmov %vm11822_vm0 }
 0x3fe   : > { %4635 = vmatmul.mubr.bf16.gmra.mrb[196].mxu0 %v3920_v40  ;;  %v6938_v46 = vpop.eup %6937  ;;  %v5287_v35 = vmul.f32 %v6936_v7, %v10602_v49  ;;  %v4411_v40 = vpop.f32.mrb[228].mxu0  ;;  %v6201_v7 = vclamps-f32 %v10715_v10, 1.0 }
 0x3ff   : > { %v5680_v36 = vsel %vm5668_vm9, %v5610_v19, %v5354_v23  ;;  %6943 = vrcp.f32 %v5093_v15  ;;  %v6940_v41 = vpop.eup %6939  ;;  %v5288_v39 = vmul.f32 %v6938_v46, %v10602_v49  ;;  %v4412_v13 = vadd.f32 %v10445_v5, %v4411_v40  ;;  %v4413_v16 = vpop.f32.mrb[229].mxu0 }
 0x400   : > { %5744 = vst.msk [vmem:[%s10651_s14 + $0x58] sm:$0xff] %vm11822_vm0, %v5680_v36  ;;  %6945 = vpow2.f32 %v6136_v14  ;;  %v5355_v3 = vadd.f32 %v10627_v6, %v5287_v35  ;;  %v5094_v31 = vadd.f32 1.0, %v6940_v41  ;;  %v4414_v33 = vpop.f32.mrb[230].mxu0  ;;  %v10784_v30 = vpop.f32.mrb[232].mxu1  ;;  %v5614_v36 = vadd.f32 %v10627_v6, %v5550_v47 }
 0x401   : > { %v5356_v52 = vadd.f32 %v10627_v6, %v5288_v39  ;;  %v10762_v43 = vadd.f32 %v10657_v24, %v4412_v13  ;;  %v4415_v9 = vadd.f32 %v10445_v5, %v4414_v33  ;;  %v4416_v51 = vpop.f32.mrb[231].mxu0  ;;  %v6942_v50 = vpop.eup %6941  ;;  %v6202_v13 = vclamps-f32 %v10740_v55, 1.0 }
 0x402   : > { %v5681_v22 = vsel %vm5668_vm9, %v5611_v32, %v5355_v3  ;;  %6947 = vrcp.f32 %v5094_v31  ;;  %v5095_v12 = vadd.f32 1.0, %v6942_v50  ;;  %v4419_v48 = vpop.f32.mrb[232].mxu0  ;;  %v4726_v11 = vpop.f32.mrb[233].mxu1  ;;  %v5551_v3 = vmul.f32 %v6201_v7, %v10602_v49 }
 0x403   : > { %5745 = vst.msk [vmem:[%s10651_s14 + $0x60] sm:$0xff] %vm11823_vm14, %v5681_v22  ;;  %v5682_v38 = vsel %vm5668_vm9, %v5612_v42, %v5356_v52  ;;  %v6137_v24 = vmul.f32 -1.442695, %v10762_v43  ;;  %v10776_v1 = vadd.f32 %v10668_v57, %v4415_v9  ;;  %v4420_v53 = vadd.f32 %v10445_v5, %v4419_v48  ;;  %v4421_v57 = vpop.f32.mrb[233].mxu0  ;;  %v10791_v21 = vpop.f32.mrb[234].mxu1  ;;  %vm11837_vm14 = vmmov %vm11822_vm0 }
 0x404   : > { %5746 = vst.msk [vmem:[%s10651_s14 + $0x68] sm:$0xff] %vm11824_vm4, %v5682_v38  ;;  %v4422_v60 = vpop.f32.mrb[234].mxu0  ;;  %v4729_v26 = vpop.f32.mrb[235].mxu1  ;;  %v5552_v2 = vmul.f32 %v6202_v13, %v10602_v49  ;;  %v6203_v34 = vclamps-f32 %v10762_v43, 1.0  ;;  %vm11838_vm4 = vmmov %vm11822_vm0 }
 0x405   : > { %6949 = vpow2.f32 %v6137_v24  ;;  %v6138_v56 = vmul.f32 -1.442695, %v10776_v1  ;;  %v10788_v8 = vadd.f32 %v10706_v17, %v4420_v53  ;;  %v4423_v37 = vadd.f32 %v10445_v5, %v4422_v60  ;;  %v4424_v63 = vpop.f32.mrb[235].mxu0 }
 0x406   : > { %v6204_v53 = vclamps-f32 %v10776_v1, 1.0 }
 0x407   : > { %6951 = vpow2.f32 %v6138_v56  ;;  %v6139_v23 = vmul.f32 -1.442695, %v10788_v8  ;;  %v10798_v58 = vadd.f32 %v10718_v0, %v4423_v37  ;;  %v4427_v0 = vpop.f32.mrb[236].mxu0 }
 0x408   : > { %6953 = vrcp.f32 %v5095_v12  ;;  %v4429_v40 = vpop.f32.mrb[237].mxu0  ;;  %v4428_v10 = vadd.f32 %v10445_v5, %v4427_v0  ;;  %v5554_v47 = vmul.f32 %v6204_v53, %v10602_v49  ;;  %v6205_v0 = vclamps-f32 %v10788_v8, 1.0 }
 0x409   : > { %v6944_v59 = vpop.eup %6943  ;;  %v6140_v20 = vmul.f32 -1.442695, %v10798_v58  ;;  %v4430_v16 = vpop.f32.mrb[238].mxu0 }
 0x40a   : > { %v6946_v61 = vpop.eup %6945  ;;  %v5289_v4 = vmul.f32 %v6944_v59, %v10602_v49  ;;  %v10816_v31 = vpop.f32.mrb[236].mxu1  ;;  %v4431_v28 = vadd.f32 %v10445_v5, %v4430_v16  ;;  %v10820_v42 = vadd.f32 %v10755_v44, %v4428_v10  ;;  %v5615_v44 = vadd.f32 %v10627_v6, %v5551_v3 }
 0x40b   : > { %v5096_v62 = vadd.f32 1.0, %v6946_v61  ;;  %v4432_v33 = vpop.f32.mrb[239].mxu0  ;;  %v4734_v9 = vpop.f32.mrb[237].mxu1  ;;  %v5616_v59 = vadd.f32 %v10627_v6, %v5552_v2  ;;  %v5618_v13 = vadd.f32 %v10627_v6, %v5554_v47  ;;  %v6206_v10 = vclamps-f32 %v10798_v58, 1.0 }
 0x40c   : > { %v5357_v25 = vadd.f32 %v10627_v6, %v5289_v4  ;;  %v6948_v19 = vpop.eup %6947  ;;  %v10824_v51 = vadd.f32 %v10765_v27, %v4431_v28  ;;  %v10826_v22 = vpop.f32.mrb[238].mxu1  ;;  %v6141_v38 = vmul.f32 -1.442695, %v10820_v42  ;;  %v5553_v4 = vmul.f32 %v6203_v34, %v10602_v49 }
 0x40d   : > { %6955 = vrcp.f32 %v5096_v62  ;;  %v5290_v15 = vmul.f32 %v6948_v19, %v10602_v49  ;;  %v4737_v29 = vpop.f32.mrb[239].mxu1 }
 0x40e   : > { %v5683_v17 = vsel %vm5668_vm9, %v5613_v18, %v5357_v25  ;;  %6957 = vpow2.f32 %v6139_v23  ;;  %v6142_v50 = vmul.f32 -1.442695, %v10824_v51 }
 0x40f   : > { %5747 = vst.msk [vmem:[%s10651_s14 + $0x70] sm:$0xff] %vm11825_vm5, %v5683_v17  ;;  %v6950_v14 = vpop.eup %6949  ;;  %v5358_v46 = vadd.f32 %v10627_v6, %v5290_v15  ;;  %6959 = vpow2.f32 %v6140_v20  ;;  %vm11839_vm5 = vmmov %vm11822_vm0 }
 0x410   : > { %v5097_v35 = vadd.f32 1.0, %v6950_v14 }
 0x411   : > { %v6952_v41 = vpop.eup %6951  ;;  %v5684_v39 = vsel %vm5668_vm9, %v5614_v36, %v5358_v46  ;;  %v5617_v46 = vadd.f32 %v10627_v6, %v5553_v4 }
 0x412   : > { %5748 = vst.msk [vmem:[%s10651_s14 + $0x78] sm:$0xff] %vm11826_vm6, %v5684_v39  ;;  %6961 = vrcp.f32 %v5097_v35  ;;  %v5098_v32 = vadd.f32 1.0, %v6952_v41  ;;  %v6954_v52 = vpop.eup %6953  ;;  %vm11840_vm6 = vmmov %vm11822_vm0 }
 0x413   : > { %v5291_v55 = vmul.f32 %v6954_v52, %v10602_v49  ;;  %v4435_v60 = vpop.f32.mrb[240].mxu0  ;;  %v10845_v62 = vpop.f32.mrb[240].mxu1  ;;  %v5556_v52 = vmul.f32 %v6206_v10, %v10602_v49 }
 0x414   : > { %6963 = vrcp.f32 %v5098_v32  ;;  %v4436_v63 = vadd.f32 %v10445_v5, %v4435_v60  ;;  %v4437_v25 = vpop.f32.mrb[241].mxu0  ;;  %v4742_v18 = vpop.f32.mrb[241].mxu1  ;;  %v5555_v32 = vmul.f32 %v6205_v0, %v10602_v49 }
 0x415   : > { %v5359_v56 = vadd.f32 %v10627_v6, %v5291_v55  ;;  %6965 = vpow2.f32 %v6141_v38  ;;  %v4438_v26 = vpop.f32.mrb[242].mxu0  ;;  %v10852_v19 = vpop.f32.mrb[242].mxu1 }
 0x416   : > { %6967 = vpow2.f32 %v6142_v50  ;;  %v10855_v17 = vadd.f32 %v10784_v30, %v4436_v63  ;;  %v4439_v15 = vadd.f32 %v10445_v5, %v4438_v26  ;;  %v4440_v7 = vpop.f32.mrb[243].mxu0  ;;  %v4745_v20 = vpop.f32.mrb[243].mxu1  ;;  %v5619_v29 = vadd.f32 %v10627_v6, %v5555_v32 }
 0x417   : > { %v6956_v24 = vpop.eup %6955  ;;  %v5685_v12 = vsel %vm5668_vm9, %v5615_v44, %v5359_v56 }
 0x418   : > { %v5292_v45 = vmul.f32 %v6956_v24, %v10602_v49  ;;  %v6958_v27 = vpop.eup %6957  ;;  %5749 = vst.msk [vmem:[%s10651_s14 + $0x80] sm:$0xff] %vm11827_vm13, %v5685_v12  ;;  %v6143_v35 = vmul.f32 -1.442695, %v10855_v17  ;;  %v10864_v40 = vadd.f32 %v10791_v21, %v4439_v15  ;;  %vm11841_vm13 = vmmov %vm11822_vm0 }
 0x419   : > { %v5099_v57 = vadd.f32 1.0, %v6958_v27  ;;  %v6960_v61 = vpop.eup %6959 }
 0x41a   : > { %v5360_v48 = vadd.f32 %v10627_v6, %v5292_v45  ;;  %v5100_v11 = vadd.f32 1.0, %v6960_v61  ;;  %v6144_v3 = vmul.f32 -1.442695, %v10864_v40 }
 0x41b   : > { %6969 = vrcp.f32 %v5099_v57 }
 0x41c   : > { %v5686_v43 = vsel %vm5668_vm9, %v5616_v59, %v5360_v48  ;;  %v6962_v37 = vpop.eup %6961  ;;  %6971 = vrcp.f32 %v5100_v11  ;;  %v5620_v48 = vadd.f32 %v10627_v6, %v5556_v52  ;;  %v6207_v59 = vclamps-f32 %v10820_v42, 1.0 }
 0x41d   : > { %5750 = vst.msk [vmem:[%s10651_s14 + $0x88] sm:$0xff] %vm11828_vm7, %v5686_v43  ;;  %v5293_v1 = vmul.f32 %v6962_v37, %v10602_v49  ;;  %6973 = vpow2.f32 %v6143_v35  ;;  %v4443_v58 = vpop.f32.mrb[244].mxu0  ;;  %v6208_v43 = vclamps-f32 %v10824_v51, 1.0  ;;  %vm11842_vm7 = vmmov %vm11822_vm0 }
 0x41e   : > { %v6964_v23 = vpop.eup %6963  ;;  %v4444_v55 = vadd.f32 %v10445_v5, %v4443_v58  ;;  %v4445_v2 = vpop.f32.mrb[245].mxu0  ;;  %v5557_v37 = vmul.f32 %v6207_v59, %v10602_v49 }
 0x41f   : > { %v5361_v14 = vadd.f32 %v10627_v6, %v5293_v1  ;;  %v5294_v36 = vmul.f32 %v6964_v23, %v10602_v49  ;;  %v6966_v30 = vpop.eup %6965  ;;  %v10883_v24 = vpop.f32.mrb[244].mxu1  ;;  %v5558_v18 = vmul.f32 %v6208_v43, %v10602_v49 }
 0x420   : > { %v6968_v16 = vpop.eup %6967  ;;  %v5101_v8 = vadd.f32 1.0, %v6966_v30  ;;  %v4446_v56 = vpop.f32.mrb[246].mxu0  ;;  %v10888_v45 = vadd.f32 %v10816_v31, %v4444_v55  ;;  %v6210_v55 = vclamps-f32 %v10864_v40, 1.0 }
 0x421   : > { %v5687_v41 = vsel %vm5668_vm9, %v5617_v46, %v5361_v14  ;;  %v5362_v39 = vadd.f32 %v10627_v6, %v5294_v36  ;;  %v5102_v28 = vadd.f32 1.0, %v6968_v16  ;;  %v4750_v34 = vpop.f32.mrb[245].mxu1  ;;  %v4447_v27 = vadd.f32 %v10445_v5, %v4446_v56  ;;  %v4448_v12 = vpop.f32.mrb[247].mxu0 }
 0x422   : > { %5751 = vst.msk [vmem:[%s10651_s14 + $0x90] sm:$0xff] %vm11829_vm8, %v5687_v41  ;;  %6975 = vrcp.f32 %v5101_v8  ;;  %v10893_v53 = vpop.f32.mrb[246].mxu1  ;;  %v6145_v31 = vmul.f32 -1.442695, %v10888_v45  ;;  %v5621_v46 = vadd.f32 %v10627_v6, %v5557_v37  ;;  %vm11843_vm8 = vmmov %vm11822_vm0 }
 0x423   : > { %v5688_v21 = vsel %vm5668_vm9, %v5618_v13, %v5362_v39  ;;  %6977 = vrcp.f32 %v5102_v28  ;;  %v4753_v4 = vpop.f32.mrb[247].mxu1  ;;  %v10903_v11 = vadd.f32 %v10826_v22, %v4447_v27  ;;  %v5622_v39 = vadd.f32 %v10627_v6, %v5558_v18 }
 0x424   : > { %5752 = vst.msk [vmem:[%s10651_s14 + $0x98] sm:$0xff] %vm11830_vm10, %v5688_v21  ;;  %6979 = vpow2.f32 %v6144_v3  ;;  %v6209_v21 = vclamps-f32 %v10855_v17, 1.0  ;;  %v5560_v27 = vmul.f32 %v6210_v55, %v10602_v49  ;;  %vm11844_vm10 = vmmov %vm11822_vm0 }
 0x425   : > { %v6970_v33 = vpop.eup %6969  ;;  %6981 = vpow2.f32 %v6145_v31  ;;  %v6146_v51 = vmul.f32 -1.442695, %v10903_v11 }
 0x426   : > { %v5295_v9 = vmul.f32 %v6970_v33, %v10602_v49  ;;  %v6972_v38 = vpop.eup %6971 }
 0x427   : > { %v5296_v50 = vmul.f32 %v6972_v38, %v10602_v49  ;;  %v6974_v60 = vpop.eup %6973  ;;  %v4451_v1 = vpop.f32.mrb[248].mxu0 }
 0x428   : > { %v5363_v44 = vadd.f32 %v10627_v6, %v5295_v9  ;;  %v5103_v63 = vadd.f32 1.0, %v6974_v60  ;;  %v4452_v26 = vadd.f32 %v10445_v5, %v4451_v1  ;;  %v4453_v23 = vpop.f32.mrb[249].mxu0  ;;  %v5559_v9 = vmul.f32 %v6209_v21, %v10602_v49 }
 0x429   : > { %v5364_v61 = vadd.f32 %v10627_v6, %v5296_v50  ;;  %v4454_v20 = vpop.f32.mrb[250].mxu0  ;;  %v6211_v60 = vclamps-f32 %v10888_v45, 1.0 }
 0x42a   : > { %v5689_v57 = vsel %vm5668_vm9, %v5619_v29, %v5363_v44  ;;  %6983 = vrcp.f32 %v5103_v63  ;;  %v10918_v0 = vadd.f32 %v10845_v62, %v4452_v26  ;;  %v10920_v35 = vpop.f32.mrb[248].mxu1  ;;  %v4456_v30 = vpop.f32.mrb[251].mxu0  ;;  %v4455_v10 = vadd.f32 %v10445_v5, %v4454_v20 }
 0x42b   : > { %5753 = vst.msk [vmem:[%s10651_s14 + $0xa0] sm:$0xff] %vm11831_vm11, %v5689_v57  ;;  %v5690_v42 = vsel %vm5668_vm9, %v5620_v48, %v5364_v61  ;;  %6985 = vpow2.f32 %v6146_v51  ;;  %v4758_v13 = vpop.f32.mrb[249].mxu1  ;;  %v5623_v34 = vadd.f32 %v10627_v6, %v5559_v9  ;;  %v6212_v26 = vclamps-f32 %v10903_v11, 1.0  ;;  %vm11845_vm11 = vmmov %vm11822_vm0 }
 0x42c   : > { %5754 = vst.msk [vmem:[%s10651_s14 + $0xa8] sm:$0xff] %vm11832_vm12, %v5690_v42  ;;  %v6976_v25 = vpop.eup %6975  ;;  %v6147_v8 = vmul.f32 -1.442695, %v10918_v0  ;;  %v10928_v3 = vpop.f32.mrb[250].mxu1  ;;  %v10936_v32 = vadd.f32 %v10852_v19, %v4455_v10  ;;  %vm11846_vm12 = vmmov %vm11822_vm0 }
 0x42d   : > { %v6978_v47 = vpop.eup %6977  ;;  %v5297_v22 = vmul.f32 %v6976_v25, %v10602_v49  ;;  %v4761_v28 = vpop.f32.mrb[251].mxu1  ;;  %v5624_v25 = vadd.f32 %v10627_v6, %v5560_v27 }
 0x42e   : > { %v6980_v15 = vpop.eup %6979  ;;  %v5298_v7 = vmul.f32 %v6978_v47, %v10602_v49  ;;  %v6148_v52 = vmul.f32 -1.442695, %v10936_v32  ;;  %v6213_v28 = vclamps-f32 %v10918_v0, 1.0 }
 0x42f   : > { %v5365_v14 = vadd.f32 %v10627_v6, %v5297_v22  ;;  %v5104_v36 = vadd.f32 1.0, %v6980_v15  ;;  %v6982_v33 = vpop.eup %6981  ;;  %v5561_v22 = vmul.f32 %v6211_v60, %v10602_v49 }
 0x430   : > { %v5366_v41 = vadd.f32 %v10627_v6, %v5298_v7  ;;  %v5105_v58 = vadd.f32 1.0, %v6982_v33 }
 0x431   : > { %v5691_v16 = vsel %vm5668_vm9, %v5621_v46, %v5365_v14  ;;  %6987 = vrcp.f32 %v5104_v36  ;;  %v10979_v14 = vld [vmem:[%s11612_s7] ss:$0 sm:$0xff]  ;;  %v5625_v10 = vadd.f32 %v10627_v6, %v5561_v22 }
 0x432   : > { %5755 = vst.msk [vmem:[%s10651_s14 + $0xb0] sm:$0xff] %vm11833_vm3, %v5691_v16  ;;  %v5692_v62 = vsel %vm5668_vm9, %v5622_v39, %v5366_v41  ;;  %6989 = vpow2.f32 %v6147_v8  ;;  %v5562_v16 = vmul.f32 %v6212_v26, %v10602_v49  ;;  %vm11847_vm3 = vmmov %vm11822_vm0 }
 0x433   : > { %5756 = vst.msk [vmem:[%s10651_s14 + $0xb8] sm:$0xff] %vm11834_vm15, %v5692_v62  ;;  %6991 = vpow2.f32 %v6148_v52  ;;  %v4459_v19 = vpop.f32.mrb[252].mxu0  ;;  %vm11848_vm15 = vmmov %vm11822_vm0 }
 0x434   : > { %v6984_v2 = vpop.eup %6983  ;;  %6993 = vrcp.f32 %v5105_v58  ;;  %v4460_v56 = vadd.f32 %v10445_v5, %v4459_v19  ;;  %v4461_v44 = vpop.f32.mrb[253].mxu0  ;;  %v5626_v0 = vadd.f32 %v10627_v6, %v5562_v16  ;;  %v5563_v19 = vmul.f32 %v6213_v28, %v10602_v49 }
 0x435   : > { %v6986_v38 = vpop.eup %6985  ;;  %v5299_v17 = vmul.f32 %v6984_v2, %v10602_v49  ;;  %v10948_v12 = vpop.f32.mrb[252].mxu1 }
 0x436   : > { %v5106_v29 = vadd.f32 1.0, %v6986_v38  ;;  %v4462_v40 = vpop.f32.mrb[254].mxu0  ;;  %v10951_v59 = vadd.f32 %v10883_v24, %v4460_v56  ;;  %v4766_v57 = vpop.f32.mrb[253].mxu1 }
 0x437   : > { %v5367_v50 = vadd.f32 %v10627_v6, %v5299_v17  ;;  %v4463_v61 = vadd.f32 %v10445_v5, %v4462_v40  ;;  %v4464_v43 = vpop.f32.mrb[255].mxu0  ;;  %v10958_v42 = vpop.f32.mrb[254].mxu1 }
 0x438   : > { %6995 = vrcp.f32 %v5106_v29  ;;  %v6149_v24 = vmul.f32 -1.442695, %v10951_v59  ;;  %v4769_v5 = vpop.f32.mrb[255].mxu1 }
 0x439   : > { %v5693_v31 = vsel %vm5668_vm9, %v5623_v34, %v5367_v50  ;;  %v10964_v63 = vadd.f32 %v10893_v53, %v4463_v61 }
 0x43a   : > { %5757 = vst.msk [vmem:[%s10651_s14 + $0xc0] sm:$0xff] %vm11835_vm2, %v5693_v31  ;;  %6997 = vpow2.f32 %v6149_v24  ;;  %vm11849_vm2 = vmmov %vm11822_vm0 }
 0x43b   : > { %v6988_v48 = vpop.eup %6987  ;;  %v6150_v45 = vmul.f32 -1.442695, %v10964_v63 }
 0x43c   : > { %v5300_v4 = vmul.f32 %v6988_v48, %v10602_v49  ;;  %v6990_v37 = vpop.eup %6989 }
 0x43d   : > { %v5107_v18 = vadd.f32 1.0, %v6990_v37  ;;  %v6992_v1 = vpop.eup %6991  ;;  %v4467_v53 = vpop.f32.mrb[0].mxu0 }
 0x43e   : > { %v5368_v51 = vadd.f32 %v10627_v6, %v5300_v4  ;;  %v6994_v23 = vpop.eup %6993  ;;  %v5108_v15 = vadd.f32 1.0, %v6992_v1  ;;  %v4469_v7 = vpop.f32.mrb[1].mxu0  ;;  %v4468_v46 = vadd.f32 %v10979_v14, %v4467_v53 }
 0x43f   : > { %6999 = vrcp.f32 %v5107_v18  ;;  %v5301_v20 = vmul.f32 %v6994_v23, %v10602_v49  ;;  %v10982_v36 = vpop.f32.mrb[0].mxu1  ;;  %v4470_v11 = vpop.f32.mrb[2].mxu0 }
 0x440   : > { %v5694_v47 = vsel %vm5668_vm9, %v5624_v25, %v5368_v51  ;;  %7001 = vpow2.f32 %v6150_v45  ;;  %v4774_v30 = vpop.f32.mrb[1].mxu1  ;;  %v4471_v41 = vadd.f32 %v10979_v14, %v4470_v11  ;;  %v4472_v39 = vpop.f32.mrb[3].mxu0  ;;  %v10989_v8 = vadd.f32 %v10920_v35, %v4468_v46 }
 0x441   : > { %5758 = vst.msk [vmem:[%s10651_s14 + $0xc8] sm:$0xff] %vm11836_vm1, %v5694_v47  ;;  %7003 = vrcp.f32 %v5108_v15  ;;  %v5369_v13 = vadd.f32 %v10627_v6, %v5301_v20  ;;  %v10991_v62 = vpop.f32.mrb[2].mxu1  ;;  %v5627_v51 = vadd.f32 %v10627_v6, %v5563_v19  ;;  %v6216_v46 = vclamps-f32 %v10964_v63, 1.0  ;;  %vm11850_vm1 = vmmov %vm11822_vm0 }
 0x442   : > { %v6996_v21 = vpop.eup %6995  ;;  %v10995_v33 = vadd.f32 %v10928_v3, %v4471_v41  ;;  %v4777_v52 = vpop.f32.mrb[3].mxu1  ;;  %v6151_v55 = vmul.f32 -1.442695, %v10989_v8  ;;  %v6214_v3 = vclamps-f32 %v10936_v32, 1.0 }
 0x443   : > { %v5695_v58 = vsel %vm5668_vm9, %v5625_v10, %v5369_v13  ;;  %v5302_v9 = vmul.f32 %v6996_v21, %v10602_v49 }
 0x444   : > { %5759 = vst.msk [vmem:[%s10651_s14 + $0xd0] sm:$0xff] %vm11822_vm0, %v5695_v58  ;;  %v6152_v35 = vmul.f32 -1.442695, %v10995_v33  ;;  %7005 = vpow2.f32 %v6151_v55  ;;  %v6998_v17 = vpop.eup %6997  ;;  %v5564_v4 = vmul.f32 %v6214_v3, %v10602_v49 }
 0x445   : > { %v5370_v2 = vadd.f32 %v10627_v6, %v5302_v9  ;;  %v5109_v34 = vadd.f32 1.0, %v6998_v17 }
 0x446   : > { %v4475_v38 = vpop.f32.mrb[4].mxu0  ;;  %7007 = vpow2.f32 %v6152_v35  ;;  %v5628_v26 = vadd.f32 %v10627_v6, %v5564_v4 }
 0x447   : > { %v4476_v29 = vadd.f32 %v10979_v14, %v4475_v38  ;;  %v4477_v56 = vpop.f32.mrb[5].mxu0  ;;  %v5696_v50 = vsel %vm5668_vm9, %v5626_v0, %v5370_v2  ;;  %v11011_v27 = vpop.f32.mrb[4].mxu1  ;;  %7009 = vrcp.f32 %v5109_v34 }
 0x448   : > { %v4478_v40 = vpop.f32.mrb[6].mxu0  ;;  %5760 = vst.msk [vmem:[%s10651_s14 + $0xd8] sm:$0xff] %vm11837_vm14, %v5696_v50  ;;  %v4782_v61 = vpop.f32.mrb[5].mxu1  ;;  %vm11851_vm14 = vmmov %vm11822_vm0 }
 0x449   : > { %v7000_v44 = vpop.eup %6999  ;;  %v11017_v57 = vadd.f32 %v10948_v12, %v4476_v29  ;;  %v4479_v43 = vadd.f32 %v10979_v14, %v4478_v40  ;;  %v4480_v31 = vpop.f32.mrb[7].mxu0 }
 0x44a   : > { %v7002_v48 = vpop.eup %7001  ;;  %v5303_v32 = vmul.f32 %v7000_v44, %v10602_v49  ;;  %v11021_v37 = vpop.f32.mrb[6].mxu1  ;;  %v6217_v44 = vclamps-f32 %v10989_v8, 1.0 }
 0x44b   : > { %v5110_v60 = vadd.f32 1.0, %v7002_v48  ;;  %v7004_v24 = vpop.eup %7003  ;;  %v6153_v25 = vmul.f32 -1.442695, %v11017_v57  ;;  %v11027_v12 = vadd.f32 %v10958_v42, %v4479_v43  ;;  %v4785_v18 = vpop.f32.mrb[7].mxu1  ;;  %v6215_v42 = vclamps-f32 %v10951_v59, 1.0 }
 0x44c   : > { %v5371_v5 = vadd.f32 %v10627_v6, %v5303_v32  ;;  %v5304_v45 = vmul.f32 %v7004_v24, %v10602_v49  ;;  %v6218_v43 = vclamps-f32 %v10995_v33, 1.0 }
 0x44d   : > { %7011 = vrcp.f32 %v5110_v60  ;;  %v6154_v47 = vmul.f32 -1.442695, %v11027_v12  ;;  %v5565_v52 = vmul.f32 %v6215_v42, %v10602_v49 }
 0x44e   : > { %v5697_v1 = vsel %vm5668_vm9, %v5627_v51, %v5371_v5  ;;  %7013 = vpow2.f32 %v6153_v25  ;;  %v5372_v22 = vadd.f32 %v10627_v6, %v5304_v45  ;;  %v4483_v53 = vpop.f32.mrb[8].mxu0  ;;  %v7006_v7 = vpop.eup %7005  ;;  %v11090_v25 = vld [vmem:[%s11613_s8] ss:$0 sm:$0xff] }
 0x44f   : > { %5761 = vst.msk [vmem:[%s10651_s14 + $0xe0] sm:$0xff] %vm11838_vm4, %v5697_v1  ;;  %7015 = vpow2.f32 %v6154_v47  ;;  %v4484_v23 = vadd.f32 %v10979_v14, %v4483_v53  ;;  %v4485_v15 = vpop.f32.mrb[9].mxu0  ;;  %v5111_v39 = vadd.f32 1.0, %v7006_v7  ;;  %v5629_v19 = vadd.f32 %v10627_v6, %v5565_v52  ;;  %vm11852_vm4 = vmmov %vm11822_vm0 }
 0x450   : > { %v5698_v20 = vsel %vm5668_vm9, %v5628_v26, %v5372_v22  ;;  %v4486_v30 = vpop.f32.mrb[10].mxu0  ;;  %v7008_v41 = vpop.eup %7007  ;;  %v5567_v18 = vmul.f32 %v11090_v25, %v6217_v44  ;;  %v5568_v1 = vmul.f32 %v11090_v25, %v6218_v43  ;;  %v6219_v26 = vclamps-f32 %v11017_v57, 1.0 }
 0x451   : > { %v11042_v11 = vpop.f32.mrb[8].mxu1  ;;  %5762 = vst.msk [vmem:[%s10651_s14 + $0xe8] sm:$0xff] %vm11839_vm5, %v5698_v20  ;;  %v11047_v13 = vadd.f32 %v10982_v36, %v4484_v23  ;;  %v4487_v10 = vadd.f32 %v10979_v14, %v4486_v30  ;;  %v4488_v16 = vpop.f32.mrb[11].mxu0  ;;  %v5112_v21 = vadd.f32 1.0, %v7008_v41  ;;  %7017 = vrcp.f32 %v5111_v39  ;;  %v11103_v20 = vld [vmem:[%s11613_s8 + $0x1] ss:$0 sm:$0xff]  ;;  %vm11853_vm5 = vmmov %vm11822_vm0 }
 0x452   : > { %v4790_v59 = vpop.f32.mrb[9].mxu1  ;;  %v7010_v55 = vpop.eup %7009  ;;  %v5566_v36 = vmul.f32 %v6216_v46, %v10602_v49  ;;  %v5631_v30 = vadd.f32 %v11103_v20, %v5567_v18  ;;  %v6220_v57 = vclamps-f32 %v11027_v12, 1.0 }
 0x453   : > { %v11050_v28 = vpop.f32.mrb[10].mxu1  ;;  %v6155_v63 = vmul.f32 -1.442695, %v11047_v13  ;;  %v11055_v58 = vadd.f32 %v10991_v62, %v4487_v10  ;;  %7019 = vrcp.f32 %v5112_v21  ;;  %v5305_v35 = vmul.f32 %v7010_v55, %v10602_v49 }
 0x454   : > { %v4793_v9 = vpop.f32.mrb[11].mxu1  ;;  %v5630_v56 = vadd.f32 %v10627_v6, %v5566_v36  ;;  %v5632_v21 = vadd.f32 %v11103_v20, %v5568_v1  ;;  %v5569_v36 = vmul.f32 %v11090_v25, %v6219_v26 }
 0x455   : > { %7021 = vpow2.f32 %v6155_v63  ;;  %v6156_v2 = vmul.f32 -1.442695, %v11055_v58  ;;  %v5373_v17 = vadd.f32 %v10627_v6, %v5305_v35  ;;  %v6222_v43 = vclamps-f32 %v11055_v58, 1.0 }
 0x456   : > { %v5633_v44 = vadd.f32 %v11103_v20, %v5569_v36 }
 0x457   : > { %v7012_v0 = vpop.eup %7011  ;;  %v4491_v3 = vpop.f32.mrb[12].mxu0  ;;  %7023 = vpow2.f32 %v6156_v2  ;;  %v5699_v61 = vsel %vm5668_vm9, %v5629_v19, %v5373_v17  ;;  %v5570_v19 = vmul.f32 %v11090_v25, %v6220_v57 }
 0x458   : > { %v7014_v38 = vpop.eup %7013  ;;  %v5306_v62 = vmul.f32 %v7012_v0, %v10602_v49  ;;  %v4493_v29 = vpop.f32.mrb[13].mxu0  ;;  %v4492_v34 = vadd.f32 %v10979_v14, %v4491_v3  ;;  %5763 = vst.msk [vmem:[%s10651_s14 + $0xf0] sm:$0xff] %vm11840_vm6, %v5699_v61  ;;  %vm11854_vm6 = vmmov %vm11822_vm0 }
 0x459   : > { %v5113_v50 = vadd.f32 1.0, %v7014_v38  ;;  %v11066_v40 = vpop.f32.mrb[12].mxu1  ;;  %v4494_v48 = vpop.f32.mrb[14].mxu0 }
 0x45a   : > { %v7016_v32 = vpop.eup %7015  ;;  %v5374_v49 = vadd.f32 %v10627_v6, %v5306_v62  ;;  %v4798_v31 = vpop.f32.mrb[13].mxu1  ;;  %v4495_v4 = vadd.f32 %v10979_v14, %v4494_v48  ;;  %v11076_v24 = vadd.f32 %v11011_v27, %v4492_v34  ;;  %v6221_v48 = vclamps-f32 %v11047_v13, 1.0 }
 0x45b   : > { %v4496_v60 = vpop.f32.mrb[15].mxu0  ;;  %7025 = vrcp.f32 %v5113_v50  ;;  %v5114_v8 = vadd.f32 1.0, %v7016_v32  ;;  %v11078_v5 = vpop.f32.mrb[14].mxu1 }
 0x45c   : > { %v5700_v51 = vsel %vm5668_vm9, %v5630_v56, %v5374_v49  ;;  %v11083_v6 = vadd.f32 %v11021_v37, %v4495_v4  ;;  %v4801_v33 = vpop.f32.mrb[15].mxu1  ;;  %v6157_v27 = vmul.f32 -1.442695, %v11076_v24  ;;  %v7018_v45 = vpop.eup %7017  ;;  %v5634_v49 = vadd.f32 %v11103_v20, %v5570_v19 }
 0x45d   : > { %5764 = vst.msk [vmem:[%s10651_s14 + $0xf8] sm:$0xff] %vm11841_vm13, %v5700_v51  ;;  %7027 = vrcp.f32 %v5114_v8  ;;  %v7020_v37 = vpop.eup %7019  ;;  %v5307_v22 = vmul.f32 %v11090_v25, %v7018_v45  ;;  %vm11855_vm13 = vmmov %vm11822_vm0 }
 0x45e   : > { %v6158_v47 = vmul.f32 -1.442695, %v11083_v6  ;;  %7029 = vpow2.f32 %v6157_v27  ;;  %v5308_v23 = vmul.f32 %v11090_v25, %v7020_v37 }
 0x45f   : > { %v7022_v42 = vpop.eup %7021  ;;  %v5375_v46 = vadd.f32 %v11103_v20, %v5307_v22  ;;  %v5571_v22 = vmul.f32 %v11090_v25, %v6221_v48 }
 0x460   : > { %v4499_v53 = vpop.f32.mrb[16].mxu0  ;;  %7031 = vpow2.f32 %v6158_v47  ;;  %v5115_v41 = vadd.f32 1.0, %v7022_v42  ;;  %v5376_v16 = vadd.f32 %v11103_v20, %v5308_v23  ;;  %v5572_v23 = vmul.f32 %v11090_v25, %v6222_v43 }
 0x461   : > { %v4500_v15 = vadd.f32 %v10979_v14, %v4499_v53  ;;  %v4501_v7 = vpop.f32.mrb[17].mxu0  ;;  %v7024_v10 = vpop.eup %7023  ;;  %v5701_v12 = vsel %vm5668_vm9, %v5631_v30, %v5375_v46 }
 0x462   : > { %v11108_v39 = vpop.f32.mrb[16].mxu1  ;;  %v4502_v59 = vpop.f32.mrb[18].mxu0  ;;  %7033 = vrcp.f32 %v5115_v41  ;;  %v5116_v35 = vadd.f32 1.0, %v7024_v10  ;;  %5765 = vst.msk [vmem:[%s10651_s14 + $0x100] sm:$0xff] %vm11842_vm7, %v5701_v12  ;;  %v5702_v0 = vsel %vm5668_vm9, %v5632_v21, %v5376_v16  ;;  %v5635_v41 = vadd.f32 %v11103_v20, %v5571_v22  ;;  %vm11856_vm7 = vmmov %vm11822_vm0 }
 0x463   : > { %v11113_v52 = vadd.f32 %v11042_v11, %v4500_v15  ;;  %v4806_v63 = vpop.f32.mrb[17].mxu1  ;;  %v4503_v9 = vadd.f32 %v10979_v14, %v4502_v59  ;;  %v4504_v55 = vpop.f32.mrb[19].mxu0  ;;  %5766 = vst.msk [vmem:[%s10651_s14 + $0x108] sm:$0xff] %vm11843_vm8, %v5702_v0  ;;  %v5636_v16 = vadd.f32 %v11103_v20, %v5572_v23  ;;  %v6223_v21 = vclamps-f32 %v11076_v24, 1.0  ;;  %vm11857_vm8 = vmmov %vm11822_vm0 }
 0x464   : > { %v11119_v2 = vpop.f32.mrb[18].mxu1  ;;  %7035 = vrcp.f32 %v5116_v35 }
 0x465   : > { %v6159_v11 = vmul.f32 -1.442695, %v11113_v52  ;;  %v11127_v3 = vadd.f32 %v11050_v28, %v4503_v9  ;;  %v4809_v38 = vpop.f32.mrb[19].mxu1  ;;  %v7026_v17 = vpop.eup %7025  ;;  %v6225_v43 = vclamps-f32 %v11113_v52, 1.0 }
 0x466   : > { %v5309_v62 = vmul.f32 %v11090_v25, %v7026_v17 }
 0x467   : > { %7037 = vpow2.f32 %v6159_v11  ;;  %v6160_v29 = vmul.f32 -1.442695, %v11127_v3  ;;  %v7028_v56 = vpop.eup %7027  ;;  %v6224_v11 = vclamps-f32 %v11083_v6, 1.0 }
 0x468   : > { %v4507_v50 = vpop.f32.mrb[20].mxu0  ;;  %v5377_v34 = vadd.f32 %v11103_v20, %v5309_v62  ;;  %v5310_v28 = vmul.f32 %v11090_v25, %v7028_v56  ;;  %v7030_v61 = vpop.eup %7029 }
 0x469   : > { %7039 = vpow2.f32 %v6160_v29  ;;  %v4509_v32 = vpop.f32.mrb[21].mxu0  ;;  %v4508_v31 = vadd.f32 %v10979_v14, %v4507_v50  ;;  %v5117_v33 = vadd.f32 1.0, %v7030_v61  ;;  %v5573_v50 = vmul.f32 %v11090_v25, %v6223_v21 }
 0x46a   : > { %v4510_v60 = vpop.f32.mrb[22].mxu0  ;;  %v7032_v8 = vpop.eup %7031  ;;  %v5703_v51 = vsel %vm5668_vm9, %v5633_v44, %v5377_v34  ;;  %v5378_v13 = vadd.f32 %v11103_v20, %v5310_v28 }
 0x46b   : > { %v11141_v4 = vpop.f32.mrb[20].mxu1  ;;  %v4511_v27 = vadd.f32 %v10979_v14, %v4510_v60  ;;  %v4512_v45 = vpop.f32.mrb[23].mxu0  ;;  %5767 = vst.msk [vmem:[%s10651_s14 + $0x110] sm:$0xff] %vm11844_vm10, %v5703_v51  ;;  %v5118_v58 = vadd.f32 1.0, %v7032_v8  ;;  %v11150_v1 = vadd.f32 %v11066_v40, %v4508_v31  ;;  %7041 = vrcp.f32 %v5117_v33  ;;  %vm11858_vm10 = vmmov %vm11822_vm0 }
 0x46c   : > { %v4814_v18 = vpop.f32.mrb[21].mxu1  ;;  %v5704_v37 = vsel %vm5668_vm9, %v5634_v49, %v5378_v13  ;;  %v7034_v42 = vpop.eup %7033  ;;  %v5637_v13 = vadd.f32 %v11103_v20, %v5573_v50  ;;  %v6226_v33 = vclamps-f32 %v11127_v3, 1.0 }
 0x46d   : > { %v11152_v47 = vpop.f32.mrb[22].mxu1  ;;  %v11158_v26 = vadd.f32 %v11078_v5, %v4511_v27  ;;  %5768 = vst.msk [vmem:[%s10651_s14 + $0x118] sm:$0xff] %vm11845_vm11, %v5704_v37  ;;  %7043 = vrcp.f32 %v5118_v58  ;;  %v6161_v40 = vmul.f32 -1.442695, %v11150_v1  ;;  %v5311_v15 = vmul.f32 %v11090_v25, %v7034_v42  ;;  %vm11859_vm11 = vmmov %vm11822_vm0 }
 0x46e   : > { %v4817_v53 = vpop.f32.mrb[23].mxu1  ;;  %v7036_v46 = vpop.eup %7035 }
 0x46f   : > { %v6162_v7 = vmul.f32 -1.442695, %v11158_v26  ;;  %7045 = vpow2.f32 %v6161_v40  ;;  %v5379_v5 = vadd.f32 %v11103_v20, %v5311_v15  ;;  %v5312_v59 = vmul.f32 %v11090_v25, %v7036_v46 }
 0x470   : > { %v4515_v30 = vpop.f32.mrb[24].mxu0 }
 0x471   : > { %v7038_v57 = vpop.eup %7037  ;;  %7047 = vpow2.f32 %v6162_v7  ;;  %v4517_v10 = vpop.f32.mrb[25].mxu0  ;;  %v4516_v9 = vadd.f32 %v10979_v14, %v4515_v30  ;;  %v5705_v35 = vsel %vm5668_vm9, %v5635_v41, %v5379_v5  ;;  %v5380_v0 = vadd.f32 %v11103_v20, %v5312_v59 }
 0x472   : > { %v5119_v63 = vadd.f32 1.0, %v7038_v57  ;;  %v4518_v12 = vpop.f32.mrb[26].mxu0  ;;  %5769 = vst.msk [vmem:[%s10651_s14 + $0x120] sm:$0xff] %vm11846_vm12, %v5705_v35  ;;  %v5575_v7 = vmul.f32 %v11090_v25, %v6225_v43  ;;  %v5576_v57 = vmul.f32 %v11090_v25, %v6226_v33  ;;  %vm11860_vm12 = vmmov %vm11822_vm0 }
 0x473   : > { %v11172_v55 = vpop.f32.mrb[24].mxu1  ;;  %v7040_v36 = vpop.eup %7039  ;;  %v4519_v17 = vadd.f32 %v10979_v14, %v4518_v12  ;;  %v11182_v62 = vadd.f32 %v11108_v39, %v4516_v9  ;;  %v5706_v56 = vsel %vm5668_vm9, %v5636_v16, %v5380_v0  ;;  %v5574_v39 = vmul.f32 %v11090_v25, %v6224_v11 }
 0x474   : > { %v4822_v38 = vpop.f32.mrb[25].mxu1  ;;  %v4520_v19 = vpop.f32.mrb[27].mxu0  ;;  %7049 = vrcp.f32 %v5119_v63  ;;  %v5120_v24 = vadd.f32 1.0, %v7040_v36  ;;  %5770 = vst.msk [vmem:[%s10651_s14 + $0x128] sm:$0xff] %vm11847_vm3, %v5706_v56  ;;  %v5639_v63 = vadd.f32 %v11103_v20, %v5575_v7  ;;  %v6227_v12 = vclamps-f32 %v11150_v1, 1.0  ;;  %vm11861_vm3 = vmmov %vm11822_vm0 }
 0x475   : > { %v11184_v29 = vpop.f32.mrb[26].mxu1  ;;  %v11189_v44 = vadd.f32 %v11119_v2, %v4519_v17  ;;  %v6163_v34 = vmul.f32 -1.442695, %v11182_v62  ;;  %v7042_v28 = vpop.eup %7041  ;;  %v5638_v58 = vadd.f32 %v11103_v20, %v5574_v39 }
 0x476   : > { %v4825_v6 = vpop.f32.mrb[27].mxu1  ;;  %7051 = vrcp.f32 %v5120_v24  ;;  %v5313_v61 = vmul.f32 %v11090_v25, %v7042_v28  ;;  %v6228_v24 = vclamps-f32 %v11158_v26, 1.0 }
 0x477   : > { %v6164_v48 = vmul.f32 -1.442695, %v11189_v44  ;;  %v7044_v32 = vpop.eup %7043  ;;  %7053 = vpow2.f32 %v6163_v34 }
 0x478   : > { %v5314_v2 = vmul.f32 %v11090_v25, %v7044_v32  ;;  %v5381_v51 = vadd.f32 %v11103_v20, %v5313_v61  ;;  %v5577_v32 = vmul.f32 %v11090_v25, %v6227_v12  ;;  %v5578_v43 = vmul.f32 %v11090_v25, %v6228_v24 }
 0x479   : > { %v4523_v49 = vpop.f32.mrb[28].mxu0  ;;  %7055 = vpow2.f32 %v6164_v48  ;;  %v7046_v8 = vpop.eup %7045 }
 0x47a   : > { %v4524_v31 = vadd.f32 %v10979_v14, %v4523_v49  ;;  %v4525_v60 = vpop.f32.mrb[29].mxu0  ;;  %v5382_v45 = vadd.f32 %v11103_v20, %v5314_v2  ;;  %v5121_v52 = vadd.f32 1.0, %v7046_v8  ;;  %v5707_v42 = vsel %vm5668_vm9, %v5637_v13, %v5381_v51 }
 0x47b   : > { %v4526_v18 = vpop.f32.mrb[30].mxu0  ;;  %v7048_v27 = vpop.eup %7047  ;;  %5771 = vst.msk [vmem:[%s10651_s14 + $0x130] sm:$0xff] %vm11848_vm15, %v5707_v42  ;;  %v5641_v33 = vadd.f32 %v11103_v20, %v5577_v32  ;;  %v6230_v42 = vclamps-f32 %v11189_v44, 1.0  ;;  %vm11862_vm15 = vmmov %vm11822_vm0 }
 0x47c   : > { %v11207_v37 = vadd.f32 %v11141_v4, %v4524_v31  ;;  %v4528_v53 = vpop.f32.mrb[31].mxu0  ;;  %v5122_v23 = vadd.f32 1.0, %v7048_v27  ;;  %v4527_v3 = vadd.f32 %v10979_v14, %v4526_v18  ;;  %v5708_v15 = vsel %vm5668_vm9, %v5638_v58, %v5382_v45 }
 0x47d   : > { %v11209_v22 = vpop.f32.mrb[28].mxu1  ;;  %7057 = vrcp.f32 %v5121_v52  ;;  %5772 = vst.msk [vmem:[%s10651_s14 + $0x138] sm:$0xff] %vm11849_vm2, %v5708_v15  ;;  %v6229_v27 = vclamps-f32 %v11182_v62, 1.0  ;;  %v5642_v53 = vadd.f32 %v11103_v20, %v5578_v43  ;;  %vm11863_vm2 = vmmov %vm11822_vm0 }
 0x47e   : > { %v4830_v40 = vpop.f32.mrb[29].mxu1  ;;  %v6165_v4 = vmul.f32 -1.442695, %v11207_v37  ;;  %v7050_v30 = vpop.eup %7049  ;;  %7059 = vrcp.f32 %v5122_v23  ;;  %v11226_v5 = vadd.f32 %v11152_v47, %v4527_v3  ;;  %v5640_v47 = vadd.f32 %v11103_v20, %v5576_v57 }
 0x47f   : > { %v11220_v46 = vpop.f32.mrb[30].mxu1  ;;  %v5315_v59 = vmul.f32 %v11090_v25, %v7050_v30 }
 0x480   : > { %v4833_v41 = vpop.f32.mrb[31].mxu1  ;;  %7061 = vpow2.f32 %v6165_v4  ;;  %v7052_v10 = vpop.eup %7051  ;;  %v6166_v16 = vmul.f32 -1.442695, %v11226_v5 }
 0x481   : > { %v5383_v21 = vadd.f32 %v11103_v20, %v5315_v59  ;;  %v5316_v9 = vmul.f32 %v11090_v25, %v7052_v10  ;;  %v7054_v35 = vpop.eup %7053  ;;  %v5579_v41 = vmul.f32 %v11090_v25, %v6229_v27 }
 0x482   : > { %7063 = vpow2.f32 %v6166_v16  ;;  %v5123_v56 = vadd.f32 1.0, %v7054_v35 }
 0x483   : > { %v4531_v36 = vpop.f32.mrb[32].mxu0  ;;  %v7056_v38 = vpop.eup %7055  ;;  %v5709_v17 = vsel %vm5668_vm9, %v5639_v63, %v5383_v21  ;;  %v5384_v19 = vadd.f32 %v11103_v20, %v5316_v9  ;;  %v5580_v21 = vmul.f32 %v11090_v25, %v6230_v42 }
 0x484   : > { %v4532_v0 = vadd.f32 %v10979_v14, %v4531_v36  ;;  %v4533_v11 = vpop.f32.mrb[33].mxu0  ;;  %5773 = vst.msk [vmem:[%s10651_s14 + $0x140] sm:$0xff] %vm11850_vm1, %v5709_v17  ;;  %v5124_v1 = vadd.f32 1.0, %v7056_v38  ;;  %7065 = vrcp.f32 %v5123_v56  ;;  %v5643_v17 = vadd.f32 %v11103_v20, %v5579_v41  ;;  %vm11864_vm1 = vmmov %vm11822_vm0 }
 0x485   : > { %v4534_v6 = vpop.f32.mrb[34].mxu0  ;;  %v5710_v48 = vsel %vm5668_vm9, %v5640_v47, %v5384_v19  ;;  %v5644_v56 = vadd.f32 %v11103_v20, %v5580_v21 }
 0x486   : > { %v11243_v50 = vadd.f32 %v11172_v55, %v4532_v0  ;;  %v11245_v34 = vpop.f32.mrb[32].mxu1  ;;  %v4535_v28 = vadd.f32 %v10979_v14, %v4534_v6  ;;  %v4536_v39 = vpop.f32.mrb[35].mxu0  ;;  %5774 = vst.msk [vmem:[%s10651_s14 + $0x148] sm:$0xff] %vm11822_vm0, %v5710_v48  ;;  %7067 = vrcp.f32 %v5124_v1  ;;  %v6231_v0 = vclamps-f32 %v11207_v37, 1.0 }
 0x487   : > { %v4838_v26 = vpop.f32.mrb[33].mxu1  ;;  %v7058_v2 = vpop.eup %7057 }
 0x488   : > { %v6167_v61 = vmul.f32 -1.442695, %v11243_v50  ;;  %v11255_v55 = vadd.f32 %v11184_v29, %v4535_v28  ;;  %v11257_v49 = vpop.f32.mrb[34].mxu1  ;;  %v7060_v60 = vpop.eup %7059  ;;  %v5317_v8 = vmul.f32 %v11090_v25, %v7058_v2  ;;  %v5581_v26 = vmul.f32 %v11090_v25, %v6231_v0 }
 0x489   : > { %v4841_v31 = vpop.f32.mrb[35].mxu1  ;;  %v5318_v18 = vmul.f32 %v11090_v25, %v7060_v60  ;;  %v6233_v42 = vclamps-f32 %v11243_v50, 1.0 }
 0x48a   : > { %7069 = vpow2.f32 %v6167_v61  ;;  %v6168_v51 = vmul.f32 -1.442695, %v11255_v55  ;;  %v7062_v13 = vpop.eup %7061  ;;  %v5385_v29 = vadd.f32 %v11103_v20, %v5317_v8 }
 0x48b   : > { %v5125_v45 = vadd.f32 1.0, %v7062_v13  ;;  %v5386_v52 = vadd.f32 %v11103_v20, %v5318_v18 }
 0x48c   : > { %7071 = vpow2.f32 %v6168_v51  ;;  %v4539_v58 = vpop.f32.mrb[36].mxu0  ;;  %v7064_v3 = vpop.eup %7063  ;;  %v5711_v15 = vsel %vm5668_vm9, %v5641_v33, %v5385_v29 }
 0x48d   : > { %v4540_v23 = vadd.f32 %v10979_v14, %v4539_v58  ;;  %v4541_v40 = vpop.f32.mrb[37].mxu0  ;;  %7073 = vrcp.f32 %v5125_v45  ;;  %5775 = vst.msk [vmem:[%s10651_s14 + $0x150] sm:$0xff] %vm11851_vm14, %v5711_v15  ;;  %v5712_v62 = vsel %vm5668_vm9, %v5642_v53, %v5386_v52  ;;  %v5126_v4 = vadd.f32 1.0, %v7064_v3  ;;  %vm11865_vm14 = vmmov %vm11822_vm0 }
 0x48e   : > { %v4542_v7 = vpop.f32.mrb[38].mxu0  ;;  %5776 = vst.msk [vmem:[%s10651_s14 + $0x158] sm:$0xff] %vm11852_vm4, %v5712_v62  ;;  %v7066_v16 = vpop.eup %7065  ;;  %v5645_v58 = vadd.f32 %v11103_v20, %v5581_v26  ;;  %vm11866_vm4 = vmmov %vm11822_vm0 }
 0x48f   : > { %v11277_v30 = vadd.f32 %v11209_v22, %v4540_v23  ;;  %v4544_v44 = vpop.f32.mrb[39].mxu0  ;;  %v4543_v10 = vadd.f32 %v10979_v14, %v4542_v7  ;;  %7075 = vrcp.f32 %v5126_v4  ;;  %v5319_v12 = vmul.f32 %v11090_v25, %v7066_v16 }
 0x490   : > { %v11279_v57 = vpop.f32.mrb[36].mxu1  ;;  %v7068_v22 = vpop.eup %7067  ;;  %v6234_v7 = vclamps-f32 %v11255_v55, 1.0 }
 0x491   : > { %v4846_v59 = vpop.f32.mrb[37].mxu1  ;;  %v6169_v63 = vmul.f32 -1.442695, %v11277_v30  ;;  %v11291_v36 = vadd.f32 %v11220_v46, %v4543_v10  ;;  %v5320_v47 = vmul.f32 %v11090_v25, %v7068_v22  ;;  %v5387_v38 = vadd.f32 %v11103_v20, %v5319_v12 }
 0x492   : > { %v11287_v9 = vpop.f32.mrb[38].mxu1  ;;  %v6232_v46 = vclamps-f32 %v11226_v5, 1.0  ;;  %v5583_v10 = vmul.f32 %v11090_v25, %v6233_v42  ;;  %v5584_v0 = vmul.f32 %v11090_v25, %v6234_v7 }
 0x493   : > { %v4849_v35 = vpop.f32.mrb[39].mxu1  ;;  %7077 = vpow2.f32 %v6169_v63  ;;  %v6170_v19 = vmul.f32 -1.442695, %v11291_v36  ;;  %v5388_v24 = vadd.f32 %v11103_v20, %v5320_v47  ;;  %v5713_v37 = vsel %vm5668_vm9, %v5643_v17, %v5387_v38 }
 0x494   : > { %v7070_v11 = vpop.eup %7069  ;;  %5777 = vst.msk [vmem:[%s10651_s14 + $0x160] sm:$0xff] %vm11853_vm5, %v5713_v37  ;;  %v5582_v13 = vmul.f32 %v11090_v25, %v6232_v46  ;;  %vm11867_vm5 = vmmov %vm11822_vm0 }
 0x495   : > { %v5127_v6 = vadd.f32 1.0, %v7070_v11  ;;  %7079 = vpow2.f32 %v6170_v19  ;;  %v5714_v32 = vsel %vm5668_vm9, %v5644_v56, %v5388_v24  ;;  %v5647_v56 = vadd.f32 %v11103_v20, %v5583_v10 }
 0x496   : > { %v7072_v28 = vpop.eup %7071  ;;  %5778 = vst.msk [vmem:[%s10651_s14 + $0x168] sm:$0xff] %vm11854_vm6, %v5714_v32  ;;  %v5646_v3 = vadd.f32 %v11103_v20, %v5582_v13  ;;  %vm11868_vm6 = vmmov %vm11822_vm0 }
 0x497   : > { %v4547_v1 = vpop.f32.mrb[40].mxu0  ;;  %7081 = vrcp.f32 %v5127_v6  ;;  %v5128_v61 = vadd.f32 1.0, %v7072_v28  ;;  %v7074_v2 = vpop.eup %7073 }
 0x498   : > { %v4548_v39 = vadd.f32 %v10979_v14, %v4547_v1  ;;  %v4549_v48 = vpop.f32.mrb[41].mxu0  ;;  %v5321_v51 = vmul.f32 %v11090_v25, %v7074_v2  ;;  %v6235_v1 = vclamps-f32 %v11277_v30, 1.0  ;;  %v6236_v2 = vclamps-f32 %v11291_v36, 1.0 }
 0x499   : > { %v4550_v5 = vpop.f32.mrb[42].mxu0  ;;  %7083 = vrcp.f32 %v5128_v61  ;;  %v5648_v48 = vadd.f32 %v11103_v20, %v5584_v0 }
 0x49a   : > { %v11312_v43 = vadd.f32 %v11245_v34, %v4548_v39  ;;  %v11314_v31 = vpop.f32.mrb[40].mxu1  ;;  %v4551_v60 = vadd.f32 %v10979_v14, %v4550_v5  ;;  %v4552_v8 = vpop.f32.mrb[43].mxu0  ;;  %v5389_v45 = vadd.f32 %v11103_v20, %v5321_v51  ;;  %v5585_v51 = vmul.f32 %v11090_v25, %v6235_v1 }
 0x49b   : > { %v4854_v33 = vpop.f32.mrb[41].mxu1  ;;  %v7076_v34 = vpop.eup %7075 }
 0x49c   : > { %v6171_v18 = vmul.f32 -1.442695, %v11312_v43  ;;  %v11321_v29 = vadd.f32 %v11257_v49, %v4551_v60  ;;  %v11323_v27 = vpop.f32.mrb[42].mxu1  ;;  %v5322_v53 = vmul.f32 %v11090_v25, %v7076_v34  ;;  %v5715_v49 = vsel %vm5668_vm9, %v5645_v58, %v5389_v45 }
 0x49d   : > { %v4857_v52 = vpop.f32.mrb[43].mxu1  ;;  %v7078_v40 = vpop.eup %7077  ;;  %5779 = vst.msk [vmem:[%s10651_s14 + $0x170] sm:$0xff] %vm11855_vm13, %v5715_v49  ;;  %vm11869_vm13 = vmmov %vm11822_vm0 }
 0x49e   : > { %7085 = vpow2.f32 %v6171_v18  ;;  %v6172_v23 = vmul.f32 -1.442695, %v11321_v29  ;;  %v5390_v15 = vadd.f32 %v11103_v20, %v5322_v53  ;;  %v5129_v62 = vadd.f32 1.0, %v7078_v40 }
 0x49f   : > { %v7080_v41 = vpop.eup %7079 }
 0x4a0   : > { %7087 = vpow2.f32 %v6172_v23  ;;  %v4555_v4 = vpop.f32.mrb[44].mxu0  ;;  %v5716_v59 = vsel %vm5668_vm9, %v5646_v3, %v5390_v15  ;;  %v5130_v63 = vadd.f32 1.0, %v7080_v41  ;;  %v5586_v23 = vmul.f32 %v11090_v25, %v6236_v2 }
 0x4a1   : > { %v4556_v50 = vadd.f32 %v10979_v14, %v4555_v4  ;;  %v4557_v44 = vpop.f32.mrb[45].mxu0  ;;  %7089 = vrcp.f32 %v5129_v62  ;;  %v7082_v21 = vpop.eup %7081  ;;  %5780 = vst.msk [vmem:[%s10651_s14 + $0x178] sm:$0xff] %vm11856_vm7, %v5716_v59  ;;  %vm11870_vm7 = vmmov %vm11822_vm0 }
 0x4a2   : > { %v4558_v16 = vpop.f32.mrb[46].mxu0  ;;  %v5323_v47 = vmul.f32 %v11090_v25, %v7082_v21  ;;  %7091 = vrcp.f32 %v5130_v63  ;;  %v6238_v21 = vclamps-f32 %v11321_v29, 1.0 }
 0x4a3   : > { %v11344_v55 = vadd.f32 %v11279_v57, %v4556_v50  ;;  %v4559_v12 = vadd.f32 %v10979_v14, %v4558_v16  ;;  %v4560_v35 = vpop.f32.mrb[47].mxu0  ;;  %v7084_v38 = vpop.eup %7083  ;;  %v5650_v16 = vadd.f32 %v11103_v20, %v5586_v23 }
 0x4a4   : > { %v11346_v22 = vpop.f32.mrb[44].mxu1  ;;  %v5391_v24 = vadd.f32 %v11103_v20, %v5323_v47  ;;  %v5324_v46 = vmul.f32 %v11090_v25, %v7084_v38  ;;  %v5588_v1 = vmul.f32 %v11090_v25, %v6238_v21 }
 0x4a5   : > { %v4862_v11 = vpop.f32.mrb[45].mxu1  ;;  %v6173_v17 = vmul.f32 -1.442695, %v11344_v55  ;;  %v11353_v19 = vadd.f32 %v11287_v9, %v4559_v12 }
 0x4a6   : > { %v11355_v57 = vpop.f32.mrb[46].mxu1  ;;  %v5717_v9 = vsel %vm5668_vm9, %v5647_v56, %v5391_v24  ;;  %v5392_v39 = vadd.f32 %v11103_v20, %v5324_v46 }
 0x4a7   : > { %v4865_v6 = vpop.f32.mrb[47].mxu1  ;;  %7093 = vpow2.f32 %v6173_v17  ;;  %v6174_v28 = vmul.f32 -1.442695, %v11353_v19  ;;  %5781 = vst.msk [vmem:[%s10651_s14 + $0x180] sm:$0xff] %vm11857_vm8, %v5717_v9  ;;  %vm11871_vm8 = vmmov %vm11822_vm0 }
 0x4a8   : > { %v7086_v37 = vpop.eup %7085  ;;  %v5718_v30 = vsel %vm5668_vm9, %v5648_v48, %v5392_v39 }
 0x4a9   : > { %v4563_v32 = vpop.f32.mrb[48].mxu0  ;;  %v5131_v26 = vadd.f32 1.0, %v7086_v37  ;;  %7095 = vpow2.f32 %v6174_v28  ;;  %5782 = vst.msk [vmem:[%s10651_s14 + $0x188] sm:$0xff] %vm11858_vm10, %v5718_v30  ;;  %vm11872_vm10 = vmmov %vm11822_vm0 }
 0x4aa   : > { %v4565_v61 = vpop.f32.mrb[49].mxu0  ;;  %v7088_v5 = vpop.eup %7087  ;;  %v4564_v60 = vadd.f32 %v10979_v14, %v4563_v32 }
 0x4ab   : > { %v4566_v8 = vpop.f32.mrb[50].mxu0  ;;  %7097 = vrcp.f32 %v5131_v26  ;;  %v5132_v13 = vadd.f32 1.0, %v7088_v5  ;;  %v7090_v45 = vpop.eup %7089  ;;  %v6239_v26 = vclamps-f32 %v11344_v55, 1.0  ;;  %v11429_v61 = vld [vmem:[%s11612_s7] ss:$0 sm:$0xff]  ;;  %v6240_v55 = vclamps-f32 %v11353_v19, 1.0 }
 0x4ac   : > { %v11375_v33 = vpop.f32.mrb[48].mxu1  ;;  %v4567_v18 = vadd.f32 %v10979_v14, %v4566_v8  ;;  %v4568_v34 = vpop.f32.mrb[51].mxu0  ;;  %v11379_v58 = vadd.f32 %v11314_v31, %v4564_v60  ;;  %v5325_v36 = vmul.f32 %v11090_v25, %v7090_v45  ;;  %v5649_v31 = vadd.f32 %v11103_v20, %v5585_v51 }
 0x4ad   : > { %v4870_v52 = vpop.f32.mrb[49].mxu1  ;;  %7099 = vrcp.f32 %v5132_v13  ;;  %v7092_v3 = vpop.eup %7091  ;;  %v5652_v51 = vadd.f32 %v11103_v20, %v5588_v1 }
 0x4ae   : > { %v11383_v53 = vadd.f32 %v11323_v27, %v4567_v18  ;;  %v11385_v42 = vpop.f32.mrb[50].mxu1  ;;  %v6175_v40 = vmul.f32 -1.442695, %v11379_v58  ;;  %v5393_v15 = vadd.f32 %v11103_v20, %v5325_v36  ;;  %v5326_v62 = vmul.f32 %v11090_v25, %v7092_v3 }
 0x4af   : > { %v4873_v49 = vpop.f32.mrb[51].mxu1  ;;  %v6237_v27 = vclamps-f32 %v11312_v43, 1.0 }
 0x4b0   : > { %v6176_v7 = vmul.f32 -1.442695, %v11383_v53  ;;  %7101 = vpow2.f32 %v6175_v40  ;;  %v5719_v44 = vsel %vm5668_vm9, %v5649_v31, %v5393_v15  ;;  %v5394_v10 = vadd.f32 %v11103_v20, %v5326_v62 }
 0x4b1   : > { %v4571_v4 = vpop.f32.mrb[52].mxu0  ;;  %v7094_v50 = vpop.eup %7093  ;;  %5783 = vst.msk [vmem:[%s10651_s14 + $0x190] sm:$0xff] %vm11859_vm11, %v5719_v44  ;;  %v5587_v17 = vmul.f32 %v11090_v25, %v6237_v27  ;;  %v5589_v49 = vmul.f32 %v11090_v25, %v6239_v26  ;;  %vm11873_vm11 = vmmov %vm11822_vm0 }
 0x4b2   : > { %7103 = vpow2.f32 %v6176_v7  ;;  %v4572_v41 = vadd.f32 %v10979_v14, %v4571_v4  ;;  %v4573_v59 = vpop.f32.mrb[53].mxu0  ;;  %v5133_v43 = vadd.f32 1.0, %v7094_v50  ;;  %v5720_v38 = vsel %vm5668_vm9, %v5650_v16, %v5394_v10 }
 0x4b3   : > { %v4574_v63 = vpop.f32.mrb[54].mxu0  ;;  %v7096_v12 = vpop.eup %7095  ;;  %5784 = vst.msk [vmem:[%s10651_s14 + $0x198] sm:$0xff] %vm11860_vm12, %v5720_v38  ;;  %v5651_v48 = vadd.f32 %v11103_v20, %v5587_v17  ;;  %v5653_v44 = vadd.f32 %v11103_v20, %v5589_v49  ;;  %v6241_v10 = vclamps-f32 %v11379_v58, 1.0  ;;  %vm11874_vm12 = vmmov %vm11822_vm0 }
 0x4b4   : > { %v11403_v35 = vadd.f32 %v11346_v22, %v4572_v41  ;;  %v11405_v47 = vpop.f32.mrb[52].mxu1  ;;  %v4575_v0 = vadd.f32 %v10979_v14, %v4574_v63  ;;  %v4576_v11 = vpop.f32.mrb[55].mxu0  ;;  %7105 = vrcp.f32 %v5133_v43  ;;  %v5134_v24 = vadd.f32 1.0, %v7096_v12 }
 0x4b5   : > { %v4878_v56 = vpop.f32.mrb[53].mxu1  ;;  %v7098_v29 = vpop.eup %7097  ;;  %v6242_v11 = vclamps-f32 %v11383_v53, 1.0  ;;  %v5591_v53 = vmul.f32 %v11090_v25, %v6241_v10 }
 0x4b6   : > { %v6177_v46 = vmul.f32 -1.442695, %v11403_v35  ;;  %v11415_v22 = vadd.f32 %v11355_v57, %v4575_v0  ;;  %v11417_v6 = vpop.f32.mrb[54].mxu1  ;;  %v5327_v14 = vmul.f32 %v11090_v25, %v7098_v29  ;;  %7107 = vrcp.f32 %v5134_v24 }
 0x4b7   : > { %v4881_v28 = vpop.f32.mrb[55].mxu1  ;;  %v7100_v37 = vpop.eup %7099  ;;  %v5592_v1 = vmul.f32 %v11090_v25, %v6242_v11 }
 0x4b8   : > { %7109 = vpow2.f32 %v6177_v46  ;;  %v6178_v9 = vmul.f32 -1.442695, %v11415_v22  ;;  %v5395_v39 = vadd.f32 %v11103_v20, %v5327_v14  ;;  %v5328_v57 = vmul.f32 %v11090_v25, %v7100_v37 }
 0x4b9   : > { %v4579_v32 = vpop.f32.mrb[56].mxu0  ;;  %v6243_v28 = vclamps-f32 %v11403_v35, 1.0  ;;  %v5655_v35 = vadd.f32 %v11103_v20, %v5591_v53 }
 0x4ba   : > { %7111 = vpow2.f32 %v6178_v9  ;;  %v4580_v5 = vadd.f32 %v11429_v61, %v4579_v32  ;;  %v4581_v30 = vpop.f32.mrb[57].mxu0  ;;  %v7102_v2 = vpop.eup %7101  ;;  %v5721_v60 = vsel %vm5668_vm9, %v5651_v48, %v5395_v39  ;;  %v5396_v8 = vadd.f32 %v11103_v20, %v5328_v57 }
 0x4bb   : > { %v4582_v13 = vpop.f32.mrb[58].mxu0  ;;  %5785 = vst.msk [vmem:[%s10651_s14 + $0x1a0] sm:$0xff] %vm11861_vm3, %v5721_v60  ;;  %v5135_v34 = vadd.f32 1.0, %v7102_v2  ;;  %vm11875_vm3 = vmmov %vm11822_vm0 }
 0x4bc   : > { %v7104_v18 = vpop.eup %7103  ;;  %v11440_v45 = vadd.f32 %v11375_v33, %v4580_v5  ;;  %v4583_v52 = vadd.f32 %v11429_v61, %v4582_v13  ;;  %v4584_v36 = vpop.f32.mrb[59].mxu0  ;;  %v5722_v23 = vsel %vm5668_vm9, %v5652_v51, %v5396_v8  ;;  %v5590_v33 = vmul.f32 %v11090_v25, %v6240_v55 }
 0x4bd   : > { %v5136_v40 = vadd.f32 1.0, %v7104_v18  ;;  %5786 = vst.msk [vmem:[%s10651_s14 + $0x1a8] sm:$0xff] %vm11862_vm15, %v5722_v23  ;;  %7113 = vrcp.f32 %v5135_v34  ;;  %v6244_v5 = vclamps-f32 %v11415_v22, 1.0  ;;  %v5656_v51 = vadd.f32 %v11103_v20, %v5592_v1 }
 0x4be   : > { %v6179_v19 = vmul.f32 -1.442695, %v11440_v45  ;;  %v11450_v3 = vadd.f32 %v11385_v42, %v4583_v52  ;;  %v7106_v15 = vpop.eup %7105  ;;  %v5654_v59 = vadd.f32 %v11103_v20, %v5590_v33  ;;  %v5593_v55 = vmul.f32 %v11090_v25, %v6243_v28 }
 0x4bf   : > { %7115 = vrcp.f32 %v5136_v40  ;;  %v5329_v31 = vmul.f32 %v11090_v25, %v7106_v15  ;;  %v5594_v40 = vmul.f32 %v11090_v25, %v6244_v5 }
 0x4c0   : > { %7117 = vpow2.f32 %v6179_v19  ;;  %v6180_v7 = vmul.f32 -1.442695, %v11450_v3  ;;  %v7108_v62 = vpop.eup %7107  ;;  %v5657_v33 = vadd.f32 %v11103_v20, %v5593_v55 }
 0x4c1   : > { %v4587_v27 = vpop.f32.mrb[60].mxu0  ;;  %v5397_v50 = vadd.f32 %v11103_v20, %v5329_v31  ;;  %v5330_v42 = vmul.f32 %v11090_v25, %v7108_v62 }
 0x4c2   : > { %v7110_v4 = vpop.eup %7109  ;;  %7119 = vpow2.f32 %v6180_v7  ;;  %v4589_v41 = vpop.f32.mrb[61].mxu0  ;;  %v4588_v21 = vadd.f32 %v11429_v61, %v4587_v27  ;;  %v6245_v27 = vclamps-f32 %v11440_v45, 1.0 }
 0x4c3   : > { %v5137_v16 = vadd.f32 1.0, %v7110_v4  ;;  %v4590_v43 = vpop.f32.mrb[62].mxu0  ;;  %v5723_v12 = vsel %vm5668_vm9, %v5653_v44, %v5397_v50  ;;  %v5398_v0 = vadd.f32 %v11103_v20, %v5330_v42  ;;  %v5658_v42 = vadd.f32 %v11103_v20, %v5594_v40 }
 0x4c4   : > { %v7112_v63 = vpop.eup %7111  ;;  %v4591_v38 = vadd.f32 %v11429_v61, %v4590_v43  ;;  %v4592_v17 = vpop.f32.mrb[63].mxu0  ;;  %5787 = vst.msk [vmem:[%s10651_s14 + $0x1b0] sm:$0xff] %vm11863_vm2, %v5723_v12  ;;  %v11469_v24 = vadd.f32 %v11405_v47, %v4588_v21  ;;  %v6246_v41 = vclamps-f32 %v11450_v3, 1.0  ;;  %v5595_v11 = vmul.f32 %v11090_v25, %v6245_v27 }
 0x4c5   : > { %7121 = vrcp.f32 %v5137_v16  ;;  %v5138_v58 = vadd.f32 1.0, %v7112_v63  ;;  %v5724_v56 = vsel %vm5668_vm9, %v5654_v59, %v5398_v0  ;;  %v11535_v17 = vld [vmem:[%s11613_s8] ss:$0 sm:$0xff] }
 0x4c6   : > { %v11474_v29 = vadd.f32 %v11417_v6, %v4591_v38  ;;  %5788 = vst.msk [vmem:[%s10651_s14 + $0x1b8] sm:$0xff] %vm11864_vm1, %v5724_v56  ;;  %v6181_v46 = vmul.f32 -1.442695, %v11469_v24  ;;  %v5659_v1 = vadd.f32 %v11103_v20, %v5595_v11 }
 0x4c7   : > { %7123 = vrcp.f32 %v5138_v58  ;;  %v7114_v14 = vpop.eup %7113  ;;  %v5596_v58 = vmul.f32 %v11535_v17, %v6246_v41 }
 0x4c8   : > { %v6182_v47 = vmul.f32 -1.442695, %v11474_v29  ;;  %v5331_v9 = vmul.f32 %v11090_v25, %v7114_v14  ;;  %7125 = vpow2.f32 %v6181_v46 }
 0x4c9   : > { %v7116_v37 = vpop.eup %7115  ;;  %v4628_v6 = vpop.f32.mrb[192].mxu0 }
 0x4ca   : > { %v7118_v39 = vpop.eup %7117  ;;  %v5332_v48 = vmul.f32 %v11090_v25, %v7116_v37  ;;  %7127 = vpow2.f32 %v6182_v47  ;;  %v11486_v57 = vadd.f32 %v11429_v61, %v4628_v6  ;;  %v4630_v32 = vpop.f32.mrb[193].mxu0  ;;  %v5399_v26 = vadd.f32 %v11103_v20, %v5331_v9  ;;  %v7184_v37 = vld [vmem:[%s11613_s8 + $0x1] ss:$0 sm:$0xff] }
 0x4cb   : > { %v5139_v30 = vadd.f32 1.0, %v7118_v39  ;;  %v4631_v2 = vpop.f32.mrb[194].mxu0  ;;  %v5660_v9 = vadd.f32 %v7184_v37, %v5596_v58  ;;  %v6247_v6 = vclamps-f32 %v11469_v24, 1.0  ;;  %v6248_v32 = vclamps-f32 %v11474_v29, 1.0 }
 0x4cc   : > { %v7120_v60 = vpop.eup %7119  ;;  %v5400_v8 = vadd.f32 %v11103_v20, %v5332_v48  ;;  %v6119_v13 = vmul.f32 -1.442695, %v11486_v57  ;;  %v4633_v18 = vpop.f32.mrb[195].mxu0  ;;  %v5725_v34 = vsel %vm5668_vm9, %v5655_v35, %v5399_v26  ;;  %v11498_v22 = vadd.f32 %v11429_v61, %v4631_v2 }
 0x4cd   : > { %7129 = vrcp.f32 %v5139_v30  ;;  %v5140_v52 = vadd.f32 1.0, %v7120_v60  ;;  %5789 = vst.msk [vmem:[%s10651_s14 + $0x1c0] sm:$0xff] %vm11822_vm0, %v5725_v34  ;;  %v5597_v35 = vmul.f32 %v11535_v17, %v6247_v6  ;;  %v5598_v24 = vmul.f32 %v11535_v17, %v6248_v32 }
 0x4ce   : > { %v5726_v36 = vsel %vm5668_vm9, %v5656_v51, %v5400_v8  ;;  %7131 = vpow2.f32 %v6119_v13  ;;  %v6120_v49 = vmul.f32 -1.442695, %v11498_v22  ;;  %v6185_v30 = vclamps-f32 %v11486_v57, 1.0 }
 0x4cf   : > { %v7122_v23 = vpop.eup %7121  ;;  %5790 = vst.msk [vmem:[%s10651_s14 + $0x1c8] sm:$0xff] %vm11865_vm14, %v5726_v36  ;;  %7133 = vrcp.f32 %v5140_v52  ;;  %v5661_v13 = vadd.f32 %v7184_v37, %v5597_v35  ;;  %v6186_v18 = vclamps-f32 %v11498_v22, 1.0  ;;  %v5662_v36 = vadd.f32 %v7184_v37, %v5598_v24 }
 0x4d0   : > { %v5333_v19 = vmul.f32 %v11090_v25, %v7122_v23  ;;  %7135 = vpow2.f32 %v6120_v49  ;;  %v5535_v23 = vmul.f32 %v11535_v17, %v6185_v30 }
 0x4d1   : > { %v7124_v15 = vpop.eup %7123  ;;  %v4636_v31 = vpop.f32.mrb[196].mxu0 }
 0x4d2   : > { %v5401_v7 = vadd.f32 %v11103_v20, %v5333_v19  ;;  %v5334_v62 = vmul.f32 %v11090_v25, %v7124_v15  ;;  %v11514_v4 = vadd.f32 %v11429_v61, %v4636_v31  ;;  %v4638_v50 = vpop.f32.mrb[197].mxu0  ;;  %v7126_v44 = vpop.eup %7125  ;;  %v5536_v15 = vmul.f32 %v11535_v17, %v6186_v18 }
 0x4d3   : > { %v4639_v59 = vpop.f32.mrb[198].mxu0  ;;  %v5141_v43 = vadd.f32 1.0, %v7126_v44 }
 0x4d4   : > { %v7128_v10 = vpop.eup %7127  ;;  %v5727_v16 = vsel %vm5668_vm9, %v5657_v33, %v5401_v7  ;;  %v5402_v21 = vadd.f32 %v11103_v20, %v5334_v62  ;;  %v6121_v45 = vmul.f32 -1.442695, %v11514_v4  ;;  %v4641_v63 = vpop.f32.mrb[199].mxu0  ;;  %v11525_v0 = vadd.f32 %v11429_v61, %v4639_v59 }
 0x4d5   : > { %5791 = vst.msk [vmem:[%s10651_s14 + $0x1d0] sm:$0xff] %vm11866_vm4, %v5727_v16  ;;  %v5142_v12 = vadd.f32 1.0, %v7128_v10  ;;  %7137 = vrcp.f32 %v5141_v43  ;;  %v5599_v7 = vadd.f32 %v7184_v37, %v5535_v23  ;;  %v6187_v50 = vclamps-f32 %v11514_v4, 1.0 }
 0x4d6   : > { %v5728_v3 = vsel %vm5668_vm9, %v5658_v42, %v5402_v21  ;;  %v6122_v61 = vmul.f32 -1.442695, %v11525_v0  ;;  %v5600_v42 = vadd.f32 %v7184_v37, %v5536_v15  ;;  %v6188_v41 = vclamps-f32 %v11525_v0, 1.0 }
 0x4d7   : > { %v7130_v38 = vpop.eup %7129  ;;  %5792 = vst.msk [vmem:[%s10651_s14 + $0x1d8] sm:$0xff] %vm11867_vm5, %v5728_v3  ;;  %7139 = vrcp.f32 %v5142_v12  ;;  %v5537_v10 = vmul.f32 %v11535_v17, %v6187_v50 }
 0x4d8   : > { %v7132_v56 = vpop.eup %7131  ;;  %v5335_v53 = vmul.f32 %v11535_v17, %v7130_v38  ;;  %7141 = vpow2.f32 %v6121_v45  ;;  %v5538_v21 = vmul.f32 %v11535_v17, %v6188_v41 }
 0x4d9   : > { %v7134_v25 = vpop.eup %7133  ;;  %v5079_v46 = vadd.f32 1.0, %v7132_v56  ;;  %7143 = vpow2.f32 %v6122_v61  ;;  %v5601_v12 = vadd.f32 %v7184_v37, %v5537_v10 }
 0x4da   : > { %v5403_v14 = vadd.f32 %v11103_v20, %v5335_v53  ;;  %v5336_v28 = vmul.f32 %v11535_v17, %v7134_v25  ;;  %v7136_v47 = vpop.eup %7135  ;;  %v5602_v0 = vadd.f32 %v7184_v37, %v5538_v21 }
 0x4db   : > { %7145 = vrcp.f32 %v5079_v46  ;;  %v5080_v26 = vadd.f32 1.0, %v7136_v47 }
 0x4dc   : > { %v5729_v39 = vsel %vm5668_vm9, %v5659_v1, %v5403_v14  ;;  %v5404_v48 = vadd.f32 %v7184_v37, %v5336_v28 }
 0x4dd   : > { %5793 = vst.msk [vmem:[%s10651_s14 + $0x1e0] sm:$0xff] %vm11868_vm6, %v5729_v39  ;;  %7147 = vrcp.f32 %v5080_v26 }
 0x4de   : > { %v5730_v20 = vsel %vm5668_vm9, %v5660_v9, %v5404_v48 }
 0x4df   : > { %5794 = vst.msk [vmem:[%s10651_s14 + $0x1e8] sm:$0xff] %vm11869_vm13, %v5730_v20  ;;  %v7138_v5 = vpop.eup %7137 }
 0x4e0   : > { %v5337_v29 = vmul.f32 %v11535_v17, %v7138_v5 }
 0x4e1   : > { %v7140_v2 = vpop.eup %7139 }
 0x4e2   : > { %v7142_v60 = vpop.eup %7141  ;;  %v5338_v8 = vmul.f32 %v11535_v17, %v7140_v2  ;;  %v5405_v55 = vadd.f32 %v7184_v37, %v5337_v29 }
 0x4e3   : > { %v7144_v51 = vpop.eup %7143  ;;  %v5081_v34 = vadd.f32 1.0, %v7142_v60 }
 0x4e4   : > { %v5406_v52 = vadd.f32 %v7184_v37, %v5338_v8  ;;  %v5082_v40 = vadd.f32 1.0, %v7144_v51  ;;  %v5731_v49 = vsel %vm5668_vm9, %v5661_v13, %v5405_v55 }
 0x4e5   : > { %v7146_v57 = vpop.eup %7145  ;;  %7149 = vrcp.f32 %v5081_v34  ;;  %5795 = vst.msk [vmem:[%s10651_s14 + $0x1f0] sm:$0xff] %vm11870_vm7, %v5731_v49 }
 0x4e6   : > { %v5732_v19 = vsel %vm5668_vm9, %v5662_v36, %v5406_v52  ;;  %v5275_v22 = vmul.f32 %v11535_v17, %v7146_v57  ;;  %7151 = vrcp.f32 %v5082_v40 }
 0x4e7   : > { %5796 = vst.msk [vmem:[%s10651_s14 + $0x1f8] sm:$0xff] %vm11871_vm8, %v5732_v19  ;;  %v7148_v33 = vpop.eup %7147 }
 0x4e8   : > { %v5343_v31 = vadd.f32 %v7184_v37, %v5275_v22  ;;  %v5276_v62 = vmul.f32 %v11535_v17, %v7148_v33 }
 0x4ea   : > { %v5669_v27 = vsel %vm5668_vm9, %v5599_v7, %v5343_v31  ;;  %v5344_v44 = vadd.f32 %v7184_v37, %v5276_v62 }
 0x4eb   : > { %5733 = vst.msk [vmem:[%s10651_s14] sm:$0xff] %vm11872_vm10, %v5669_v27 }
 0x4ec   : > { %v5670_v59 = vsel %vm5668_vm9, %v5600_v42, %v5344_v44 }
 0x4ed   : > { %5734 = vst.msk [vmem:[%s10651_s14 + $0x8] sm:$0xff] %vm11873_vm11, %v5670_v59 }
 0x4ef   : > { %v7150_v16 = vpop.eup %7149 }
 0x4f0   : > { %v7152_v43 = vpop.eup %7151  ;;  %v5277_v4 = vmul.f32 %v11535_v17, %v7150_v16 }
 0x4f1   : > { %v5278_v45 = vmul.f32 %v11535_v17, %v7152_v43 }
 0x4f2   : > { %v5345_v63 = vadd.f32 %v7184_v37, %v5277_v4 }
 0x4f3   : > { %v5346_v3 = vadd.f32 %v7184_v37, %v5278_v45 }
 0x4f4   : > { %v5671_v11 = vsel %vm5668_vm9, %v5601_v12, %v5345_v63 }
 0x4f5   : > { %5735 = vst.msk [vmem:[%s10651_s14 + $0x10] sm:$0xff] %vm11874_vm12, %v5671_v11  ;;  %v5672_v38 = vsel %vm5668_vm9, %v5602_v0, %v5346_v3 }
 0x4f6   : > { %5736 = vst.msk [vmem:[%s10651_s14 + $0x18] sm:$0xff] %vm11875_vm3, %v5672_v38 }
 0x4f7 PF: > { %s19_s11 = sadd.s32 1, %s7207_s11   ;;  %s11876_s30 = smov %s7203_s10 }
 0x4f8   : > { %p16_p5 = scmp.ge.s32.totalorder %s19_s11, 4   ;;  %s11877_s10 = smov %s11879_s12 }
 0x4fa   :  { %18 = sbr.rel (!%p16_p5) target bundleno = 2 (0x2), region = 100 }

</bundles_post_ra>
